<compile_context>
chip_gen: v6e
topology: v6e:2x2x1
jax: 0.10.0
libtpu: 0.0.40
codegen_flags: <defaults>
</compile_context>

<pallas_src>
import functools

import jax
import jax.numpy as jnp
from jax.experimental import pallas as pl
from jax.experimental.pallas import tpu as pltpu

NEG_SLOPE = 0.1      # LeakyReLU slope used by the FixMatch WideResNet BasicBlock
BN_EPS = 1e-5        # PyTorch BatchNorm2d default eps


def _lrelu(y):
    return jnp.where(y >= 0.0, y, NEG_SLOPE * y)


def _fold_bn(gamma, beta, mean, var):
    scale = gamma / jnp.sqrt(var + BN_EPS)
    bias = beta - mean * scale
    return scale, bias


# ------------------------------ fused block kernel ------------------------------

def _make_block_kernel(*, stride, equal_in_out, use_act, B, h, w, cin, cout, ho, wo):
    """One fused BasicBlock: bn1+lrelu -> conv3x3(stride) -> bn2+lrelu -> conv3x3 -> +residual."""
    assert stride in (1, 2)
    assert not (stride == 2 and equal_in_out)

    # Tap tables: entries are (row_block_start_in_pad_scratch, padded_row_start, padded_col_start).
    # stride-1 scratch holds (B, X+2, Y+2, C); tap (ky,kx) is the contiguous window at (ky,kx).
    taps_s1 = [(0, ky, kx) for ky in range(3) for kx in range(3)]
    # stride-2: the 4 space-to-depth quadrants (row-parity, col-parity) each occupy a
    # (B, ho+2, wo+2, cin) slab stacked quadrant-major along the scratch's leading axis.
    # Kernel tap index k maps to (parity, padded_start):
    #   k=0 -> original index 2i-1 -> odd  quadrant, start 0
    #   k=1 -> original index 2i   -> even quadrant, start 1
    #   k=2 -> original index 2i+1 -> odd  quadrant, start 1
    _PS = ((1, 0), (0, 1), (1, 1))
    taps_s2 = []
    for ky in range(3):
        pr, ar = _PS[ky]
        for kx in range(3):
            pc, ac = _PS[kx]
            taps_s2.append(((pr * 2 + pc) * B, ar, ac))

    def zero_halo(ref, rows, hh, ww, c):
        # Zero only the 1-px border; the interior is fully rewritten every step.
        zr = jnp.zeros((rows, 1, ww + 2, c), jnp.bfloat16)
        zc = jnp.zeros((rows, hh + 2, 1, c), jnp.bfloat16)
        ref[:, 0:1, :, :] = zr
        ref[:, hh + 1:hh + 2, :, :] = zr
        ref[:, :, 0:1, :] = zc
        ref[:, :, ww + 1:ww + 2, :] = zc

    def im2col(ref, taps, c):
        # 9 contiguous taps concatenated along the lane axis -> one (M, 9*c) bf16 MXU operand.
        cols = [ref[r0:r0 + B, ar:ar + ho, ac:ac + wo, :] for (r0, ar, ac) in taps]
        return jnp.concatenate(cols, axis=-1).reshape(B * ho * wo, 9 * c)

    def kernel(*refs):
        n_x = 1 if stride == 1 else 4
        x_refs = refs[:n_x]
        s1_ref, b1_ref, w1_ref, s2_ref, b2_ref, w2_ref = refs[n_x:n_x + 6]
        idx = n_x + 6
        ws_ref = None
        if not equal_in_out:
            ws_ref = refs[idx]
            idx += 1
        o_ref, pad1_ref, pad2_ref = refs[idx], refs[idx + 1], refs[idx + 2]

        # Halo zeroing every step keeps the grid axis safely "parallel" (no cross-step
        # scratch dependence) while avoiding full-buffer zero fills.
        if stride == 1:
            zero_halo(pad1_ref, B, h, w, cin)
        else:
            zero_halo(pad1_ref, 4 * B, ho, wo, cin)
        zero_halo(pad2_ref, B, ho, wo, cout)

        # ---- BN1 (folded affine) + LeakyReLU prologue, conv1-input scratch fill ----------
        x_raw = None
        if stride == 1:
            x_raw = x_refs[0][...].astype(jnp.float32).reshape(B * h * w, cin)
            conv1_in = _lrelu(x_raw * s1_ref[...] + b1_ref[...]) if use_act else x_raw
            c1_bf = conv1_in.astype(jnp.bfloat16)
            pad1_ref[0:B, 1:h + 1, 1:w + 1, :] = c1_bf.reshape(B, h, w, cin)
            col1 = im2col(pad1_ref, taps_s1, cin)
            short_in = c1_bf                      # (B*ho*wo, cin); used only if not equal
        else:
            q_bf = []
            for q in range(4):
                xq = x_refs[q][...].astype(jnp.float32).reshape(B * ho * wo, cin)
                aq = _lrelu(xq * s1_ref[...] + b1_ref[...]) if use_act else xq
                q_bf.append(aq.astype(jnp.bfloat16))
            for q in range(4):
                pad1_ref[q * B:(q + 1) * B, 1:ho + 1, 1:wo + 1, :] = (
                    q_bf[q].reshape(B, ho, wo, cin))
            col1 = im2col(pad1_ref, taps_s2, cin)
            short_in = q_bf[0]                    # even/even quadrant == 1x1 stride-2 input

        # ---- conv1 as a single K = 9*cin matmul (bf16 MXU, f32 accumulation) -------------
        acc1 = jnp.dot(col1, w1_ref[...], preferred_element_type=jnp.float32)

        # ---- BN2 + LeakyReLU epilogue ----
        act2 = _lrelu(acc1 * s2_ref[...] + b2_ref[...])
        # TODO(synk): dropout omitted — dropRate defaults to 0.0 and eval-mode F.dropout is a no-op.

        # ---- conv2 (3x3 / stride 1) as a single K = 9*cout matmul -------------------------
        pad2_ref[0:B, 1:ho + 1, 1:wo + 1, :] = act2.astype(jnp.bfloat16).reshape(B, ho, wo, cout)
        col2 = im2col(pad2_ref, taps_s1, cout)
        out = jnp.dot(col2, w2_ref[...], preferred_element_type=jnp.float32)

        # ---- residual: identity, or fused 1x1 (possibly strided) shortcut -----------------
        if equal_in_out:
            out = out + x_raw
        else:
            out = out + jnp.dot(short_in, ws_ref[...], preferred_element_type=jnp.float32)

        o_ref[...] = out.astype(jnp.bfloat16).reshape(B, ho, wo, cout)

    return kernel


# ------------------------------ block / module wrappers -------------------------

def basic_block_forward(x_nhwc, p, stride, equal_in_out, activate_before_residual, batch_tile):
    n, h, w, cin = x_nhwc.shape
    cout = p["conv1_w"].shape[-1]
    assert stride in (1, 2)  # TODO(synk): only the WRN strides (1, 2) are supported.
    if equal_in_out:
        assert stride == 1, "identity shortcut requires stride 1 (as in PyTorch)"
    if stride == 2:
        assert h % 2 == 0 and w % 2 == 0, "stride-2 path assumes even spatial dims"
    ho, wo = h // stride, w // stride
    use_act = equal_in_out or activate_before_residual

    B = batch_tile
    assert n % B == 0
    grid = (n // B,)

    s1, b1 = _fold_bn(p["bn1_gamma"], p["bn1_beta"], p["bn1_mean"], p["bn1_var"])
    s2, b2 = _fold_bn(p["bn2_gamma"], p["bn2_beta"], p["bn2_mean"], p["bn2_var"])
    w1 = p["conv1_w"].reshape(9 * cin, cout).astype(jnp.bfloat16)    # (ky,kx,cin)-major rows
    w2 = p["conv2_w"].reshape(9 * cout, cout).astype(jnp.bfloat16)

    x_bf = x_nhwc.astype(jnp.bfloat16)
    if stride == 1:
        x_inputs = [x_bf]
        x_specs = [pl.BlockSpec((B, h, w, cin), lambda nb: (nb, 0, 0, 0))]
        pad1_shape = (B, h + 2, w + 2, cin)
    else:
        # Space-to-depth quadrants (cheap XLA slices, done once outside the kernel) so the
        # stride-2 conv needs only contiguous reads in-kernel (no strided slicing).
        x_inputs = [x_bf[:, 0::2, 0::2, :], x_bf[:, 0::2, 1::2, :],
                    x_bf[:, 1::2, 0::2, :], x_bf[:, 1::2, 1::2, :]]
        x_specs = [pl.BlockSpec((B, ho, wo, cin), lambda nb: (nb, 0, 0, 0)) for _ in range(4)]
        pad1_shape = (4 * B, ho + 2, wo + 2, cin)

    inputs = x_inputs + [s1.reshape(1, cin), b1.reshape(1, cin), w1,
                         s2.reshape(1, cout), b2.reshape(1, cout), w2]
    in_specs = x_specs + [
        pl.BlockSpec((1, cin), lambda nb: (0, 0)),
        pl.BlockSpec((1, cin), lambda nb: (0, 0)),
        pl.BlockSpec((9 * cin, cout), lambda nb: (0, 0)),
        pl.BlockSpec((1, cout), lambda nb: (0, 0)),
        pl.BlockSpec((1, cout), lambda nb: (0, 0)),
        pl.BlockSpec((9 * cout, cout), lambda nb: (0, 0)),
    ]
    if not equal_in_out:
        inputs.append(p["short_w"].reshape(cin, cout).astype(jnp.bfloat16))
        in_specs.append(pl.BlockSpec((cin, cout), lambda nb: (0, 0)))

    kernel = _make_block_kernel(
        stride=stride, equal_in_out=equal_in_out, use_act=use_act,
        B=B, h=h, w=w, cin=cin, cout=cout, ho=ho, wo=wo)

    # TODO(synk): feature maps too large for VMEM would need spatial row tiling with a halo;
    # not needed at CIFAR/WRN scales.
    out = pl.pallas_call(
        kernel,
        out_shape=jax.ShapeDtypeStruct((n, ho, wo, cout), jnp.bfloat16),
        grid=grid,
        in_specs=in_specs,
        out_specs=pl.BlockSpec((B, ho, wo, cout), lambda nb: (nb, 0, 0, 0)),
        scratch_shapes=[
            pltpu.VMEM(pad1_shape, jnp.bfloat16),                   # padded conv1 input
            pltpu.VMEM((B, ho + 2, wo + 2, cout), jnp.bfloat16),    # padded conv2 input
        ],
        compiler_params=pltpu.CompilerParams(
            dimension_semantics=("parallel",),
            vmem_limit_bytes=48 * 1024 * 1024),
    )(*inputs)
    return out


def _pick_batch_tile(n):
    """Largest divisor of n that keeps >= 2 grid steps (v7x megacore) and a modest per-step set."""
    if n <= 1:
        return 1
    cap = max(1, min(8, n // 2))
    for d in range(cap, 0, -1):
        if n % d == 0:
            return d
    return 1


@functools.partial(jax.jit, static_argnums=(2, 3, 4, 5, 6))
def network_block_forward(x_nchw, params, nb_layers, in_planes, out_planes, stride,
                          activate_before_residual):
    # NCHW (PyTorch) -> NHWC (channels on lanes); bf16 activations between blocks.
    x = jnp.transpose(x_nchw, (0, 2, 3, 1)).astype(jnp.bfloat16)
    bt = _pick_batch_tile(x.shape[0])
    for i in range(int(nb_layers)):
        blk_in = in_planes if i == 0 else out_planes
        blk_stride = stride if i == 0 else 1
        equal = (blk_in == out_planes)
        x = basic_block_forward(x, params[i], blk_stride, equal,
                                activate_before_residual, bt)
    return jnp.transpose(x.astype(jnp.float32), (0, 3, 1, 2))


# -------------------------- deterministic init -----------------------------

def init_params(key, nb_layers, in_planes, out_planes):
    params = []
    for i in range(int(nb_layers)):
        cin = in_planes if i == 0 else out_planes
        ks = jax.random.split(jax.random.fold_in(key, i), 12)
        p = {
            "bn1_gamma": 1.0 + 0.1 * jax.random.normal(ks[0], (cin,), jnp.float32),
            "bn1_beta": 0.1 * jax.random.normal(ks[1], (cin,), jnp.float32),
            "bn1_mean": 0.1 * jax.random.normal(ks[2], (cin,), jnp.float32),
            "bn1_var": jax.random.uniform(ks[3], (cin,), jnp.float32, 0.5, 1.5),
            "conv1_w": jax.random.normal(ks[4], (3, 3, cin, out_planes), jnp.float32)
                       * (2.0 / (9 * cin)) ** 0.5,
            "bn2_gamma": 1.0 + 0.1 * jax.random.normal(ks[5], (out_planes,), jnp.float32),
            "bn2_beta": 0.1 * jax.random.normal(ks[6], (out_planes,), jnp.float32),
            "bn2_mean": 0.1 * jax.random.normal(ks[7], (out_planes,), jnp.float32),
            "bn2_var": jax.random.uniform(ks[8], (out_planes,), jnp.float32, 0.5, 1.5),
            "conv2_w": jax.random.normal(ks[9], (3, 3, out_planes, out_planes), jnp.float32)
                       * (2.0 / (9 * out_planes)) ** 0.5,
        }
        if cin != out_planes:
            p["short_w"] = jax.random.normal(ks[10], (1, 1, cin, out_planes), jnp.float32) \
                           * (2.0 / cin) ** 0.5
        params.append(p)
    return params


# ----------------------------- pure-JAX reference ---------------------------

def _ref_bn_lrelu(x, g, b, m, v):
    y = (x - m) / jnp.sqrt(v + BN_EPS) * g + b
    return jnp.where(y >= 0.0, y, NEG_SLOPE * y)


def _ref_conv(x, w, stride, pad):
    return jax.lax.conv_general_dilated(
        x, w, (stride, stride), ((pad, pad), (pad, pad)),
        dimension_numbers=("NHWC", "HWIO", "NHWC"),
        precision=jax.lax.Precision.HIGHEST)


def ref_network_block(x_nchw, params, nb_layers, in_planes, out_planes, stride,
                      activate_before_residual):
    x = jnp.transpose(x_nchw, (0, 2, 3, 1)).astype(jnp.float32)
    for i in range(int(nb_layers)):
        blk_in = in_planes if i == 0 else out_planes
        blk_stride = stride if i == 0 else 1
        equal = (blk_in == out_planes)
        p = params[i]
        act = _ref_bn_lrelu(x, p["bn1_gamma"], p["bn1_beta"], p["bn1_mean"], p["bn1_var"])
        if (not equal) and activate_before_residual:
            x = act
        conv1_in = act if equal else x
        out = _ref_conv(conv1_in, p["conv1_w"], blk_stride, 1)
        out = _ref_bn_lrelu(out, p["bn2_gamma"], p["bn2_beta"], p["bn2_mean"], p["bn2_var"])
        out = _ref_conv(out, p["conv2_w"], 1, 1)
        res = x if equal else _ref_conv(x, p["short_w"], blk_stride, 0)
        x = res + out
    return jnp.transpose(x, (0, 3, 1, 2))


# ---------------------------------- main ------------------------------------

if __name__ == "__main__":
    key = jax.random.PRNGKey(0)
    k_x, k_p = jax.random.split(key)

    N, C_IN, H, W = 2, 4, 16, 16
    OUT_PLANES, NB_LAYERS, STRIDE = 8, 2, 2
    ABR = True  # activate_before_residual (first NetworkBlock in FixMatch WRN)

    x = jax.random.normal(k_x, (N, C_IN, H, W), dtype=jnp.float32)
    params = init_params(k_p, NB_LAYERS, C_IN, OUT_PLANES)

    out = network_block_forward(x, params, NB_LAYERS, C_IN, OUT_PLANES, STRIDE, ABR)
    out = jax.block_until_ready(out)

    assert out.shape == (N, OUT_PLANES, H // STRIDE, W // STRIDE), out.shape

    ref = jax.block_until_ready(
        ref_network_block(x, params, NB_LAYERS, C_IN, OUT_PLANES, STRIDE, ABR))
    err = float(jnp.max(jnp.abs(out - ref)))
    # bf16 activations + bf16 MXU operands (vs. an f32 reference) loosen the tolerance;
    # a real bug (wrong tap / residual / BN / stride mapping) would show O(1) errors.
    assert err < 2e-1, f"max abs err = {err}"

    print("KERNEL_OK")
</pallas_src>

<mosaic_0001>
module attributes {stable_mosaic.version = 11 : i64} {
  func.func @kernel(%arg0: i32, %arg1: memref<1x8x8x4xbf16, #tpu.memory_space<vmem>>, %arg2: memref<1x8x8x4xbf16, #tpu.memory_space<vmem>>, %arg3: memref<1x8x8x4xbf16, #tpu.memory_space<vmem>>, %arg4: memref<1x8x8x4xbf16, #tpu.memory_space<vmem>>, %arg5: memref<1x4xf32, #tpu.memory_space<vmem>>, %arg6: memref<1x4xf32, #tpu.memory_space<vmem>>, %arg7: memref<36x8xbf16, #tpu.memory_space<vmem>>, %arg8: memref<1x8xf32, #tpu.memory_space<vmem>>, %arg9: memref<1x8xf32, #tpu.memory_space<vmem>>, %arg10: memref<72x8xbf16, #tpu.memory_space<vmem>>, %arg11: memref<4x8xbf16, #tpu.memory_space<vmem>>, %arg12: memref<1x8x8x8xbf16, #tpu.memory_space<vmem>>, %arg13: memref<4x10x10x4xbf16, #tpu.memory_space<vmem>>, %arg14: memref<1x10x10x8xbf16, #tpu.memory_space<vmem>>) attributes {dimension_semantics = [#tpu.dimension_semantics<parallel>], iteration_bounds = array<i64: 2>, scalar_prefetch = 0 : i64, scratch_operands = 2 : i64, tpu.core_type = #tpu.core_type<tc>, window_params = [{transform_indices = @transform_0, window_bounds = array<i64: 1, 8, 8, 4>}, {transform_indices = @transform_1, window_bounds = array<i64: 1, 8, 8, 4>}, {transform_indices = @transform_2, window_bounds = array<i64: 1, 8, 8, 4>}, {transform_indices = @transform_3, window_bounds = array<i64: 1, 8, 8, 4>}, {pipeline_mode = #tpu.pipeline_mode<synchronous>, transform_indices = @transform_4, window_bounds = array<i64: 1, 4>}, {pipeline_mode = #tpu.pipeline_mode<synchronous>, transform_indices = @transform_5, window_bounds = array<i64: 1, 4>}, {pipeline_mode = #tpu.pipeline_mode<synchronous>, transform_indices = @transform_6, window_bounds = array<i64: 36, 8>}, {pipeline_mode = #tpu.pipeline_mode<synchronous>, transform_indices = @transform_7, window_bounds = array<i64: 1, 8>}, {pipeline_mode = #tpu.pipeline_mode<synchronous>, transform_indices = @transform_8, window_bounds = array<i64: 1, 8>}, {pipeline_mode = #tpu.pipeline_mode<synchronous>, transform_indices = @transform_9, window_bounds = array<i64: 72, 8>}, {pipeline_mode = #tpu.pipeline_mode<synchronous>, transform_indices = @transform_10, window_bounds = array<i64: 4, 8>}, {transform_indices = @transform_11, window_bounds = array<i64: 1, 8, 8, 8>}]} {
    %cst = arith.constant 0.000000e+00 : bf16
    %0 = vector.broadcast %cst : bf16 to vector<4x1x10x4xbf16>
    %cst_0 = arith.constant 0.000000e+00 : bf16
    %1 = vector.broadcast %cst_0 : bf16 to vector<4x10x1x4xbf16>
    %c0 = arith.constant 0 : index
    %c0_1 = arith.constant 0 : index
    %c0_2 = arith.constant 0 : index
    %c0_3 = arith.constant 0 : index
    %2 = vector.load %arg13[%c0, %c0_1, %c0_2, %c0_3] : memref<4x10x10x4xbf16, #tpu.memory_space<vmem>>, vector<4x1x10x4xbf16>
    tpu.vector_store %arg13[%c0, %c0_1, %c0_2, %c0_3], %0 {strides = array<i32>} : memref<4x10x10x4xbf16, #tpu.memory_space<vmem>>, vector<4x1x10x4xbf16>,
    %c0_4 = arith.constant 0 : index
    %c9 = arith.constant 9 : index
    %c0_5 = arith.constant 0 : index
    %c0_6 = arith.constant 0 : index
    %3 = vector.load %arg13[%c0_4, %c9, %c0_5, %c0_6] : memref<4x10x10x4xbf16, #tpu.memory_space<vmem>>, vector<4x1x10x4xbf16>
    tpu.vector_store %arg13[%c0_4, %c9, %c0_5, %c0_6], %0 {strides = array<i32>} : memref<4x10x10x4xbf16, #tpu.memory_space<vmem>>, vector<4x1x10x4xbf16>,
    %c0_7 = arith.constant 0 : index
    %c0_8 = arith.constant 0 : index
    %c0_9 = arith.constant 0 : index
    %c0_10 = arith.constant 0 : index
    %4 = vector.load %arg13[%c0_7, %c0_8, %c0_9, %c0_10] : memref<4x10x10x4xbf16, #tpu.memory_space<vmem>>, vector<4x10x1x4xbf16>
    tpu.vector_store %arg13[%c0_7, %c0_8, %c0_9, %c0_10], %1 {strides = array<i32>} : memref<4x10x10x4xbf16, #tpu.memory_space<vmem>>, vector<4x10x1x4xbf16>,
    %c0_11 = arith.constant 0 : index
    %c0_12 = arith.constant 0 : index
    %c9_13 = arith.constant 9 : index
    %c0_14 = arith.constant 0 : index
    %5 = vector.load %arg13[%c0_11, %c0_12, %c9_13, %c0_14] : memref<4x10x10x4xbf16, #tpu.memory_space<vmem>>, vector<4x10x1x4xbf16>
    tpu.vector_store %arg13[%c0_11, %c0_12, %c9_13, %c0_14], %1 {strides = array<i32>} : memref<4x10x10x4xbf16, #tpu.memory_space<vmem>>, vector<4x10x1x4xbf16>,
    %cst_15 = arith.constant 0.000000e+00 : bf16
    %6 = vector.broadcast %cst_15 : bf16 to vector<1x1x10x8xbf16>
    %cst_16 = arith.constant 0.000000e+00 : bf16
    %7 = vector.broadcast %cst_16 : bf16 to vector<1x10x1x8xbf16>
    %c0_17 = arith.constant 0 : index
    %c0_18 = arith.constant 0 : index
    %c0_19 = arith.constant 0 : index
    %c0_20 = arith.constant 0 : index
    %8 = vector.load %arg14[%c0_17, %c0_18, %c0_19, %c0_20] : memref<1x10x10x8xbf16, #tpu.memory_space<vmem>>, vector<1x1x10x8xbf16>
    tpu.vector_store %arg14[%c0_17, %c0_18, %c0_19, %c0_20], %6 {strides = array<i32>} : memref<1x10x10x8xbf16, #tpu.memory_space<vmem>>, vector<1x1x10x8xbf16>,
    %c0_21 = arith.constant 0 : index
    %c9_22 = arith.constant 9 : index
    %c0_23 = arith.constant 0 : index
    %c0_24 = arith.constant 0 : index
    %9 = vector.load %arg14[%c0_21, %c9_22, %c0_23, %c0_24] : memref<1x10x10x8xbf16, #tpu.memory_space<vmem>>, vector<1x1x10x8xbf16>
    tpu.vector_store %arg14[%c0_21, %c9_22, %c0_23, %c0_24], %6 {strides = array<i32>} : memref<1x10x10x8xbf16, #tpu.memory_space<vmem>>, vector<1x1x10x8xbf16>,
    %c0_25 = arith.constant 0 : index
    %c0_26 = arith.constant 0 : index
    %c0_27 = arith.constant 0 : index
    %c0_28 = arith.constant 0 : index
    %10 = vector.load %arg14[%c0_25, %c0_26, %c0_27, %c0_28] : memref<1x10x10x8xbf16, #tpu.memory_space<vmem>>, vector<1x10x1x8xbf16>
    tpu.vector_store %arg14[%c0_25, %c0_26, %c0_27, %c0_28], %7 {strides = array<i32>} : memref<1x10x10x8xbf16, #tpu.memory_space<vmem>>, vector<1x10x1x8xbf16>,
    %c0_29 = arith.constant 0 : index
    %c0_30 = arith.constant 0 : index
    %c9_31 = arith.constant 9 : index
    %c0_32 = arith.constant 0 : index
    %11 = vector.load %arg14[%c0_29, %c0_30, %c9_31, %c0_32] : memref<1x10x10x8xbf16, #tpu.memory_space<vmem>>, vector<1x10x1x8xbf16>
    tpu.vector_store %arg14[%c0_29, %c0_30, %c9_31, %c0_32], %7 {strides = array<i32>} : memref<1x10x10x8xbf16, #tpu.memory_space<vmem>>, vector<1x10x1x8xbf16>,
    %c0_33 = arith.constant 0 : index
    %c0_34 = arith.constant 0 : index
    %c0_35 = arith.constant 0 : index
    %c0_36 = arith.constant 0 : index
    %12 = vector.load %arg1[%c0_33, %c0_34, %c0_35, %c0_36] : memref<1x8x8x4xbf16, #tpu.memory_space<vmem>>, vector<1x8x8x4xbf16>
    %13 = arith.extf %12 : vector<1x8x8x4xbf16> to vector<1x8x8x4xf32>
    %14 = vector.shape_cast %13 : vector<1x8x8x4xf32> to vector<64x4xf32>
    %c0_37 = arith.constant 0 : index
    %c0_38 = arith.constant 0 : index
    %15 = vector.load %arg5[%c0_37, %c0_38] : memref<1x4xf32, #tpu.memory_space<vmem>>, vector<1x4xf32>
    %16 = vector.broadcast %15 : vector<1x4xf32> to vector<64x4xf32>
    %17 = arith.mulf %14, %16 : vector<64x4xf32>
    %c0_39 = arith.constant 0 : index
    %c0_40 = arith.constant 0 : index
    %18 = vector.load %arg6[%c0_39, %c0_40] : memref<1x4xf32, #tpu.memory_space<vmem>>, vector<1x4xf32>
    %19 = vector.broadcast %18 : vector<1x4xf32> to vector<64x4xf32>
    %20 = arith.addf %17, %19 : vector<64x4xf32>
    %cst_41 = arith.constant 0.000000e+00 : f32
    %21 = vector.broadcast %cst_41 : f32 to vector<64x4xf32>
    %22 = arith.cmpf oge, %20, %21 : vector<64x4xf32>
    %cst_42 = arith.constant 1.000000e-01 : f32
    %23 = vector.broadcast %cst_42 : f32 to vector<64x4xf32>
    %24 = arith.mulf %23, %20 : vector<64x4xf32>
    %25 = arith.select %22, %20, %24 : vector<64x4xi1>, vector<64x4xf32>
    %26 = arith.truncf %25 : vector<64x4xf32> to vector<64x4xbf16>
    %c0_43 = arith.constant 0 : index
    %c0_44 = arith.constant 0 : index
    %c0_45 = arith.constant 0 : index
    %c0_46 = arith.constant 0 : index
    %27 = vector.load %arg2[%c0_43, %c0_44, %c0_45, %c0_46] : memref<1x8x8x4xbf16, #tpu.memory_space<vmem>>, vector<1x8x8x4xbf16>
    %28 = arith.extf %27 : vector<1x8x8x4xbf16> to vector<1x8x8x4xf32>
    %29 = vector.shape_cast %28 : vector<1x8x8x4xf32> to vector<64x4xf32>
    %c0_47 = arith.constant 0 : index
    %c0_48 = arith.constant 0 : index
    %30 = vector.load %arg5[%c0_47, %c0_48] : memref<1x4xf32, #tpu.memory_space<vmem>>, vector<1x4xf32>
    %31 = vector.broadcast %30 : vector<1x4xf32> to vector<64x4xf32>
    %32 = arith.mulf %29, %31 : vector<64x4xf32>
    %c0_49 = arith.constant 0 : index
    %c0_50 = arith.constant 0 : index
    %33 = vector.load %arg6[%c0_49, %c0_50] : memref<1x4xf32, #tpu.memory_space<vmem>>, vector<1x4xf32>
    %34 = vector.broadcast %33 : vector<1x4xf32> to vector<64x4xf32>
    %35 = arith.addf %32, %34 : vector<64x4xf32>
    %cst_51 = arith.constant 0.000000e+00 : f32
    %36 = vector.broadcast %cst_51 : f32 to vector<64x4xf32>
    %37 = arith.cmpf oge, %35, %36 : vector<64x4xf32>
    %cst_52 = arith.constant 1.000000e-01 : f32
    %38 = vector.broadcast %cst_52 : f32 to vector<64x4xf32>
    %39 = arith.mulf %38, %35 : vector<64x4xf32>
    %40 = arith.select %37, %35, %39 : vector<64x4xi1>, vector<64x4xf32>
    %41 = arith.truncf %40 : vector<64x4xf32> to vector<64x4xbf16>
    %c0_53 = arith.constant 0 : index
    %c0_54 = arith.constant 0 : index
    %c0_55 = arith.constant 0 : index
    %c0_56 = arith.constant 0 : index
    %42 = vector.load %arg3[%c0_53, %c0_54, %c0_55, %c0_56] : memref<1x8x8x4xbf16, #tpu.memory_space<vmem>>, vector<1x8x8x4xbf16>
    %43 = arith.extf %42 : vector<1x8x8x4xbf16> to vector<1x8x8x4xf32>
    %44 = vector.shape_cast %43 : vector<1x8x8x4xf32> to vector<64x4xf32>
    %c0_57 = arith.constant 0 : index
    %c0_58 = arith.constant 0 : index
    %45 = vector.load %arg5[%c0_57, %c0_58] : memref<1x4xf32, #tpu.memory_space<vmem>>, vector<1x4xf32>
    %46 = vector.broadcast %45 : vector<1x4xf32> to vector<64x4xf32>
    %47 = arith.mulf %44, %46 : vector<64x4xf32>
    %c0_59 = arith.constant 0 : index
    %c0_60 = arith.constant 0 : index
    %48 = vector.load %arg6[%c0_59, %c0_60] : memref<1x4xf32, #tpu.memory_space<vmem>>, vector<1x4xf32>
    %49 = vector.broadcast %48 : vector<1x4xf32> to vector<64x4xf32>
    %50 = arith.addf %47, %49 : vector<64x4xf32>
    %cst_61 = arith.constant 0.000000e+00 : f32
    %51 = vector.broadcast %cst_61 : f32 to vector<64x4xf32>
    %52 = arith.cmpf oge, %50, %51 : vector<64x4xf32>
    %cst_62 = arith.constant 1.000000e-01 : f32
    %53 = vector.broadcast %cst_62 : f32 to vector<64x4xf32>
    %54 = arith.mulf %53, %50 : vector<64x4xf32>
    %55 = arith.select %52, %50, %54 : vector<64x4xi1>, vector<64x4xf32>
    %56 = arith.truncf %55 : vector<64x4xf32> to vector<64x4xbf16>
    %c0_63 = arith.constant 0 : index
    %c0_64 = arith.constant 0 : index
    %c0_65 = arith.constant 0 : index
    %c0_66 = arith.constant 0 : index
    %57 = vector.load %arg4[%c0_63, %c0_64, %c0_65, %c0_66] : memref<1x8x8x4xbf16, #tpu.memory_space<vmem>>, vector<1x8x8x4xbf16>
    %58 = arith.extf %57 : vector<1x8x8x4xbf16> to vector<1x8x8x4xf32>
    %59 = vector.shape_cast %58 : vector<1x8x8x4xf32> to vector<64x4xf32>
    %c0_67 = arith.constant 0 : index
    %c0_68 = arith.constant 0 : index
    %60 = vector.load %arg5[%c0_67, %c0_68] : memref<1x4xf32, #tpu.memory_space<vmem>>, vector<1x4xf32>
    %61 = vector.broadcast %60 : vector<1x4xf32> to vector<64x4xf32>
    %62 = arith.mulf %59, %61 : vector<64x4xf32>
    %c0_69 = arith.constant 0 : index
    %c0_70 = arith.constant 0 : index
    %63 = vector.load %arg6[%c0_69, %c0_70] : memref<1x4xf32, #tpu.memory_space<vmem>>, vector<1x4xf32>
    %64 = vector.broadcast %63 : vector<1x4xf32> to vector<64x4xf32>
    %65 = arith.addf %62, %64 : vector<64x4xf32>
    %cst_71 = arith.constant 0.000000e+00 : f32
    %66 = vector.broadcast %cst_71 : f32 to vector<64x4xf32>
    %67 = arith.cmpf oge, %65, %66 : vector<64x4xf32>
    %cst_72 = arith.constant 1.000000e-01 : f32
    %68 = vector.broadcast %cst_72 : f32 to vector<64x4xf32>
    %69 = arith.mulf %68, %65 : vector<64x4xf32>
    %70 = arith.select %67, %65, %69 : vector<64x4xi1>, vector<64x4xf32>
    %71 = arith.truncf %70 : vector<64x4xf32> to vector<64x4xbf16>
    %72 = vector.shape_cast %26 : vector<64x4xbf16> to vector<1x8x8x4xbf16>
    %c0_73 = arith.constant 0 : index
    %c1 = arith.constant 1 : index
    %c1_74 = arith.constant 1 : index
    %c0_75 = arith.constant 0 : index
    %73 = vector.load %arg13[%c0_73, %c1, %c1_74, %c0_75] : memref<4x10x10x4xbf16, #tpu.memory_space<vmem>>, vector<1x8x8x4xbf16>
    tpu.vector_store %arg13[%c0_73, %c1, %c1_74, %c0_75], %72 {strides = array<i32>} : memref<4x10x10x4xbf16, #tpu.memory_space<vmem>>, vector<1x8x8x4xbf16>,
    %74 = vector.shape_cast %41 : vector<64x4xbf16> to vector<1x8x8x4xbf16>
    %c1_76 = arith.constant 1 : index
    %c1_77 = arith.constant 1 : index
    %c1_78 = arith.constant 1 : index
    %c0_79 = arith.constant 0 : index
    %75 = vector.load %arg13[%c1_76, %c1_77, %c1_78, %c0_79] : memref<4x10x10x4xbf16, #tpu.memory_space<vmem>>, vector<1x8x8x4xbf16>
    tpu.vector_store %arg13[%c1_76, %c1_77, %c1_78, %c0_79], %74 {strides = array<i32>} : memref<4x10x10x4xbf16, #tpu.memory_space<vmem>>, vector<1x8x8x4xbf16>,
    %76 = vector.shape_cast %56 : vector<64x4xbf16> to vector<1x8x8x4xbf16>
    %c2 = arith.constant 2 : index
    %c1_80 = arith.constant 1 : index
    %c1_81 = arith.constant 1 : index
    %c0_82 = arith.constant 0 : index
    %77 = vector.load %arg13[%c2, %c1_80, %c1_81, %c0_82] : memref<4x10x10x4xbf16, #tpu.memory_space<vmem>>, vector<1x8x8x4xbf16>
    tpu.vector_store %arg13[%c2, %c1_80, %c1_81, %c0_82], %76 {strides = array<i32>} : memref<4x10x10x4xbf16, #tpu.memory_space<vmem>>, vector<1x8x8x4xbf16>,
    %78 = vector.shape_cast %71 : vector<64x4xbf16> to vector<1x8x8x4xbf16>
    %c3 = arith.constant 3 : index
    %c1_83 = arith.constant 1 : index
    %c1_84 = arith.constant 1 : index
    %c0_85 = arith.constant 0 : index
    %79 = vector.load %arg13[%c3, %c1_83, %c1_84, %c0_85] : memref<4x10x10x4xbf16, #tpu.memory_space<vmem>>, vector<1x8x8x4xbf16>
    tpu.vector_store %arg13[%c3, %c1_83, %c1_84, %c0_85], %78 {strides = array<i32>} : memref<4x10x10x4xbf16, #tpu.memory_space<vmem>>, vector<1x8x8x4xbf16>,
    %c3_86 = arith.constant 3 : index
    %c0_87 = arith.constant 0 : index
    %c0_88 = arith.constant 0 : index
    %c0_89 = arith.constant 0 : index
    %80 = vector.load %arg13[%c3_86, %c0_87, %c0_88, %c0_89] : memref<4x10x10x4xbf16, #tpu.memory_space<vmem>>, vector<1x8x8x4xbf16>
    %c2_90 = arith.constant 2 : index
    %c0_91 = arith.constant 0 : index
    %c1_92 = arith.constant 1 : index
    %c0_93 = arith.constant 0 : index
    %81 = vector.load %arg13[%c2_90, %c0_91, %c1_92, %c0_93] : memref<4x10x10x4xbf16, #tpu.memory_space<vmem>>, vector<1x8x8x4xbf16>
    %c3_94 = arith.constant 3 : index
    %c0_95 = arith.constant 0 : index
    %c1_96 = arith.constant 1 : index
    %c0_97 = arith.constant 0 : index
    %82 = vector.load %arg13[%c3_94, %c0_95, %c1_96, %c0_97] : memref<4x10x10x4xbf16, #tpu.memory_space<vmem>>, vector<1x8x8x4xbf16>
    %c1_98 = arith.constant 1 : index
    %c1_99 = arith.constant 1 : index
    %c0_100 = arith.constant 0 : index
    %c0_101 = arith.constant 0 : index
    %83 = vector.load %arg13[%c1_98, %c1_99, %c0_100, %c0_101] : memref<4x10x10x4xbf16, #tpu.memory_space<vmem>>, vector<1x8x8x4xbf16>
    %c0_102 = arith.constant 0 : index
    %c1_103 = arith.constant 1 : index
    %c1_104 = arith.constant 1 : index
    %c0_105 = arith.constant 0 : index
    %84 = vector.load %arg13[%c0_102, %c1_103, %c1_104, %c0_105] : memref<4x10x10x4xbf16, #tpu.memory_space<vmem>>, vector<1x8x8x4xbf16>
    %c1_106 = arith.constant 1 : index
    %c1_107 = arith.constant 1 : index
    %c1_108 = arith.constant 1 : index
    %c0_109 = arith.constant 0 : index
    %85 = vector.load %arg13[%c1_106, %c1_107, %c1_108, %c0_109] : memref<4x10x10x4xbf16, #tpu.memory_space<vmem>>, vector<1x8x8x4xbf16>
    %c3_110 = arith.constant 3 : index
    %c1_111 = arith.constant 1 : index
    %c0_112 = arith.constant 0 : index
    %c0_113 = arith.constant 0 : index
    %86 = vector.load %arg13[%c3_110, %c1_111, %c0_112, %c0_113] : memref<4x10x10x4xbf16, #tpu.memory_space<vmem>>, vector<1x8x8x4xbf16>
    %c2_114 = arith.constant 2 : index
    %c1_115 = arith.constant 1 : index
    %c1_116 = arith.constant 1 : index
    %c0_117 = arith.constant 0 : index
    %87 = vector.load %arg13[%c2_114, %c1_115, %c1_116, %c0_117] : memref<4x10x10x4xbf16, #tpu.memory_space<vmem>>, vector<1x8x8x4xbf16>
    %c3_118 = arith.constant 3 : index
    %c1_119 = arith.constant 1 : index
    %c1_120 = arith.constant 1 : index
    %c0_121 = arith.constant 0 : index
    %88 = vector.load %arg13[%c3_118, %c1_119, %c1_120, %c0_121] : memref<4x10x10x4xbf16, #tpu.memory_space<vmem>>, vector<1x8x8x4xbf16>
    %89 = tpu.concatenate %80, %81, %82, %83, %84, %85, %86, %87, %88 in 3 : vector<1x8x8x4xbf16>, vector<1x8x8x4xbf16>, vector<1x8x8x4xbf16>, vector<1x8x8x4xbf16>, vector<1x8x8x4xbf16>, vector<1x8x8x4xbf16>, vector<1x8x8x4xbf16>, vector<1x8x8x4xbf16>, vector<1x8x8x4xbf16> -> vector<1x8x8x36xbf16>
    %90 = vector.shape_cast %89 : vector<1x8x8x36xbf16> to vector<64x36xbf16>
    %c0_122 = arith.constant 0 : index
    %c0_123 = arith.constant 0 : index
    %91 = vector.load %arg7[%c0_122, %c0_123] : memref<36x8xbf16, #tpu.memory_space<vmem>>, vector<36x8xbf16>
    %cst_124 = arith.constant dense<0.000000e+00> : vector<64x8xf32>
    %92 = tpu.matmul %90, %91, %cst_124 {dimension_numbers = #tpu.dot_dimension_numbers<[1], [0], [0], [1], [0, 0, 1, 1], [], []>} : vector<64x36xbf16>, vector<36x8xbf16>, vector<64x8xf32> -> vector<64x8xf32>
    %c0_125 = arith.constant 0 : index
    %c0_126 = arith.constant 0 : index
    %93 = vector.load %arg8[%c0_125, %c0_126] : memref<1x8xf32, #tpu.memory_space<vmem>>, vector<1x8xf32>
    %94 = vector.broadcast %93 : vector<1x8xf32> to vector<64x8xf32>
    %95 = arith.mulf %92, %94 : vector<64x8xf32>
    %c0_127 = arith.constant 0 : index
    %c0_128 = arith.constant 0 : index
    %96 = vector.load %arg9[%c0_127, %c0_128] : memref<1x8xf32, #tpu.memory_space<vmem>>, vector<1x8xf32>
    %97 = vector.broadcast %96 : vector<1x8xf32> to vector<64x8xf32>
    %98 = arith.addf %95, %97 : vector<64x8xf32>
    %cst_129 = arith.constant 0.000000e+00 : f32
    %99 = vector.broadcast %cst_129 : f32 to vector<64x8xf32>
    %100 = arith.cmpf oge, %98, %99 : vector<64x8xf32>
    %cst_130 = arith.constant 1.000000e-01 : f32
    %101 = vector.broadcast %cst_130 : f32 to vector<64x8xf32>
    %102 = arith.mulf %101, %98 : vector<64x8xf32>
    %103 = arith.select %100, %98, %102 : vector<64x8xi1>, vector<64x8xf32>
    %104 = arith.truncf %103 : vector<64x8xf32> to vector<64x8xbf16>
    %105 = vector.shape_cast %104 : vector<64x8xbf16> to vector<1x8x8x8xbf16>
    %c0_131 = arith.constant 0 : index
    %c1_132 = arith.constant 1 : index
    %c1_133 = arith.constant 1 : index
    %c0_134 = arith.constant 0 : index
    %106 = vector.load %arg14[%c0_131, %c1_132, %c1_133, %c0_134] : memref<1x10x10x8xbf16, #tpu.memory_space<vmem>>, vector<1x8x8x8xbf16>
    tpu.vector_store %arg14[%c0_131, %c1_132, %c1_133, %c0_134], %105 {strides = array<i32>} : memref<1x10x10x8xbf16, #tpu.memory_space<vmem>>, vector<1x8x8x8xbf16>,
    %c0_135 = arith.constant 0 : index
    %c0_136 = arith.constant 0 : index
    %c0_137 = arith.constant 0 : index
    %c0_138 = arith.constant 0 : index
    %107 = vector.load %arg14[%c0_135, %c0_136, %c0_137, %c0_138] : memref<1x10x10x8xbf16, #tpu.memory_space<vmem>>, vector<1x8x8x8xbf16>
    %c0_139 = arith.constant 0 : index
    %c0_140 = arith.constant 0 : index
    %c1_141 = arith.constant 1 : index
    %c0_142 = arith.constant 0 : index
    %108 = vector.load %arg14[%c0_139, %c0_140, %c1_141, %c0_142] : memref<1x10x10x8xbf16, #tpu.memory_space<vmem>>, vector<1x8x8x8xbf16>
    %c0_143 = arith.constant 0 : index
    %c0_144 = arith.constant 0 : index
    %c2_145 = arith.constant 2 : index
    %c0_146 = arith.constant 0 : index
    %109 = vector.load %arg14[%c0_143, %c0_144, %c2_145, %c0_146] : memref<1x10x10x8xbf16, #tpu.memory_space<vmem>>, vector<1x8x8x8xbf16>
    %c0_147 = arith.constant 0 : index
    %c1_148 = arith.constant 1 : index
    %c0_149 = arith.constant 0 : index
    %c0_150 = arith.constant 0 : index
    %110 = vector.load %arg14[%c0_147, %c1_148, %c0_149, %c0_150] : memref<1x10x10x8xbf16, #tpu.memory_space<vmem>>, vector<1x8x8x8xbf16>
    %c0_151 = arith.constant 0 : index
    %c1_152 = arith.constant 1 : index
    %c1_153 = arith.constant 1 : index
    %c0_154 = arith.constant 0 : index
    %111 = vector.load %arg14[%c0_151, %c1_152, %c1_153, %c0_154] : memref<1x10x10x8xbf16, #tpu.memory_space<vmem>>, vector<1x8x8x8xbf16>
    %c0_155 = arith.constant 0 : index
    %c1_156 = arith.constant 1 : index
    %c2_157 = arith.constant 2 : index
    %c0_158 = arith.constant 0 : index
    %112 = vector.load %arg14[%c0_155, %c1_156, %c2_157, %c0_158] : memref<1x10x10x8xbf16, #tpu.memory_space<vmem>>, vector<1x8x8x8xbf16>
    %c0_159 = arith.constant 0 : index
    %c2_160 = arith.constant 2 : index
    %c0_161 = arith.constant 0 : index
    %c0_162 = arith.constant 0 : index
    %113 = vector.load %arg14[%c0_159, %c2_160, %c0_161, %c0_162] : memref<1x10x10x8xbf16, #tpu.memory_space<vmem>>, vector<1x8x8x8xbf16>
    %c0_163 = arith.constant 0 : index
    %c2_164 = arith.constant 2 : index
    %c1_165 = arith.constant 1 : index
    %c0_166 = arith.constant 0 : index
    %114 = vector.load %arg14[%c0_163, %c2_164, %c1_165, %c0_166] : memref<1x10x10x8xbf16, #tpu.memory_space<vmem>>, vector<1x8x8x8xbf16>
    %c0_167 = arith.constant 0 : index
    %c2_168 = arith.constant 2 : index
    %c2_169 = arith.constant 2 : index
    %c0_170 = arith.constant 0 : index
    %115 = vector.load %arg14[%c0_167, %c2_168, %c2_169, %c0_170] : memref<1x10x10x8xbf16, #tpu.memory_space<vmem>>, vector<1x8x8x8xbf16>
    %116 = tpu.concatenate %107, %108, %109, %110, %111, %112, %113, %114, %115 in 3 : vector<1x8x8x8xbf16>, vector<1x8x8x8xbf16>, vector<1x8x8x8xbf16>, vector<1x8x8x8xbf16>, vector<1x8x8x8xbf16>, vector<1x8x8x8xbf16>, vector<1x8x8x8xbf16>, vector<1x8x8x8xbf16>, vector<1x8x8x8xbf16> -> vector<1x8x8x72xbf16>
    %117 = vector.shape_cast %116 : vector<1x8x8x72xbf16> to vector<64x72xbf16>
    %c0_171 = arith.constant 0 : index
    %c0_172 = arith.constant 0 : index
    %118 = vector.load %arg10[%c0_171, %c0_172] : memref<72x8xbf16, #tpu.memory_space<vmem>>, vector<72x8xbf16>
    %cst_173 = arith.constant dense<0.000000e+00> : vector<64x8xf32>
    %119 = tpu.matmul %117, %118, %cst_173 {dimension_numbers = #tpu.dot_dimension_numbers<[1], [0], [0], [1], [0, 0, 1, 1], [], []>} : vector<64x72xbf16>, vector<72x8xbf16>, vector<64x8xf32> -> vector<64x8xf32>
    %c0_174 = arith.constant 0 : index
    %c0_175 = arith.constant 0 : index
    %120 = vector.load %arg11[%c0_174, %c0_175] : memref<4x8xbf16, #tpu.memory_space<vmem>>, vector<4x8xbf16>
    %cst_176 = arith.constant dense<0.000000e+00> : vector<64x8xf32>
    %121 = tpu.matmul %26, %120, %cst_176 {dimension_numbers = #tpu.dot_dimension_numbers<[1], [0], [0], [1], [0, 0, 1, 1], [], []>} : vector<64x4xbf16>, vector<4x8xbf16>, vector<64x8xf32> -> vector<64x8xf32>
    %122 = arith.addf %119, %121 : vector<64x8xf32>
    %123 = arith.truncf %122 : vector<64x8xf32> to vector<64x8xbf16>
    %124 = vector.shape_cast %123 : vector<64x8xbf16> to vector<1x8x8x8xbf16>
    %c0_177 = arith.constant 0 : index
    %c0_178 = arith.constant 0 : index
    %c0_179 = arith.constant 0 : index
    %c0_180 = arith.constant 0 : index
    %125 = vector.load %arg12[%c0_177, %c0_178, %c0_179, %c0_180] : memref<1x8x8x8xbf16, #tpu.memory_space<vmem>>, vector<1x8x8x8xbf16>
    tpu.vector_store %arg12[%c0_177, %c0_178, %c0_179, %c0_180], %124 {strides = array<i32>} : memref<1x8x8x8xbf16, #tpu.memory_space<vmem>>, vector<1x8x8x8xbf16>,
    return
  }
  func.func @transform_0(%arg0: i32) -> (i32, i32, i32, i32) {
    %c0_i32 = arith.constant 0 : i32
    %c0_i32_0 = arith.constant 0 : i32
    %c0_i32_1 = arith.constant 0 : i32
    %c0_i32_2 = arith.constant 0 : i32
    return %arg0, %c0_i32, %c0_i32_0, %c0_i32_1 : i32, i32, i32, i32
  }
  func.func @transform_1(%arg0: i32) -> (i32, i32, i32, i32) {
    %c0_i32 = arith.constant 0 : i32
    %c0_i32_0 = arith.constant 0 : i32
    %c0_i32_1 = arith.constant 0 : i32
    %c0_i32_2 = arith.constant 0 : i32
    return %arg0, %c0_i32, %c0_i32_0, %c0_i32_1 : i32, i32, i32, i32
  }
  func.func @transform_2(%arg0: i32) -> (i32, i32, i32, i32) {
    %c0_i32 = arith.constant 0 : i32
    %c0_i32_0 = arith.constant 0 : i32
    %c0_i32_1 = arith.constant 0 : i32
    %c0_i32_2 = arith.constant 0 : i32
    return %arg0, %c0_i32, %c0_i32_0, %c0_i32_1 : i32, i32, i32, i32
  }
  func.func @transform_3(%arg0: i32) -> (i32, i32, i32, i32) {
    %c0_i32 = arith.constant 0 : i32
    %c0_i32_0 = arith.constant 0 : i32
    %c0_i32_1 = arith.constant 0 : i32
    %c0_i32_2 = arith.constant 0 : i32
    return %arg0, %c0_i32, %c0_i32_0, %c0_i32_1 : i32, i32, i32, i32
  }
  func.func @transform_4(%arg0: i32) -> (i32, i32) {
    %c0_i32 = arith.constant 0 : i32
    %c0_i32_0 = arith.constant 0 : i32
    %c0_i32_1 = arith.constant 0 : i32
    return %c0_i32, %c0_i32_0 : i32, i32
  }
  func.func @transform_5(%arg0: i32) -> (i32, i32) {
    %c0_i32 = arith.constant 0 : i32
    %c0_i32_0 = arith.constant 0 : i32
    %c0_i32_1 = arith.constant 0 : i32
    return %c0_i32, %c0_i32_0 : i32, i32
  }
  func.func @transform_6(%arg0: i32) -> (i32, i32) {
    %c0_i32 = arith.constant 0 : i32
    %c0_i32_0 = arith.constant 0 : i32
    %c0_i32_1 = arith.constant 0 : i32
    return %c0_i32, %c0_i32_0 : i32, i32
  }
  func.func @transform_7(%arg0: i32) -> (i32, i32) {
    %c0_i32 = arith.constant 0 : i32
    %c0_i32_0 = arith.constant 0 : i32
    %c0_i32_1 = arith.constant 0 : i32
    return %c0_i32, %c0_i32_0 : i32, i32
  }
  func.func @transform_8(%arg0: i32) -> (i32, i32) {
    %c0_i32 = arith.constant 0 : i32
    %c0_i32_0 = arith.constant 0 : i32
    %c0_i32_1 = arith.constant 0 : i32
    return %c0_i32, %c0_i32_0 : i32, i32
  }
  func.func @transform_9(%arg0: i32) -> (i32, i32) {
    %c0_i32 = arith.constant 0 : i32
    %c0_i32_0 = arith.constant 0 : i32
    %c0_i32_1 = arith.constant 0 : i32
    return %c0_i32, %c0_i32_0 : i32, i32
  }
  func.func @transform_10(%arg0: i32) -> (i32, i32) {
    %c0_i32 = arith.constant 0 : i32
    %c0_i32_0 = arith.constant 0 : i32
    %c0_i32_1 = arith.constant 0 : i32
    return %c0_i32, %c0_i32_0 : i32, i32
  }
  func.func @transform_11(%arg0: i32) -> (i32, i32, i32, i32) {
    %c0_i32 = arith.constant 0 : i32
    %c0_i32_0 = arith.constant 0 : i32
    %c0_i32_1 = arith.constant 0 : i32
    %c0_i32_2 = arith.constant 0 : i32
    return %arg0, %c0_i32, %c0_i32_0, %c0_i32_1 : i32, i32, i32, i32
  }
}

module attributes {stable_mosaic.version = 11 : i64} {
  func.func @kernel(%arg0: i32, %arg1: memref<1x8x8x8xbf16, #tpu.memory_space<vmem>>, %arg2: memref<1x8xf32, #tpu.memory_space<vmem>>, %arg3: memref<1x8xf32, #tpu.memory_space<vmem>>, %arg4: memref<72x8xbf16, #tpu.memory_space<vmem>>, %arg5: memref<1x8xf32, #tpu.memory_space<vmem>>, %arg6: memref<1x8xf32, #tpu.memory_space<vmem>>, %arg7: memref<72x8xbf16, #tpu.memory_space<vmem>>, %arg8: memref<1x8x8x8xbf16, #tpu.memory_space<vmem>>, %arg9: memref<1x10x10x8xbf16, #tpu.memory_space<vmem>>, %arg10: memref<1x10x10x8xbf16, #tpu.memory_space<vmem>>) attributes {dimension_semantics = [#tpu.dimension_semantics<parallel>], iteration_bounds = array<i64: 2>, scalar_prefetch = 0 : i64, scratch_operands = 2 : i64, tpu.core_type = #tpu.core_type<tc>, window_params = [{transform_indices = @transform_0, window_bounds = array<i64: 1, 8, 8, 8>}, {pipeline_mode = #tpu.pipeline_mode<synchronous>, transform_indices = @transform_1, window_bounds = array<i64: 1, 8>}, {pipeline_mode = #tpu.pipeline_mode<synchronous>, transform_indices = @transform_2, window_bounds = array<i64: 1, 8>}, {pipeline_mode = #tpu.pipeline_mode<synchronous>, transform_indices = @transform_3, window_bounds = array<i64: 72, 8>}, {pipeline_mode = #tpu.pipeline_mode<synchronous>, transform_indices = @transform_4, window_bounds = array<i64: 1, 8>}, {pipeline_mode = #tpu.pipeline_mode<synchronous>, transform_indices = @transform_5, window_bounds = array<i64: 1, 8>}, {pipeline_mode = #tpu.pipeline_mode<synchronous>, transform_indices = @transform_6, window_bounds = array<i64: 72, 8>}, {transform_indices = @transform_7, window_bounds = array<i64: 1, 8, 8, 8>}]} {
    %cst = arith.constant 0.000000e+00 : bf16
    %0 = vector.broadcast %cst : bf16 to vector<1x1x10x8xbf16>
    %cst_0 = arith.constant 0.000000e+00 : bf16
    %1 = vector.broadcast %cst_0 : bf16 to vector<1x10x1x8xbf16>
    %c0 = arith.constant 0 : index
    %c0_1 = arith.constant 0 : index
    %c0_2 = arith.constant 0 : index
    %c0_3 = arith.constant 0 : index
    %2 = vector.load %arg9[%c0, %c0_1, %c0_2, %c0_3] : memref<1x10x10x8xbf16, #tpu.memory_space<vmem>>, vector<1x1x10x8xbf16>
    tpu.vector_store %arg9[%c0, %c0_1, %c0_2, %c0_3], %0 {strides = array<i32>} : memref<1x10x10x8xbf16, #tpu.memory_space<vmem>>, vector<1x1x10x8xbf16>,
    %c0_4 = arith.constant 0 : index
    %c9 = arith.constant 9 : index
    %c0_5 = arith.constant 0 : index
    %c0_6 = arith.constant 0 : index
    %3 = vector.load %arg9[%c0_4, %c9, %c0_5, %c0_6] : memref<1x10x10x8xbf16, #tpu.memory_space<vmem>>, vector<1x1x10x8xbf16>
    tpu.vector_store %arg9[%c0_4, %c9, %c0_5, %c0_6], %0 {strides = array<i32>} : memref<1x10x10x8xbf16, #tpu.memory_space<vmem>>, vector<1x1x10x8xbf16>,
    %c0_7 = arith.constant 0 : index
    %c0_8 = arith.constant 0 : index
    %c0_9 = arith.constant 0 : index
    %c0_10 = arith.constant 0 : index
    %4 = vector.load %arg9[%c0_7, %c0_8, %c0_9, %c0_10] : memref<1x10x10x8xbf16, #tpu.memory_space<vmem>>, vector<1x10x1x8xbf16>
    tpu.vector_store %arg9[%c0_7, %c0_8, %c0_9, %c0_10], %1 {strides = array<i32>} : memref<1x10x10x8xbf16, #tpu.memory_space<vmem>>, vector<1x10x1x8xbf16>,
    %c0_11 = arith.constant 0 : index
    %c0_12 = arith.constant 0 : index
    %c9_13 = arith.constant 9 : index
    %c0_14 = arith.constant 0 : index
    %5 = vector.load %arg9[%c0_11, %c0_12, %c9_13, %c0_14] : memref<1x10x10x8xbf16, #tpu.memory_space<vmem>>, vector<1x10x1x8xbf16>
    tpu.vector_store %arg9[%c0_11, %c0_12, %c9_13, %c0_14], %1 {strides = array<i32>} : memref<1x10x10x8xbf16, #tpu.memory_space<vmem>>, vector<1x10x1x8xbf16>,
    %cst_15 = arith.constant 0.000000e+00 : bf16
    %6 = vector.broadcast %cst_15 : bf16 to vector<1x1x10x8xbf16>
    %cst_16 = arith.constant 0.000000e+00 : bf16
    %7 = vector.broadcast %cst_16 : bf16 to vector<1x10x1x8xbf16>
    %c0_17 = arith.constant 0 : index
    %c0_18 = arith.constant 0 : index
    %c0_19 = arith.constant 0 : index
    %c0_20 = arith.constant 0 : index
    %8 = vector.load %arg10[%c0_17, %c0_18, %c0_19, %c0_20] : memref<1x10x10x8xbf16, #tpu.memory_space<vmem>>, vector<1x1x10x8xbf16>
    tpu.vector_store %arg10[%c0_17, %c0_18, %c0_19, %c0_20], %6 {strides = array<i32>} : memref<1x10x10x8xbf16, #tpu.memory_space<vmem>>, vector<1x1x10x8xbf16>,
    %c0_21 = arith.constant 0 : index
    %c9_22 = arith.constant 9 : index
    %c0_23 = arith.constant 0 : index
    %c0_24 = arith.constant 0 : index
    %9 = vector.load %arg10[%c0_21, %c9_22, %c0_23, %c0_24] : memref<1x10x10x8xbf16, #tpu.memory_space<vmem>>, vector<1x1x10x8xbf16>
    tpu.vector_store %arg10[%c0_21, %c9_22, %c0_23, %c0_24], %6 {strides = array<i32>} : memref<1x10x10x8xbf16, #tpu.memory_space<vmem>>, vector<1x1x10x8xbf16>,
    %c0_25 = arith.constant 0 : index
    %c0_26 = arith.constant 0 : index
    %c0_27 = arith.constant 0 : index
    %c0_28 = arith.constant 0 : index
    %10 = vector.load %arg10[%c0_25, %c0_26, %c0_27, %c0_28] : memref<1x10x10x8xbf16, #tpu.memory_space<vmem>>, vector<1x10x1x8xbf16>
    tpu.vector_store %arg10[%c0_25, %c0_26, %c0_27, %c0_28], %7 {strides = array<i32>} : memref<1x10x10x8xbf16, #tpu.memory_space<vmem>>, vector<1x10x1x8xbf16>,
    %c0_29 = arith.constant 0 : index
    %c0_30 = arith.constant 0 : index
    %c9_31 = arith.constant 9 : index
    %c0_32 = arith.constant 0 : index
    %11 = vector.load %arg10[%c0_29, %c0_30, %c9_31, %c0_32] : memref<1x10x10x8xbf16, #tpu.memory_space<vmem>>, vector<1x10x1x8xbf16>
    tpu.vector_store %arg10[%c0_29, %c0_30, %c9_31, %c0_32], %7 {strides = array<i32>} : memref<1x10x10x8xbf16, #tpu.memory_space<vmem>>, vector<1x10x1x8xbf16>,
    %c0_33 = arith.constant 0 : index
    %c0_34 = arith.constant 0 : index
    %c0_35 = arith.constant 0 : index
    %c0_36 = arith.constant 0 : index
    %12 = vector.load %arg1[%c0_33, %c0_34, %c0_35, %c0_36] : memref<1x8x8x8xbf16, #tpu.memory_space<vmem>>, vector<1x8x8x8xbf16>
    %13 = arith.extf %12 : vector<1x8x8x8xbf16> to vector<1x8x8x8xf32>
    %14 = vector.shape_cast %13 : vector<1x8x8x8xf32> to vector<64x8xf32>
    %c0_37 = arith.constant 0 : index
    %c0_38 = arith.constant 0 : index
    %15 = vector.load %arg2[%c0_37, %c0_38] : memref<1x8xf32, #tpu.memory_space<vmem>>, vector<1x8xf32>
    %16 = vector.broadcast %15 : vector<1x8xf32> to vector<64x8xf32>
    %17 = arith.mulf %14, %16 : vector<64x8xf32>
    %c0_39 = arith.constant 0 : index
    %c0_40 = arith.constant 0 : index
    %18 = vector.load %arg3[%c0_39, %c0_40] : memref<1x8xf32, #tpu.memory_space<vmem>>, vector<1x8xf32>
    %19 = vector.broadcast %18 : vector<1x8xf32> to vector<64x8xf32>
    %20 = arith.addf %17, %19 : vector<64x8xf32>
    %cst_41 = arith.constant 0.000000e+00 : f32
    %21 = vector.broadcast %cst_41 : f32 to vector<64x8xf32>
    %22 = arith.cmpf oge, %20, %21 : vector<64x8xf32>
    %cst_42 = arith.constant 1.000000e-01 : f32
    %23 = vector.broadcast %cst_42 : f32 to vector<64x8xf32>
    %24 = arith.mulf %23, %20 : vector<64x8xf32>
    %25 = arith.select %22, %20, %24 : vector<64x8xi1>, vector<64x8xf32>
    %26 = arith.truncf %25 : vector<64x8xf32> to vector<64x8xbf16>
    %27 = vector.shape_cast %26 : vector<64x8xbf16> to vector<1x8x8x8xbf16>
    %c0_43 = arith.constant 0 : index
    %c1 = arith.constant 1 : index
    %c1_44 = arith.constant 1 : index
    %c0_45 = arith.constant 0 : index
    %28 = vector.load %arg9[%c0_43, %c1, %c1_44, %c0_45] : memref<1x10x10x8xbf16, #tpu.memory_space<vmem>>, vector<1x8x8x8xbf16>
    tpu.vector_store %arg9[%c0_43, %c1, %c1_44, %c0_45], %27 {strides = array<i32>} : memref<1x10x10x8xbf16, #tpu.memory_space<vmem>>, vector<1x8x8x8xbf16>,
    %c0_46 = arith.constant 0 : index
    %c0_47 = arith.constant 0 : index
    %c0_48 = arith.constant 0 : index
    %c0_49 = arith.constant 0 : index
    %29 = vector.load %arg9[%c0_46, %c0_47, %c0_48, %c0_49] : memref<1x10x10x8xbf16, #tpu.memory_space<vmem>>, vector<1x8x8x8xbf16>
    %c0_50 = arith.constant 0 : index
    %c0_51 = arith.constant 0 : index
    %c1_52 = arith.constant 1 : index
    %c0_53 = arith.constant 0 : index
    %30 = vector.load %arg9[%c0_50, %c0_51, %c1_52, %c0_53] : memref<1x10x10x8xbf16, #tpu.memory_space<vmem>>, vector<1x8x8x8xbf16>
    %c0_54 = arith.constant 0 : index
    %c0_55 = arith.constant 0 : index
    %c2 = arith.constant 2 : index
    %c0_56 = arith.constant 0 : index
    %31 = vector.load %arg9[%c0_54, %c0_55, %c2, %c0_56] : memref<1x10x10x8xbf16, #tpu.memory_space<vmem>>, vector<1x8x8x8xbf16>
    %c0_57 = arith.constant 0 : index
    %c1_58 = arith.constant 1 : index
    %c0_59 = arith.constant 0 : index
    %c0_60 = arith.constant 0 : index
    %32 = vector.load %arg9[%c0_57, %c1_58, %c0_59, %c0_60] : memref<1x10x10x8xbf16, #tpu.memory_space<vmem>>, vector<1x8x8x8xbf16>
    %c0_61 = arith.constant 0 : index
    %c1_62 = arith.constant 1 : index
    %c1_63 = arith.constant 1 : index
    %c0_64 = arith.constant 0 : index
    %33 = vector.load %arg9[%c0_61, %c1_62, %c1_63, %c0_64] : memref<1x10x10x8xbf16, #tpu.memory_space<vmem>>, vector<1x8x8x8xbf16>
    %c0_65 = arith.constant 0 : index
    %c1_66 = arith.constant 1 : index
    %c2_67 = arith.constant 2 : index
    %c0_68 = arith.constant 0 : index
    %34 = vector.load %arg9[%c0_65, %c1_66, %c2_67, %c0_68] : memref<1x10x10x8xbf16, #tpu.memory_space<vmem>>, vector<1x8x8x8xbf16>
    %c0_69 = arith.constant 0 : index
    %c2_70 = arith.constant 2 : index
    %c0_71 = arith.constant 0 : index
    %c0_72 = arith.constant 0 : index
    %35 = vector.load %arg9[%c0_69, %c2_70, %c0_71, %c0_72] : memref<1x10x10x8xbf16, #tpu.memory_space<vmem>>, vector<1x8x8x8xbf16>
    %c0_73 = arith.constant 0 : index
    %c2_74 = arith.constant 2 : index
    %c1_75 = arith.constant 1 : index
    %c0_76 = arith.constant 0 : index
    %36 = vector.load %arg9[%c0_73, %c2_74, %c1_75, %c0_76] : memref<1x10x10x8xbf16, #tpu.memory_space<vmem>>, vector<1x8x8x8xbf16>
    %c0_77 = arith.constant 0 : index
    %c2_78 = arith.constant 2 : index
    %c2_79 = arith.constant 2 : index
    %c0_80 = arith.constant 0 : index
    %37 = vector.load %arg9[%c0_77, %c2_78, %c2_79, %c0_80] : memref<1x10x10x8xbf16, #tpu.memory_space<vmem>>, vector<1x8x8x8xbf16>
    %38 = tpu.concatenate %29, %30, %31, %32, %33, %34, %35, %36, %37 in 3 : vector<1x8x8x8xbf16>, vector<1x8x8x8xbf16>, vector<1x8x8x8xbf16>, vector<1x8x8x8xbf16>, vector<1x8x8x8xbf16>, vector<1x8x8x8xbf16>, vector<1x8x8x8xbf16>, vector<1x8x8x8xbf16>, vector<1x8x8x8xbf16> -> vector<1x8x8x72xbf16>
    %39 = vector.shape_cast %38 : vector<1x8x8x72xbf16> to vector<64x72xbf16>
    %c0_81 = arith.constant 0 : index
    %c0_82 = arith.constant 0 : index
    %40 = vector.load %arg4[%c0_81, %c0_82] : memref<72x8xbf16, #tpu.memory_space<vmem>>, vector<72x8xbf16>
    %cst_83 = arith.constant dense<0.000000e+00> : vector<64x8xf32>
    %41 = tpu.matmul %39, %40, %cst_83 {dimension_numbers = #tpu.dot_dimension_numbers<[1], [0], [0], [1], [0, 0, 1, 1], [], []>} : vector<64x72xbf16>, vector<72x8xbf16>, vector<64x8xf32> -> vector<64x8xf32>
    %c0_84 = arith.constant 0 : index
    %c0_85 = arith.constant 0 : index
    %42 = vector.load %arg5[%c0_84, %c0_85] : memref<1x8xf32, #tpu.memory_space<vmem>>, vector<1x8xf32>
    %43 = vector.broadcast %42 : vector<1x8xf32> to vector<64x8xf32>
    %44 = arith.mulf %41, %43 : vector<64x8xf32>
    %c0_86 = arith.constant 0 : index
    %c0_87 = arith.constant 0 : index
    %45 = vector.load %arg6[%c0_86, %c0_87] : memref<1x8xf32, #tpu.memory_space<vmem>>, vector<1x8xf32>
    %46 = vector.broadcast %45 : vector<1x8xf32> to vector<64x8xf32>
    %47 = arith.addf %44, %46 : vector<64x8xf32>
    %cst_88 = arith.constant 0.000000e+00 : f32
    %48 = vector.broadcast %cst_88 : f32 to vector<64x8xf32>
    %49 = arith.cmpf oge, %47, %48 : vector<64x8xf32>
    %cst_89 = arith.constant 1.000000e-01 : f32
    %50 = vector.broadcast %cst_89 : f32 to vector<64x8xf32>
    %51 = arith.mulf %50, %47 : vector<64x8xf32>
    %52 = arith.select %49, %47, %51 : vector<64x8xi1>, vector<64x8xf32>
    %53 = arith.truncf %52 : vector<64x8xf32> to vector<64x8xbf16>
    %54 = vector.shape_cast %53 : vector<64x8xbf16> to vector<1x8x8x8xbf16>
    %c0_90 = arith.constant 0 : index
    %c1_91 = arith.constant 1 : index
    %c1_92 = arith.constant 1 : index
    %c0_93 = arith.constant 0 : index
    %55 = vector.load %arg10[%c0_90, %c1_91, %c1_92, %c0_93] : memref<1x10x10x8xbf16, #tpu.memory_space<vmem>>, vector<1x8x8x8xbf16>
    tpu.vector_store %arg10[%c0_90, %c1_91, %c1_92, %c0_93], %54 {strides = array<i32>} : memref<1x10x10x8xbf16, #tpu.memory_space<vmem>>, vector<1x8x8x8xbf16>,
    %c0_94 = arith.constant 0 : index
    %c0_95 = arith.constant 0 : index
    %c0_96 = arith.constant 0 : index
    %c0_97 = arith.constant 0 : index
    %56 = vector.load %arg10[%c0_94, %c0_95, %c0_96, %c0_97] : memref<1x10x10x8xbf16, #tpu.memory_space<vmem>>, vector<1x8x8x8xbf16>
    %c0_98 = arith.constant 0 : index
    %c0_99 = arith.constant 0 : index
    %c1_100 = arith.constant 1 : index
    %c0_101 = arith.constant 0 : index
    %57 = vector.load %arg10[%c0_98, %c0_99, %c1_100, %c0_101] : memref<1x10x10x8xbf16, #tpu.memory_space<vmem>>, vector<1x8x8x8xbf16>
    %c0_102 = arith.constant 0 : index
    %c0_103 = arith.constant 0 : index
    %c2_104 = arith.constant 2 : index
    %c0_105 = arith.constant 0 : index
    %58 = vector.load %arg10[%c0_102, %c0_103, %c2_104, %c0_105] : memref<1x10x10x8xbf16, #tpu.memory_space<vmem>>, vector<1x8x8x8xbf16>
    %c0_106 = arith.constant 0 : index
    %c1_107 = arith.constant 1 : index
    %c0_108 = arith.constant 0 : index
    %c0_109 = arith.constant 0 : index
    %59 = vector.load %arg10[%c0_106, %c1_107, %c0_108, %c0_109] : memref<1x10x10x8xbf16, #tpu.memory_space<vmem>>, vector<1x8x8x8xbf16>
    %c0_110 = arith.constant 0 : index
    %c1_111 = arith.constant 1 : index
    %c1_112 = arith.constant 1 : index
    %c0_113 = arith.constant 0 : index
    %60 = vector.load %arg10[%c0_110, %c1_111, %c1_112, %c0_113] : memref<1x10x10x8xbf16, #tpu.memory_space<vmem>>, vector<1x8x8x8xbf16>
    %c0_114 = arith.constant 0 : index
    %c1_115 = arith.constant 1 : index
    %c2_116 = arith.constant 2 : index
    %c0_117 = arith.constant 0 : index
    %61 = vector.load %arg10[%c0_114, %c1_115, %c2_116, %c0_117] : memref<1x10x10x8xbf16, #tpu.memory_space<vmem>>, vector<1x8x8x8xbf16>
    %c0_118 = arith.constant 0 : index
    %c2_119 = arith.constant 2 : index
    %c0_120 = arith.constant 0 : index
    %c0_121 = arith.constant 0 : index
    %62 = vector.load %arg10[%c0_118, %c2_119, %c0_120, %c0_121] : memref<1x10x10x8xbf16, #tpu.memory_space<vmem>>, vector<1x8x8x8xbf16>
    %c0_122 = arith.constant 0 : index
    %c2_123 = arith.constant 2 : index
    %c1_124 = arith.constant 1 : index
    %c0_125 = arith.constant 0 : index
    %63 = vector.load %arg10[%c0_122, %c2_123, %c1_124, %c0_125] : memref<1x10x10x8xbf16, #tpu.memory_space<vmem>>, vector<1x8x8x8xbf16>
    %c0_126 = arith.constant 0 : index
    %c2_127 = arith.constant 2 : index
    %c2_128 = arith.constant 2 : index
    %c0_129 = arith.constant 0 : index
    %64 = vector.load %arg10[%c0_126, %c2_127, %c2_128, %c0_129] : memref<1x10x10x8xbf16, #tpu.memory_space<vmem>>, vector<1x8x8x8xbf16>
    %65 = tpu.concatenate %56, %57, %58, %59, %60, %61, %62, %63, %64 in 3 : vector<1x8x8x8xbf16>, vector<1x8x8x8xbf16>, vector<1x8x8x8xbf16>, vector<1x8x8x8xbf16>, vector<1x8x8x8xbf16>, vector<1x8x8x8xbf16>, vector<1x8x8x8xbf16>, vector<1x8x8x8xbf16>, vector<1x8x8x8xbf16> -> vector<1x8x8x72xbf16>
    %66 = vector.shape_cast %65 : vector<1x8x8x72xbf16> to vector<64x72xbf16>
    %c0_130 = arith.constant 0 : index
    %c0_131 = arith.constant 0 : index
    %67 = vector.load %arg7[%c0_130, %c0_131] : memref<72x8xbf16, #tpu.memory_space<vmem>>, vector<72x8xbf16>
    %cst_132 = arith.constant dense<0.000000e+00> : vector<64x8xf32>
    %68 = tpu.matmul %66, %67, %cst_132 {dimension_numbers = #tpu.dot_dimension_numbers<[1], [0], [0], [1], [0, 0, 1, 1], [], []>} : vector<64x72xbf16>, vector<72x8xbf16>, vector<64x8xf32> -> vector<64x8xf32>
    %69 = arith.addf %68, %14 : vector<64x8xf32>
    %70 = arith.truncf %69 : vector<64x8xf32> to vector<64x8xbf16>
    %71 = vector.shape_cast %70 : vector<64x8xbf16> to vector<1x8x8x8xbf16>
    %c0_133 = arith.constant 0 : index
    %c0_134 = arith.constant 0 : index
    %c0_135 = arith.constant 0 : index
    %c0_136 = arith.constant 0 : index
    %72 = vector.load %arg8[%c0_133, %c0_134, %c0_135, %c0_136] : memref<1x8x8x8xbf16, #tpu.memory_space<vmem>>, vector<1x8x8x8xbf16>
    tpu.vector_store %arg8[%c0_133, %c0_134, %c0_135, %c0_136], %71 {strides = array<i32>} : memref<1x8x8x8xbf16, #tpu.memory_space<vmem>>, vector<1x8x8x8xbf16>,
    return
  }
  func.func @transform_0(%arg0: i32) -> (i32, i32, i32, i32) {
    %c0_i32 = arith.constant 0 : i32
    %c0_i32_0 = arith.constant 0 : i32
    %c0_i32_1 = arith.constant 0 : i32
    %c0_i32_2 = arith.constant 0 : i32
    return %arg0, %c0_i32, %c0_i32_0, %c0_i32_1 : i32, i32, i32, i32
  }
  func.func @transform_1(%arg0: i32) -> (i32, i32) {
    %c0_i32 = arith.constant 0 : i32
    %c0_i32_0 = arith.constant 0 : i32
    %c0_i32_1 = arith.constant 0 : i32
    return %c0_i32, %c0_i32_0 : i32, i32
  }
  func.func @transform_2(%arg0: i32) -> (i32, i32) {
    %c0_i32 = arith.constant 0 : i32
    %c0_i32_0 = arith.constant 0 : i32
    %c0_i32_1 = arith.constant 0 : i32
    return %c0_i32, %c0_i32_0 : i32, i32
  }
  func.func @transform_3(%arg0: i32) -> (i32, i32) {
    %c0_i32 = arith.constant 0 : i32
    %c0_i32_0 = arith.constant 0 : i32
    %c0_i32_1 = arith.constant 0 : i32
    return %c0_i32, %c0_i32_0 : i32, i32
  }
  func.func @transform_4(%arg0: i32) -> (i32, i32) {
    %c0_i32 = arith.constant 0 : i32
    %c0_i32_0 = arith.constant 0 : i32
    %c0_i32_1 = arith.constant 0 : i32
    return %c0_i32, %c0_i32_0 : i32, i32
  }
  func.func @transform_5(%arg0: i32) -> (i32, i32) {
    %c0_i32 = arith.constant 0 : i32
    %c0_i32_0 = arith.constant 0 : i32
    %c0_i32_1 = arith.constant 0 : i32
    return %c0_i32, %c0_i32_0 : i32, i32
  }
  func.func @transform_6(%arg0: i32) -> (i32, i32) {
    %c0_i32 = arith.constant 0 : i32
    %c0_i32_0 = arith.constant 0 : i32
    %c0_i32_1 = arith.constant 0 : i32
    return %c0_i32, %c0_i32_0 : i32, i32
  }
  func.func @transform_7(%arg0: i32) -> (i32, i32, i32, i32) {
    %c0_i32 = arith.constant 0 : i32
    %c0_i32_0 = arith.constant 0 : i32
    %c0_i32_1 = arith.constant 0 : i32
    %c0_i32_2 = arith.constant 0 : i32
    return %arg0, %c0_i32, %c0_i32_0, %c0_i32_1 : i32, i32, i32, i32
  }
}

</mosaic_0001>

<bundles_post_ra>
// kernel: network_block_forward.3
= control target key start
LH: loop header
LB: loop body
LE: loop exit
PB: predicated region body
PF: predicated region fallthrough
CT: control target
= control target key end

     0   :  { %s3203_s24 = smov 0   ;;  %s4097_s0 = inlined_call_operand.vmem [shape: bf16[2,8,8,8], index: 0, kind: input, shape index: {}]   ;;  %s4098_s1 = inlined_call_operand.vmem [shape: f32[1,8], index: 1, kind: input, shape index: {}]   ;;  %s4099_s2 = inlined_call_operand.vmem [shape: f32[1,8], index: 2, kind: input, shape index: {}]   ;;  %s4100_s3 = inlined_call_operand.vmem [shape: bf16[72,8], index: 3, kind: input, shape index: {}]   ;;  %s4101_s4 = inlined_call_operand.vmem [shape: f32[1,8], index: 4, kind: input, shape index: {}]   ;;  %s4102_s5 = inlined_call_operand.vmem [shape: f32[1,8], index: 5, kind: input, shape index: {}]   ;;  %s4103_s6 = inlined_call_operand.vmem [shape: bf16[72,8], index: 6, kind: input, shape index: {}]   ;;  %s4104_s7 = inlined_call_operand.vmem [shape: bf16[2,8,8,8], index: 7, kind: output, shape index: {}]  }
   0x1 LB: > { %s2700_s25 = sadd.s32 4294967295, %s3152_s24   ;;  %p2704_p0 = scmp.ge.s32.totalorder %s3152_s24, 1  ;;  %s3152_s24 = sphi %s3203_s24, %s17_s24  }
   0x2   : > { %p237_p1 = scmp.lt.s32.totalorder %s3152_s24, 3 }
   0x4   : > { %p238_p2 = pnand %p2704_p0, %p237_p1 }
   0x5   : > { %p269_p3 = scmp.lt.s32.totalorder (!%p238_p2), %s2700_s25, 1  ;;  %s3155_s11 = smov (!%p238_p2), 16  }
   0x6   : > { %241 = sbr.rel (%p238_p2) target bundleno = 906 (0x38a), region = 48  ;;  %s3156_s12 = smov (!%p238_p2), 8  }
   0x7   : > { %s3157_s13 = smov (!%p238_p2), 24   ;;  %s3158_s14 = smov (!%p238_p2), 48  }
   0x8   : > { %s3159_s15 = smov (!%p238_p2), 40   ;;  %s3160_s16 = smov (!%p238_p2), 32  }
   0x9   : > { %s3161_s17 = smov (!%p238_p2), 56   ;;  %s3162_s18 = smov (!%p238_p2), 64  }
   0xb   : > { %vm280_vm0 = vcmask 60416   ;;  %vm282_vm1 = vcmask 57344   ;;  %vm288_vm2 = vsmask.f32 256  ;;  %v3154_v0 = vmov 0   ;;  %s4112_s25 = smov (!%p269_p3, %s2700_s25), 1 }
   0xc   : > { %281 = vst.msk [vmem:[#allocation2] sm:$0xf] %vm280_vm0, %v3154_v0  ;;  %vm3214_vm3 = vmand %vm282_vm1, %vm288_vm2  ;;  %vm320_vm4 = vsmask.f32 7938  ;;  %v296_v2 = vld [vmem:[#allocation2 + $0x10] sm:$0x1] }
   0xd   : > { %283 = vst.msk [vmem:[#allocation2 + $0x4] sm:$0x1] %vm282_vm1, %v3154_v0  ;;  %286 = vst.msk [vmem:[#allocation2 + $0x4c] sm:$0x1] %vm282_vm1, %v3154_v0  ;;  %v297_v4 = vsel %vm3214_vm3, 0, %v296_v2  ;;  %s2893_s26 = sshll.u32 %s4112_s25, 5 }
   0xe   : > { %285 = vst.msk [vmem:[#allocation2 + $0x48] sm:$0xf] %vm280_vm0, %v3154_v0  ;;  %352 = vst.msk [vmem:[#allocation3] sm:$0xf] %vm280_vm0, %v3154_v0  ;;  %v328_v5 = vld [vmem:[#allocation2 + $0x14] sm:$0x1]  ;;  %s3248_s29 = scalar_lea.vmem %s4097_s0, %s2893_s26 }
   0xf   : > { %353 = vst.msk [vmem:[#allocation3 + $0x4] sm:$0x1] %vm282_vm1, %v3154_v0  ;;  %356 = vst.msk [vmem:[#allocation3 + $0x4c] sm:$0x1] %vm282_vm1, %v3154_v0  ;;  %v293_v7 = vld [vmem:[#allocation2 + $0x8] sm:$0x1] }
  0x10   : > { %355 = vst.msk [vmem:[#allocation3 + $0x48] sm:$0xf] %vm280_vm0, %v3154_v0  ;;  %vm3226_vm5 = vmand %vm282_vm1, %vm320_vm4  ;;  %v294_v8 = vsel %vm3214_vm3, 0, %v293_v7  ;;  %v302_v9 = vld [vmem:[#allocation2 + $0x20] sm:$0x1]  ;;  %v3261_v19 = vld [vmem:[%s3248_s29 + $0x8] sm:$0xff]  }
  0x11   : > { %298 = vst [vmem:[#allocation2 + $0x10] sm:$0x1] %v297_v4  ;;  %v329_v6 = vsel %vm3226_vm5, 0, %v328_v5  ;;  %v299_v10 = vld [vmem:[#allocation2 + $0x18] sm:$0x1]  ;;  %v303_v11 = vsel %vm3214_vm3, 0, %v302_v9  ;;  %v2926_v27 = vunpack.c.h.bf16 %v3261_v19  ;;  %v2925_v28 = vunpack.c.l.bf16 %v3261_v19  ;;  %vm3313_vm10 = vmand %vm280_vm0, %vm320_vm4 }
  0x12   : > { %330 = vst [vmem:[#allocation2 + $0x14] sm:$0x1] %v329_v6  ;;  %295 = vst [vmem:[#allocation2 + $0x8] sm:$0x1] %v294_v8  ;;  %v300_v12 = vsel %vm3214_vm3, 0, %v299_v10  ;;  %v3253_v17 = vld [vmem:[%s3248_s29] sm:$0xff]  }
  0x13   : > { %v331_v13 = vld [vmem:[#allocation2 + $0x1c] sm:$0x1]  ;;  %304 = vst [vmem:[#allocation2 + $0x20] sm:$0x1] %v303_v11  ;;  %301 = vst [vmem:[#allocation2 + $0x18] sm:$0x1] %v300_v12  ;;  %v2922_v24 = vunpack.c.h.bf16 %v3253_v17  ;;  %v2921_v26 = vunpack.c.l.bf16 %v3253_v17 }
  0x14   : > { %v332_v14 = vsel %vm3226_vm5, 0, %v331_v13  ;;  %v325_v15 = vld [vmem:[#allocation2 + $0xc] sm:$0x1]  ;;  %v334_v16 = vld [vmem:[#allocation2 + $0x24] sm:$0x1]  ;;  %v3303_v48 = vld [vmem:[%s3248_s29 + $0x10] sm:$0xff]  }
  0x15   : > { %v3258_v18 = vld [vmem:[%s4098_s1] ss:$0 sm:$0xff]  ;;  %333 = vst [vmem:[#allocation2 + $0x1c] sm:$0x1] %v332_v14  ;;  %v326_v20 = vsel %vm3226_vm5, 0, %v325_v15  ;;  %v335_v21 = vsel %vm3226_vm5, 0, %v334_v16  ;;  %v2929_v57 = vunpack.c.l.bf16 %v3303_v48 }
  0x16   : > { %v322_v22 = vld [vmem:[#allocation2 + $0x4] sm:$0x1]  ;;  %v290_v23 = vld [vmem:[#allocation2] sm:$0x1]  ;;  %327 = vst [vmem:[#allocation2 + $0xc] sm:$0x1] %v326_v20  ;;  %v441_v33 = vmul.f32 %v2922_v24, %v3258_v18  ;;  %v440_v34 = vmul.f32 %v2921_v26, %v3258_v18  ;;  %v443_v35 = vmul.f32 %v2926_v27, %v3258_v18  ;;  %v442_v36 = vmul.f32 %v2925_v28, %v3258_v18 }
  0x17   : > { %v3271_v25 = vld [vmem:[%s4099_s2] ss:$0 sm:$0xff]  ;;  %336 = vst [vmem:[#allocation2 + $0x24] sm:$0x1] %v335_v21  ;;  %v323_v29 = vsel %vm3226_vm5, 0, %v322_v22  ;;  %v291_v30 = vsel %vm3214_vm3, 0, %v290_v23 }
  0x18   : > { %v305_v31 = vld [vmem:[#allocation2 + $0x28] sm:$0x1]  ;;  %v337_v32 = vld [vmem:[#allocation2 + $0x2c] sm:$0x1]  ;;  %324 = vst [vmem:[#allocation2 + $0x4] sm:$0x1] %v323_v29  ;;  %v456_v41 = vadd.f32 %v3271_v25, %v441_v33  ;;  %v455_v42 = vadd.f32 %v3271_v25, %v440_v34  ;;  %v458_v43 = vadd.f32 %v3271_v25, %v443_v35  ;;  %v457_v44 = vadd.f32 %v3271_v25, %v442_v36 }
  0x19   : > { %292 = vst [vmem:[#allocation2] sm:$0x1] %v291_v30  ;;  %v308_v37 = vld [vmem:[#allocation2 + $0x30] sm:$0x1]  ;;  %v306_v38 = vsel %vm3214_vm3, 0, %v305_v31  ;;  %v338_v39 = vsel %vm3226_vm5, 0, %v337_v32 }
  0x1a   : > { %v309_v40 = vsel %vm3214_vm3, 0, %v308_v37  ;;  %307 = vst [vmem:[#allocation2 + $0x28] sm:$0x1] %v306_v38  ;;  %339 = vst [vmem:[#allocation2 + $0x2c] sm:$0x1] %v338_v39  ;;  %vm464_vm6 = vcmp.ge.f32.partialorder %v456_v41, 0.0  ;;  %v2930_v37 = vunpack.c.h.bf16 %v3303_v48 }
  0x1b   : > { %310 = vst [vmem:[#allocation2 + $0x30] sm:$0x1] %v309_v40  ;;  %v340_v45 = vld [vmem:[#allocation2 + $0x34] sm:$0x1]  ;;  %v311_v46 = vld [vmem:[#allocation2 + $0x38] sm:$0x1] }
  0x1c   : > { %v658_v47 = vld [vmem:[#allocation2] sm:$0xe]  ;;  %v341_v49 = vsel %vm3226_vm5, 0, %v340_v45  ;;  %v312_v50 = vsel %vm3214_vm3, 0, %v311_v46  ;;  %v472_v51 = vmul.f32 0.1, %v456_v41 }
  0x1d   : > { %vm463_vm7 = vcmp.ge.f32.partialorder %v455_v42, 0.0  ;;  %v471_v52 = vmul.f32 0.1, %v455_v42  ;;  %342 = vst [vmem:[#allocation2 + $0x34] sm:$0x1] %v341_v49  ;;  %vm466_vm8 = vcmp.ge.f32.partialorder %v458_v43, 0.0 }
  0x1e   : > { %313 = vst [vmem:[#allocation2 + $0x38] sm:$0x1] %v312_v50  ;;  %v474_v53 = vmul.f32 0.1, %v458_v43  ;;  %vm465_vm9 = vcmp.ge.f32.partialorder %v457_v44, 0.0  ;;  %v480_v55 = vsel %vm464_vm6, %v456_v41, %v472_v51  ;;  %vm1456_vm15 = vcmask 1043456  }
  0x1f   : > { %v473_v54 = vmul.f32 0.1, %v457_v44  ;;  %v479_v56 = vsel %vm463_vm7, %v455_v42, %v471_v52  ;;  %v650_v58 = vld [vmem:[#allocation2 + $0x4] sm:$0x1]  ;;  %v2896_v60 = vpack.c.bf16 %v480_v55, %v480_v55  ;;  %v600_v13 = vld [vmem:[#allocation2 + $0x10] sm:$0xf] }
  0x20   : > { %v642_v59 = vld [vmem:[#allocation2] sm:$0xf]  ;;  %v2895_v61 = vpack.c.bf16 %v479_v56, %v479_v56  ;;  %v482_v62 = vsel %vm466_vm8, %v458_v43, %v474_v53  ;;  %v2727_v0 = vcombine.low %v658_v47, %v650_v58  ;;  %v603_v14 = vld [vmem:[#allocation2 + $0x14] sm:$0x1]  ;;  %v594_v15 = vld [vmem:[#allocation2 + $0x8] sm:$0xf] }
  0x21   : > { %v481_v63 = vsel %vm465_vm9, %v457_v44, %v473_v54  ;;  %v2719_v2 = vcombine.low %v642_v59, %v650_v58  ;;  %v2898_v4 = vpack.c.bf16 %v482_v62, %v482_v62  ;;  %v520_v6 = vshrl.u32 %v2896_v60, 16  ;;  %v612_v23 = vld [vmem:[#allocation2 + $0x20] sm:$0xf]  ;;  %v597_v30 = vld [vmem:[#allocation2 + $0xc] sm:$0x1] }
  0x22   : > { %v2897_v5 = vpack.c.bf16 %v481_v63, %v481_v63  ;;  %v523_v7 = vshll.u32 %v2896_v60, 16  ;;  %v512_v8 = vshrl.u32 %v2895_v61, 16  ;;  %v515_v9 = vshll.u32 %v2895_v61, 16  ;;  %v606_v35 = vld [vmem:[#allocation2 + $0x18] sm:$0xf] }
  0x23   : > { %v851_v10 = vrot.slane %v2727_v0, 1  ;;  %v758_v11 = vshll.u32 %v2719_v2, 16  ;;  %v756_v12 = vshrl.u32 %v2719_v2, 16  ;;  %v536_v16 = vshrl.u32 %v2898_v4, 16  ;;  %v615_v36 = vld [vmem:[#allocation2 + $0x24] sm:$0x1] }
  0x24   : > { %v522_v20 = vrot.slane %v520_v6, 7  ;;  %v514_v21 = vrot.slane %v512_v8, 7  ;;  %v539_v22 = vshll.u32 %v2898_v4, 16  ;;  %v528_v29 = vshrl.u32 %v2897_v5, 16  ;;  %v609_v42 = vld [vmem:[#allocation2 + $0x1c] sm:$0x1] }
  0x25   : > { %859 = vrot.lane.b32.xlu0 %v851_v10, %s3155_s11  ;;  %v760_v31 = vrot.slane %v758_v11, 1  ;;  %v538_v33 = vrot.slane %v536_v16, 7  ;;  %v531_v34 = vshll.u32 %v2897_v5, 16  ;;  %v343_v43 = vld [vmem:[#allocation2 + $0x3c] sm:$0x1]  ;;  %v444_v61 = vmul.f32 %v2929_v57, %v3258_v18 }
  0x26   : > { %v525_v38 = vor.u32 %v523_v7, %v522_v20  ;;  %v526_v39 = vrot.slane %v522_v20, 4  ;;  %v517_v40 = vor.u32 %v515_v9, %v514_v21  ;;  %v530_v41 = vrot.slane %v528_v29, 7  ;;  %v314_v44 = vld [vmem:[#allocation2 + $0x40] sm:$0x1]  ;;  %v346_v50 = vld [vmem:[#allocation2 + $0x44] sm:$0x1] }
  0x27   : > { %v761_v45 = vor.u32 %v760_v31, %v756_v12  ;;  %v541_v46 = vor.u32 %v539_v22, %v538_v33  ;;  %v518_v47 = vrot.slane %v514_v21, 4  ;;  %v542_v49 = vrot.slane %v538_v33, 4  ;;  %v317_v62 = vld [vmem:[#allocation2 + $0x48] sm:$0x1]  ;;  %v349_v4 = vld [vmem:[#allocation2 + $0x4c] sm:$0x1] }
  0x28   : > { %v601_v51 = vsel %vm3313_vm10, %v525_v38, %v600_v13  ;;  %v604_v52 = vsel %vm3214_vm3, %v526_v39, %v603_v14  ;;  %v595_v53 = vsel %vm3313_vm10, %v517_v40, %v594_v15  ;;  %v533_v54 = vor.u32 %v531_v34, %v530_v41 }
  0x29   : > { %811 = vrot.lane.b32.xlu0 %v761_v45, %s3156_s12  ;;  %602 = vst [vmem:[#allocation2 + $0x10] sm:$0xf] %v601_v51  ;;  %605 = vst [vmem:[#allocation2 + $0x14] sm:$0x1] %v604_v52  ;;  %v613_v55 = vsel %vm3313_vm10, %v541_v46, %v612_v23  ;;  %v534_v56 = vrot.slane %v530_v41, 4  ;;  %v598_v58 = vsel %vm3214_vm3, %v518_v47, %v597_v30  ;;  %v344_v0 = vsel %vm3226_vm5, 0, %v343_v43 }
  0x2a   : > { %596 = vst [vmem:[#allocation2 + $0x8] sm:$0xf] %v595_v53  ;;  %v616_v59 = vsel %vm3214_vm3, %v542_v49, %v615_v36  ;;  %614 = vst [vmem:[#allocation2 + $0x20] sm:$0xf] %v613_v55  ;;  %v607_v60 = vsel %vm3313_vm10, %v533_v54, %v606_v35  ;;  %v315_v2 = vsel %vm3214_vm3, 0, %v314_v44  ;;  %v347_v5 = vsel %vm3226_vm5, 0, %v346_v50 }
  0x2b   : > { %599 = vst [vmem:[#allocation2 + $0xc] sm:$0x1] %v598_v58  ;;  %617 = vst [vmem:[#allocation2 + $0x24] sm:$0x1] %v616_v59  ;;  %v610_v63 = vsel %vm3214_vm3, %v534_v56, %v609_v42  ;;  %v445_v6 = vmul.f32 %v2930_v37, %v3258_v18  ;;  %v318_v7 = vsel %vm3214_vm3, 0, %v317_v62  ;;  %v459_v8 = vadd.f32 %v3271_v25, %v444_v61  ;;  %v3372_v36 = vld [vmem:[%s3248_s29 + $0x18] sm:$0xff]  }
  0x2c   : > { %608 = vst [vmem:[#allocation2 + $0x18] sm:$0xf] %v607_v60  ;;  %611 = vst [vmem:[#allocation2 + $0x1c] sm:$0x1] %v610_v63  ;;  %v350_v9 = vsel %vm3226_vm5, 0, %v349_v4  ;;  %v2933_v49 = vunpack.c.l.bf16 %v3372_v36  ;;  %vm1243_vm1 = vcmask 64512  }
  0x2d   : > { %345 = vst [vmem:[#allocation2 + $0x3c] sm:$0x1] %v344_v0  ;;  %316 = vst [vmem:[#allocation2 + $0x40] sm:$0x1] %v315_v2  ;;  %v460_v15 = vadd.f32 %v3271_v25, %v445_v6  ;;  %vm467_vm11 = vcmp.ge.f32.partialorder %v459_v8, 0.0  ;;  %v2934_v2 = vunpack.c.h.bf16 %v3372_v36  ;;  %vm1268_vm2 = vcmask 130048  }
  0x2e   : > { %348 = vst [vmem:[#allocation2 + $0x44] sm:$0x1] %v347_v5  ;;  %319 = vst [vmem:[#allocation2 + $0x48] sm:$0x1] %v318_v7  ;;  %v475_v20 = vmul.f32 0.1, %v459_v8  ;;  %v446_v0 = vmul.f32 %v2933_v49, %v3258_v18 }
  0x2f   : > { %351 = vst [vmem:[#allocation2 + $0x4c] sm:$0x1] %v350_v9  ;;  %v476_v35 = vmul.f32 0.1, %v460_v15  ;;  %vm468_vm12 = vcmp.ge.f32.partialorder %v460_v15, 0.0  ;;  %vm1285_vm4 = vcmask 195584  }
  0x30   : > { %v3352_v10 = vld [vmem:[#allocation2 + $0x10] sm:$0xf]  ;;  %v652_v30 = vld [vmem:[#allocation2 + $0x14] sm:$0x1]  ;;  %v483_v40 = vsel %vm467_vm11, %v459_v8, %v475_v20  ;;  %vm1302_vm6 = vcmask 261120   ;;  %vm1319_vm7 = vcmask 326656  }
  0x31   : > { %v666_v11 = vld [vmem:[#allocation2 + $0x8] sm:$0xf]  ;;  %v2736_v12 = vcombine.low %v3352_v10, %v3352_v10  ;;  %v3356_v14 = vld [vmem:[#allocation2 + $0x20] sm:$0xf]  ;;  %v3369_v29 = vld [vmem:[#allocation2 + $0x10] sm:$0xf]  ;;  %v2899_v50 = vpack.c.bf16 %v483_v40, %v483_v40  ;;  %v484_v51 = vsel %vm468_vm12, %v460_v15, %v476_v35 }
  0x32   : > { %v2735_v13 = vcombine.low %v666_v11, %v666_v11  ;;  %v2738_v21 = vcombine.low %v3356_v14, %v3356_v14  ;;  %v660_v31 = vld [vmem:[#allocation2 + $0x10] sm:$0xe]  ;;  %v651_v33 = vld [vmem:[#allocation2 + $0xc] sm:$0x1]  ;;  %v659_v34 = vld [vmem:[#allocation2 + $0x8] sm:$0xe]  ;;  %v2759_v42 = vcombine.low %v3369_v29, %v3369_v29  ;;  %v3391_v63 = vpack.c.bf16 %v484_v51, %v484_v51 }
  0x33   : > { %v3359_v16 = vld [vmem:[#allocation2 + $0x18] sm:$0xf]  ;;  %901 = vrot.lane.b32.xlu1 %v2736_v12, %s3157_s13  ;;  %v2729_v38 = vcombine.low %v660_v31, %v652_v30  ;;  %v2728_v39 = vcombine.low %v659_v34, %v651_v33  ;;  %v3381_v43 = vld [vmem:[#allocation2 + $0x8] sm:$0xf]  ;;  %v674_v44 = vld [vmem:[#allocation2 + $0xc] sm:$0x1]  ;;  %v461_v31 = vadd.f32 %v3271_v25, %v446_v0 }
  0x34   : > { %899 = vrot.lane.b32.xlu0 %v2735_v13, %s3157_s13  ;;  %v2737_v22 = vcombine.low %v3359_v16, %v3359_v16  ;;  %v3367_v23 = vld [vmem:[#allocation2 + $0x18] sm:$0xf]  ;;  %v682_v45 = vld [vmem:[#allocation2 + $0x8] sm:$0xe]  ;;  %v653_v46 = vld [vmem:[#allocation2 + $0x1c] sm:$0x1]  ;;  %v3389_v56 = vcombine.low %v3381_v43, %v651_v33  ;;  %v3400_v6 = vcombine.low %v666_v11, %v674_v44  ;;  %v447_v33 = vmul.f32 %v2934_v2, %v3258_v18 }
  0x35   : > { %v2760_v41 = vcombine.low %v3367_v23, %v3367_v23  ;;  %v661_v47 = vld [vmem:[#allocation2 + $0x18] sm:$0xe]  ;;  %v675_v52 = vld [vmem:[#allocation2 + $0x14] sm:$0x1]  ;;  %v3384_v53 = vld [vmem:[#allocation2 + $0x10] sm:$0xf]  ;;  %v2751_v58 = vcombine.low %v682_v45, %v674_v44 }
  0x36   : > { %v853_v54 = vrot.slane %v2729_v38, 1  ;;  %v852_v55 = vrot.slane %v2728_v39, 1  ;;  %v2730_v59 = vcombine.low %v661_v47, %v653_v46  ;;  %v676_v60 = vld [vmem:[#allocation2 + $0x1c] sm:$0x1]  ;;  %v684_v61 = vld [vmem:[#allocation2 + $0x18] sm:$0xe]  ;;  %v3398_v4 = vcombine.low %v3384_v53, %v652_v30 }
  0x37   : > { %905 = vrot.lane.b32.xlu1 %v2738_v21, %s3157_s13  ;;  %v683_v62 = vld [vmem:[#allocation2 + $0x10] sm:$0xe]  ;;  %v544_v5 = vshrl.u32 %v2899_v50, 16  ;;  %v3402_v7 = vld [vmem:[#allocation2 + $0x18] sm:$0xf]  ;;  %v2753_v8 = vcombine.low %v684_v61, %v676_v60  ;;  %v1035_v12 = vrot.slane %v2751_v58, 1  ;;  %v3408_v21 = vcombine.low %v3352_v10, %v675_v52 }
  0x38   : > { %903 = vrot.lane.b32.xlu0 %v2737_v22, %s3157_s13  ;;  %v2752_v9 = vcombine.low %v683_v62, %v675_v52  ;;  %v854_v13 = vrot.slane %v2730_v59, 1  ;;  %v765_v15 = vshll.u32 %v3389_v56, 16  ;;  %v547_v20 = vshll.u32 %v2899_v50, 16  ;;  %v677_v22 = vld [vmem:[#allocation2 + $0x24] sm:$0x1] }
  0x39   : > { %v685_v30 = vld [vmem:[#allocation2 + $0x20] sm:$0xe]  ;;  %v552_v11 = vshrl.u32 %v3391_v63, 16  ;;  %v3415_v34 = vld [vmem:[#allocation2 + $0x14] sm:$0x1]  ;;  %v3418_v35 = vcombine.low %v3402_v7, %v653_v46  ;;  %v3421_v38 = vcombine.low %v3359_v16, %v676_v60  ;;  %v772_v10 = vshll.u32 %v3398_v4, 16 }
  0x3a   : > { %v546_v39 = vrot.slane %v544_v5, 7  ;;  %v618_v40 = vld [vmem:[#allocation2 + $0x28] sm:$0xf]  ;;  %v763_v44 = vshrl.u32 %v3389_v56, 16  ;;  %v942_v45 = vshll.u32 %v3400_v6, 16  ;;  %v2754_v18 = vcombine.low %v685_v30, %v677_v22 }
  0x3b   : > { %1085 = vrot.lane.b32.xlu1 %v2760_v41, %s3158_s14  ;;  %v1037_v41 = vrot.slane %v2753_v8, 1  ;;  %v621_v47 = vld [vmem:[#allocation2 + $0x2c] sm:$0x1]  ;;  %v767_v46 = vrot.slane %v765_v15, 1  ;;  %v949_v51 = vshll.u32 %v3408_v21, 16  ;;  %v3431_v52 = vcombine.low %v3369_v29, %v3415_v34 }
  0x3c   : > { %1083 = vrot.lane.b32.xlu0 %v2759_v42, %s3158_s14  ;;  %v1036_v42 = vrot.slane %v2752_v9, 1  ;;  %v549_v16 = vor.u32 %v547_v20, %v546_v39  ;;  %v550_v50 = vrot.slane %v546_v39, 4  ;;  %v770_v56 = vshrl.u32 %v3398_v4, 16  ;;  %v627_v9 = vld [vmem:[#allocation2 + $0x34] sm:$0x1] }
  0x3d   : > { %v774_v58 = vrot.slane %v772_v10, 1  ;;  %v3441_v61 = vcombine.low %v3356_v14, %v677_v22  ;;  %v940_v62 = vshrl.u32 %v3400_v6, 16  ;;  %v944_v29 = vrot.slane %v942_v45, 1  ;;  %v3452_v39 = vld [vmem:[#allocation2 + $0x24] sm:$0x1] }
  0x3e   : > { %v619_v59 = vsel %vm3313_vm10, %v549_v16, %v618_v40  ;;  %v622_v60 = vsel %vm3214_vm3, %v550_v50, %v621_v47  ;;  %v779_v0 = vshll.u32 %v3418_v35, 16  ;;  %v768_v4 = vor.u32 %v767_v46, %v763_v44  ;;  %v693_v44 = vld [vmem:[#allocation2 + $0x20] sm:$0xf]  ;;  %v3459_v45 = vld [vmem:[#allocation2 + $0x1c] sm:$0x1] }
  0x3f   : > { %861 = vrot.lane.b32.xlu1 %v852_v55, %s3155_s11  ;;  %v462_v55 = vadd.f32 %v3271_v25, %v447_v33  ;;  %620 = vst [vmem:[#allocation2 + $0x28] sm:$0xf] %v619_v59  ;;  %623 = vst [vmem:[#allocation2 + $0x2c] sm:$0x1] %v622_v60  ;;  %v624_v25 = vld [vmem:[#allocation2 + $0x30] sm:$0xf]  ;;  %v945_v22 = vor.u32 %v944_v29, %v940_v62  ;;  %v2769_v47 = vcombine.low %v693_v44, %v3452_v39 }
  0x40   : > { %863 = vrot.lane.b32.xlu0 %v853_v54, %s3155_s11  ;;  %v555_v54 = vshll.u32 %v3391_v63, 16  ;;  %v1038_v63 = vrot.slane %v2754_v18, 1  ;;  %v956_v5 = vshll.u32 %v3421_v38, 16  ;;  %v554_v8 = vrot.slane %v552_v11, 7  ;;  %v630_v60 = vld [vmem:[#allocation2 + $0x38] sm:$0xf] }
  0x41   : > { %v777_v14 = vshrl.u32 %v3418_v35, 16  ;;  %v954_v6 = vshrl.u32 %v3421_v38, 16  ;;  %vm469_vm13 = vcmp.ge.f32.partialorder %v461_v31, 0.0  ;;  %vm470_vm14 = vcmp.ge.f32.partialorder %v462_v55, 0.0  ;;  %v633_v62 = vld [vmem:[#allocation2 + $0x3c] sm:$0x1] }
  0x42   : > { %v557_v15 = vor.u32 %v555_v54, %v554_v8  ;;  %v558_v20 = vrot.slane %v554_v8, 4  ;;  %v781_v30 = vrot.slane %v779_v0, 1  ;;  %v478_v10 = vmul.f32 0.1, %v462_v55 }
  0x43   : > { %865 = vrot.lane.b32.xlu1 %v854_v13, %s3155_s11  ;;  %v775_v13 = vor.u32 %v774_v58, %v770_v56  ;;  %v958_v11 = vrot.slane %v956_v5, 1  ;;  %v963_v18 = vshll.u32 %v3441_v61, 16  ;;  %v2768_v56 = vcombine.low %v3367_v23, %v3459_v45  ;;  %v3474_v23 = vld [vmem:[#allocation2 + $0x24] sm:$0x1] }
  0x44   : > { %1043 = vrot.lane.b32.xlu0 %v1035_v12, %s3159_s15  ;;  %v477_v12 = vmul.f32 0.1, %v461_v31  ;;  %v625_v35 = vsel %vm3313_vm10, %v557_v15, %v624_v25  ;;  %v628_v38 = vsel %vm3214_vm3, %v558_v20, %v627_v9  ;;  %v782_v50 = vor.u32 %v781_v30, %v777_v14  ;;  %v3469_v25 = vld [vmem:[#allocation2 + $0x20] sm:$0xf] }
  0x45   : > { %626 = vst [vmem:[#allocation2 + $0x30] sm:$0xf] %v625_v35  ;;  %629 = vst [vmem:[#allocation2 + $0x34] sm:$0x1] %v628_v38  ;;  %v959_v54 = vor.u32 %v958_v11, %v954_v6  ;;  %v2761_v58 = vcombine.low %v693_v44, %v693_v44  ;;  %v961_v59 = vshrl.u32 %v3441_v61, 16  ;;  %v965_v29 = vrot.slane %v963_v18, 1 }
  0x46   : > { %v485_v33 = vsel %vm469_vm13, %v461_v31, %v477_v12  ;;  %v947_v31 = vshrl.u32 %v3408_v21, 16  ;;  %v1140_v0 = vshll.u32 %v2769_v47, 16  ;;  %v1124_v8 = vshrl.u32 %v3431_v52, 16  ;;  %v3476_v61 = vld [vmem:[#allocation2 + $0x2c] sm:$0x1] }
  0x47   : > { %1045 = vrot.lane.b32.xlu1 %v1036_v42, %s3159_s15  ;;  %v2901_v40 = vpack.c.bf16 %v485_v33, %v485_v33  ;;  %v951_v42 = vrot.slane %v949_v51, 1  ;;  %v966_v15 = vor.u32 %v965_v29, %v961_v59  ;;  %v694_v20 = vld [vmem:[#allocation2 + $0x28] sm:$0xf]  ;;  %v1133_v30 = vshll.u32 %v2768_v56, 16  ;;  %v707_v11 = vld [vmem:[#allocation2 + $0x10] sm:$0xe] }
  0x48   : > { %1047 = vrot.lane.b32.xlu0 %v1037_v41, %s3159_s15  ;;  %v486_v41 = vsel %vm470_vm14, %v462_v55, %v478_v10  ;;  %v1126_v55 = vshll.u32 %v3431_v52, 16  ;;  %v2723_v52 = vcombine.low %v3469_v25, %v3474_v23  ;;  %v2770_v10 = vcombine.low %v694_v20, %v3476_v61 }
  0x49   : > { %v560_v46 = vshrl.u32 %v2901_v40, 16  ;;  %v563_v16 = vshll.u32 %v2901_v40, 16  ;;  %v2902_v21 = vpack.c.bf16 %v486_v41, %v486_v41  ;;  %v952_v5 = vor.u32 %v951_v42, %v947_v31  ;;  %v636_v40 = vld [vmem:[#allocation2 + $0x40] sm:$0xf]  ;;  %v639_v41 = vld [vmem:[#allocation2 + $0x44] sm:$0x1] }
  0x4a   : > { %v1128_v9 = vrot.slane %v1126_v55, 1  ;;  %v1131_v31 = vshrl.u32 %v2768_v56, 16  ;;  %v1135_v18 = vrot.slane %v1133_v30, 1  ;;  %v3490_v55 = vld [vmem:[#allocation2 + $0x28] sm:$0xf]  ;;  %vm1336_vm8 = vcmask 392192  }
  0x4b   : > { %1049 = vrot.lane.b32.xlu1 %v1038_v63, %s3159_s15  ;;  %v562_v51 = vrot.slane %v560_v46, 7  ;;  %v568_v14 = vshrl.u32 %v2902_v21, 16  ;;  %v571_v38 = vshll.u32 %v2902_v21, 16  ;;  %v2775_v46 = vcombine.low %v707_v11, %v3415_v34  ;;  %v3496_v56 = vld [vmem:[#allocation2 + $0x2c] sm:$0x1] }
  0x4c   : > { %813 = vrot.lane.b32.xlu0 %v768_v4, %s3156_s12  ;;  %v1129_v33 = vor.u32 %v1128_v9, %v1124_v8  ;;  %v3500_v34 = vld [vmem:[#allocation2 + $0x34] sm:$0x1]  ;;  %v1136_v59 = vor.u32 %v1135_v18, %v1131_v31  ;;  %v2724_v8 = vcombine.low %v3490_v55, %v3496_v56  ;;  %v662_v11 = vld [vmem:[#allocation2 + $0x20] sm:$0xe]  ;;  %vm1353_vm9 = vcmask 457728  }
  0x4d   : > { %v565_v63 = vor.u32 %v563_v16, %v562_v51  ;;  %v566_v4 = vrot.slane %v562_v51, 4  ;;  %v570_v35 = vrot.slane %v568_v14, 7  ;;  %v786_v16 = vshll.u32 %v2723_v52, 16 }
  0x4e   : > { %vm1370_vm11 = vcmask 523264   ;;  %vm1443_vm12 = vcmask 588800  }
  0x4f   : > { %815 = vrot.lane.b32.xlu1 %v775_v13, %s3156_s12  ;;  %v631_v6 = vsel %vm3313_vm10, %v565_v63, %v630_v60  ;;  %v634_v12 = vsel %vm3214_vm3, %v566_v4, %v633_v62  ;;  %v1138_v13 = vshrl.u32 %v2769_v47, 16  ;;  %v573_v42 = vor.u32 %v571_v38, %v570_v35  ;;  %v708_v4 = vld [vmem:[#allocation2 + $0x18] sm:$0xe]  ;;  %v710_v38 = vld [vmem:[#allocation2 + $0x28] sm:$0xe] }
  0x50   : > { %995 = vrot.lane.b32.xlu0 %v945_v22, %s3160_s16  ;;  %632 = vst [vmem:[#allocation2 + $0x38] sm:$0xf] %v631_v6  ;;  %635 = vst [vmem:[#allocation2 + $0x3c] sm:$0x1] %v634_v12  ;;  %v1142_v22 = vrot.slane %v1140_v0, 1  ;;  %v574_v44 = vrot.slane %v570_v35, 4  ;;  %v2776_v14 = vcombine.low %v708_v4, %v3459_v45  ;;  %v2778_v31 = vcombine.low %v710_v38, %v3476_v61 }
  0x51   : > { %v637_v21 = vsel %vm3313_vm10, %v573_v42, %v636_v40  ;;  %v1219_v60 = vrot.slane %v2775_v46, 1  ;;  %v784_v62 = vshrl.u32 %v2723_v52, 16  ;;  %v788_v29 = vrot.slane %v786_v16, 1  ;;  %v664_v16 = vld [vmem:[#allocation2 + $0x30] sm:$0xe] }
  0x52   : > { %v1143_v47 = vor.u32 %v1142_v22, %v1138_v13  ;;  %v640_v51 = vsel %vm3214_vm3, %v574_v44, %v639_v41  ;;  %638 = vst [vmem:[#allocation2 + $0x40] sm:$0xf] %v637_v21  ;;  %v1145_v0 = vshrl.u32 %v2770_v10, 16  ;;  %v1220_v52 = vrot.slane %v2776_v14, 1  ;;  %v3071_v41 = vld [vmem:[%s4100_s3 + $0x20] ss:$0 sps:$4 sm:$0xff]  }
  0x53   : > { %817 = vrot.lane.b32.xlu1 %v782_v50, %s3156_s12  ;;  %v2762_v50 = vcombine.low %v694_v20, %v694_v20  ;;  %641 = vst [vmem:[#allocation2 + $0x44] sm:$0x1] %v640_v51  ;;  %v789_v13 = vor.u32 %v788_v29, %v784_v62  ;;  %v2731_v42 = vcombine.low %v662_v11, %v3474_v23  ;;  %v3072_v44 = vld [vmem:[%s4100_s3 + $0x18] sm:$0xff]   ;;  %v3073_v23 = vld [vmem:[%s4100_s3 + $0x10] sm:$0xff]   ;;  %v678_v62 = vld [vmem:[#allocation2 + $0x2c] sm:$0x1] }
  0x54   : > { %999 = vrot.lane.b32.xlu0 %v959_v54, %s3160_s16  ;;  %v1147_v54 = vshll.u32 %v2770_v10, 16  ;;  %v791_v10 = vshrl.u32 %v2724_v8, 16  ;;  %2992 = vmatprep.subr.msk.bf16.mxu0 %vm1456_vm15, %v3071_v41  ;;  %v670_v29 = vld [vmem:[#allocation2 + $0x28] sm:$0xf] }
  0x55   : > { %v855_v61 = vrot.slane %v2731_v42, 1  ;;  %v2739_v14 = vcombine.low %v670_v29, %v670_v29 }
  0x56   : > { %v1149_v63 = vrot.slane %v1147_v54, 1  ;;  %v1222_v54 = vrot.slane %v2778_v31, 1 }
  0x57   : > { %997 = vrot.lane.b32.xlu1 %v952_v5, %s3160_s16  ;;  %v709_v5 = vld [vmem:[#allocation2 + $0x20] sm:$0xe]  ;;  %v3512_v22 = vld [vmem:[#allocation2 + $0x38] sm:$0xf]  ;;  %v3514_v30 = vld [vmem:[#allocation2 + $0x3c] sm:$0x1] }
  0x58   : > { %1087 = vrot.lane.b32.xlu0 %v2761_v58, %s3158_s14  ;;  %v3498_v58 = vld [vmem:[#allocation2 + $0x30] sm:$0xf]  ;;  %v2777_v6 = vcombine.low %v709_v5, %v3452_v39  ;;  %v1150_v12 = vor.u32 %v1149_v63, %v1145_v0  ;;  %v2726_v40 = vcombine.low %v3512_v22, %v3514_v30  ;;  %v3074_v0 = vld [vmem:[%s4100_s3 + $0x8] sm:$0xff]  }
  0x59   : > { %v2725_v9 = vcombine.low %v3498_v58, %v3500_v34 }
  0x5a   : > { %v807_v46 = vshll.u32 %v2726_v40, 16  ;;  %v805_v21 = vshrl.u32 %v2726_v40, 16  ;;  %v681_v40 = vld [vmem:[#allocation2 + $0x44] sm:$0x1] }
  0x5b   : > { %1001 = vrot.lane.b32.xlu1 %v966_v15, %s3160_s16  ;;  %v793_v15 = vshll.u32 %v2724_v8, 16  ;;  %v800_v20 = vshll.u32 %v2725_v9, 16  ;;  %v798_v45 = vshrl.u32 %v2725_v9, 16  ;;  %v2747_v8 = vcombine.low %v670_v29, %v678_v62  ;;  %v665_v9 = vld [vmem:[#allocation2 + $0x38] sm:$0xe] }
  0x5c   : > { %1179 = vrot.lane.b32.xlu0 %v1129_v33, %s3161_s17  ;;  %v1221_v33 = vrot.slane %v2777_v6, 1  ;;  %v809_v51 = vrot.slane %v807_v46, 1  ;;  %v672_v6 = vld [vmem:[#allocation2 + $0x38] sm:$0xf]  ;;  %v686_v46 = vld [vmem:[#allocation2 + $0x28] sm:$0xe] }
  0x5d   : > { %v795_v39 = vrot.slane %v793_v15, 1  ;;  %v802_v35 = vrot.slane %v800_v20, 1  ;;  %v2734_v15 = vcombine.low %v665_v9, %v3514_v30  ;;  %v968_v11 = vshrl.u32 %v2747_v8, 16  ;;  %v673_v30 = vld [vmem:[#allocation2 + $0x40] sm:$0xf] }
  0x5e   : > { %v810_v63 = vor.u32 %v809_v51, %v805_v21  ;;  %v688_v51 = vld [vmem:[#allocation2 + $0x38] sm:$0xe] }
  0x5f   : > { %1089 = vrot.lane.b32.xlu1 %v2762_v50, %s3158_s14  ;;  %v803_v18 = vor.u32 %v802_v35, %v798_v45  ;;  %v1458_v50 = vsel %vm1456_vm15, %v3071_v41, 0  ;;  %v2741_v45 = vcombine.low %v672_v6, %v672_v6 }
  0x60   : > { %1183 = vrot.lane.b32.xlu0 %v1143_v47, %s3161_s17  ;;  %v796_v47 = vor.u32 %v795_v39, %v791_v10  ;;  %2957 = vmatpush3.bf16.msra.mxu0 %v1458_v50  ;;  %v858_v39 = vrot.slane %v2734_v15, 1  ;;  %v2755_v50 = vcombine.low %v686_v46, %v678_v62  ;;  %v703_v62 = vld [vmem:[#allocation2 + $0x34] sm:$0x1] }
  0x61   : > { %2958 = vmatprep.subr.bf16.mxu0 %v3072_v44 }
  0x63   : > { %1181 = vrot.lane.b32.xlu1 %v1136_v59, %s3161_s17  ;;  %v2733_v59 = vcombine.low %v664_v16, %v3500_v34  ;;  %v680_v34 = vld [vmem:[#allocation2 + $0x3c] sm:$0x1] }
  0x64   : > { %1227 = vrot.lane.b32.xlu0 %v1219_v60, %s3162_s18  ;;  %v663_v60 = vld [vmem:[#allocation2 + $0x28] sm:$0xe]  ;;  %2959 = vmatpush3.bf16.msra.mxu0 %v3072_v44  ;;  %v2749_v20 = vcombine.low %v672_v6, %v680_v34  ;;  %v2750_v44 = vcombine.low %v673_v30, %v681_v40 }
  0x65   : > { %2960 = vmatprep.subr.bf16.mxu0 %v3073_v23  ;;  %v857_v4 = vrot.slane %v2733_v59, 1  ;;  %v2732_v5 = vcombine.low %v663_v60, %v3496_v56  ;;  %v679_v56 = vld [vmem:[#allocation2 + $0x34] sm:$0x1]  ;;  %v1039_v59 = vrot.slane %v2755_v50, 1  ;;  %v711_v50 = vld [vmem:[#allocation2 + $0x30] sm:$0xe] }
  0x66   : > { %v984_v38 = vshll.u32 %v2749_v20, 16  ;;  %v991_v21 = vshll.u32 %v2750_v44, 16  ;;  %v989_v29 = vshrl.u32 %v2750_v44, 16 }
  0x67   : > { %1185 = vrot.lane.b32.xlu1 %v1150_v12, %s3161_s17  ;;  %v3075_v12 = vld [vmem:[%s4100_s3] sm:$0xff]  }
  0x68   : > { %819 = vrot.lane.b32.xlu0 %v789_v13, %s3156_s12  ;;  %2961 = vmatpush3.bf16.msra.mxu0 %v3073_v23  ;;  %v856_v13 = vrot.slane %v2732_v5, 1  ;;  %v695_v5 = vld [vmem:[#allocation2 + $0x30] sm:$0xf] }
  0x69   : > { %2962 = vmatprep.subr.bf16.mxu0 %v3074_v0  ;;  %v2771_v6 = vcombine.low %v695_v5, %v703_v62  ;;  %v2763_v15 = vcombine.low %v695_v5, %v695_v5 }
  0x6b   : > { %1229 = vrot.lane.b32.xlu1 %v1220_v52, %s3162_s18  ;;  %v970_v52 = vshll.u32 %v2747_v8, 16 }
  0x6c   : > { %1231 = vrot.lane.b32.xlu0 %v1221_v33, %s3162_s18  ;;  %v671_v33 = vld [vmem:[#allocation2 + $0x30] sm:$0xf]  ;;  %2963 = vmatpush3.bf16.msra.mxu0 %v3074_v0  ;;  %v993_v0 = vrot.slane %v991_v21, 1 }
  0x6d   : > { %v2748_v10 = vcombine.low %v671_v33, %v679_v56  ;;  %2964 = vmatprep.subr.bf16.mxu0 %v3075_v12  ;;  %v972_v35 = vrot.slane %v970_v52, 1  ;;  %v2740_v41 = vcombine.low %v671_v33, %v671_v33 }
  0x6e   : > { %v994_v8 = vor.u32 %v993_v0, %v989_v29  ;;  %v713_v29 = vld [vmem:[#allocation2 + $0x40] sm:$0xe] }
  0x6f   : > { %821 = vrot.lane.b32.xlu1 %v796_v47, %s3156_s12  ;;  %v977_v31 = vshll.u32 %v2748_v10, 16  ;;  %v973_v42 = vor.u32 %v972_v35, %v968_v11  ;;  %v982_v47 = vshrl.u32 %v2749_v20, 16  ;;  %v975_v16 = vshrl.u32 %v2748_v10, 16  ;;  %v697_v20 = vld [vmem:[#allocation2 + $0x40] sm:$0xf] }
  0x70   : > { %823 = vrot.lane.b32.xlu0 %v803_v18, %s3156_s12  ;;  %2965 = vmatpush3.bf16.msra.mxu0 %v3075_v12  ;;  %v986_v18 = vrot.slane %v984_v38, 1  ;;  %v689_v12 = vld [vmem:[#allocation2 + $0x40] sm:$0xe]  ;;  %v704_v10 = vld [vmem:[#allocation2 + $0x3c] sm:$0x1]  ;;  %v1154_v11 = vshll.u32 %v2771_v6, 16  ;;  %v2765_v38 = vcombine.low %v697_v20, %v697_v20 }
  0x71   : > { %v2758_v52 = vcombine.low %v689_v12, %v681_v40  ;;  %v1152_v35 = vshrl.u32 %v2771_v6, 16 }
  0x72   : > { %v987_v23 = vor.u32 %v986_v18, %v982_v47 }
  0x73   : > { %1233 = vrot.lane.b32.xlu1 %v1222_v54, %s3162_s18  ;;  %v979_v54 = vrot.slane %v977_v31, 1 }
  0x74   : > { %867 = vrot.lane.b32.xlu0 %v855_v61, %s3155_s11  ;;  %v2742_v61 = vcombine.low %v673_v30, %v673_v30  ;;  %v706_v30 = vld [vmem:[#allocation2 + $0x4c] sm:$0x1] }
  0x75   : > { %v980_v60 = vor.u32 %v979_v54, %v975_v16  ;;  %v2779_v54 = vcombine.low %v711_v50, %v703_v62  ;;  %v712_v62 = vld [vmem:[#allocation2 + $0x38] sm:$0xe] }
  0x76   : > { %v2780_v12 = vcombine.low %v712_v62, %v704_v10 }
  0x77   : > { %825 = vrot.lane.b32.xlu1 %v810_v63, %s3156_s12  ;;  %v2757_v63 = vcombine.low %v688_v51, %v680_v34  ;;  %v1223_v0 = vrot.slane %v2779_v54, 1 }
  0x78   : > { %871 = vrot.lane.b32.xlu0 %v857_v4, %s3155_s11  ;;  %v687_v4 = vld [vmem:[#allocation2 + $0x30] sm:$0xe] }
  0x79   : > { %v1041_v9 = vrot.slane %v2757_v63, 1 }
  0x7b   : > { %869 = vrot.lane.b32.xlu1 %v856_v13, %s3155_s11  ;;  %v705_v13 = vld [vmem:[#allocation2 + $0x44] sm:$0x1] }
  0x7c   : > { %907 = vrot.lane.b32.xlu0 %v2739_v14, %s3157_s13  ;;  %v2756_v14 = vcombine.low %v687_v4, %v679_v56  ;;  %v2773_v33 = vcombine.low %v697_v20, %v705_v13  ;;  %v1042_v56 = vrot.slane %v2758_v52, 1  ;;  %v366_v52 = vld [vmem:[#allocation3 + $0x18] sm:$0x1] }
  0x7e   : > { %v1040_v34 = vrot.slane %v2756_v14, 1  ;;  %v1168_v31 = vshll.u32 %v2773_v33, 16  ;;  %v1166_v18 = vshrl.u32 %v2773_v33, 16  ;;  %v396_v33 = vld [vmem:[#allocation3 + $0x1c] sm:$0x1] }
  0x7f   : > { %873 = vrot.lane.b32.xlu1 %v858_v39, %s3155_s11  ;;  %v696_v39 = vld [vmem:[#allocation2 + $0x38] sm:$0xf] }
  0x80   : > { %911 = vrot.lane.b32.xlu0 %v2741_v45, %s3157_s13  ;;  %v2772_v45 = vcombine.low %v696_v39, %v704_v10  ;;  %v2764_v44 = vcombine.low %v696_v39, %v696_v39  ;;  %v1170_v46 = vrot.slane %v1168_v31, 1  ;;  %v397_v39 = vsel %vm3226_vm5, 0, %v396_v33 }
  0x81   : > { %398 = vst [vmem:[#allocation3 + $0x1c] sm:$0x1] %v397_v39 }
  0x82   : > { %v1161_v16 = vshll.u32 %v2772_v45, 16  ;;  %v1171_v21 = vor.u32 %v1170_v46, %v1166_v18  ;;  %v1159_v51 = vshrl.u32 %v2772_v45, 16 }
  0x83   : > { %909 = vrot.lane.b32.xlu1 %v2740_v41, %s3157_s13  ;;  %v1156_v41 = vrot.slane %v1154_v11, 1  ;;  %v367_v11 = vsel %vm3214_vm3, 0, %v366_v52 }
  0x84   : > { %1003 = vrot.lane.b32.xlu0 %v973_v42, %s3160_s16  ;;  %v698_v42 = vld [vmem:[#allocation2 + $0x48] sm:$0xf]  ;;  %368 = vst [vmem:[#allocation3 + $0x18] sm:$0x1] %v367_v11 }
  0x85   : > { %v2774_v47 = vcombine.low %v698_v42, %v706_v30  ;;  %v1157_v40 = vor.u32 %v1156_v41, %v1152_v35 }
  0x87   : > { %913 = vrot.lane.b32.xlu1 %v2742_v61, %s3157_s13  ;;  %v1173_v5 = vshrl.u32 %v2774_v47, 16 }
  0x88   : > { %1007 = vrot.lane.b32.xlu0 %v987_v23, %s3160_s16  ;;  %v2766_v23 = vcombine.low %v698_v42, %v698_v42 }
  0x8b   : > { %1005 = vrot.lane.b32.xlu1 %v980_v60, %s3160_s16  ;;  %v1175_v60 = vshll.u32 %v2774_v47, 16 }
  0x8c   : > { %1051 = vrot.lane.b32.xlu0 %v1039_v59, %s3159_s15  ;;  %v1163_v59 = vrot.slane %v1161_v16, 1 }
  0x8e   : > { %v1164_v4 = vor.u32 %v1163_v59, %v1159_v51 }
  0x8f   : > { %1009 = vrot.lane.b32.xlu1 %v994_v8, %s3160_s16  ;;  %v1177_v8 = vrot.slane %v1175_v60, 1 }
  0x90   : > { %1055 = vrot.lane.b32.xlu0 %v1041_v9, %s3159_s15  ;;  %v2781_v9 = vcombine.low %v713_v29, %v705_v13  ;;  %v1224_v13 = vrot.slane %v2780_v12, 1  ;;  %v3145_v29 = vld [vmem:[#allocation2] sm:$0xf] }
  0x91   : > { %v1178_v14 = vor.u32 %v1177_v8, %v1173_v5 }
  0x92   : > { %v1225_v6 = vrot.slane %v2781_v9, 1 }
  0x93   : > { %1053 = vrot.lane.b32.xlu1 %v1040_v34, %s3159_s15 }
  0x94   : > { %1091 = vrot.lane.b32.xlu0 %v2763_v15, %s3158_s14  ;;  %v714_v15 = vld [vmem:[#allocation2 + $0x48] sm:$0xe] }
  0x95   : > { %v2782_v45 = vcombine.low %v714_v15, %v706_v30 }
  0x97   : > { %1057 = vrot.lane.b32.xlu1 %v1042_v56, %s3159_s15  ;;  %v3566_v61 = vpop.permute.xlu0 %859  ;;  %v1226_v56 = vrot.slane %v2782_v45, 1 }
  0x98   : > { %1095 = vrot.lane.b32.xlu0 %v2765_v38, %s3158_s14 }
  0x9b   : > { %1093 = vrot.lane.b32.xlu1 %v2764_v44, %s3158_s14  ;;  %v812_v63 = vpop.permute.xlu0 %811 }
  0x9c   : > { %1187 = vrot.lane.b32.xlu0 %v1157_v40, %s3161_s17 }
  0x9f   : > { %1097 = vrot.lane.b32.xlu1 %v2766_v23, %s3158_s14 }
  0xa0   : > { %1191 = vrot.lane.b32.xlu0 %v1171_v21, %s3161_s17 }
  0xa3   : > { %1189 = vrot.lane.b32.xlu1 %v1164_v4, %s3161_s17 }
  0xa4   : > { %1235 = vrot.lane.b32.xlu0 %v1223_v0, %s3162_s18  ;;  %v1246_v0 = vsel %vm1243_vm1, %v3145_v29, %v812_v63 }
  0xa5   : > { %v902_v20 = vpop.permute.xlu1 %901  ;;  %v1270_v9 = vsel %vm1268_vm2, %v1246_v0, %v3566_v61 }
  0xa6   : > { %v900_v34 = vpop.permute.xlu0 %899 }
  0xa7   : > { %1193 = vrot.lane.b32.xlu1 %v1178_v14, %s3161_s17  ;;  %v1287_v14 = vsel %vm1285_vm4, %v1270_v9, %v900_v34 }
  0xa8   : > { %1239 = vrot.lane.b32.xlu0 %v1225_v6, %s3162_s18 }
  0xa9   : > { %v3580_v10 = vpop.permute.xlu1 %905 }
  0xaa   : > { %v904_v35 = vpop.permute.xlu0 %903 }
  0xab   : > { %1237 = vrot.lane.b32.xlu1 %v1224_v13, %s3162_s18 }
  0xad   : > { %v1086_v38 = vpop.permute.xlu1 %1085 }
  0xae   : > { %v1084_v41 = vpop.permute.xlu0 %1083 }
  0xaf   : > { %1241 = vrot.lane.b32.xlu1 %v1226_v56, %s3162_s18 }
  0xb1   : > { %v862_v42 = vpop.permute.xlu1 %861 }
  0xb2   : > { %v864_v31 = vpop.permute.xlu0 %863 }
  0xb5   : > { %v866_v47 = vpop.permute.xlu1 %865 }
  0xb6   : > { %v1044_v44 = vpop.permute.xlu0 %1043 }
  0xb9   : > { %v1046_v18 = vpop.permute.xlu1 %1045 }
  0xba   : > { %v1048_v40 = vpop.permute.xlu0 %1047 }
  0xbd   : > { %v1050_v46 = vpop.permute.xlu1 %1049 }
  0xbe   : > { %v814_v30 = vpop.permute.xlu0 %813 }
  0xbf   : > { %v1249_v4 = vsel %vm1243_vm1, %v3381_v43, %v814_v30 }
  0xc0   : > { %v1272_v62 = vsel %vm1268_vm2, %v1249_v4, %v862_v42 }
  0xc1   : > { %v816_v16 = vpop.permute.xlu1 %815  ;;  %v1289_v6 = vsel %vm1285_vm4, %v1272_v62, %v902_v20 }
  0xc2   : > { %v996_v50 = vpop.permute.xlu0 %995  ;;  %v1252_v52 = vsel %vm1243_vm1, %v3384_v53, %v816_v16 }
  0xc3   : > { %v1304_v63 = vsel %vm1302_vm6, %v1287_v14, %v996_v50  ;;  %v1274_v39 = vsel %vm1268_vm2, %v1252_v52, %v864_v31 }
  0xc4   : > { %v1321_v61 = vsel %vm1319_vm7, %v1304_v63, %v1044_v44  ;;  %v1291_v56 = vsel %vm1285_vm4, %v1274_v39, %v904_v35 }
  0xc5   : > { %v818_v23 = vpop.permute.xlu1 %817  ;;  %v1338_v45 = vsel %vm1336_vm8, %v1321_v61, %v1084_v41 }
  0xc6   : > { %v1000_v54 = vpop.permute.xlu0 %999  ;;  %v1255_v33 = vsel %vm1243_vm1, %v3402_v7, %v818_v23 }
  0xc7   : > { %v1276_v13 = vsel %vm1268_vm2, %v1255_v33, %v866_v47  ;;  %v1308_v41 = vsel %vm1302_vm6, %v1291_v56, %v1000_v54 }
  0xc8   : > { %v1293_v47 = vsel %vm1285_vm4, %v1276_v13, %v3580_v10  ;;  %v1325_v23 = vsel %vm1319_vm7, %v1308_v41, %v1048_v40 }
  0xc9   : > { %v998_v21 = vpop.permute.xlu1 %997 }
  0xca   : > { %v1088_v51 = vpop.permute.xlu0 %1087  ;;  %v1306_v43 = vsel %vm1302_vm6, %v1289_v6, %v998_v21 }
  0xcb   : > { %v1323_v11 = vsel %vm1319_vm7, %v1306_v43, %v1046_v18 }
  0xcc   : > { %v1340_v53 = vsel %vm1336_vm8, %v1323_v11, %v1086_v38 }
  0xcd   : > { %v1002_v59 = vpop.permute.xlu1 %1001 }
  0xce   : > { %v1180_v60 = vpop.permute.xlu0 %1179  ;;  %v1310_v38 = vsel %vm1302_vm6, %v1293_v47, %v1002_v59 }
  0xcf   : > { %v1355_v42 = vsel %vm1353_vm9, %v1338_v45, %v1180_v60  ;;  %v1327_v21 = vsel %vm1319_vm7, %v1310_v38, %v1050_v46  ;;  %v1342_v60 = vsel %vm1336_vm8, %v1325_v23, %v1088_v51 }
  0xd1   : > { %v1090_v5 = vpop.permute.xlu1 %1089 }
  0xd2   : > { %v1184_v8 = vpop.permute.xlu0 %1183  ;;  %v1344_v29 = vsel %vm1336_vm8, %v1327_v21, %v1090_v5 }
  0xd3   : > { %v1359_v0 = vsel %vm1353_vm9, %v1342_v60, %v1184_v8 }
  0xd5   : > { %v1182_v12 = vpop.permute.xlu1 %1181 }
  0xd6   : > { %v1228_v15 = vpop.permute.xlu0 %1227  ;;  %v1357_v7 = vsel %vm1353_vm9, %v1340_v53, %v1182_v12 }
  0xd7   : > { %v1372_v30 = vsel %vm1370_vm11, %v1355_v42, %v1228_v15 }
  0xd9   : > { %v1186_v34 = vpop.permute.xlu1 %1185 }
  0xda   : > { %v820_v20 = vpop.permute.xlu0 %819  ;;  %v1361_v10 = vsel %vm1353_vm9, %v1344_v29, %v1186_v34 }
  0xdd   : > { %v1230_v44 = vpop.permute.xlu1 %1229 }
  0xde   : > { %v1232_v18 = vpop.permute.xlu0 %1231  ;;  %v1374_v31 = vsel %vm1370_vm11, %v1357_v7, %v1230_v44  ;;  %v1258_v44 = vsel %vm1243_vm1, %v3469_v25, %v820_v20 }
  0xdf   : > { %v2783_v16 = vcombine.low %v1372_v30, %v1374_v31  ;;  %v1376_v59 = vsel %vm1370_vm11, %v1359_v0, %v1232_v18 }
  0xe1   : > { %v822_v35 = vpop.permute.xlu1 %821  ;;  %2966 = vmatprep.mubr.msk.bf16.mxu0 %vm1443_vm12, %v2783_v16 }
  0xe2   : > { %v824_v50 = vpop.permute.xlu0 %823  ;;  %v1261_v18 = vsel %vm1243_vm1, %v3490_v55, %v822_v35 }
  0xe3   : > { %v1264_v47 = vsel %vm1243_vm1, %v3498_v58, %v824_v50 }
  0xe5   : > { %v1234_v4 = vpop.permute.xlu1 %1233 }
  0xe6   : > { %v868_v54 = vpop.permute.xlu0 %867  ;;  %v1378_v9 = vsel %vm1370_vm11, %v1361_v10, %v1234_v4 }
  0xe7   : > { %v2784_v62 = vcombine.low %v1376_v59, %v1378_v9  ;;  %v1278_v30 = vsel %vm1268_vm2, %v1258_v44, %v868_v54  ;;  %v414_v44 = vld [vmem:[#allocation3 + $0x4c] sm:$0x1] }
  0xe9   : > { %v826_v14 = vpop.permute.xlu1 %825  ;;  %2967 = vmatmul.mubr.msk.bf16.vlgmr.msra.gmra.mxu0 %vm1443_vm12, %v2784_v62 }
  0xea   : > { %v872_v40 = vpop.permute.xlu0 %871  ;;  %v1267_v55 = vsel %vm1243_vm1, %v3512_v22, %v826_v14 }
  0xeb   : > { %v1282_v60 = vsel %vm1268_vm2, %v1264_v47, %v872_v40 }
  0xed   : > { %v870_v46 = vpop.permute.xlu1 %869 }
  0xee   : > { %v908_v6 = vpop.permute.xlu0 %907  ;;  %v1280_v31 = vsel %vm1268_vm2, %v1261_v18, %v870_v46  ;;  %v369_v18 = vld [vmem:[#allocation3 + $0x20] sm:$0x1] }
  0xef   : > { %v1295_v16 = vsel %vm1285_vm4, %v1278_v30, %v908_v6  ;;  %v399_v30 = vld [vmem:[#allocation3 + $0x24] sm:$0x1]  ;;  %v370_v47 = vsel %vm3214_vm3, 0, %v369_v18 }
  0xf0   : > { %371 = vst [vmem:[#allocation3 + $0x20] sm:$0x1] %v370_v47 }
  0xf1   : > { %v874_v51 = vpop.permute.xlu1 %873 }
  0xf2   : > { %v912_v12 = vpop.permute.xlu0 %911  ;;  %v1284_v58 = vsel %vm1268_vm2, %v1267_v55, %v874_v51 }
  0xf3   : > { %v1299_v0 = vsel %vm1285_vm4, %v1282_v60, %v912_v12 }
  0xf5   : > { %v910_v5 = vpop.permute.xlu1 %909 }
  0xf6   : > { %v1004_v15 = vpop.permute.xlu0 %1003  ;;  %v1297_v41 = vsel %vm1285_vm4, %v1280_v31, %v910_v5  ;;  %v415_v31 = vsel %vm3226_vm5, 0, %v414_v44 }
  0xf7   : > { %v1312_v21 = vsel %vm1302_vm6, %v1295_v16, %v1004_v15  ;;  %v400_v16 = vsel %vm3226_vm5, 0, %v399_v30  ;;  %416 = vst [vmem:[#allocation3 + $0x4c] sm:$0x1] %v415_v31 }
  0xf8   : > { %401 = vst [vmem:[#allocation3 + $0x24] sm:$0x1] %v400_v16 }
  0xf9   : > { %v914_v8 = vpop.permute.xlu1 %913 }
  0xfa   : > { %v1008_v63 = vpop.permute.xlu0 %1007  ;;  %v1301_v10 = vsel %vm1285_vm4, %v1284_v58, %v914_v8 }
  0xfb   : > { %v1316_v59 = vsel %vm1302_vm6, %v1299_v0, %v1008_v63 }
  0xfd   : > { %v1006_v43 = vpop.permute.xlu1 %1005 }
  0xfe   : > { %v1052_v52 = vpop.permute.xlu0 %1051  ;;  %v1314_v25 = vsel %vm1302_vm6, %v1297_v41, %v1006_v43  ;;  %v363_v41 = vld [vmem:[#allocation3 + $0x10] sm:$0x1]  ;;  %v3684_v60 = vld [vmem:[#allocation3 + $0x4c] sm:$0x1] }
  0xff   : > { %v1329_v20 = vsel %vm1319_vm7, %v1312_v21, %v1052_v52  ;;  %v364_v21 = vsel %vm3214_vm3, 0, %v363_v41 }
 0x100   : > { %365 = vst [vmem:[#allocation3 + $0x10] sm:$0x1] %v364_v21 }
 0x101   : > { %v1010_v61 = vpop.permute.xlu1 %1009 }
 0x102   : > { %v1056_v33 = vpop.permute.xlu0 %1055  ;;  %v1318_v9 = vsel %vm1302_vm6, %v1301_v10, %v1010_v61 }
 0x103   : > { %v1333_v40 = vsel %vm1319_vm7, %v1316_v59, %v1056_v33  ;;  %v357_v33 = vld [vmem:[#allocation3] sm:$0x1] }
 0x105   : > { %v1054_v11 = vpop.permute.xlu1 %1053 }
 0x106   : > { %v1092_v34 = vpop.permute.xlu0 %1091  ;;  %v1331_v35 = vsel %vm1319_vm7, %v1314_v25, %v1054_v11  ;;  %v387_v11 = vld [vmem:[#allocation3 + $0x4] sm:$0x1] }
 0x107   : > { %v1346_v50 = vsel %vm1336_vm8, %v1329_v20, %v1092_v34  ;;  %v358_v34 = vsel %vm3214_vm3, 0, %v357_v33 }
 0x108   : > { %359 = vst [vmem:[#allocation3] sm:$0x1] %v358_v34  ;;  %v405_v34 = vld [vmem:[#allocation3 + $0x34] sm:$0x1] }
 0x109   : > { %v1058_v39 = vpop.permute.xlu1 %1057 }
 0x10a   : > { %v1096_v13 = vpop.permute.xlu0 %1095  ;;  %v1335_v46 = vsel %vm1319_vm7, %v1318_v9, %v1058_v39  ;;  %v388_v39 = vsel %vm3226_vm5, 0, %v387_v11  ;;  %v375_v11 = vld [vmem:[#allocation3 + $0x30] sm:$0x1] }
 0x10b   : > { %v1350_v12 = vsel %vm1336_vm8, %v1333_v40, %v1096_v13  ;;  %389 = vst [vmem:[#allocation3 + $0x4] sm:$0x1] %v388_v39  ;;  %v360_v13 = vld [vmem:[#allocation3 + $0x8] sm:$0x1]  ;;  %v376_v39 = vsel %vm3214_vm3, 0, %v375_v11 }
 0x10c   : > { %377 = vst [vmem:[#allocation3 + $0x30] sm:$0x1] %v376_v39 }
 0x10d   : > { %v1094_v45 = vpop.permute.xlu1 %1093 }
 0x10e   : > { %v1188_v53 = vpop.permute.xlu0 %1187  ;;  %v1348_v29 = vsel %vm1336_vm8, %v1331_v35, %v1094_v45  ;;  %v390_v45 = vld [vmem:[#allocation3 + $0xc] sm:$0x1] }
 0x10f   : > { %v1363_v4 = vsel %vm1353_vm9, %v1346_v50, %v1188_v53  ;;  %v384_v53 = vld [vmem:[#allocation3 + $0x48] sm:$0x1] }
 0x111   : > { %v1098_v56 = vpop.permute.xlu1 %1097 }
 0x112   : > { %v1192_v42 = vpop.permute.xlu0 %1191  ;;  %v1352_v5 = vsel %vm1336_vm8, %v1335_v46, %v1098_v56  ;;  %v361_v56 = vsel %vm3214_vm3, 0, %v360_v13  ;;  %v1740_v55 = vld [vmem:[#allocation3 + $0x4] sm:$0x1]  ;;  %v378_v46 = vld [vmem:[#allocation3 + $0x38] sm:$0x1]  ;;  %v406_v13 = vsel %vm3226_vm5, 0, %v405_v34 }
 0x113   : > { %v1367_v15 = vsel %vm1353_vm9, %v1350_v12, %v1192_v42  ;;  %v391_v42 = vsel %vm3226_vm5, 0, %v390_v45  ;;  %362 = vst [vmem:[#allocation3 + $0x8] sm:$0x1] %v361_v56  ;;  %407 = vst [vmem:[#allocation3 + $0x34] sm:$0x1] %v406_v13 }
 0x114   : > { %392 = vst [vmem:[#allocation3 + $0xc] sm:$0x1] %v391_v42  ;;  %v3710_v45 = vld [vmem:[%s4101_s4] ss:$0 sm:$0xff]  ;;  %v1702_v13 = vld [vmem:[#allocation3 + $0x20] sm:$0xf] }
 0x115   : > { %v1190_v7 = vpop.permute.xlu1 %1189  ;;  %v3715_v56 = vld [vmem:[%s4102_s5] ss:$0 sm:$0xff] }
 0x116   : > { %v1236_v38 = vpop.permute.xlu0 %1235  ;;  %v1365_v22 = vsel %vm1353_vm9, %v1348_v29, %v1190_v7  ;;  %v385_v7 = vsel %vm3214_vm3, 0, %v384_v53 }
 0x117   : > { %v1380_v62 = vsel %vm1370_vm11, %v1363_v4, %v1236_v38  ;;  %386 = vst [vmem:[#allocation3 + $0x48] sm:$0x1] %v385_v7  ;;  %v393_v38 = vld [vmem:[#allocation3 + $0x14] sm:$0x1] }
 0x118   : > { %v394_v25 = vsel %vm3226_vm5, 0, %v393_v38 }
 0x119   : > { %v1194_v23 = vpop.permute.xlu1 %1193  ;;  %395 = vst [vmem:[#allocation3 + $0x14] sm:$0x1] %v394_v25 }
 0x11a   : > { %v1240_v6 = vpop.permute.xlu0 %1239  ;;  %v1369_v8 = vsel %vm1353_vm9, %v1352_v5, %v1194_v23  ;;  %v3677_v23 = vld [vmem:[#allocation3] sm:$0xf]  ;;  %v372_v5 = vld [vmem:[#allocation3 + $0x28] sm:$0x1] }
 0x11b   : > { %v1384_v43 = vsel %vm1370_vm11, %v1367_v15, %v1240_v6  ;;  %v2806_v20 = vcombine.low %v3677_v23, %v1740_v55  ;;  %v408_v6 = vld [vmem:[#allocation3 + $0x3c] sm:$0x1]  ;;  %v402_v15 = vld [vmem:[#allocation3 + $0x2c] sm:$0x1] }
 0x11c   : > { %v409_v12 = vsel %vm3226_vm5, 0, %v408_v6 }
 0x11d   : > { %v1238_v54 = vpop.permute.xlu1 %1237  ;;  %v1846_v58 = vshrl.u32 %v2806_v20, 16  ;;  %v1848_v50 = vshll.u32 %v2806_v20, 16  ;;  %410 = vst [vmem:[#allocation3 + $0x3c] sm:$0x1] %v409_v12  ;;  %v1684_v12 = vld [vmem:[#allocation3 + $0x8] sm:$0xf] }
 0x11e   : > { %v1382_v14 = vsel %vm1370_vm11, %v1365_v22, %v1238_v54  ;;  %v1788_v35 = vld [vmem:[#allocation3 + $0x48] sm:$0xf]  ;;  %v1748_v22 = vld [vmem:[#allocation3] sm:$0xe] }
 0x11f   : > { %v2785_v51 = vcombine.low %v1380_v62, %v1382_v14  ;;  %v2861_v29 = vcombine.low %v1788_v35, %v3684_v60  ;;  %v2853_v0 = vcombine.low %v1788_v35, %v1788_v35  ;;  %v1850_v10 = vrot.slane %v1848_v50, 1 }
 0x120   : > { %v2814_v9 = vcombine.low %v1748_v22, %v1740_v55  ;;  %v1696_v22 = vld [vmem:[#allocation3 + $0x18] sm:$0xf] }
 0x121   : > { %v1242_v63 = vpop.permute.xlu1 %1241  ;;  %2970 = vmatprep.mubr.msk.bf16.mxu0 %vm1443_vm12, %v2785_v51  ;;  %v2265_v4 = vshll.u32 %v2861_v29, 16  ;;  %2187 = vrot.lane.b32.xlu1 %v2853_v0, %s3158_s14  ;;  %v1851_v54 = vor.u32 %v1850_v10, %v1846_v58  ;;  %v2263_v59 = vshrl.u32 %v2861_v29, 16  ;;  %v379_v51 = vsel %vm3214_vm3, 0, %v378_v46 }
 0x122   : > { %v1386_v52 = vsel %vm1370_vm11, %v1369_v8, %v1242_v63  ;;  %v1941_v14 = vrot.slane %v2814_v9, 1  ;;  %380 = vst [vmem:[#allocation3 + $0x38] sm:$0x1] %v379_v51  ;;  %v373_v8 = vsel %vm3214_vm3, 0, %v372_v5  ;;  %v403_v63 = vsel %vm3226_vm5, 0, %v402_v15 }
 0x123   : > { %v2786_v61 = vcombine.low %v1384_v43, %v1386_v52  ;;  %v2267_v62 = vrot.slane %v2265_v4, 1  ;;  %1901 = vrot.lane.b32.xlu0 %v1851_v54, %s3156_s12  ;;  %374 = vst [vmem:[#allocation3 + $0x28] sm:$0x1] %v373_v8  ;;  %404 = vst [vmem:[#allocation3 + $0x2c] sm:$0x1] %v403_v63 }
 0x124   : > { %v381_v43 = vld [vmem:[#allocation3 + $0x40] sm:$0x1]  ;;  %v411_v52 = vld [vmem:[#allocation3 + $0x44] sm:$0x1]  ;;  %v1699_v9 = vld [vmem:[#allocation3 + $0x1c] sm:$0x1] }
 0x125   : > { %2971 = vmatmul.mubr.msk.bf16.gmra.mxu0 %vm1443_vm12, %v2786_v61  ;;  %v2268_v40 = vor.u32 %v2267_v62, %v2263_v59  ;;  %v382_v61 = vsel %vm3214_vm3, 0, %v381_v43  ;;  %v412_v33 = vsel %vm3226_vm5, 0, %v411_v52  ;;  %v1687_v5 = vld [vmem:[#allocation3 + $0xc] sm:$0x1] }
 0x126   : > { %383 = vst [vmem:[#allocation3 + $0x40] sm:$0x1] %v382_v61  ;;  %413 = vst [vmem:[#allocation3 + $0x44] sm:$0x1] %v412_v33 }
 0x127   : > { %2283 = vrot.lane.b32.xlu1 %v2268_v40, %s3161_s17  ;;  %1949 = vrot.lane.b32.xlu0 %v1941_v14, %s3155_s11 }
 0x1a9   : > { %v2968_v53 = vpop.f32.mrf.mxu0 }
 0x1aa   : > { %v1534_v42 = vmul.f32 %v2968_v53, %v3710_v45  ;;  %v1705_v53 = vld [vmem:[#allocation3 + $0x24] sm:$0x1] }
 0x1ab   : > { %v1494_v7 = vpop.f32.mrf.mxu0 }
 0x1ac   : > { %v1549_v44 = vadd.f32 %v3715_v56, %v1534_v42  ;;  %v1532_v3 = vmul.f32 %v3710_v45, %v1494_v7 }
 0x1ad   : > { %v2969_v18 = vpop.f32.mrf.mxu0 }
 0x1ae   : > { %vm1557_vm5 = vcmp.ge.f32.partialorder %v1549_v44, 0.0  ;;  %v1565_v30 = vmul.f32 0.1, %v1549_v44  ;;  %v1547_v31 = vadd.f32 %v3715_v56, %v1532_v3  ;;  %v1535_v47 = vmul.f32 %v2969_v18, %v3710_v45 }
 0x1af   : > { %v1497_v16 = vpop.f32.mrf.mxu0 }
 0x1b0   : > { %v1573_v41 = vsel %vm1557_vm5, %v1549_v44, %v1565_v30  ;;  %vm1555_vm13 = vcmp.ge.f32.partialorder %v1547_v31, 0.0  ;;  %v1563_v38 = vmul.f32 0.1, %v1547_v31  ;;  %v1550_v21 = vadd.f32 %v3715_v56, %v1535_v47  ;;  %v1690_v47 = vld [vmem:[#allocation3 + $0x10] sm:$0xf] }
 0x1b1   : > { %v2905_v25 = vpack.c.bf16 %v1573_v41, %v1573_v41  ;;  %v1533_v55 = vmul.f32 %v3710_v45, %v1497_v16  ;;  %v1693_v16 = vld [vmem:[#allocation3 + $0x14] sm:$0x1] }
 0x1b2   : > { %v1571_v20 = vsel %vm1555_vm13, %v1547_v31, %v1563_v38  ;;  %vm1558_vm14 = vcmp.ge.f32.partialorder %v1550_v21, 0.0  ;;  %v1566_v35 = vmul.f32 0.1, %v1550_v21 }
 0x1b3   : > { %v1620_v58 = vshrl.u32 %v2905_v25, 16  ;;  %v2903_v50 = vpack.c.bf16 %v1571_v20, %v1571_v20  ;;  %v1548_v29 = vadd.f32 %v3715_v56, %v1533_v55  ;;  %v1623_v4 = vshll.u32 %v2905_v25, 16 }
 0x1b4   : > { %v1574_v0 = vsel %vm1558_vm14, %v1550_v21, %v1566_v35 }
 0x1b5   : > { %v1622_v10 = vrot.slane %v1620_v58, 7  ;;  %v1604_v54 = vshrl.u32 %v2903_v50, 16  ;;  %v2906_v59 = vpack.c.bf16 %v1574_v0, %v1574_v0  ;;  %v1607_v62 = vshll.u32 %v2903_v50, 16 }
 0x1b6   : > { %vm1556_vm5 = vcmp.ge.f32.partialorder %v1548_v29, 0.0  ;;  %v1564_v14 = vmul.f32 0.1, %v1548_v29 }
 0x1b7   : > { %v1625_v40 = vor.u32 %v1623_v4, %v1622_v10  ;;  %v1626_v46 = vrot.slane %v1622_v10, 4  ;;  %v1606_v6 = vrot.slane %v1604_v54, 7  ;;  %v1628_v51 = vshrl.u32 %v2906_v59, 16 }
 0x1b8   : > { %v1572_v15 = vsel %vm1556_vm5, %v1548_v29, %v1564_v14  ;;  %v1631_v33 = vshll.u32 %v2906_v59, 16 }
 0x1b9   : > { %v1697_v8 = vsel %vm3313_vm10, %v1625_v40, %v1696_v22  ;;  %v1700_v63 = vsel %vm3214_vm3, %v1626_v46, %v1699_v9  ;;  %v1609_v43 = vor.u32 %v1607_v62, %v1606_v6  ;;  %v1610_v52 = vrot.slane %v1606_v6, 4 }
 0x1ba   : > { %1698 = vst [vmem:[#allocation3 + $0x18] sm:$0xf] %v1697_v8  ;;  %1701 = vst [vmem:[#allocation3 + $0x1c] sm:$0x1] %v1700_v63  ;;  %v1630_v61 = vrot.slane %v1628_v51, 7  ;;  %v2904_v11 = vpack.c.bf16 %v1572_v15, %v1572_v15 }
 0x1bb   : > { %v1685_v34 = vsel %vm3313_vm10, %v1609_v43, %v1684_v12  ;;  %v1688_v39 = vsel %vm3214_vm3, %v1610_v52, %v1687_v5 }
 0x1bc   : > { %1686 = vst [vmem:[#allocation3 + $0x8] sm:$0xf] %v1685_v34  ;;  %1689 = vst [vmem:[#allocation3 + $0xc] sm:$0x1] %v1688_v39  ;;  %v1633_v42 = vor.u32 %v1631_v33, %v1630_v61  ;;  %v1634_v7 = vrot.slane %v1630_v61, 4  ;;  %v1612_v44 = vshrl.u32 %v2904_v11, 16 }
 0x1bd   : > { %v1615_v31 = vshll.u32 %v2904_v11, 16 }
 0x1be   : > { %v1703_v3 = vsel %vm3313_vm10, %v1633_v42, %v1702_v13  ;;  %v1706_v18 = vsel %vm3214_vm3, %v1634_v7, %v1705_v53  ;;  %v1614_v30 = vrot.slane %v1612_v44, 7 }
 0x1bf   : > { %1704 = vst [vmem:[#allocation3 + $0x20] sm:$0xf] %v1703_v3  ;;  %1707 = vst [vmem:[#allocation3 + $0x24] sm:$0x1] %v1706_v18 }
 0x1c0   : > { %v1617_v41 = vor.u32 %v1615_v31, %v1614_v30  ;;  %v1618_v38 = vrot.slane %v1614_v30, 4 }
 0x1c1   : > { %v1782_v21 = vld [vmem:[#allocation3 + $0x18] sm:$0xf]  ;;  %v1743_v55 = vld [vmem:[#allocation3 + $0x1c] sm:$0x1] }
 0x1c2   : > { %v1758_v25 = vld [vmem:[#allocation3 + $0x18] sm:$0xf]  ;;  %v1691_v20 = vsel %vm3313_vm10, %v1617_v41, %v1690_v47  ;;  %v1694_v35 = vsel %vm3214_vm3, %v1618_v38, %v1693_v16  ;;  %v2847_v58 = vcombine.low %v1782_v21, %v1782_v21  ;;  %v1790_v0 = vld [vmem:[#allocation3 + $0x1c] sm:$0x1] }
 0x1c3   : > { %v2824_v50 = vcombine.low %v1758_v25, %v1758_v25  ;;  %v1751_v29 = vld [vmem:[#allocation3 + $0x18] sm:$0xe]  ;;  %1692 = vst [vmem:[#allocation3 + $0x10] sm:$0xf] %v1691_v20  ;;  %1695 = vst [vmem:[#allocation3 + $0x14] sm:$0x1] %v1694_v35  ;;  %v2855_v47 = vcombine.low %v1782_v21, %v1790_v0 }
 0x1c4   : > { %v2817_v10 = vcombine.low %v1751_v29, %v1743_v55  ;;  %v3741_v4 = vld [vmem:[#allocation3 + $0x8] sm:$0xf]  ;;  %v1798_v22 = vld [vmem:[#allocation3 + $0x18] sm:$0xe]  ;;  %v1766_v54 = vld [vmem:[#allocation3 + $0x1c] sm:$0x1]  ;;  %2175 = vrot.lane.b32.xlu1 %v2847_v58, %s3158_s14 }
 0x1c5   : > { %1993 = vrot.lane.b32.xlu0 %v2824_v50, %s3157_s13  ;;  %v1774_v59 = vld [vmem:[#allocation3 + $0x18] sm:$0xe]  ;;  %v2822_v14 = vcombine.low %v3741_v4, %v3741_v4  ;;  %v2863_v40 = vcombine.low %v1798_v22, %v1790_v0  ;;  %v1764_v6 = vld [vmem:[#allocation3 + $0xc] sm:$0x1]  ;;  %v1772_v51 = vld [vmem:[#allocation3 + $0x8] sm:$0xe]  ;;  %v2832_v8 = vcombine.low %v1758_v25, %v1766_v54 }
 0x1c6   : > { %v1944_v9 = vrot.slane %v2817_v10, 1  ;;  %v3745_v62 = vld [vmem:[#allocation3 + $0x18] sm:$0xf]  ;;  %v2840_v46 = vcombine.low %v1774_v59, %v1766_v54  ;;  %v1741_v12 = vld [vmem:[#allocation3 + $0xc] sm:$0x1]  ;;  %v2838_v52 = vcombine.low %v1772_v51, %v1764_v6  ;;  %v2223_v22 = vshll.u32 %v2855_v47, 16 }
 0x1c7   : > { %v1749_v5 = vld [vmem:[#allocation3 + $0x8] sm:$0xe]  ;;  %v2809_v15 = vcombine.low %v3745_v62, %v1743_v55  ;;  %v2310_v63 = vrot.slane %v2863_v40, 1  ;;  %v2046_v34 = vshll.u32 %v2832_v8, 16  ;;  %v3754_v13 = vld [vmem:[#allocation3 + $0x20] sm:$0xf] }
 0x1c8   : > { %1955 = vrot.lane.b32.xlu1 %v1944_v9, %s3155_s11  ;;  %v2127_v43 = vrot.slane %v2840_v46, 1  ;;  %v2815_v61 = vcombine.low %v1749_v5, %v1741_v12  ;;  %v2125_v33 = vrot.slane %v2838_v52, 1  ;;  %v3756_v53 = vld [vmem:[#allocation3 + $0x20] sm:$0xf]  ;;  %v2848_v42 = vcombine.low %v3754_v13, %v3754_v13  ;;  %v3766_v31 = vld [vmem:[#allocation3 + $0x8] sm:$0xf] }
 0x1c9   : > { %1989 = vrot.lane.b32.xlu0 %v2822_v14, %s3157_s13  ;;  %v1869_v39 = vshll.u32 %v2809_v15, 16  ;;  %v2825_v7 = vcombine.low %v3756_v53, %v3756_v53  ;;  %v2048_v44 = vrot.slane %v2046_v34, 1  ;;  %v2044_v18 = vshrl.u32 %v2832_v8, 16  ;;  %v3768_v38 = vld [vmem:[#allocation3 + $0x24] sm:$0x1] }
 0x1ca   : > { %v1942_v11 = vrot.slane %v2815_v61, 1  ;;  %v1867_v30 = vshrl.u32 %v2809_v15, 16  ;;  %v1799_v25 = vld [vmem:[#allocation3 + $0x20] sm:$0xe]  ;;  %v3770_v55 = vld [vmem:[#allocation3 + $0x24] sm:$0x1]  ;;  %v2807_v50 = vcombine.low %v3766_v31, %v1741_v12  ;;  %v2830_v9 = vcombine.low %v3741_v4, %v1764_v6 }
 0x1cb   : > { %v1871_v3 = vrot.slane %v1869_v39, 1  ;;  %v2049_v16 = vor.u32 %v2048_v44, %v2044_v18  ;;  %v3772_v20 = vld [vmem:[#allocation3 + $0x10] sm:$0xf]  ;;  %v1775_v58 = vld [vmem:[#allocation3 + $0x20] sm:$0xe]  ;;  %v2864_v21 = vcombine.low %v1799_v25, %v3768_v38  ;;  %v2225_v51 = vrot.slane %v2223_v22, 1 }
 0x1cc   : > { %2319 = vrot.lane.b32.xlu1 %v2310_v63, %s3162_s18  ;;  %v3774_v35 = vld [vmem:[#allocation3 + $0x10] sm:$0xf]  ;;  %v2846_v29 = vcombine.low %v3772_v20, %v3772_v20  ;;  %v2841_v10 = vcombine.low %v1775_v58, %v3770_v55  ;;  %v3785_v54 = vld [vmem:[#allocation3 + $0x24] sm:$0x1]  ;;  %v1752_v59 = vld [vmem:[#allocation3 + $0x20] sm:$0xe] }
 0x1cd   : > { %2137 = vrot.lane.b32.xlu0 %v2127_v43, %s3159_s15  ;;  %v1872_v41 = vor.u32 %v1871_v3, %v1867_v30  ;;  %v2823_v0 = vcombine.low %v3774_v35, %v3774_v35  ;;  %v2311_v14 = vrot.slane %v2864_v21, 1  ;;  %v2818_v46 = vcombine.low %v1752_v59, %v3785_v54  ;;  %v3791_v5 = vld [vmem:[#allocation3 + $0x14] sm:$0x1]  ;;  %v1750_v15 = vld [vmem:[#allocation3 + $0x10] sm:$0xe] }
 0x1ce   : > { %v2128_v40 = vrot.slane %v2841_v10, 1  ;;  %v1855_v12 = vshll.u32 %v2807_v50, 16  ;;  %v2221_v8 = vshrl.u32 %v2855_v47, 16  ;;  %v2032_v63 = vshll.u32 %v2830_v9, 16  ;;  %v3796_v6 = vld [vmem:[#allocation3 + $0x14] sm:$0x1] }
 0x1cf   : > { %v1945_v43 = vrot.slane %v2818_v46, 1  ;;  %v2816_v4 = vcombine.low %v1750_v15, %v3791_v5  ;;  %v3802_v18 = vld [vmem:[#allocation3 + $0x14] sm:$0x1]  ;;  %v1797_v30 = vld [vmem:[#allocation3 + $0x10] sm:$0xe]  ;;  %v2831_v1 = vcombine.low %v3774_v35, %v3796_v6 }
 0x1d0   : > { %1951 = vrot.lane.b32.xlu1 %v1942_v11, %s3155_s11  ;;  %v2226_v52 = vor.u32 %v2225_v51, %v2221_v8  ;;  %v1857_v61 = vrot.slane %v1855_v12, 1  ;;  %v1853_v11 = vshrl.u32 %v2807_v50, 16 }
 0x1d1   : > { %2133 = vrot.lane.b32.xlu0 %v2125_v33, %s3159_s15  ;;  %v1773_v33 = vld [vmem:[#allocation3 + $0x10] sm:$0xe]  ;;  %v1943_v3 = vrot.slane %v2816_v4, 1 }
 0x1d2   : > { %v2839_v39 = vcombine.low %v1773_v33, %v3796_v6  ;;  %v1858_v44 = vor.u32 %v1857_v61, %v1853_v11  ;;  %v1720_v11 = vld [vmem:[#allocation3 + $0x38] sm:$0xf] }
 0x1d4   : > { %1995 = vrot.lane.b32.xlu1 %v2825_v7, %s3157_s13  ;;  %v2126_v50 = vrot.slane %v2839_v39, 1 }
 0x1d5   : > { %2177 = vrot.lane.b32.xlu0 %v2848_v42, %s3158_s14  ;;  %v2034_v42 = vrot.slane %v2032_v63, 1 }
 0x1d8   : > { %1907 = vrot.lane.b32.xlu1 %v1872_v41, %s3156_s12 }
 0x1d9   : > { %2089 = vrot.lane.b32.xlu0 %v2049_v16, %s3160_s16  ;;  %v2030_v16 = vshrl.u32 %v2830_v9, 16 }
 0x1db   : > { %v2035_v21 = vor.u32 %v2034_v42, %v2030_v16  ;;  %v1723_v42 = vld [vmem:[#allocation3 + $0x3c] sm:$0x1]  ;;  %v2833_v16 = vcombine.low %v3756_v53, %v3770_v55  ;;  %v2856_v53 = vcombine.low %v3754_v13, %v3768_v38 }
 0x1dc   : > { %1991 = vrot.lane.b32.xlu1 %v2823_v0, %s3157_s13 }
 0x1dd   : > { %2173 = vrot.lane.b32.xlu0 %v2846_v29, %s3158_s14  ;;  %v2862_v29 = vcombine.low %v1797_v30, %v3802_v18  ;;  %v2228_v32 = vshrl.u32 %v2856_v53, 16 }
 0x1df   : > { %v2309_v8 = vrot.slane %v2862_v29, 1 }
 0x1e0   : > { %2139 = vrot.lane.b32.xlu1 %v2128_v40, %s3159_s15 }
 0x1e1   : > { %2321 = vrot.lane.b32.xlu0 %v2311_v14, %s3162_s18 }
 0x1e4   : > { %2271 = vrot.lane.b32.xlu1 %v2226_v52, %s3161_s17 }
 0x1e5   : > { %1957 = vrot.lane.b32.xlu0 %v1945_v43, %s3155_s11  ;;  %v2972_v34 = vpop.f32.mrf.mxu0 }
 0x1e6   : > { %v1538_v7 = vmul.f32 %v2972_v34, %v3710_v45 }
 0x1e7   : > { %v1510_v47 = vpop.f32.mrf.mxu0 }
 0x1e8   : > { %v1553_v41 = vadd.f32 %v3715_v56, %v1538_v7  ;;  %v1536_v25 = vmul.f32 %v3710_v45, %v1510_v47  ;;  %1903 = vrot.lane.b32.xlu1 %v1858_v44, %s3156_s12 }
 0x1e9   : > { %1953 = vrot.lane.b32.xlu0 %v1943_v3, %s3155_s11  ;;  %v2973_v58 = vpop.f32.mrf.mxu0 }
 0x1ea   : > { %vm1561_vm13 = vcmp.ge.f32.partialorder %v1553_v41, 0.0  ;;  %v1569_v0 = vmul.f32 0.1, %v1553_v41  ;;  %v1551_v10 = vadd.f32 %v3715_v56, %v1536_v25  ;;  %v1539_v22 = vmul.f32 %v2973_v58, %v3710_v45 }
 0x1eb   : > { %v1513_v59 = vpop.f32.mrf.mxu0 }
 0x1ec   : > { %v1577_v9 = vsel %vm1561_vm13, %v1553_v41, %v1569_v0  ;;  %vm1559_vm14 = vcmp.ge.f32.partialorder %v1551_v10, 0.0  ;;  %v1567_v14 = vmul.f32 0.1, %v1551_v10  ;;  %v1554_v40 = vadd.f32 %v3715_v56, %v1539_v22  ;;  %2135 = vrot.lane.b32.xlu1 %v2126_v50, %s3159_s15  ;;  %v1711_v41 = vld [vmem:[#allocation3 + $0x2c] sm:$0x1] }
 0x1ed   : > { %2085 = vrot.lane.b32.xlu0 %v2035_v21, %s3160_s16  ;;  %v2909_v46 = vpack.c.bf16 %v1577_v9, %v1577_v9  ;;  %v1537_v51 = vmul.f32 %v3710_v45, %v1513_v59  ;;  %v3823_v0 = vld [vmem:[#allocation3 + $0x20] sm:$0xf] }
 0x1ee   : > { %v1575_v12 = vsel %vm1559_vm14, %v1551_v10, %v1567_v14  ;;  %vm1562_vm5 = vcmp.ge.f32.partialorder %v1554_v40, 0.0  ;;  %v1570_v15 = vmul.f32 0.1, %v1554_v40  ;;  %v1726_v14 = vld [vmem:[#allocation3 + $0x40] sm:$0xf] }
 0x1ef   : > { %v1652_v63 = vshrl.u32 %v2909_v46, 16  ;;  %v2907_v43 = vpack.c.bf16 %v1575_v12, %v1575_v12  ;;  %v1552_v52 = vadd.f32 %v3715_v56, %v1537_v51  ;;  %v1655_v33 = vshll.u32 %v2909_v46, 16  ;;  %v1708_v56 = vld [vmem:[#allocation3 + $0x28] sm:$0xf] }
 0x1f0   : > { %v1578_v61 = vsel %vm1562_vm5, %v1554_v40, %v1570_v15  ;;  %v1729_v40 = vld [vmem:[#allocation3 + $0x44] sm:$0x1]  ;;  %v2810_v15 = vcombine.low %v3823_v0, %v3785_v54 }
 0x1f1   : > { %2317 = vrot.lane.b32.xlu0 %v2309_v8, %s3162_s18  ;;  %v1654_v4 = vrot.slane %v1652_v63, 7  ;;  %v1636_v34 = vshrl.u32 %v2907_v43, 16  ;;  %v2910_v39 = vpack.c.bf16 %v1578_v61, %v1578_v61  ;;  %v1639_v7 = vshll.u32 %v2907_v43, 16  ;;  %v1717_v61 = vld [vmem:[#allocation3 + $0x34] sm:$0x1] }
 0x1f2   : > { %vm1560_vm13 = vcmp.ge.f32.partialorder %v1552_v52, 0.0  ;;  %v1568_v45 = vmul.f32 0.1, %v1552_v52  ;;  %v2053_v8 = vshll.u32 %v2833_v16, 16 }
 0x1f3   : > { %v1657_v44 = vor.u32 %v1655_v33, %v1654_v4  ;;  %v1658_v3 = vrot.slane %v1654_v4, 4  ;;  %v1638_v30 = vrot.slane %v1636_v34, 7  ;;  %v1660_v47 = vshrl.u32 %v2910_v39, 16 }
 0x1f4   : > { %v1576_v25 = vsel %vm1560_vm13, %v1552_v52, %v1568_v45  ;;  %v1663_v22 = vshll.u32 %v2910_v39, 16  ;;  %v1714_v52 = vld [vmem:[#allocation3 + $0x30] sm:$0xf]  ;;  %v2230_v4 = vshll.u32 %v2856_v53, 16  ;;  %v2055_v54 = vrot.slane %v2053_v8, 1 }
 0x1f5   : > { %v1721_v58 = vsel %vm3313_vm10, %v1657_v44, %v1720_v11  ;;  %v1724_v50 = vsel %vm3214_vm3, %v1658_v3, %v1723_v42  ;;  %v1641_v21 = vor.u32 %v1639_v7, %v1638_v30  ;;  %v1642_v29 = vrot.slane %v1638_v30, 4 }
 0x1f6   : > { %1722 = vst [vmem:[#allocation3 + $0x38] sm:$0xf] %v1721_v58  ;;  %1725 = vst [vmem:[#allocation3 + $0x3c] sm:$0x1] %v1724_v50  ;;  %v1662_v10 = vrot.slane %v1660_v47, 7  ;;  %v2908_v59 = vpack.c.bf16 %v1576_v25, %v1576_v25  ;;  %v1876_v44 = vshll.u32 %v2810_v15, 16 }
 0x1f7   : > { %v1709_v55 = vsel %vm3313_vm10, %v1641_v21, %v1708_v56  ;;  %v1712_v9 = vsel %vm3214_vm3, %v1642_v29, %v1711_v41  ;;  %v2232_v30 = vrot.slane %v2230_v4, 1  ;;  %v2051_v47 = vshrl.u32 %v2833_v16, 16  ;;  %v3851_v56 = vld [vmem:[#allocation3 + $0x10] sm:$0xf] }
 0x1f8   : > { %1710 = vst [vmem:[#allocation3 + $0x28] sm:$0xf] %v1709_v55  ;;  %1713 = vst [vmem:[#allocation3 + $0x2c] sm:$0x1] %v1712_v9  ;;  %v1665_v46 = vor.u32 %v1663_v22, %v1662_v10  ;;  %v1666_v51 = vrot.slane %v1662_v10, 4  ;;  %v1644_v12 = vshrl.u32 %v2908_v59, 16  ;;  %v2808_v10 = vcombine.low %v3851_v56, %v3791_v5 }
 0x1f9   : > { %v1647_v43 = vshll.u32 %v2908_v59, 16  ;;  %v2056_v41 = vor.u32 %v2055_v54, %v2051_v47  ;;  %v1878_v25 = vrot.slane %v1876_v44, 1  ;;  %v2233_v58 = vor.u32 %v2232_v30, %v2228_v32  ;;  %v3140_v30 = vld [vmem:[%s4103_s6 + $0x20] ss:$0 sps:$4 sm:$0xff]  }
 0x1fa   : > { %v1727_v13 = vsel %vm3313_vm10, %v1665_v46, %v1726_v14  ;;  %v1730_v38 = vsel %vm3214_vm3, %v1666_v51, %v1729_v40  ;;  %v1646_v63 = vrot.slane %v1644_v12, 7  ;;  %v1874_v16 = vshrl.u32 %v2810_v15, 16  ;;  %2993 = vmatprep.subr.msk.bf16.mxu1 %vm1456_vm15, %v3140_v30 }
 0x1fb   : > { %1728 = vst [vmem:[#allocation3 + $0x40] sm:$0xf] %v1727_v13  ;;  %1731 = vst [vmem:[#allocation3 + $0x44] sm:$0x1] %v1730_v38  ;;  %v2039_v22 = vshll.u32 %v2831_v1, 16  ;;  %v1862_v14 = vshll.u32 %v2808_v10, 16  ;;  %v2854_v5 = vcombine.low %v3772_v20, %v3802_v18 }
 0x1fc   : > { %v1649_v33 = vor.u32 %v1647_v43, %v1646_v63  ;;  %v1650_v11 = vrot.slane %v1646_v63, 4  ;;  %v1879_v6 = vor.u32 %v1878_v25, %v1874_v16  ;;  %v2037_v13 = vshrl.u32 %v2831_v1, 16  ;;  %v3141_v16 = vld [vmem:[%s4103_s6 + $0x18] sm:$0xff]  }
 0x1fd   : > { %v3837_v34 = vld [vmem:[#allocation3 + $0x38] sm:$0xf]  ;;  %v1747_v21 = vld [vmem:[#allocation3 + $0x3c] sm:$0x1]  ;;  %v2041_v40 = vrot.slane %v2039_v22, 1  ;;  %v1864_v38 = vrot.slane %v1862_v14, 1 }
 0x1fe   : > { %v3839_v39 = vld [vmem:[#allocation3 + $0x38] sm:$0xf]  ;;  %v1715_v42 = vsel %vm3313_vm10, %v1649_v33, %v1714_v52  ;;  %v1718_v7 = vsel %vm3214_vm3, %v1650_v11, %v1717_v61  ;;  %v2851_v45 = vcombine.low %v3837_v34, %v3837_v34  ;;  %v1770_v53 = vld [vmem:[#allocation3 + $0x3c] sm:$0x1]  ;;  %v2216_v61 = vshll.u32 %v2854_v5, 16 }
 0x1ff   : > { %1716 = vst [vmem:[#allocation3 + $0x30] sm:$0xf] %v1715_v42  ;;  %1719 = vst [vmem:[#allocation3 + $0x34] sm:$0x1] %v1718_v7  ;;  %v2828_v3 = vcombine.low %v3839_v39, %v3839_v39  ;;  %v3855_v50 = vld [vmem:[#allocation3 + $0x28] sm:$0xf]  ;;  %v2042_v43 = vor.u32 %v2041_v40, %v2037_v13  ;;  %v2836_v25 = vcombine.low %v3839_v39, %v1770_v53 }
 0x200   : > { %2183 = vrot.lane.b32.xlu1 %v2851_v45, %s3158_s14  ;;  %v1755_v29 = vld [vmem:[#allocation3 + $0x38] sm:$0xe]  ;;  %v2849_v59 = vcombine.low %v3855_v50, %v3855_v50  ;;  %v3864_v55 = vld [vmem:[#allocation3 + $0x28] sm:$0xf]  ;;  %v3869_v51 = vld [vmem:[#allocation3 + $0x2c] sm:$0x1] }
 0x201   : > { %2001 = vrot.lane.b32.xlu0 %v2828_v3, %s3157_s13  ;;  %v2821_v35 = vcombine.low %v1755_v29, %v1747_v21  ;;  %v1778_v9 = vld [vmem:[#allocation3 + $0x38] sm:$0xe]  ;;  %v2826_v12 = vcombine.low %v3864_v55, %v3864_v55  ;;  %v1800_v8 = vld [vmem:[#allocation3 + $0x28] sm:$0xe]  ;;  %v3878_v18 = vld [vmem:[#allocation3 + $0x2c] sm:$0x1] }
 0x202   : > { %v2844_v15 = vcombine.low %v1778_v9, %v1770_v53  ;;  %v3875_v63 = vld [vmem:[#allocation3 + $0x38] sm:$0xf]  ;;  %v2865_v52 = vcombine.low %v1800_v8, %v3869_v51  ;;  %v1753_v4 = vld [vmem:[#allocation3 + $0x28] sm:$0xe]  ;;  %v1860_v33 = vshrl.u32 %v2808_v10, 16  ;;  %v2218_v7 = vrot.slane %v2216_v61, 1 }
 0x203   : > { %v1948_v46 = vrot.slane %v2821_v35, 1  ;;  %v2813_v11 = vcombine.low %v3875_v63, %v1747_v21  ;;  %v2819_v42 = vcombine.low %v1753_v4, %v3878_v18  ;;  %v1768_v44 = vld [vmem:[#allocation3 + $0x2c] sm:$0x1]  ;;  %v1776_v3 = vld [vmem:[#allocation3 + $0x28] sm:$0xe]  ;;  %v2214_v47 = vshrl.u32 %v2854_v5, 16 }
 0x204   : > { %2091 = vrot.lane.b32.xlu1 %v2056_v41, %s3160_s16  ;;  %v2131_v20 = vrot.slane %v2844_v15, 1  ;;  %v2312_v54 = vrot.slane %v2865_v52, 1  ;;  %v1865_v45 = vor.u32 %v1864_v38, %v1860_v33  ;;  %v2538_v41 = vsel %vm1456_vm15, %v3140_v30, 0  ;;  %v3892_v29 = vld [vmem:[#allocation3 + $0x40] sm:$0xf]  ;;  %v3143_v13 = vld [vmem:[%s4103_s6 + $0x8] sm:$0xff]  }
 0x205   : > { %2273 = vrot.lane.b32.xlu0 %v2233_v58, %s3161_s17  ;;  %v1897_v32 = vshll.u32 %v2813_v11, 16  ;;  %v1946_v1 = vrot.slane %v2819_v42, 1  ;;  %v2219_v58 = vor.u32 %v2218_v7, %v2214_v47  ;;  %v2842_v21 = vcombine.low %v1776_v3, %v1768_v44  ;;  %2975 = vmatpush3.bf16.msra.mxu1 %v2538_v41  ;;  %v1787_v9 = vld [vmem:[#allocation3 + $0x40] sm:$0xf]  ;;  %v1771_v15 = vld [vmem:[#allocation3 + $0x44] sm:$0x1] }
 0x206   : > { %2976 = vmatprep.subr.bf16.mxu1 %v3141_v16  ;;  %v2829_v22 = vcombine.low %v3892_v29, %v3892_v29  ;;  %v2074_v39 = vshll.u32 %v2836_v25, 16  ;;  %v1895_v53 = vshrl.u32 %v2813_v11, 16  ;;  %v1779_v8 = vld [vmem:[#allocation3 + $0x40] sm:$0xe]  ;;  %v2072_v38 = vshrl.u32 %v2836_v25, 16  ;;  %v3935_v25 = vpop.permute.xlu1 %2187 }
 0x207   : > { %v1899_v10 = vrot.slane %v1897_v32, 1  ;;  %v2129_v35 = vrot.slane %v2842_v21, 1  ;;  %v2845_v61 = vcombine.low %v1779_v8, %v1771_v15  ;;  %v2834_v4 = vcombine.low %v3864_v55, %v1768_v44  ;;  %v1785_v11 = vld [vmem:[#allocation3 + $0x30] sm:$0xf]  ;;  %v3931_v32 = vld [vmem:[#allocation3 + $0x44] sm:$0x1] }
 0x208   : > { %2179 = vrot.lane.b32.xlu1 %v2849_v59, %s3158_s14  ;;  %v3901_v59 = vld [vmem:[#allocation3 + $0x3c] sm:$0x1]  ;;  %v2076_v5 = vrot.slane %v2074_v39, 1  ;;  %v1754_v42 = vld [vmem:[#allocation3 + $0x30] sm:$0xe]  ;;  %v2850_v55 = vcombine.low %v1785_v11, %v1785_v11 }
 0x209   : > { %1909 = vrot.lane.b32.xlu0 %v1879_v6, %s3156_s12  ;;  %2977 = vmatpush3.bf16.msra.mxu1 %v3141_v16  ;;  %v3142_v6 = vld [vmem:[%s4103_s6 + $0x10] sm:$0xff]   ;;  %v2859_v14 = vcombine.low %v3837_v34, %v3901_v59  ;;  %v1900_v40 = vor.u32 %v1899_v10, %v1895_v53  ;;  %v2857_v34 = vcombine.low %v3855_v50, %v3869_v51  ;;  %v3144_v50 = vld [vmem:[%s4103_s6] sm:$0xff]   ;;  %v2132_v3 = vrot.slane %v2845_v61, 1 }
 0x20a   : > { %2978 = vmatprep.subr.bf16.mxu1 %v3142_v6  ;;  %v2077_v33 = vor.u32 %v2076_v5, %v2072_v38  ;;  %v2060_v30 = vshll.u32 %v2834_v4, 16  ;;  %v2860_v16 = vcombine.low %v1787_v9, %v3931_v32  ;;  %v3939_v39 = vld [vmem:[#allocation3 + $0x30] sm:$0xf]  ;;  %v2058_v53 = vshrl.u32 %v2834_v4, 16 }
 0x20b   : > { %v2237_v7 = vshll.u32 %v2857_v34, 16  ;;  %v2249_v47 = vshrl.u32 %v2859_v14, 16  ;;  %v1777_v38 = vld [vmem:[#allocation3 + $0x30] sm:$0xe] }
 0x20c   : > { %1963 = vrot.lane.b32.xlu1 %v1948_v46, %s3155_s11  ;;  %v3910_v46 = vld [vmem:[#allocation3 + $0x30] sm:$0xf] }
 0x20d   : > { %1997 = vrot.lane.b32.xlu0 %v2826_v12, %s3157_s13  ;;  %v2852_v12 = vcombine.low %v1787_v9, %v1787_v9  ;;  %2979 = vmatpush3.bf16.msra.mxu1 %v3142_v6  ;;  %v2827_v52 = vcombine.low %v3910_v46, %v3910_v46  ;;  %v1801_v6 = vld [vmem:[#allocation3 + $0x30] sm:$0xe]  ;;  %v1769_v9 = vld [vmem:[#allocation3 + $0x34] sm:$0x1] }
 0x20e   : > { %2980 = vmatprep.subr.bf16.mxu1 %v3143_v13 }
 0x210   : > { %2087 = vrot.lane.b32.xlu1 %v2042_v43, %s3160_s16  ;;  %v2251_v43 = vshll.u32 %v2859_v14, 16  ;;  %v2837_v14 = vcombine.low %v3892_v29, %v1771_v15  ;;  %v2835_v29 = vcombine.low %v3910_v46, %v1769_v9  ;;  %v2843_v15 = vcombine.low %v1777_v38, %v1769_v9 }
 0x211   : > { %2145 = vrot.lane.b32.xlu0 %v2131_v20, %s3159_s15  ;;  %v3921_v20 = vld [vmem:[#allocation3 + $0x28] sm:$0xf]  ;;  %2981 = vmatpush3.bf16.msra.mxu1 %v3143_v13 }
 0x212   : > { %v2253_v51 = vrot.slane %v2251_v43, 1  ;;  %2982 = vmatprep.subr.bf16.mxu1 %v3144_v50  ;;  %v2258_v43 = vshll.u32 %v2860_v16, 16 }
 0x214   : > { %2323 = vrot.lane.b32.xlu1 %v2312_v54, %s3162_s18  ;;  %v1746_v54 = vld [vmem:[#allocation3 + $0x34] sm:$0x1]  ;;  %v2254_v41 = vor.u32 %v2253_v51, %v2249_v47 }
 0x215   : > { %1905 = vrot.lane.b32.xlu0 %v1865_v45, %s3156_s12  ;;  %v2811_v45 = vcombine.low %v3921_v20, %v3878_v18  ;;  %v2820_v44 = vcombine.low %v1754_v42, %v1746_v54  ;;  %2983 = vmatpush3.bf16.msra.mxu1 %v3144_v50  ;;  %v2235_v18 = vshrl.u32 %v2857_v34, 16  ;;  %v3945_v34 = vpop.permute.xlu1 %2283  ;;  %v2260_v50 = vrot.slane %v2258_v43, 1 }
 0x217   : > { %v1883_v21 = vshll.u32 %v2811_v45, 16  ;;  %v1947_v10 = vrot.slane %v2820_v44, 1  ;;  %v1881_v61 = vshrl.u32 %v2811_v45, 16  ;;  %v2130_v44 = vrot.slane %v2843_v15, 1 }
 0x218   : > { %1959 = vrot.lane.b32.xlu1 %v1946_v1, %s3155_s11  ;;  %v2239_v1 = vrot.slane %v2237_v7, 1 }
 0x219   : > { %2269 = vrot.lane.b32.xlu0 %v2219_v58, %s3161_s17  ;;  %v1902_v58 = vpop.permute.xlu0 %1901  ;;  %v1885_v5 = vrot.slane %v1883_v21, 1  ;;  %v2079_v21 = vshrl.u32 %v2837_v14, 16 }
 0x21a   : > { %v2335_v7 = vsel %vm1243_vm1, %v3677_v23, %v1902_v58 }
 0x21b   : > { %v1886_v4 = vor.u32 %v1885_v5, %v1881_v61  ;;  %v1803_v5 = vld [vmem:[#allocation3 + $0x40] sm:$0xe] }
 0x21c   : > { %2003 = vrot.lane.b32.xlu1 %v2829_v22, %s3157_s13  ;;  %v2062_v22 = vrot.slane %v2060_v30, 1  ;;  %v2067_v30 = vshll.u32 %v2835_v29, 16 }
 0x21d   : > { %2141 = vrot.lane.b32.xlu0 %v2129_v35, %s3159_s15  ;;  %v1793_v35 = vld [vmem:[#allocation3 + $0x34] sm:$0x1] }
 0x21e   : > { %v2063_v8 = vor.u32 %v2062_v22, %v2058_v53  ;;  %v2866_v13 = vcombine.low %v1801_v6, %v1793_v35  ;;  %v2858_v42 = vcombine.low %v1785_v11, %v1793_v35  ;;  %v1802_v53 = vld [vmem:[#allocation3 + $0x38] sm:$0xe] }
 0x21f   : > { %v2867_v38 = vcombine.low %v1802_v53, %v3901_v59 }
 0x220   : > { %1915 = vrot.lane.b32.xlu1 %v1900_v40, %s3156_s12  ;;  %v2240_v40 = vor.u32 %v2239_v1, %v2235_v18  ;;  %v2244_v1 = vshll.u32 %v2858_v42, 16 }
 0x221   : > { %2185 = vrot.lane.b32.xlu0 %v2852_v12, %s3158_s14  ;;  %v2812_v12 = vcombine.low %v3939_v39, %v1746_v54  ;;  %v2313_v54 = vrot.slane %v2866_v13, 1  ;;  %v2314_v15 = vrot.slane %v2867_v38, 1 }
 0x222   : > { %v2246_v6 = vrot.slane %v2244_v1, 1 }
 0x223   : > { %v1890_v51 = vshll.u32 %v2812_v12, 16  ;;  %v1888_v23 = vshrl.u32 %v2812_v12, 16 }
 0x224   : > { %1999 = vrot.lane.b32.xlu1 %v2827_v52, %s3157_s13  ;;  %v1950_v52 = vpop.permute.xlu0 %1949  ;;  %s278_s13 = scalar_lea.vmem %s4104_s7, %s2893_s26 }
 0x225   : > { %2097 = vrot.lane.b32.xlu0 %v2077_v33, %s3160_s16  ;;  %v2081_v33 = vshll.u32 %v2837_v14, 16  ;;  %v1892_v11 = vrot.slane %v1890_v51, 1  ;;  %v1804_v14 = vld [vmem:[#allocation3 + $0x48] sm:$0xe] }
 0x226   : > { %v2869_v61 = vcombine.low %v1804_v14, %v3684_v60 }
 0x227   : > { %v2083_v46 = vrot.slane %v2081_v33, 1  ;;  %v1893_v35 = vor.u32 %v1892_v11, %v1888_v23 }
 0x228   : > { %2147 = vrot.lane.b32.xlu1 %v2132_v3, %s3159_s15  ;;  %v2256_v3 = vshrl.u32 %v2860_v16, 16 }
 0x229   : > { %2181 = vrot.lane.b32.xlu0 %v2850_v55, %s3158_s14  ;;  %v2084_v16 = vor.u32 %v2083_v46, %v2079_v21 }
 0x22a   : > { %v2261_v47 = vor.u32 %v2260_v50, %v2256_v3 }
 0x22c   : > { %2279 = vrot.lane.b32.xlu1 %v2254_v41, %s3161_s17  ;;  %v2358_v41 = vsel %vm1268_vm2, %v2335_v7, %v1950_v52  ;;  %v2868_v52 = vcombine.low %v1803_v5, %v3931_v32 }
 0x22d   : > { %1961 = vrot.lane.b32.xlu0 %v1947_v10, %s3155_s11  ;;  %v2069_v10 = vrot.slane %v2067_v30, 1 }
 0x22e   : > { %v2315_v33 = vrot.slane %v2868_v52, 1 }
 0x230   : > { %2275 = vrot.lane.b32.xlu1 %v2240_v40, %s3161_s17  ;;  %v2065_v40 = vshrl.u32 %v2835_v29, 16 }
 0x231   : > { %2093 = vrot.lane.b32.xlu0 %v2063_v8, %s3160_s16  ;;  %v2242_v8 = vshrl.u32 %v2858_v42, 16  ;;  %v2316_v42 = vrot.slane %v2869_v61, 1 }
 0x232   : > { %v2070_v9 = vor.u32 %v2069_v10, %v2065_v40 }
 0x233   : > { %v2247_v43 = vor.u32 %v2246_v6, %v2242_v8 }
 0x234   : > { %1911 = vrot.lane.b32.xlu1 %v1886_v4, %s3156_s12 }
 0x235   : > { %2325 = vrot.lane.b32.xlu0 %v2313_v54, %s3162_s18 }
 0x236   : > { %v3953_v45 = vpop.permute.xlu1 %2175 }
 0x237   : > { %v3955_v55 = vpop.permute.xlu0 %1993 }
 0x238   : > { %2143 = vrot.lane.b32.xlu1 %v2130_v44, %s3159_s15 }
 0x239   : > { %2281 = vrot.lane.b32.xlu0 %v2261_v47, %s3161_s17 }
 0x23a   : > { %v1956_v58 = vpop.permute.xlu1 %1955 }
 0x23b   : > { %v1990_v18 = vpop.permute.xlu0 %1989 }
 0x23c   : > { %v2374_v22 = vsel %vm1285_vm4, %v2358_v41, %v1990_v18  ;;  %2099 = vrot.lane.b32.xlu1 %v2084_v16, %s3160_s16 }
 0x23d   : > { %1913 = vrot.lane.b32.xlu0 %v1893_v35, %s3156_s12 }
 0x23e   : > { %v3963_v13 = vpop.permute.xlu1 %2319 }
 0x23f   : > { %v3965_v12 = vpop.permute.xlu0 %2137 }
 0x240   : > { %2095 = vrot.lane.b32.xlu1 %v2070_v9, %s3160_s16 }
 0x241   : > { %2277 = vrot.lane.b32.xlu0 %v2247_v43, %s3161_s17 }
 0x242   : > { %v1952_v4 = vpop.permute.xlu1 %1951 }
 0x243   : > { %v2134_v29 = vpop.permute.xlu0 %2133 }
 0x244   : > { %2327 = vrot.lane.b32.xlu1 %v2314_v15, %s3162_s18 }
 0x245   : > { %2329 = vrot.lane.b32.xlu0 %v2315_v33, %s3162_s18 }
 0x246   : > { %v1996_v54 = vpop.permute.xlu1 %1995 }
 0x247   : > { %v2178_v59 = vpop.permute.xlu0 %2177 }
 0x248   : > { %2331 = vrot.lane.b32.xlu1 %v2316_v42, %s3162_s18 }
 0x24a   : > { %v1908_v32 = vpop.permute.xlu1 %1907 }
 0x24b   : > { %v2344_v50 = vsel %vm1243_vm1, %v3745_v62, %v1908_v32  ;;  %v2090_v60 = vpop.permute.xlu0 %2089 }
 0x24c   : > { %v2364_v51 = vsel %vm1268_vm2, %v2344_v50, %v1956_v58 }
 0x24d   : > { %v2380_v7 = vsel %vm1285_vm4, %v2364_v51, %v1996_v54 }
 0x24e   : > { %v1992_v44 = vpop.permute.xlu1 %1991 }
 0x24f   : > { %v2174_v3 = vpop.permute.xlu0 %2173 }
 0x252   : > { %v2140_v30 = vpop.permute.xlu1 %2139 }
 0x253   : > { %v2322_v46 = vpop.permute.xlu0 %2321 }
 0x256   : > { %v2272_v11 = vpop.permute.xlu1 %2271 }
 0x257   : > { %v3979_v47 = vpop.permute.xlu0 %1957 }
 0x25a   : > { %v1904_v41 = vpop.permute.xlu1 %1903 }
 0x25b   : > { %v1954_v1 = vpop.permute.xlu0 %1953  ;;  %v2338_v53 = vsel %vm1243_vm1, %v3766_v31, %v1904_v41 }
 0x25c   : > { %v2360_v5 = vsel %vm1268_vm2, %v2338_v53, %v1952_v4 }
 0x25d   : > { %v2376_v14 = vsel %vm1285_vm4, %v2360_v5, %v1992_v44 }
 0x25e   : > { %v2136_v23 = vpop.permute.xlu1 %2135 }
 0x25f   : > { %v2086_v21 = vpop.permute.xlu0 %2085 }
 0x260   : > { %v2390_v61 = vsel %vm1302_vm6, %v2374_v22, %v2086_v21 }
 0x261   : > { %v2406_v42 = vsel %vm1319_vm7, %v2390_v61, %v2134_v29 }
 0x262   : > { %v2422_v44 = vsel %vm1336_vm8, %v2406_v42, %v2174_v3 }
 0x263   : > { %v2318_v18 = vpop.permute.xlu0 %2317 }
 0x272   : > { %v3981_v16 = vpop.permute.xlu1 %2183 }
 0x273   : > { %v3983_v62 = vpop.permute.xlu0 %2001 }
 0x276   : > { %v2092_v10 = vpop.permute.xlu1 %2091 }
 0x277   : > { %v2274_v58 = vpop.permute.xlu0 %2273 }
 0x27a   : > { %v2180_v35 = vpop.permute.xlu1 %2179 }
 0x27b   : > { %v1910_v6 = vpop.permute.xlu0 %1909 }
 0x27e   : > { %v1964_v40 = vpop.permute.xlu1 %1963 }
 0x27f   : > { %v1998_v8 = vpop.permute.xlu0 %1997 }
 0x282   : > { %v2088_v9 = vpop.permute.xlu1 %2087 }
 0x283   : > { %v2392_v38 = vsel %vm1302_vm6, %v2376_v14, %v2088_v9  ;;  %v3990_v43 = vpop.permute.xlu0 %2145 }
 0x284   : > { %v2408_v52 = vsel %vm1319_vm7, %v2392_v38, %v2136_v23  ;;  %v2396_v38 = vsel %vm1302_vm6, %v2380_v7, %v2092_v10  ;;  %v2347_v7 = vsel %vm1243_vm1, %v3823_v0, %v1910_v6 }
 0x285   : > { %v2424_v33 = vsel %vm1336_vm8, %v2408_v52, %v3953_v45 }
 0x286   : > { %v2324_v15 = vpop.permute.xlu1 %2323  ;;  %v2440_v51 = vsel %vm1353_vm9, %v2424_v33, %v2272_v11 }
 0x287   : > { %v1906_v31 = vpop.permute.xlu0 %1905 }
 0x288   : > { %v2341_v4 = vsel %vm1243_vm1, %v3851_v56, %v1906_v31 }
 0x289   : > { %v2362_v54 = vsel %vm1268_vm2, %v2341_v4, %v1954_v1  ;;  %v2456_v1 = vsel %vm1370_vm11, %v2440_v51, %v3963_v13 }
 0x28a   : > { %v2378_v32 = vsel %vm1285_vm4, %v2362_v54, %v3955_v55  ;;  %v1960_v50 = vpop.permute.xlu1 %1959 }
 0x28b   : > { %v2394_v22 = vsel %vm1302_vm6, %v2378_v32, %v2090_v60  ;;  %v2270_v41 = vpop.permute.xlu0 %2269 }
 0x28c   : > { %v2410_v45 = vsel %vm1319_vm7, %v2394_v22, %v3965_v12  ;;  %v2438_v29 = vsel %vm1353_vm9, %v2422_v44, %v2270_v41 }
 0x28d   : > { %v2454_v56 = vsel %vm1370_vm11, %v2438_v29, %v2318_v18  ;;  %v2426_v55 = vsel %vm1336_vm8, %v2410_v45, %v2178_v59  ;;  %v2412_v59 = vsel %vm1319_vm7, %v2396_v38, %v2140_v30 }
 0x28e   : > { %v2004_v21 = vpop.permute.xlu1 %2003  ;;  %v2870_v23 = vcombine.low %v2454_v56, %v2456_v1  ;;  %v2442_v11 = vsel %vm1353_vm9, %v2426_v55, %v2274_v58  ;;  %v2428_v61 = vsel %vm1336_vm8, %v2412_v59, %v2180_v35  ;;  %v2366_v35 = vsel %vm1268_vm2, %v2347_v7, %v3979_v47 }
 0x28f   : > { %v2142_v60 = vpop.permute.xlu0 %2141  ;;  %v2458_v3 = vsel %vm1370_vm11, %v2442_v11, %v2322_v46  ;;  %v2382_v51 = vsel %vm1285_vm4, %v2366_v35, %v1998_v8 }
 0x290   : > { %2984 = vmatprep.mubr.msk.bf16.mxu1 %vm1443_vm12, %v2870_v23 }
 0x292   : > { %v1916_v53 = vpop.permute.xlu1 %1915 }
 0x293   : > { %v2186_v12 = vpop.permute.xlu0 %2185  ;;  %v2356_v10 = vsel %vm1243_vm1, %v3875_v63, %v1916_v53 }
 0x294   : > { %v2372_v22 = vsel %vm1268_vm2, %v2356_v10, %v1964_v40 }
 0x295   : > { %v2388_v45 = vsel %vm1285_vm4, %v2372_v22, %v2004_v21 }
 0x296   : > { %v2000_v5 = vpop.permute.xlu1 %1999 }
 0x297   : > { %v2098_v14 = vpop.permute.xlu0 %2097 }
 0x29a   : > { %v2148_v9 = vpop.permute.xlu1 %2147 }
 0x29b   : > { %v2182_v18 = vpop.permute.xlu0 %2181 }
 0x29e   : > { %v2280_v13 = vpop.permute.xlu1 %2279 }
 0x29f   : > { %v1962_v52 = vpop.permute.xlu0 %1961 }
 0x2a2   : > { %v2276_v58 = vpop.permute.xlu1 %2275 }
 0x2a3   : > { %v2444_v33 = vsel %vm1353_vm9, %v2428_v61, %v2276_v58  ;;  %v2094_v46 = vpop.permute.xlu0 %2093 }
 0x2a4   : > { %v2460_v31 = vsel %vm1370_vm11, %v2444_v33, %v2324_v15  ;;  %v2398_v44 = vsel %vm1302_vm6, %v2382_v51, %v2094_v46 }
 0x2a5   : > { %v2871_v42 = vcombine.low %v2458_v3, %v2460_v31  ;;  %v2414_v63 = vsel %vm1319_vm7, %v2398_v44, %v2142_v60 }
 0x2a6   : > { %v1912_v4 = vpop.permute.xlu1 %1911  ;;  %v2430_v55 = vsel %vm1336_vm8, %v2414_v63, %v2182_v18 }
 0x2a7   : > { %v2326_v54 = vpop.permute.xlu0 %2325  ;;  %2985 = vmatmul.mubr.msk.bf16.vlgmr.msra.gmra.mxu1 %vm1443_vm12, %v2871_v42  ;;  %v2350_v15 = vsel %vm1243_vm1, %v3921_v20, %v1912_v4 }
 0x2a8   : > { %v2368_v0 = vsel %vm1268_vm2, %v2350_v15, %v1960_v50 }
 0x2a9   : > { %v2384_v40 = vsel %vm1285_vm4, %v2368_v0, %v2000_v5 }
 0x2aa   : > { %v2144_v30 = vpop.permute.xlu1 %2143 }
 0x2ab   : > { %v2282_v32 = vpop.permute.xlu0 %2281 }
 0x2ae   : > { %v2100_v41 = vpop.permute.xlu1 %2099 }
 0x2af   : > { %v1914_v6 = vpop.permute.xlu0 %1913  ;;  %v2404_v8 = vsel %vm1302_vm6, %v2388_v45, %v2100_v41 }
 0x2b0   : > { %v2353_v47 = vsel %vm1243_vm1, %v3939_v39, %v1914_v6  ;;  %v2420_v23 = vsel %vm1319_vm7, %v2404_v8, %v2148_v9 }
 0x2b1   : > { %v2370_v29 = vsel %vm1268_vm2, %v2353_v47, %v1962_v52  ;;  %v2436_v18 = vsel %vm1336_vm8, %v2420_v23, %v3935_v25 }
 0x2b2   : > { %v2386_v20 = vsel %vm1285_vm4, %v2370_v29, %v3983_v62  ;;  %v2096_v56 = vpop.permute.xlu1 %2095 }
 0x2b3   : > { %v2402_v50 = vsel %vm1302_vm6, %v2386_v20, %v2098_v14  ;;  %v2400_v1 = vsel %vm1302_vm6, %v2384_v40, %v2096_v56  ;;  %v2278_v21 = vpop.permute.xlu0 %2277 }
 0x2b4   : > { %v2416_v39 = vsel %vm1319_vm7, %v2400_v1, %v2144_v30  ;;  %v2446_v11 = vsel %vm1353_vm9, %v2430_v55, %v2278_v21  ;;  %v2418_v60 = vsel %vm1319_vm7, %v2402_v50, %v3990_v43 }
 0x2b5   : > { %v2432_v62 = vsel %vm1336_vm8, %v2416_v39, %v3981_v16  ;;  %v2434_v3 = vsel %vm1336_vm8, %v2418_v60, %v2186_v12  ;;  %v2462_v14 = vsel %vm1370_vm11, %v2446_v11, %v2326_v54  ;;  %v2452_v16 = vsel %vm1353_vm9, %v2436_v18, %v3945_v34 }
 0x2b6   : > { %v2448_v53 = vsel %vm1353_vm9, %v2432_v62, %v2280_v13  ;;  %v2328_v5 = vpop.permute.xlu1 %2327  ;;  %v2450_v52 = vsel %vm1353_vm9, %v2434_v3, %v2282_v32 }
 0x2b7   : > { %v2464_v9 = vsel %vm1370_vm11, %v2448_v53, %v2328_v5  ;;  %v2330_v43 = vpop.permute.xlu0 %2329 }
 0x2b8   : > { %v2872_v38 = vcombine.low %v2462_v14, %v2464_v9  ;;  %v2466_v12 = vsel %vm1370_vm11, %v2450_v52, %v2330_v43 }
 0x2ba   : > { %v2332_v59 = vpop.permute.xlu1 %2331  ;;  %2988 = vmatprep.mubr.msk.bf16.mxu1 %vm1443_vm12, %v2872_v38 }
 0x2bb   : > { %v2468_v13 = vsel %vm1370_vm11, %v2452_v16, %v2332_v59 }
 0x2bc   : > { %v2873_v61 = vcombine.low %v2466_v12, %v2468_v13 }
 0x2be   : > { %2989 = vmatmul.mubr.msk.bf16.gmra.mxu1 %vm1443_vm12, %v2873_v61 }
 0x367   : > { %v2986_v58 = vpop.f32.mrf.mxu1 }
 0x368   : > { %v2583_v25 = vadd.f32 %v2986_v58, %v2925_v28 }
 0x369   : > { %v2574_v34 = vpop.f32.mrf.mxu1 }
 0x36a   : > { %v2913_v33 = vpack.c.bf16 %v2583_v25, %v2583_v25  ;;  %v2575_v46 = vadd.f32 %v2921_v26, %v2574_v34 }
 0x36b   : > { %v2987_v31 = vpop.f32.mrf.mxu1 }
 0x36c   : > { %2639 = vst.msk [vmem:[%s278_s13 + $0x8] sm:$0xf] %vm280_vm0, %v2913_v33  ;;  %v2911_v42 = vpack.c.bf16 %v2575_v46, %v2575_v46  ;;  %v2586_v4 = vadd.f32 %v2987_v31, %v2926_v27 }
 0x36d   : > { %v2577_v54 = vpop.f32.mrf.mxu1 }
 0x36e   : > { %2637 = vst.msk [vmem:[%s278_s13] sm:$0xf] %vm280_vm0, %v2911_v42  ;;  %v2914_v28 = vpack.c.bf16 %v2586_v4, %v2586_v4  ;;  %v2578_v7 = vadd.f32 %v2922_v24, %v2577_v54 }
 0x370   : > { %2640 = vst.msk [vmem:[%s278_s13 + $0xc] sm:$0xf] %vm280_vm0, %v2914_v28  ;;  %v2912_v10 = vpack.c.bf16 %v2578_v7, %v2578_v7 }
 0x372   : > { %2638 = vst.msk [vmem:[%s278_s13 + $0x4] sm:$0xf] %vm280_vm0, %v2912_v10 }
 0x37e   : > { %v2990_v26 = vpop.f32.mrf.mxu1 }
 0x37f   : > { %v2599_v30 = vadd.f32 %v2990_v26, %v2933_v49 }
 0x380   : > { %v2590_v35 = vpop.f32.mrf.mxu1 }
 0x381   : > { %v2917_v32 = vpack.c.bf16 %v2599_v30, %v2599_v30  ;;  %v2591_v19 = vadd.f32 %v2929_v57, %v2590_v35 }
 0x382   : > { %v2991_v27 = vpop.f32.mrf.mxu1 }
 0x383   : > { %2643 = vst.msk [vmem:[%s278_s13 + $0x18] sm:$0xf] %vm280_vm0, %v2917_v32  ;;  %v2915_v51 = vpack.c.bf16 %v2591_v19, %v2591_v19  ;;  %v2602_v17 = vadd.f32 %v2991_v27, %v2934_v2 }
 0x384   : > { %v2593_v24 = vpop.f32.mrf.mxu1 }
 0x385   : > { %2641 = vst.msk [vmem:[%s278_s13 + $0x10] sm:$0xf] %vm280_vm0, %v2915_v51  ;;  %v2918_v15 = vpack.c.bf16 %v2602_v17, %v2602_v17  ;;  %v2594_v22 = vadd.f32 %v2930_v37, %v2593_v24 }
 0x387   : > { %2644 = vst.msk [vmem:[%s278_s13 + $0x1c] sm:$0xf] %vm280_vm0, %v2918_v15  ;;  %v2916_v49 = vpack.c.bf16 %v2594_v22, %v2594_v22 }
 0x389   : > { %2642 = vst.msk [vmem:[%s278_s13 + $0x14] sm:$0xf] %vm280_vm0, %v2916_v49 }
 0x38a PF: > { %s17_s24 = sadd.s32 1, %s3152_s24  }
 0x38b   : > { %p14_p4 = scmp.ge.s32.totalorder %s17_s24, 4  }
 0x38d   :  { %16 = sbr.rel (!%p14_p4) target bundleno = 1 (0x1), region = 84 }

// kernel: network_block_forward.2
= control target key start
LH: loop header
LB: loop body
LE: loop exit
PB: predicated region body
PF: predicated region fallthrough
CT: control target
= control target key end

     0   :  { %s4686_s17 = smov 0   ;;  %s6097_s0 = inlined_call_operand.vmem [shape: bf16[2,8,8,4], index: 0, kind: input, shape index: {}]   ;;  %s6098_s1 = inlined_call_operand.vmem [shape: bf16[2,8,8,4], index: 1, kind: input, shape index: {}]   ;;  %s6099_s2 = inlined_call_operand.vmem [shape: bf16[2,8,8,4], index: 2, kind: input, shape index: {}]   ;;  %s6100_s3 = inlined_call_operand.vmem [shape: bf16[2,8,8,4], index: 3, kind: input, shape index: {}]   ;;  %s6101_s4 = inlined_call_operand.vmem [shape: f32[1,4], index: 4, kind: input, shape index: {}]   ;;  %s6102_s5 = inlined_call_operand.vmem [shape: f32[1,4], index: 5, kind: input, shape index: {}]   ;;  %s6103_s6 = inlined_call_operand.vmem [shape: bf16[36,8], index: 6, kind: input, shape index: {}]   ;;  %s6104_s7 = inlined_call_operand.vmem [shape: f32[1,8], index: 7, kind: input, shape index: {}]   ;;  %s6105_s8 = inlined_call_operand.vmem [shape: f32[1,8], index: 8, kind: input, shape index: {}]   ;;  %s6106_s9 = inlined_call_operand.vmem [shape: bf16[72,8], index: 9, kind: input, shape index: {}]   ;;  %s6107_s10 = inlined_call_operand.vmem [shape: bf16[4,8], index: 10, kind: input, shape index: {}]   ;;  %s6108_s11 = inlined_call_operand.vmem [shape: bf16[2,8,8,8], index: 11, kind: output, shape index: {}]  }
   0x1 LB: > { %s4018_s18 = sadd.s32 4294967295, %s4611_s17   ;;  %p4022_p0 = scmp.ge.s32.totalorder %s4611_s17, 1  ;;  %s4611_s17 = sphi %s4686_s17, %s21_s17  }
   0x2   : > { %p367_p1 = scmp.lt.s32.totalorder %s4611_s17, 3 }
   0x4   : > { %p368_p2 = pnand %p4022_p0, %p367_p1 }
   0x5   : > { %p422_p3 = scmp.lt.s32.totalorder (!%p368_p2), %s4018_s18, 1  ;;  %s4614_s14 = smov (!%p368_p2), 4  }
   0x6   : > { %371 = sbr.rel (%p368_p2) target bundleno = 985 (0x3d9), region = 64  ;;  %s4615_s20 = smov (!%p368_p2), 8  }
   0x7   : > { %s4616_s21 = smov (!%p368_p2), 12   ;;  %s4617_s22 = smov (!%p368_p2), 24  }
   0x8   : > { %s4618_s23 = smov (!%p368_p2), 16   ;;  %s4619_s30 = smov (!%p368_p2), 20  }
   0x9   : > { %s4620_s12 = smov (!%p368_p2), 28   ;;  %s4622_s28 = smov (!%p368_p2), 48  }
   0xa   : > { %s4624_s15 = smov (!%p368_p2), 64   ;;  %s4625_s16 = smov (!%p368_p2), 40  }
   0xb   : > { %vm448_vm0 = vcmask 27648   ;;  %vm450_vm1 = vcmask 24576   ;;  %vm468_vm2 = vsmask.f32 256  ;;  %v4613_v0 = vmov 0   ;;  %s6122_s18 = smov (!%p422_p3, %s4018_s18), 1 }
   0xc   : > { %451 = vst.msk [vmem:[#allocation2 + $0x4] sm:$0x1] %vm450_vm1, %v4613_v0  ;;  %453 = vst.msk [vmem:[#allocation2 + $0x54] sm:$0x1] %vm450_vm1, %v4613_v0  ;;  %vm590_vm4 = vsmask.f32 7938 }
   0xd   : > { %454 = vst.msk [vmem:[#allocation2 + $0xa0] sm:$0xf] %vm448_vm0, %v4613_v0  ;;  %459 = vst.msk [vmem:[#allocation2 + $0x48] sm:$0xf] %vm448_vm0, %v4613_v0  ;;  %v506_v2 = vld [vmem:[#allocation2 + $0x60] sm:$0x1] }
   0xe   : > { %455 = vst.msk [vmem:[#allocation2 + $0xa4] sm:$0x1] %vm450_vm1, %v4613_v0  ;;  %460 = vst.msk [vmem:[#allocation2 + $0x4c] sm:$0x1] %vm450_vm1, %v4613_v0  ;;  %v628_v5 = vld [vmem:[#allocation2 + $0x64] sm:$0x1] }
   0xf   : > { %461 = vst.msk [vmem:[#allocation2 + $0x98] sm:$0xf] %vm448_vm0, %v4613_v0  ;;  %463 = vst.msk [vmem:[#allocation2 + $0xe8] sm:$0xf] %vm448_vm0, %v4613_v0  ;;  %v503_v7 = vld [vmem:[#allocation2 + $0x58] sm:$0x1] }
  0x10   : > { %462 = vst.msk [vmem:[#allocation2 + $0x9c] sm:$0x1] %vm450_vm1, %v4613_v0  ;;  %464 = vst.msk [vmem:[#allocation2 + $0xec] sm:$0x1] %vm450_vm1, %v4613_v0  ;;  %v625_v9 = vld [vmem:[#allocation2 + $0x5c] sm:$0x1] }
  0x11   : > { %465 = vst.msk [vmem:[#allocation2 + $0x138] sm:$0xf] %vm448_vm0, %v4613_v0  ;;  %vm4720_vm3 = vmand %vm450_vm1, %vm468_vm2  ;;  %v512_v10 = vld [vmem:[#allocation2 + $0x70] sm:$0x1]  ;;  %s4748_s19 = sshll.u32 %s6122_s18, 5 }
  0x12   : > { %466 = vst.msk [vmem:[#allocation2 + $0x13c] sm:$0x1] %vm450_vm1, %v4613_v0  ;;  %457 = vst.msk [vmem:[#allocation2 + $0xf4] sm:$0x1] %vm450_vm1, %v4613_v0  ;;  %v507_v4 = vsel %vm4720_vm3, 0, %v506_v2  ;;  %v504_v8 = vsel %vm4720_vm3, 0, %v503_v7  ;;  %s4763_s24 = scalar_lea.vmem %s6098_s1, %s4748_s19  ;;  %s4782_s29 = scalar_lea.vmem %s6100_s3, %s4748_s19 }
  0x13   : > { %449 = vst.msk [vmem:[#allocation2] sm:$0xf] %vm448_vm0, %v4613_v0  ;;  %452 = vst.msk [vmem:[#allocation2 + $0x50] sm:$0xf] %vm448_vm0, %v4613_v0  ;;  %v4753_v11 = vld [vmem:[%s6101_s4] ss:$0 sm:$0xff]  ;;  %s4817_s13 = scalar_lea.vmem %s6099_s2, %s4748_s19  ;;  %s4876_s18 = scalar_lea.vmem %s6097_s0, %s4748_s19 }
  0x14   : > { %456 = vst.msk [vmem:[#allocation2 + $0xf0] sm:$0xf] %vm448_vm0, %v4613_v0  ;;  %vm4736_vm5 = vmand %vm450_vm1, %vm590_vm4  ;;  %v513_v13 = vsel %vm4720_vm3, 0, %v512_v10  ;;  %v634_v14 = vld [vmem:[#allocation2 + $0x74] sm:$0x1]  ;;  %v4313_v19 = vld [vmem:[%s4763_s24] sm:$0xff]  }
  0x15   : > { %508 = vst [vmem:[#allocation2 + $0x60] sm:$0x1] %v507_v4  ;;  %v629_v6 = vsel %vm4736_vm5, 0, %v628_v5  ;;  %505 = vst [vmem:[#allocation2 + $0x58] sm:$0x1] %v504_v8  ;;  %v626_v12 = vsel %vm4736_vm5, 0, %v625_v9  ;;  %v4315_v27 = vunpack.c.h.bf16 %v4313_v19  ;;  %v4314_v28 = vunpack.c.l.bf16 %v4313_v19 }
  0x16   : > { %630 = vst [vmem:[#allocation2 + $0x64] sm:$0x1] %v629_v6  ;;  %627 = vst [vmem:[#allocation2 + $0x5c] sm:$0x1] %v626_v12  ;;  %v635_v15 = vsel %vm4736_vm5, 0, %v634_v14  ;;  %v4363_v20 = vld [vmem:[%s4763_s24 + $0x8] sm:$0xff]  }
  0x17   : > { %514 = vst [vmem:[#allocation2 + $0x70] sm:$0x1] %v513_v13  ;;  %v509_v16 = vld [vmem:[#allocation2 + $0x68] sm:$0x1]  ;;  %v631_v17 = vld [vmem:[#allocation2 + $0x6c] sm:$0x1]  ;;  %v4319_v29 = vunpack.c.h.bf16 %v4363_v20  ;;  %v4318_v30 = vunpack.c.l.bf16 %v4363_v20  ;;  %v873_v39 = vmul.f32 %v4315_v27, %v4753_v11  ;;  %v872_v40 = vmul.f32 %v4314_v28, %v4753_v11  ;;  %vm4850_vm11 = vmand %vm448_vm0, %vm590_vm4 }
  0x18   : > { %v4770_v18 = vld [vmem:[%s6102_s5] ss:$0 sm:$0xff]  ;;  %636 = vst [vmem:[#allocation2 + $0x74] sm:$0x1] %v635_v15  ;;  %v510_v21 = vsel %vm4720_vm3, 0, %v509_v16  ;;  %v632_v22 = vsel %vm4736_vm5, 0, %v631_v17 }
  0x19   : > { %v566_v23 = vld [vmem:[#allocation2 + $0x100] sm:$0x1]  ;;  %v497_v24 = vld [vmem:[#allocation2 + $0x48] sm:$0x1]  ;;  %v527_v25 = vld [vmem:[#allocation2 + $0x98] sm:$0x1]  ;;  %v875_v41 = vmul.f32 %v4319_v29, %v4753_v11  ;;  %v874_v47 = vmul.f32 %v4318_v30, %v4753_v11  ;;  %v881_v53 = vadd.f32 %v4770_v18, %v873_v39  ;;  %v880_v58 = vadd.f32 %v4770_v18, %v872_v40 }
  0x1a   : > { %v530_v26 = vld [vmem:[#allocation2 + $0xa0] sm:$0x1]  ;;  %511 = vst [vmem:[#allocation2 + $0x68] sm:$0x1] %v510_v21  ;;  %633 = vst [vmem:[#allocation2 + $0x6c] sm:$0x1] %v632_v22 }
  0x1b   : > { %v498_v31 = vsel %vm4720_vm3, 0, %v497_v24  ;;  %v528_v32 = vsel %vm4720_vm3, 0, %v527_v25  ;;  %v531_v33 = vsel %vm4720_vm3, 0, %v530_v26  ;;  %v557_v34 = vld [vmem:[#allocation2 + $0xe8] sm:$0x1]  ;;  %v567_v35 = vsel %vm4720_vm3, 0, %v566_v23 }
  0x1c   : > { %499 = vst [vmem:[#allocation2 + $0x48] sm:$0x1] %v498_v31  ;;  %529 = vst [vmem:[#allocation2 + $0x98] sm:$0x1] %v528_v32  ;;  %v558_v36 = vsel %vm4720_vm3, 0, %v557_v34  ;;  %v4345_v42 = vld [vmem:[%s4782_s29] sm:$0xff]   ;;  %v883_v63 = vadd.f32 %v4770_v18, %v875_v41  ;;  %v882_v8 = vadd.f32 %v4770_v18, %v874_v47 }
  0x1d   : > { %532 = vst [vmem:[#allocation2 + $0xa0] sm:$0x1] %v531_v33  ;;  %v587_v37 = vld [vmem:[#allocation2 + $0x138] sm:$0x1]  ;;  %v592_v38 = vld [vmem:[#allocation2 + $0x4] sm:$0x1]  ;;  %v4347_v48 = vunpack.c.h.bf16 %v4345_v42  ;;  %v4346_v2 = vunpack.c.l.bf16 %v4345_v42 }
  0x1e   : > { %568 = vst [vmem:[#allocation2 + $0x100] sm:$0x1] %v567_v35  ;;  %559 = vst [vmem:[#allocation2 + $0xe8] sm:$0x1] %v558_v36  ;;  %v588_v43 = vsel %vm4720_vm3, 0, %v587_v37  ;;  %v593_v44 = vsel %vm4736_vm5, 0, %v592_v38 }
  0x1f   : > { %v619_v45 = vld [vmem:[#allocation2 + $0x4c] sm:$0x1]  ;;  %v622_v46 = vld [vmem:[#allocation2 + $0x54] sm:$0x1]  ;;  %589 = vst [vmem:[#allocation2 + $0x138] sm:$0x1] %v588_v43  ;;  %v993_v9 = vmul.f32 %v4347_v48, %v4753_v11  ;;  %v992_v15 = vmul.f32 %v4346_v2, %v4753_v11 }
  0x20   : > { %594 = vst [vmem:[#allocation2 + $0x4] sm:$0x1] %v593_v44  ;;  %v620_v49 = vsel %vm4736_vm5, 0, %v619_v45  ;;  %v623_v50 = vsel %vm4736_vm5, 0, %v622_v46  ;;  %v649_v51 = vld [vmem:[#allocation2 + $0x9c] sm:$0x1] }
  0x21   : > { %v652_v52 = vld [vmem:[#allocation2 + $0xa4] sm:$0x1]  ;;  %621 = vst [vmem:[#allocation2 + $0x4c] sm:$0x1] %v620_v49  ;;  %624 = vst [vmem:[#allocation2 + $0x54] sm:$0x1] %v623_v50  ;;  %v4837_v23 = vadd.f32 %v4770_v18, %v993_v9  ;;  %v4841_v27 = vadd.f32 %v4770_v18, %v992_v15 }
  0x22   : > { %v650_v54 = vsel %vm4736_vm5, 0, %v649_v51  ;;  %v653_v55 = vsel %vm4736_vm5, 0, %v652_v52  ;;  %v679_v56 = vld [vmem:[#allocation2 + $0xec] sm:$0x1]  ;;  %v709_v57 = vld [vmem:[#allocation2 + $0x13c] sm:$0x1] }
  0x23   : > { %651 = vst [vmem:[#allocation2 + $0x9c] sm:$0x1] %v650_v54  ;;  %654 = vst [vmem:[#allocation2 + $0xa4] sm:$0x1] %v653_v55  ;;  %v680_v59 = vsel %vm4736_vm5, 0, %v679_v56  ;;  %v710_v60 = vsel %vm4736_vm5, 0, %v709_v57 }
  0x24   : > { %v470_v61 = vld [vmem:[#allocation2] sm:$0x1]  ;;  %v500_v62 = vld [vmem:[#allocation2 + $0x50] sm:$0x1]  ;;  %681 = vst [vmem:[#allocation2 + $0xec] sm:$0x1] %v680_v59 }
  0x25   : > { %711 = vst [vmem:[#allocation2 + $0x13c] sm:$0x1] %v710_v60  ;;  %v471_v4 = vsel %vm4720_vm3, 0, %v470_v61  ;;  %v501_v5 = vsel %vm4720_vm3, 0, %v500_v62  ;;  %v560_v6 = vld [vmem:[#allocation2 + $0xf0] sm:$0x1] }
  0x26   : > { %v682_v7 = vld [vmem:[#allocation2 + $0xf4] sm:$0x1]  ;;  %472 = vst [vmem:[#allocation2] sm:$0x1] %v471_v4  ;;  %502 = vst [vmem:[#allocation2 + $0x50] sm:$0x1] %v501_v5 }
  0x27   : > { %v561_v10 = vsel %vm4720_vm3, 0, %v560_v6  ;;  %v683_v12 = vsel %vm4736_vm5, 0, %v682_v7  ;;  %vm889_vm6 = vcmp.ge.f32.partialorder %v881_v53, 0.0  ;;  %v897_v13 = vmul.f32 0.1, %v881_v53  ;;  %v4329_v14 = vld [vmem:[%s4817_s13] sm:$0xff]  }
  0x28   : > { %562 = vst [vmem:[#allocation2 + $0xf0] sm:$0x1] %v561_v10  ;;  %684 = vst [vmem:[#allocation2 + $0xf4] sm:$0x1] %v683_v12  ;;  %v4331_v16 = vunpack.c.h.bf16 %v4329_v14  ;;  %v4330_v17 = vunpack.c.l.bf16 %v4329_v14  ;;  %vm888_vm7 = vcmp.ge.f32.partialorder %v880_v58, 0.0  ;;  %vm891_vm8 = vcmp.ge.f32.partialorder %v883_v63, 0.0 }
  0x29   : > { %v905_v19 = vsel %vm889_vm6, %v881_v53, %v897_v13  ;;  %v896_v20 = vmul.f32 0.1, %v880_v58  ;;  %v899_v22 = vmul.f32 0.1, %v883_v63  ;;  %vm890_vm9 = vcmp.ge.f32.partialorder %v882_v8, 0.0 }
  0x2a   : > { %v4257_v21 = vpack.c.bf16 %v905_v19, %v905_v19  ;;  %v933_v24 = vmul.f32 %v4331_v16, %v4753_v11  ;;  %v898_v26 = vmul.f32 0.1, %v882_v8  ;;  %v4459_v28 = vld [vmem:[#allocation2 + $0xa0] sm:$0x1f]   ;;  %v932_v37 = vmul.f32 %v4330_v17, %v4753_v11  ;;  %v1288_v54 = vld [vmem:[#allocation2 + $0x58] sm:$0xf] }
  0x2b   : > { %v904_v25 = vsel %vm888_vm7, %v880_v58, %v896_v20  ;;  %v907_v32 = vsel %vm891_vm8, %v883_v63, %v899_v22  ;;  %v1294_v33 = vld [vmem:[#allocation2 + $0x60] sm:$0xf]  ;;  %v1773_v38 = vshrl.u32 %v4459_v28, 16  ;;  %v1775_v39 = vshll.u32 %v4459_v28, 16  ;;  %v1297_v41 = vld [vmem:[#allocation2 + $0x64] sm:$0x1] }
  0x2c   : > { %v1216_v29 = vshrl.u32 %v4257_v21, 16  ;;  %v1219_v30 = vshll.u32 %v4257_v21, 16  ;;  %v4256_v31 = vpack.c.bf16 %v904_v25, %v904_v25  ;;  %v4259_v34 = vpack.c.bf16 %v907_v32, %v907_v32  ;;  %v1291_v55 = vld [vmem:[#allocation2 + $0x5c] sm:$0x1]  ;;  %v1306_v59 = vld [vmem:[#allocation2 + $0x70] sm:$0xf] }
  0x2d   : > { %v906_v35 = vsel %vm890_vm9, %v882_v8, %v898_v26  ;;  %v4844_v36 = vadd.f32 %v4770_v18, %v933_v24  ;;  %vm1009_vm10 = vcmp.ge.f32.partialorder %v4837_v23, 0.0  ;;  %v4855_v49 = vadd.f32 %v4770_v18, %v932_v37  ;;  %v1309_v4 = vld [vmem:[#allocation2 + $0x74] sm:$0x1]  ;;  %v688_v5 = vld [vmem:[#allocation2 + $0x104] sm:$0x1] }
  0x2e   : > { %v1218_v40 = vrot.slane %v1216_v29, 7  ;;  %v1208_v42 = vshrl.u32 %v4256_v31, 16  ;;  %v1211_v46 = vshll.u32 %v4256_v31, 16  ;;  %v1232_v47 = vshrl.u32 %v4259_v34, 16  ;;  %v1300_v10 = vld [vmem:[#allocation2 + $0x68] sm:$0xf] }
  0x2f   : > { %v1635_v44 = vld [vmem:[#allocation2 + $0xf0] sm:$0xf]  ;;  %v1660_v45 = vld [vmem:[#allocation2 + $0xf4] sm:$0x1]  ;;  %v4258_v48 = vpack.c.bf16 %v906_v35, %v906_v35  ;;  %v1777_v50 = vrot.slane %v1775_v39, 1  ;;  %v1235_v58 = vshll.u32 %v4259_v34, 16 }
  0x30   : > { %v4075_v51 = vcombine.low %v1635_v44, %v1660_v45  ;;  %v1221_v52 = vor.u32 %v1219_v30, %v1218_v40  ;;  %v1222_v53 = vrot.slane %v1218_v40, 4  ;;  %v1210_v56 = vrot.slane %v1208_v42, 7  ;;  %v1303_v12 = vld [vmem:[#allocation2 + $0x6c] sm:$0x1]  ;;  %v563_v13 = vld [vmem:[#allocation2 + $0xf8] sm:$0x1] }
  0x31   : > { %v1234_v57 = vrot.slane %v1232_v47, 7  ;;  %v1224_v60 = vshrl.u32 %v4258_v48, 16  ;;  %v1778_v61 = vor.u32 %v1777_v50, %v1773_v38  ;;  %v1227_v17 = vshll.u32 %v4258_v48, 16  ;;  %v685_v19 = vld [vmem:[#allocation2 + $0xfc] sm:$0x1]  ;;  %v4903_v47 = vld [vmem:[%s4876_s18] sm:$0xff]  }
  0x32   : > { %v1885_v62 = vshrl.u32 %v4075_v51, 16  ;;  %v1887_v63 = vshll.u32 %v4075_v51, 16  ;;  %v1295_v2 = vsel %vm4850_vm11, %v1221_v52, %v1294_v33  ;;  %v1298_v6 = vsel %vm4720_vm3, %v1222_v53, %v1297_v41  ;;  %v536_v25 = vld [vmem:[#allocation2 + $0xb0] sm:$0x1]  ;;  %v658_v26 = vld [vmem:[#allocation2 + $0xb4] sm:$0x1] }
  0x33   : > { %1296 = vst [vmem:[#allocation2 + $0x60] sm:$0xf] %v1295_v2  ;;  %v1213_v7 = vor.u32 %v1211_v46, %v1210_v56  ;;  %v1214_v8 = vrot.slane %v1210_v56, 4  ;;  %v1237_v9 = vor.u32 %v1235_v58, %v1234_v57  ;;  %1828 = vrot.lane.b32.xlu0 %v1778_v61, %s4614_s14  ;;  %1299 = vst [vmem:[#allocation2 + $0x64] sm:$0x1] %v1298_v6  ;;  %v1238_v15 = vrot.slane %v1234_v57, 4 }
  0x34   : > { %v1889_v14 = vrot.slane %v1887_v63, 1  ;;  %v1226_v16 = vrot.slane %v1224_v60, 7  ;;  %v689_v24 = vsel %vm4736_vm5, 0, %v688_v5  ;;  %v533_v32 = vld [vmem:[#allocation2 + $0xa8] sm:$0x1]  ;;  %v564_v35 = vsel %vm4720_vm3, 0, %v563_v13 }
  0x35   : > { %v1289_v20 = vsel %vm4850_vm11, %v1213_v7, %v1288_v54  ;;  %v1292_v21 = vsel %vm4720_vm3, %v1214_v8, %v1291_v55  ;;  %v1307_v22 = vsel %vm4850_vm11, %v1237_v9, %v1306_v59  ;;  %v1310_v29 = vsel %vm4720_vm3, %v1238_v15, %v1309_v4  ;;  %690 = vst [vmem:[#allocation2 + $0x104] sm:$0x1] %v689_v24  ;;  %v655_v33 = vld [vmem:[#allocation2 + $0xac] sm:$0x1]  ;;  %v1592_v13 = vld [vmem:[#allocation2 + $0x100] sm:$0xf] }
  0x36   : > { %v1890_v28 = vor.u32 %v1889_v14, %v1885_v62  ;;  %1290 = vst [vmem:[#allocation2 + $0x58] sm:$0xf] %v1289_v20  ;;  %1293 = vst [vmem:[#allocation2 + $0x5c] sm:$0x1] %v1292_v21  ;;  %v1229_v30 = vor.u32 %v1227_v17, %v1226_v16  ;;  %v1230_v31 = vrot.slane %v1226_v16, 4  ;;  %v686_v37 = vsel %vm4736_vm5, 0, %v685_v19 }
  0x37   : > { %1308 = vst [vmem:[#allocation2 + $0x70] sm:$0xf] %v1307_v22  ;;  %1311 = vst [vmem:[#allocation2 + $0x74] sm:$0x1] %v1310_v29  ;;  %v1017_v34 = vmul.f32 0.1, %v4837_v23  ;;  %v4298_v5 = vunpack.c.l.bf16 %v4903_v47 }
  0x38   : > { %vm1008_vm12 = vcmp.ge.f32.partialorder %v4841_v27, 0.0  ;;  %1940 = vrot.lane.b32.xlu0 %v1890_v28, %s4615_s20  ;;  %v1301_v38 = vsel %vm4850_vm11, %v1229_v30, %v1300_v10  ;;  %v1304_v39 = vsel %vm4720_vm3, %v1230_v31, %v1303_v12  ;;  %565 = vst [vmem:[#allocation2 + $0xf8] sm:$0x1] %v564_v35  ;;  %687 = vst [vmem:[#allocation2 + $0xfc] sm:$0x1] %v686_v37  ;;  %v537_v41 = vsel %vm4720_vm3, 0, %v536_v25 }
  0x39   : > { %v1016_v40 = vmul.f32 0.1, %v4841_v27  ;;  %1302 = vst [vmem:[#allocation2 + $0x68] sm:$0xf] %v1301_v38  ;;  %1305 = vst [vmem:[#allocation2 + $0x6c] sm:$0x1] %v1304_v39  ;;  %v1025_v42 = vsel %vm1009_vm10, %v4837_v23, %v1017_v34  ;;  %v805_v31 = vmul.f32 %v4298_v5, %v4753_v11 }
  0x3a   : > { %538 = vst [vmem:[#allocation2 + $0xb0] sm:$0x1] %v537_v41  ;;  %v659_v44 = vsel %vm4736_vm5, 0, %v658_v26  ;;  %vm949_vm13 = vcmp.ge.f32.partialorder %v4844_v36, 0.0  ;;  %v957_v45 = vmul.f32 0.1, %v4844_v36  ;;  %v4273_v50 = vpack.c.bf16 %v1025_v42, %v1025_v42 }
  0x3b   : > { %v4900_v46 = vld [vmem:[%s4817_s13 + $0x8] sm:$0xff]   ;;  %v1669_v48 = vld [vmem:[#allocation2 + $0x60] sm:$0xf]  ;;  %v1024_v51 = vsel %vm1008_vm12, %v4841_v27, %v1016_v40  ;;  %660 = vst [vmem:[#allocation2 + $0xb4] sm:$0x1] %v659_v44  ;;  %v534_v23 = vsel %vm4720_vm3, 0, %v533_v32 }
  0x3c   : > { %v656_v52 = vsel %vm4736_vm5, 0, %v655_v33  ;;  %v4913_v53 = vld [vmem:[%s4782_s29 + $0x8] sm:$0xff]   ;;  %v1693_v55 = vld [vmem:[#allocation2 + $0x64] sm:$0x1]  ;;  %v4084_v56 = vcombine.low %v1669_v48, %v1669_v48  ;;  %v4272_v57 = vpack.c.bf16 %v1024_v51, %v1024_v51  ;;  %v965_v58 = vsel %vm949_vm13, %v4844_v36, %v957_v45  ;;  %535 = vst [vmem:[#allocation2 + $0xa8] sm:$0x1] %v534_v23 }
  0x3d   : > { %v4916_v54 = vld [vmem:[%s4876_s18 + $0x8] sm:$0xff]   ;;  %657 = vst [vmem:[#allocation2 + $0xac] sm:$0x1] %v656_v52  ;;  %vm948_vm14 = vcmp.ge.f32.partialorder %v4855_v49, 0.0  ;;  %v4920_v27 = vcombine.low %v1669_v48, %v1693_v55  ;;  %v1514_v59 = vshrl.u32 %v4273_v50, 16  ;;  %v1517_v60 = vshll.u32 %v4273_v50, 16 }
  0x3e   : > { %v4265_v61 = vpack.c.bf16 %v965_v58, %v965_v58  ;;  %1982 = vrot.lane.b32.xlu1 %v4084_v56, %s4616_s21  ;;  %v1668_v62 = vld [vmem:[#allocation2 + $0x58] sm:$0xf]  ;;  %v1692_v63 = vld [vmem:[#allocation2 + $0x5c] sm:$0x1]  ;;  %v1671_v2 = vld [vmem:[#allocation2 + $0x70] sm:$0xf]  ;;  %v4334_v4 = vunpack.c.l.bf16 %v4900_v46  ;;  %v4350_v36 = vunpack.c.l.bf16 %v4913_v53  ;;  %v4302_v6 = vunpack.c.l.bf16 %v4916_v54 }
  0x3f   : > { %v2140_v7 = vshrl.u32 %v4920_v27, 16  ;;  %v2142_v8 = vshll.u32 %v4920_v27, 16  ;;  %v4083_v9 = vcombine.low %v1668_v62, %v1668_v62  ;;  %v4929_v10 = vcombine.low %v1668_v62, %v1692_v63  ;;  %v1695_v12 = vld [vmem:[#allocation2 + $0x74] sm:$0x1]  ;;  %v539_v14 = vld [vmem:[#allocation2 + $0xb8] sm:$0x1] }
  0x40   : > { %v4086_v15 = vcombine.low %v1671_v2, %v1671_v2  ;;  %v4931_v16 = vcombine.low %v1671_v2, %v1695_v12  ;;  %v1516_v17 = vrot.slane %v1514_v59, 7  ;;  %v1595_v19 = vld [vmem:[#allocation2 + $0x104] sm:$0x1]  ;;  %v1506_v20 = vshrl.u32 %v4272_v57, 16  ;;  %v661_v21 = vld [vmem:[#allocation2 + $0xbc] sm:$0x1] }
  0x41   : > { %1980 = vrot.lane.b32.xlu0 %v4083_v9, %s4616_s21  ;;  %v1670_v22 = vld [vmem:[#allocation2 + $0x68] sm:$0xf]  ;;  %v1694_v24 = vld [vmem:[#allocation2 + $0x6c] sm:$0x1]  ;;  %v1509_v25 = vshll.u32 %v4272_v57, 16  ;;  %v1365_v26 = vshrl.u32 %v4265_v61, 16  ;;  %v934_v28 = vmul.f32 %v4334_v4, %v4753_v11 }
  0x42   : > { %v473_v29 = vld [vmem:[#allocation2 + $0x8] sm:$0x1]  ;;  %v595_v30 = vld [vmem:[#allocation2 + $0xc] sm:$0x1]  ;;  %1986 = vrot.lane.b32.xlu1 %v4086_v15, %s4616_s21  ;;  %v4085_v32 = vcombine.low %v1670_v22, %v1670_v22  ;;  %v4937_v33 = vcombine.low %v1670_v22, %v1694_v24  ;;  %v1519_v34 = vor.u32 %v1517_v60, %v1516_v17  ;;  %v1520_v35 = vrot.slane %v1516_v17, 4 }
  0x43   : > { %v1586_v37 = vld [vmem:[#allocation2 + $0xf8] sm:$0xf]  ;;  %v1589_v38 = vld [vmem:[#allocation2 + $0xfc] sm:$0x1]  ;;  %v1508_v39 = vrot.slane %v1506_v20, 7  ;;  %v1367_v40 = vrot.slane %v1365_v26, 7  ;;  %v942_v60 = vadd.f32 %v4770_v18, %v934_v28  ;;  %v994_v20 = vmul.f32 %v4350_v36, %v4753_v11 }
  0x44   : > { %v1368_v41 = vshll.u32 %v4265_v61, 16  ;;  %v956_v42 = vmul.f32 0.1, %v4855_v49  ;;  %v1593_v44 = vsel %vm4850_vm11, %v1519_v34, %v1592_v13  ;;  %v1596_v45 = vsel %vm4720_vm3, %v1520_v35, %v1595_v19  ;;  %v1443_v48 = vld [vmem:[#allocation2 + $0xb0] sm:$0xf] }
  0x45   : > { %v1446_v50 = vld [vmem:[#allocation2 + $0xb4] sm:$0x1]  ;;  %v540_v51 = vsel %vm4720_vm3, 0, %v539_v14  ;;  %v662_v23 = vsel %vm4736_vm5, 0, %v661_v21  ;;  %1984 = vrot.lane.b32.xlu0 %v4085_v32, %s4616_s21  ;;  %1594 = vst [vmem:[#allocation2 + $0x100] sm:$0xf] %v1593_v44  ;;  %v1511_v52 = vor.u32 %v1509_v25, %v1508_v39  ;;  %v820_v14 = vadd.f32 %v4770_v18, %v805_v31 }
  0x46   : > { %1597 = vst [vmem:[#allocation2 + $0x104] sm:$0x1] %v1596_v45  ;;  %v1512_v55 = vrot.slane %v1508_v39, 4  ;;  %v1370_v56 = vor.u32 %v1368_v41, %v1367_v40  ;;  %v1371_v57 = vrot.slane %v1367_v40, 4  ;;  %541 = vst [vmem:[#allocation2 + $0xb8] sm:$0x1] %v540_v51  ;;  %v964_v59 = vsel %vm948_vm14, %v4855_v49, %v956_v42 }
  0x47   : > { %663 = vst [vmem:[#allocation2 + $0xbc] sm:$0x1] %v662_v23  ;;  %v569_v58 = vld [vmem:[#allocation2 + $0x108] sm:$0x1]  ;;  %v474_v61 = vsel %vm4720_vm3, 0, %v473_v29  ;;  %v596_v62 = vsel %vm4736_vm5, 0, %v595_v30  ;;  %v1587_v4 = vsel %vm4850_vm11, %v1511_v52, %v1586_v37  ;;  %v4264_v12 = vpack.c.bf16 %v964_v59, %v964_v59 }
  0x48   : > { %v691_v63 = vld [vmem:[#allocation2 + $0x10c] sm:$0x1]  ;;  %v479_v2 = vld [vmem:[#allocation2 + $0x18] sm:$0x1]  ;;  %v1590_v5 = vsel %vm4720_vm3, %v1512_v55, %v1589_v38  ;;  %v1444_v9 = vsel %vm4850_vm11, %v1370_v56, %v1443_v48  ;;  %v1447_v49 = vsel %vm4720_vm3, %v1371_v57, %v1446_v50  ;;  %475 = vst [vmem:[#allocation2 + $0x8] sm:$0x1] %v474_v61  ;;  %v4976_v30 = vadd.f32 %v4770_v18, %v994_v20 }
  0x49   : > { %597 = vst [vmem:[#allocation2 + $0xc] sm:$0x1] %v596_v62  ;;  %1588 = vst [vmem:[#allocation2 + $0xf8] sm:$0xf] %v1587_v4  ;;  %vm950_vm15 = vcmp.ge.f32.partialorder %v942_v60, 0.0  ;;  %v570_v17 = vsel %vm4720_vm3, 0, %v569_v58  ;;  %v807_v35 = vmul.f32 %v4302_v6, %v4753_v11  ;;  %v4299_v38 = vunpack.c.h.bf16 %v4903_v47 }
  0x4a   : > { %1591 = vst [vmem:[#allocation2 + $0xfc] sm:$0x1] %v1590_v5  ;;  %1445 = vst [vmem:[#allocation2 + $0xb0] sm:$0xf] %v1444_v9  ;;  %v958_v13 = vmul.f32 0.1, %v942_v60 }
  0x4b   : > { %1448 = vst [vmem:[#allocation2 + $0xb4] sm:$0x1] %v1447_v49  ;;  %v601_v15 = vld [vmem:[#allocation2 + $0x1c] sm:$0x1]  ;;  %v692_v19 = vsel %vm4736_vm5, 0, %v691_v63  ;;  %v480_v21 = vsel %vm4720_vm3, 0, %v479_v2  ;;  %v822_v57 = vadd.f32 %v4770_v18, %v807_v35  ;;  %v806_v58 = vmul.f32 %v4299_v38, %v4753_v11 }
  0x4c   : > { %v476_v22 = vld [vmem:[#allocation2 + $0x10] sm:$0x1]  ;;  %v1357_v24 = vshrl.u32 %v4264_v12, 16  ;;  %v1360_v25 = vshll.u32 %v4264_v12, 16  ;;  %v966_v26 = vsel %vm950_vm15, %v942_v60, %v958_v13  ;;  %vm828_vm0 = vcmp.ge.f32.partialorder %v820_v14, 0.0 }
  0x4d   : > { %571 = vst [vmem:[#allocation2 + $0x108] sm:$0x1] %v570_v17  ;;  %693 = vst [vmem:[#allocation2 + $0x10c] sm:$0x1] %v692_v19  ;;  %v4266_v28 = vpack.c.bf16 %v966_v26, %v966_v26  ;;  %v836_v29 = vmul.f32 0.1, %v820_v14 }
  0x4e   : > { %481 = vst [vmem:[#allocation2 + $0x18] sm:$0x1] %v480_v21  ;;  %v602_v31 = vsel %vm4736_vm5, 0, %v601_v15  ;;  %v1701_v36 = vld [vmem:[#allocation2 + $0x100] sm:$0xf]  ;;  %v1359_v34 = vrot.slane %v1357_v24, 7 }
  0x4f   : > { %v1725_v32 = vld [vmem:[#allocation2 + $0x104] sm:$0x1]  ;;  %603 = vst [vmem:[#allocation2 + $0x1c] sm:$0x1] %v602_v31  ;;  %v477_v37 = vsel %vm4720_vm3, 0, %v476_v22  ;;  %v4108_v39 = vcombine.low %v1701_v36, %v1701_v36  ;;  %v1373_v44 = vshrl.u32 %v4266_v28, 16  ;;  %v4989_v52 = vsel %vm828_vm0, %v820_v14, %v836_v29 }
  0x50   : > { %v4986_v40 = vcombine.low %v1701_v36, %v1725_v32  ;;  %v1437_v41 = vld [vmem:[#allocation2 + $0xa8] sm:$0xf]  ;;  %v1440_v42 = vld [vmem:[#allocation2 + $0xac] sm:$0x1]  ;;  %v1376_v45 = vshll.u32 %v4266_v28, 16  ;;  %v1362_v48 = vor.u32 %v1360_v25, %v1359_v34  ;;  %v1363_v50 = vrot.slane %v1359_v34, 4 }
  0x51   : > { %478 = vst [vmem:[#allocation2 + $0x10] sm:$0x1] %v477_v37  ;;  %v1637_v51 = vld [vmem:[#allocation2 + $0x100] sm:$0xf]  ;;  %v1662_v23 = vld [vmem:[#allocation2 + $0x104] sm:$0x1]  ;;  %2230 = vrot.lane.b32.xlu1 %v4108_v39, %s4617_s22  ;;  %v4248_v56 = vpack.c.bf16 %v4989_v52, %v4989_v52 }
  0x52   : > { %vm1010_vm1 = vcmp.ge.f32.partialorder %v4976_v30, 0.0  ;;  %v1700_v47 = vld [vmem:[#allocation2 + $0xf8] sm:$0xf]  ;;  %v1724_v6 = vld [vmem:[#allocation2 + $0xfc] sm:$0x1]  ;;  %v4077_v55 = vcombine.low %v1637_v51, %v1662_v23  ;;  %v1438_v62 = vsel %vm4850_vm11, %v1362_v48, %v1437_v41  ;;  %v1441_v63 = vsel %vm4720_vm3, %v1363_v50, %v1440_v42 }
  0x53   : > { %v4107_v59 = vcombine.low %v1700_v47, %v1700_v47  ;;  %v4997_v60 = vcombine.low %v1700_v47, %v1724_v6  ;;  %v4473_v61 = vld [vmem:[#allocation2 + $0xb0] sm:$0x1f]   ;;  %v1449_v2 = vld [vmem:[#allocation2 + $0xb8] sm:$0xf]  ;;  %1439 = vst [vmem:[#allocation2 + $0xa8] sm:$0xf] %v1438_v62 }
  0x54   : > { %v1636_v4 = vld [vmem:[#allocation2 + $0xf8] sm:$0xf]  ;;  %1442 = vst [vmem:[#allocation2 + $0xac] sm:$0x1] %v1441_v63  ;;  %v1375_v5 = vrot.slane %v1373_v44, 7  ;;  %v1899_v9 = vshrl.u32 %v4077_v55, 16 }
  0x55   : > { %v1901_v49 = vshll.u32 %v4077_v55, 16  ;;  %v1661_v12 = vld [vmem:[#allocation2 + $0xfc] sm:$0x1]  ;;  %v1057_v13 = vshrl.u32 %v4248_v56, 16  ;;  %2228 = vrot.lane.b32.xlu0 %v4107_v59, %s4617_s22  ;;  %v1787_v14 = vshrl.u32 %v4473_v61, 16  ;;  %v1789_v15 = vshll.u32 %v4473_v61, 16 }
  0x56   : > { %v1452_v17 = vld [vmem:[#allocation2 + $0xbc] sm:$0x1]  ;;  %v4076_v19 = vcombine.low %v1636_v4, %v1661_v12  ;;  %v1060_v20 = vshll.u32 %v4248_v56, 16  ;;  %v1378_v21 = vor.u32 %v1376_v45, %v1375_v5  ;;  %v1379_v22 = vrot.slane %v1375_v5, 4  ;;  %v1139_v26 = vld [vmem:[#allocation2 + $0x8] sm:$0xf] }
  0x57   : > { %v1903_v24 = vrot.slane %v1901_v49, 1  ;;  %v1059_v25 = vrot.slane %v1057_v13, 7  ;;  %v1791_v28 = vrot.slane %v1789_v15, 1  ;;  %v1018_v36 = vmul.f32 0.1, %v4976_v30 }
  0x58   : > { %v1892_v29 = vshrl.u32 %v4076_v19, 16  ;;  %v1894_v31 = vshll.u32 %v4076_v19, 16  ;;  %v1450_v32 = vsel %vm4850_vm11, %v1378_v21, %v1449_v2  ;;  %v1453_v34 = vsel %vm4720_vm3, %v1379_v22, %v1452_v17  ;;  %v1142_v38 = vld [vmem:[#allocation2 + $0xc] sm:$0x1]  ;;  %v598_v45 = vld [vmem:[#allocation2 + $0x14] sm:$0x1] }
  0x59   : > { %v5009_v35 = vor.u32 %v1903_v24, %v1899_v9  ;;  %v1062_v37 = vor.u32 %v1060_v20, %v1059_v25  ;;  %v1792_v39 = vor.u32 %v1791_v28, %v1787_v14  ;;  %1451 = vst [vmem:[#allocation2 + $0xb8] sm:$0xf] %v1450_v32  ;;  %1454 = vst [vmem:[#allocation2 + $0xbc] sm:$0x1] %v1453_v34  ;;  %v1063_v42 = vrot.slane %v1059_v25, 4 }
  0x5a   : > { %v1896_v41 = vrot.slane %v1894_v31, 1  ;;  %v1026_v44 = vsel %vm1010_vm1, %v4976_v30, %v1018_v36  ;;  %vm830_vm6 = vcmp.ge.f32.partialorder %v822_v57, 0.0  ;;  %v838_v51 = vmul.f32 0.1, %v822_v57  ;;  %v482_v23 = vld [vmem:[#allocation2 + $0x20] sm:$0x1] }
  0x5b   : > { %v1140_v48 = vsel %vm4850_vm11, %v1062_v37, %v1139_v26  ;;  %v4274_v50 = vpack.c.bf16 %v1026_v44, %v1026_v44  ;;  %1832 = vrot.lane.b32.xlu1 %v1792_v39, %s4614_s14  ;;  %v4474_v47 = vld [vmem:[#allocation2 + $0xa8] sm:$0x1f]   ;;  %v1143_v55 = vsel %vm4720_vm3, %v1063_v42, %v1142_v38  ;;  %v821_v56 = vadd.f32 %v4770_v18, %v806_v58  ;;  %v604_v19 = vld [vmem:[#allocation2 + $0x24] sm:$0x1]  ;;  %v1151_v22 = vld [vmem:[#allocation2 + $0x18] sm:$0xf] }
  0x5c   : > { %v5017_v6 = vor.u32 %v1896_v41, %v1892_v29  ;;  %1141 = vst [vmem:[#allocation2 + $0x8] sm:$0xf] %v1140_v48  ;;  %v4303_v30 = vunpack.c.h.bf16 %v4916_v54  ;;  %1144 = vst [vmem:[#allocation2 + $0xc] sm:$0x1] %v1143_v55  ;;  %v5023_v62 = vsel %vm830_vm6, %v822_v57, %v838_v51  ;;  %v599_v63 = vsel %vm4736_vm5, 0, %v598_v45 }
  0x5d   : > { %v1522_v59 = vshrl.u32 %v4274_v50, 16  ;;  %v1525_v61 = vshll.u32 %v4274_v50, 16  ;;  %v1780_v2 = vshrl.u32 %v4474_v47, 16  ;;  %v1782_v4 = vshll.u32 %v4474_v47, 16  ;;  %v1598_v5 = vld [vmem:[#allocation2 + $0x108] sm:$0xf] }
  0x5e   : > { %v4250_v9 = vpack.c.bf16 %v5023_v62, %v5023_v62  ;;  %600 = vst [vmem:[#allocation2 + $0x14] sm:$0x1] %v599_v63  ;;  %vm829_vm7 = vcmp.ge.f32.partialorder %v821_v56, 0.0  ;;  %v837_v58 = vmul.f32 0.1, %v821_v56  ;;  %v2133_v54 = vshrl.u32 %v4929_v10, 16 }
  0x5f   : > { %v1524_v49 = vrot.slane %v1522_v59, 7  ;;  %v2135_v12 = vshll.u32 %v4929_v10, 16  ;;  %v1784_v13 = vrot.slane %v1782_v4, 1  ;;  %v1601_v57 = vld [vmem:[#allocation2 + $0x10c] sm:$0x1]  ;;  %v483_v17 = vsel %vm4720_vm3, 0, %v482_v23 }
  0x60   : > { %v1073_v14 = vshrl.u32 %v4250_v9, 16  ;;  %v1076_v15 = vshll.u32 %v4250_v9, 16  ;;  %v4475_v20 = vld [vmem:[#allocation2 + $0xb8] sm:$0x1f]   ;;  %v5033_v25 = vsel %vm829_vm7, %v821_v56, %v837_v58  ;;  %484 = vst [vmem:[#allocation2 + $0x20] sm:$0x1] %v483_v17  ;;  %v808_v26 = vmul.f32 %v4303_v30, %v4753_v11 }
  0x61   : > { %v1527_v21 = vor.u32 %v1525_v61, %v1524_v49  ;;  %v1154_v24 = vld [vmem:[#allocation2 + $0x1c] sm:$0x1]  ;;  %v4351_v28 = vunpack.c.h.bf16 %v4913_v53  ;;  %v1785_v10 = vor.u32 %v1784_v13, %v1780_v2  ;;  %v1528_v29 = vrot.slane %v1524_v49, 4  ;;  %v1145_v61 = vld [vmem:[#allocation2 + $0x10] sm:$0xf] }
  0x62   : > { %v1075_v31 = vrot.slane %v1073_v14, 7  ;;  %v4249_v36 = vpack.c.bf16 %v5033_v25, %v5033_v25  ;;  %v1794_v32 = vshrl.u32 %v4475_v20, 16  ;;  %v1796_v34 = vshll.u32 %v4475_v20, 16  ;;  %v4485_v13 = vld [vmem:[#allocation2 + $0xa8] sm:$0x1f]  }
  0x63   : > { %v1599_v37 = vsel %vm4850_vm11, %v1527_v21, %v1598_v5  ;;  %v2137_v38 = vrot.slane %v2135_v12, 1  ;;  %1830 = vrot.lane.b32.xlu0 %v1785_v10, %s4614_s14  ;;  %v4478_v39 = vld [vmem:[#allocation2 + $0x8] sm:$0x1f]   ;;  %v1602_v11 = vsel %vm4720_vm3, %v1528_v29, %v1601_v57  ;;  %v605_v51 = vsel %vm4736_vm5, 0, %v604_v19 }
  0x64   : > { %1600 = vst [vmem:[#allocation2 + $0x108] sm:$0xf] %v1599_v37  ;;  %v1078_v41 = vor.u32 %v1076_v15, %v1075_v31  ;;  %v1079_v42 = vrot.slane %v1075_v31, 4  ;;  %v1065_v44 = vshrl.u32 %v4249_v36, 16  ;;  %v1798_v45 = vrot.slane %v1796_v34, 1 }
  0x65   : > { %1603 = vst [vmem:[#allocation2 + $0x10c] sm:$0x1] %v1602_v11  ;;  %v1068_v48 = vshll.u32 %v4249_v36, 16  ;;  %v5044_v50 = vor.u32 %v2137_v38, %v2133_v54  ;;  %v2037_v23 = vshrl.u32 %v4478_v39, 16  ;;  %v2039_v47 = vshll.u32 %v4478_v39, 16 }
  0x66   : > { %v1152_v55 = vsel %vm4850_vm11, %v1078_v41, %v1151_v22  ;;  %v1155_v56 = vsel %vm4720_vm3, %v1079_v42, %v1154_v24  ;;  %606 = vst [vmem:[#allocation2 + $0x24] sm:$0x1] %v605_v51  ;;  %v1799_v30 = vor.u32 %v1798_v45, %v1794_v32  ;;  %v1067_v59 = vrot.slane %v1065_v44, 7  ;;  %v1148_v5 = vld [vmem:[#allocation2 + $0x14] sm:$0x1] }
  0x67   : > { %1153 = vst [vmem:[#allocation2 + $0x18] sm:$0xf] %v1152_v55  ;;  %1156 = vst [vmem:[#allocation2 + $0x1c] sm:$0x1] %v1155_v56  ;;  %v823_v63 = vadd.f32 %v4770_v18, %v808_v26  ;;  %v2147_v2 = vshrl.u32 %v4937_v33, 16  ;;  %1944 = vrot.lane.b32.xlu0 %v5009_v35, %s4615_s20  ;;  %v2041_v4 = vrot.slane %v2039_v47, 1  ;;  %v4335_v42 = vunpack.c.h.bf16 %v4900_v46 }
  0x68   : > { %v2149_v9 = vshll.u32 %v4937_v33, 16  ;;  %v2144_v49 = vrot.slane %v2142_v8, 1  ;;  %v2154_v58 = vshrl.u32 %v4931_v16, 16  ;;  %1834 = vrot.lane.b32.xlu1 %v1799_v30, %s4614_s14  ;;  %v1070_v54 = vor.u32 %v1068_v48, %v1067_v59  ;;  %v572_v15 = vld [vmem:[#allocation2 + $0x110] sm:$0x1] }
  0x69   : > { %v1071_v12 = vrot.slane %v1067_v59, 4  ;;  %vm831_vm8 = vcmp.ge.f32.partialorder %v823_v63, 0.0  ;;  %v839_v18 = vmul.f32 0.1, %v823_v63  ;;  %v2042_v57 = vor.u32 %v2041_v4, %v2037_v23  ;;  %v5075_v24 = vld [vmem:[%s4817_s13 + $0x10] sm:$0xff]  }
  0x6a   : > { %v2151_v14 = vrot.slane %v2149_v9, 1  ;;  %v5063_v35 = vor.u32 %v2144_v49, %v2140_v7  ;;  %v2156_v33 = vshll.u32 %v4931_v16, 16  ;;  %v1146_v17 = vsel %vm4850_vm11, %v1070_v54, %v1145_v61  ;;  %v694_v37 = vld [vmem:[#allocation2 + $0x114] sm:$0x1]  ;;  %v4488_v38 = vld [vmem:[#allocation2 + $0xb8] sm:$0x1f]  }
  0x6b   : > { %v1638_v8 = vld [vmem:[#allocation2 + $0x108] sm:$0xf]  ;;  %v1149_v19 = vsel %vm4720_vm3, %v1071_v12, %v1148_v5  ;;  %v5070_v20 = vsel %vm831_vm8, %v823_v63, %v839_v18  ;;  %v2285_v22 = vshrl.u32 %v4485_v13, 16  ;;  %2092 = vrot.lane.b32.xlu0 %v2042_v57, %s4618_s23  ;;  %1147 = vst [vmem:[#allocation2 + $0x10] sm:$0xf] %v1146_v17  ;;  %v2287_v32 = vshll.u32 %v4485_v13, 16 }
  0x6c   : > { %v5072_v21 = vld [vmem:[#allocation2 + $0x108] sm:$0xf]  ;;  %v1663_v27 = vld [vmem:[#allocation2 + $0x10c] sm:$0x1]  ;;  %1150 = vst [vmem:[#allocation2 + $0x14] sm:$0x1] %v1149_v19  ;;  %v4251_v7 = vpack.c.bf16 %v5070_v20, %v5070_v20  ;;  %v5080_v16 = vor.u32 %v2151_v14, %v2147_v2  ;;  %1942 = vrot.lane.b32.xlu1 %v5017_v6, %s4615_s20  ;;  %v4338_v44 = vunpack.c.l.bf16 %v5075_v24 }
  0x6d   : > { %v1726_v26 = vld [vmem:[#allocation2 + $0x10c] sm:$0x1]  ;;  %v4109_v10 = vcombine.low %v5072_v21, %v5072_v21  ;;  %v2158_v29 = vrot.slane %v2156_v33, 1  ;;  %v4078_v31 = vcombine.low %v1638_v8, %v1663_v27  ;;  %v573_v34 = vsel %vm4720_vm3, 0, %v572_v15  ;;  %v5096_v41 = vld [vmem:[%s6101_s4] ss:$0 sm:$0xff] }
  0x6e   : > { %v5087_v36 = vcombine.low %v5072_v21, %v1726_v26  ;;  %v4480_v39 = vld [vmem:[#allocation2 + $0x18] sm:$0x1f]   ;;  %574 = vst [vmem:[#allocation2 + $0x110] sm:$0x1] %v573_v34  ;;  %v995_v6 = vmul.f32 %v5096_v41, %v4351_v28  ;;  %v1081_v51 = vshrl.u32 %v4251_v7, 16  ;;  %v1084_v23 = vshll.u32 %v4251_v7, 16 }
  0x6f   : > { %v5091_v11 = vor.u32 %v2158_v29, %v2154_v58  ;;  %v1906_v45 = vshrl.u32 %v4078_v31, 16  ;;  %v1908_v48 = vshll.u32 %v4078_v31, 16  ;;  %v2051_v47 = vshrl.u32 %v4480_v39, 16  ;;  %v4489_v59 = vld [vmem:[#allocation2 + $0xb0] sm:$0x1f]  }
  0x70   : > { %v2053_v55 = vshll.u32 %v4480_v39, 16  ;;  %v2289_v56 = vrot.slane %v2287_v32, 1  ;;  %v695_v30 = vsel %vm4736_vm5, 0, %v694_v37  ;;  %v1083_v63 = vrot.slane %v1081_v51, 7  ;;  %v1157_v53 = vld [vmem:[#allocation2 + $0x20] sm:$0xf] }
  0x71   : > { %v1910_v61 = vrot.slane %v1908_v48, 1  ;;  %696 = vst [vmem:[#allocation2 + $0x114] sm:$0x1] %v695_v30  ;;  %v5108_v46 = vld [vmem:[%s6102_s5] ss:$0 sm:$0xff]  ;;  %v2299_v2 = vshrl.u32 %v4488_v38, 16  ;;  %v935_v13 = vmul.f32 %v5096_v41, %v4335_v42  ;;  %v5115_v57 = vmul.f32 %v5096_v41, %v4338_v44 }
  0x72   : > { %v1003_v28 = vadd.f32 %v5108_v46, %v995_v6  ;;  %v2055_v4 = vrot.slane %v2053_v55, 1  ;;  %v1160_v5 = vld [vmem:[#allocation2 + $0x24] sm:$0x1]  ;;  %v5111_v9 = vor.u32 %v2289_v56, %v2285_v22  ;;  %v2301_v49 = vshll.u32 %v4488_v38, 16  ;;  %v542_v8 = vld [vmem:[#allocation2 + $0xc0] sm:$0x1] }
  0x73   : > { %v2292_v58 = vshrl.u32 %v4489_v59, 16  ;;  %v1911_v54 = vor.u32 %v1910_v61, %v1906_v45  ;;  %v4481_v12 = vld [vmem:[#allocation2 + $0x10] sm:$0x1f]   ;;  %v1086_v18 = vor.u32 %v1084_v23, %v1083_v63  ;;  %v1087_v33 = vrot.slane %v1083_v63, 4  ;;  %v664_v7 = vld [vmem:[#allocation2 + $0xc4] sm:$0x1] }
  0x74   : > { %v2056_v14 = vor.u32 %v2055_v4, %v2051_v47  ;;  %vm1011_vm9 = vcmp.ge.f32.partialorder %v1003_v28, 0.0  ;;  %v1019_v15 = vmul.f32 0.1, %v1003_v28  ;;  %v2044_v17 = vshrl.u32 %v4481_v12, 16  ;;  %v545_v48 = vld [vmem:[#allocation2 + $0xc8] sm:$0x1] }
  0x75   : > { %1946 = vrot.lane.b32.xlu1 %v1911_v54, %s4615_s20  ;;  %v2046_v19 = vshll.u32 %v4481_v12, 16  ;;  %v1158_v22 = vsel %vm4850_vm11, %v1086_v18, %v1157_v53  ;;  %v2303_v27 = vrot.slane %v2301_v49, 1  ;;  %v1161_v26 = vsel %vm4720_vm3, %v1087_v33, %v1160_v5  ;;  %v667_v56 = vld [vmem:[#allocation2 + $0xcc] sm:$0x1]  ;;  %v548_v61 = vld [vmem:[#allocation2 + $0xd0] sm:$0x1] }
  0x76   : > { %2096 = vrot.lane.b32.xlu0 %v2056_v14, %s4618_s23  ;;  %1159 = vst [vmem:[#allocation2 + $0x20] sm:$0xf] %v1158_v22  ;;  %v1027_v29 = vsel %vm1011_vm9, %v1003_v28, %v1019_v15  ;;  %v2294_v31 = vshll.u32 %v4489_v59, 16  ;;  %v2381_v32 = vshrl.u32 %v4997_v60, 16  ;;  %1162 = vst [vmem:[#allocation2 + $0x24] sm:$0x1] %v1161_v26  ;;  %v943_v45 = vadd.f32 %v5108_v46, %v935_v13 }
  0x77   : > { %v2048_v34 = vrot.slane %v2046_v19, 1  ;;  %v4275_v37 = vpack.c.bf16 %v1027_v29, %v1027_v29  ;;  %v5124_v38 = vor.u32 %v2303_v27, %v2299_v2  ;;  %v2383_v39 = vshll.u32 %v4997_v60, 16  ;;  %v1604_v53 = vld [vmem:[#allocation2 + $0x110] sm:$0xf]  ;;  %v670_v12 = vld [vmem:[#allocation2 + $0xd4] sm:$0x1] }
  0x78   : > { %v2296_v6 = vrot.slane %v2294_v31, 1  ;;  %v543_v42 = vsel %vm4720_vm3, 0, %v542_v8  ;;  %v665_v44 = vsel %vm4736_vm5, 0, %v664_v7  ;;  %vm951_vm10 = vcmp.ge.f32.partialorder %v943_v45, 0.0  ;;  %v1607_v5 = vld [vmem:[#allocation2 + $0x114] sm:$0x1] }
  0x79   : > { %v2049_v51 = vor.u32 %v2048_v34, %v2044_v17  ;;  %v1530_v23 = vshrl.u32 %v4275_v37, 16  ;;  %v1533_v47 = vshll.u32 %v4275_v37, 16  ;;  %v2385_v55 = vrot.slane %v2383_v39, 1  ;;  %544 = vst [vmem:[#allocation2 + $0xc0] sm:$0x1] %v543_v42  ;;  %v5155_v22 = vld [vmem:[%s4817_s13 + $0x18] sm:$0xff]  }
  0x7a   : > { %666 = vst [vmem:[#allocation2 + $0xc4] sm:$0x1] %v665_v44  ;;  %2188 = vrot.lane.b32.xlu0 %v5044_v50, %s4619_s30  ;;  %v5134_v60 = vor.u32 %v2296_v6, %v2292_v58  ;;  %v959_v30 = vmul.f32 0.1, %v943_v45  ;;  %v2388_v59 = vshrl.u32 %v4986_v40, 16  ;;  %v2390_v2 = vshll.u32 %v4986_v40, 16 }
  0x7b   : > { %2094 = vrot.lane.b32.xlu1 %v2049_v51, %s4618_s23  ;;  %v1532_v63 = vrot.slane %v1530_v23, 7  ;;  %v5138_v28 = vor.u32 %v2385_v55, %v2381_v32  ;;  %v2395_v4 = vshrl.u32 %v5087_v36, 16  ;;  %v2397_v50 = vshll.u32 %v5087_v36, 16  ;;  %v551_v40 = vld [vmem:[#allocation2 + $0xd8] sm:$0x1] }
  0x7c   : > { %v967_v49 = vsel %vm951_vm10, %v943_v45, %v959_v30  ;;  %v546_v58 = vsel %vm4720_vm3, 0, %v545_v48  ;;  %v668_v54 = vsel %vm4736_vm5, 0, %v667_v56  ;;  %v2392_v33 = vrot.slane %v2390_v2, 1  ;;  %v578_v31 = vld [vmem:[#allocation2 + $0x120] sm:$0x1]  ;;  %v5182_v2 = vld [vmem:[%s4763_s24 + $0x10] sm:$0xff]  }
  0x7d   : > { %v1535_v18 = vor.u32 %v1533_v47, %v1532_v63  ;;  %v1536_v13 = vrot.slane %v1532_v63, 4  ;;  %v4267_v14 = vpack.c.bf16 %v967_v49, %v967_v49  ;;  %547 = vst [vmem:[#allocation2 + $0xc8] sm:$0x1] %v546_v58  ;;  %669 = vst [vmem:[#allocation2 + $0xcc] sm:$0x1] %v668_v54  ;;  %v2399_v36 = vrot.slane %v2397_v50, 1 }
  0x7e   : > { %v4482_v15 = vld [vmem:[#allocation2 + $0x20] sm:$0x1f]   ;;  %2192 = vrot.lane.b32.xlu0 %v5080_v16, %s4619_s30  ;;  %v944_v8 = vadd.f32 %v5108_v46, %v5115_v57  ;;  %v549_v17 = vsel %vm4720_vm3, 0, %v548_v61  ;;  %v4339_v19 = vunpack.c.h.bf16 %v5075_v24  ;;  %v673_v16 = vld [vmem:[#allocation2 + $0xdc] sm:$0x1]  ;;  %v5161_v37 = vor.u32 %v2392_v33, %v2388_v59 }
  0x7f   : > { %v1605_v27 = vsel %vm4850_vm11, %v1535_v18, %v1604_v53  ;;  %v1608_v7 = vsel %vm4720_vm3, %v1536_v13, %v1607_v5  ;;  %v1381_v26 = vshrl.u32 %v4267_v14, 16  ;;  %v1384_v29 = vshll.u32 %v4267_v14, 16  ;;  %550 = vst [vmem:[#allocation2 + $0xd0] sm:$0x1] %v549_v17  ;;  %v700_v39 = vld [vmem:[#allocation2 + $0x124] sm:$0x1] }
  0x80   : > { %v2058_v32 = vshrl.u32 %v4482_v15, 16  ;;  %v2060_v57 = vshll.u32 %v4482_v15, 16  ;;  %1606 = vst [vmem:[#allocation2 + $0x110] sm:$0xf] %v1605_v27  ;;  %1609 = vst [vmem:[#allocation2 + $0x114] sm:$0x1] %v1608_v7  ;;  %v5163_v24 = vor.u32 %v2399_v36, %v2395_v4  ;;  %v937_v51 = vmul.f32 %v5096_v41, %v4339_v19 }
  0x81   : > { %v1455_v34 = vld [vmem:[#allocation2 + $0xc0] sm:$0xf]  ;;  %v1383_v6 = vrot.slane %v1381_v26, 7  ;;  %vm952_vm12 = vcmp.ge.f32.partialorder %v944_v8, 0.0  ;;  %v960_v42 = vmul.f32 0.1, %v944_v8  ;;  %v4342_v21 = vunpack.c.l.bf16 %v5155_v22 }
  0x82   : > { %v671_v44 = vsel %vm4736_vm5, 0, %v670_v12  ;;  %v2062_v45 = vrot.slane %v2060_v57, 1  ;;  %2232 = vrot.lane.b32.xlu0 %v4109_v10, %s4617_s22  ;;  %v1458_v48 = vld [vmem:[#allocation2 + $0xc4] sm:$0x1]  ;;  %v552_v23 = vsel %vm4720_vm3, 0, %v551_v40  ;;  %v674_v47 = vsel %vm4736_vm5, 0, %v673_v16 }
  0x83   : > { %672 = vst [vmem:[#allocation2 + $0xd4] sm:$0x1] %v671_v44  ;;  %v1386_v55 = vor.u32 %v1384_v29, %v1383_v6  ;;  %v1387_v56 = vrot.slane %v1383_v6, 4  ;;  %v968_v30 = vsel %vm952_vm12, %v944_v8, %v960_v42  ;;  %553 = vst [vmem:[#allocation2 + $0xd8] sm:$0x1] %v552_v23  ;;  %v945_v61 = vadd.f32 %v5108_v46, %v937_v51  ;;  %v4370_v53 = vld [vmem:[%s4782_s29 + $0x10] sm:$0xff]  }
  0x84   : > { %675 = vst [vmem:[#allocation2 + $0xdc] sm:$0x1] %v674_v47  ;;  %v2063_v10 = vor.u32 %v2062_v45, %v2058_v32  ;;  %v4268_v59 = vpack.c.bf16 %v968_v30, %v968_v30  ;;  %v579_v63 = vsel %vm4720_vm3, 0, %v578_v31  ;;  %v938_v49 = vmul.f32 %v5096_v41, %v4342_v21  ;;  %v1461_v14 = vld [vmem:[#allocation2 + $0xc8] sm:$0xf]  ;;  %v5209_v51 = vld [vmem:[%s4763_s24 + $0x18] sm:$0xff]  }
  0x85   : > { %v1456_v4 = vsel %vm4850_vm11, %v1386_v55, %v1455_v34  ;;  %v1459_v5 = vsel %vm4720_vm3, %v1387_v56, %v1458_v48  ;;  %580 = vst [vmem:[#allocation2 + $0x120] sm:$0x1] %v579_v63  ;;  %v701_v50 = vsel %vm4736_vm5, 0, %v700_v39  ;;  %vm953_vm13 = vcmp.ge.f32.partialorder %v945_v61, 0.0  ;;  %v1464_v26 = vld [vmem:[#allocation2 + $0xcc] sm:$0x1] }
  0x86   : > { %2098 = vrot.lane.b32.xlu1 %v2063_v10, %s4618_s23  ;;  %2340 = vrot.lane.b32.xlu0 %v5111_v9, %s4620_s12  ;;  %1457 = vst [vmem:[#allocation2 + $0xc0] sm:$0xf] %v1456_v4  ;;  %1460 = vst [vmem:[#allocation2 + $0xc4] sm:$0x1] %v1459_v5  ;;  %v1389_v58 = vshrl.u32 %v4268_v59, 16  ;;  %v1392_v54 = vshll.u32 %v4268_v59, 16  ;;  %v946_v33 = vadd.f32 %v5108_v46, %v938_v49  ;;  %v4355_v40 = vunpack.c.h.bf16 %v4370_v53 }
  0x87   : > { %v961_v12 = vmul.f32 0.1, %v945_v61  ;;  %702 = vst [vmem:[#allocation2 + $0x124] sm:$0x1] %v701_v50  ;;  %v5194_v18 = vld [vmem:[#allocation2 + $0x110] sm:$0xf]  ;;  %v4354_v15 = vunpack.c.l.bf16 %v4370_v53  ;;  %v4322_v36 = vunpack.c.l.bf16 %v5182_v2  ;;  %v4326_v49 = vunpack.c.l.bf16 %v5209_v51 }
  0x88   : > { %v1727_v13 = vld [vmem:[#allocation2 + $0x114] sm:$0x1]  ;;  %v4110_v9 = vcombine.low %v5194_v18, %v5194_v18  ;;  %v1391_v17 = vrot.slane %v1389_v58, 7  ;;  %v1639_v27 = vld [vmem:[#allocation2 + $0x110] sm:$0xf]  ;;  %vm954_vm14 = vcmp.ge.f32.partialorder %v946_v33, 0.0  ;;  %v997_v30 = vmul.f32 %v5096_v41, %v4355_v40 }
  0x89   : > { %v4126_v8 = vcombine.low %v5194_v18, %v1727_v13  ;;  %v969_v19 = vsel %vm953_vm13, %v945_v61, %v961_v12  ;;  %v1664_v7 = vld [vmem:[#allocation2 + $0x114] sm:$0x1]  ;;  %v962_v31 = vmul.f32 0.1, %v946_v33  ;;  %v5206_v48 = vld [vmem:[%s4782_s29 + $0x18] sm:$0xff]   ;;  %v996_v10 = vmul.f32 %v5096_v41, %v4354_v15  ;;  %s4621_s24 = smov 32  }
  0x8a   : > { %v4269_v29 = vpack.c.bf16 %v969_v19, %v969_v19  ;;  %v4079_v16 = vcombine.low %v1639_v27, %v1664_v7  ;;  %2190 = vrot.lane.b32.xlu1 %v5063_v35, %s4619_s30  ;;  %2344 = vrot.lane.b32.xlu0 %v5124_v38, %s4620_s12  ;;  %v1394_v32 = vor.u32 %v1392_v54, %v1391_v17  ;;  %v1395_v57 = vrot.slane %v1391_v17, 4  ;;  %v575_v21 = vld [vmem:[#allocation2 + $0x118] sm:$0x1]  ;;  %v1467_v63 = vld [vmem:[#allocation2 + $0xd0] sm:$0xf] }
  0x8b   : > { %v2402_v34 = vshrl.u32 %v4126_v8, 16  ;;  %v2404_v39 = vshll.u32 %v4126_v8, 16  ;;  %v970_v38 = vsel %vm954_vm14, %v946_v33, %v962_v31  ;;  %v876_v59 = vmul.f32 %v5096_v41, %v4322_v36  ;;  %v697_v4 = vld [vmem:[#allocation2 + $0x11c] sm:$0x1]  ;;  %v1470_v18 = vld [vmem:[#allocation2 + $0xd4] sm:$0x1] }
  0x8c   : > { %v1397_v6 = vshrl.u32 %v4269_v29, 16  ;;  %v1400_v42 = vshll.u32 %v4269_v29, 16  ;;  %v1913_v44 = vshrl.u32 %v4079_v16, 16  ;;  %v1915_v45 = vshll.u32 %v4079_v16, 16  ;;  %v1473_v17 = vld [vmem:[#allocation2 + $0xd8] sm:$0xf] }
  0x8d   : > { %v1462_v23 = vsel %vm4850_vm11, %v1394_v32, %v1461_v14  ;;  %v1465_v35 = vsel %vm4720_vm3, %v1395_v57, %v1464_v26  ;;  %v2406_v47 = vrot.slane %v2404_v39, 1  ;;  %v4490_v55 = vld [vmem:[#allocation2 + $0xc0] sm:$0x1f]   ;;  %v4270_v56 = vpack.c.bf16 %v970_v38, %v970_v38  ;;  %v515_v19 = vld [vmem:[#allocation2 + $0x78] sm:$0x1] }
  0x8e   : > { %1463 = vst [vmem:[#allocation2 + $0xc8] sm:$0xf] %v1462_v23  ;;  %1466 = vst [vmem:[#allocation2 + $0xcc] sm:$0x1] %v1465_v35  ;;  %2194 = vrot.lane.b32.xlu1 %v5091_v11, %s4619_s30  ;;  %2436 = vrot.lane.b32.xlu0 %v5138_v28, %s4621_s24  ;;  %v4491_v61 = vld [vmem:[#allocation2 + $0xc0] sm:$0x1f]   ;;  %v4358_v5 = vunpack.c.l.bf16 %v5206_v48  ;;  %v4323_v50 = vunpack.c.h.bf16 %v5182_v2  ;;  %v1005_v29 = vadd.f32 %v5108_v46, %v997_v30 }
  0x8f   : > { %v5223_v53 = vor.u32 %v2406_v47, %v2402_v34  ;;  %v2306_v58 = vshrl.u32 %v4490_v55, 16  ;;  %v2308_v54 = vshll.u32 %v4490_v55, 16  ;;  %v1399_v12 = vrot.slane %v1397_v6, 7  ;;  %v1476_v26 = vld [vmem:[#allocation2 + $0xdc] sm:$0x1] }
  0x90   : > { %v1917_v11 = vrot.slane %v1915_v45, 1  ;;  %v1801_v13 = vshrl.u32 %v4491_v61, 16  ;;  %v1803_v14 = vshll.u32 %v4491_v61, 16  ;;  %v1405_v33 = vshrl.u32 %v4270_v56, 16  ;;  %v637_v31 = vld [vmem:[#allocation2 + $0x7c] sm:$0x1] }
  0x91   : > { %v1408_v28 = vshll.u32 %v4270_v56, 16  ;;  %v2310_v40 = vrot.slane %v2308_v54, 1  ;;  %v1402_v15 = vor.u32 %v1400_v42, %v1399_v12  ;;  %v1403_v36 = vrot.slane %v1399_v12, 4  ;;  %v581_v23 = vld [vmem:[#allocation2 + $0x128] sm:$0x1] }
  0x92   : > { %v5228_v8 = vor.u32 %v1917_v11, %v1913_v44  ;;  %2234 = vrot.lane.b32.xlu1 %v4110_v9, %s4617_s22  ;;  %v1805_v27 = vrot.slane %v1803_v14, 1  ;;  %v1407_v7 = vrot.slane %v1405_v33, 7  ;;  %v576_v16 = vsel %vm4720_vm3, 0, %v575_v21  ;;  %v703_v35 = vld [vmem:[#allocation2 + $0x12c] sm:$0x1] }
  0x93   : > { %v2311_v32 = vor.u32 %v2310_v40, %v2306_v58  ;;  %v1468_v57 = vsel %vm4850_vm11, %v1402_v15, %v1467_v63  ;;  %v1471_v34 = vsel %vm4720_vm3, %v1403_v36, %v1470_v18  ;;  %577 = vst [vmem:[#allocation2 + $0x118] sm:$0x1] %v576_v16  ;;  %v698_v9 = vsel %vm4736_vm5, 0, %v697_v4  ;;  %v521_v40 = vld [vmem:[#allocation2 + $0x88] sm:$0x1] }
  0x94   : > { %v1806_v39 = vor.u32 %v1805_v27, %v1801_v13  ;;  %1469 = vst [vmem:[#allocation2 + $0xd0] sm:$0xf] %v1468_v57  ;;  %1472 = vst [vmem:[#allocation2 + $0xd4] sm:$0x1] %v1471_v34  ;;  %v1410_v42 = vor.u32 %v1408_v28, %v1407_v7  ;;  %v1004_v44 = vadd.f32 %v5108_v46, %v996_v10  ;;  %v1411_v47 = vrot.slane %v1407_v7, 4 }
  0x95   : > { %v4492_v6 = vld [vmem:[#allocation2 + $0xc8] sm:$0x1f]   ;;  %699 = vst [vmem:[#allocation2 + $0x11c] sm:$0x1] %v698_v9  ;;  %v884_v45 = vadd.f32 %v5108_v46, %v876_v59  ;;  %vm1013_vm15 = vcmp.ge.f32.partialorder %v1005_v29, 0.0  ;;  %v516_v55 = vsel %vm4720_vm3, 0, %v515_v19  ;;  %v998_v11 = vmul.f32 %v5096_v41, %v4358_v5 }
  0x96   : > { %v1021_v38 = vmul.f32 0.1, %v1005_v29  ;;  %2342 = vrot.lane.b32.xlu1 %v5134_v60, %s4620_s12  ;;  %1836 = vrot.lane.b32.xlu0 %v1806_v39, %s4614_s14  ;;  %v1808_v56 = vshrl.u32 %v4492_v6, 16  ;;  %v1810_v30 = vshll.u32 %v4492_v6, 16  ;;  %v1474_v21 = vsel %vm4850_vm11, %v1410_v42, %v1473_v17  ;;  %517 = vst [vmem:[#allocation2 + $0x78] sm:$0x1] %v516_v55 }
  0x97   : > { %vm1012_vm0 = vcmp.ge.f32.partialorder %v1004_v44, 0.0  ;;  %1475 = vst [vmem:[#allocation2 + $0xd8] sm:$0xf] %v1474_v21  ;;  %v1477_v10 = vsel %vm4720_vm3, %v1411_v47, %v1476_v26  ;;  %v1020_v61 = vmul.f32 0.1, %v1004_v44  ;;  %v638_v63 = vsel %vm4736_vm5, 0, %v637_v31 }
  0x98   : > { %v1029_v59 = vsel %vm1013_vm15, %v1005_v29, %v1021_v38  ;;  %v1812_v4 = vrot.slane %v1810_v30, 1  ;;  %1478 = vst [vmem:[#allocation2 + $0xdc] sm:$0x1] %v1477_v10  ;;  %639 = vst [vmem:[#allocation2 + $0x7c] sm:$0x1] %v638_v63  ;;  %vm892_vm1 = vcmp.ge.f32.partialorder %v884_v45, 0.0  ;;  %v1006_v19 = vadd.f32 %v5108_v46, %v998_v11 }
  0x99   : > { %v4277_v60 = vpack.c.bf16 %v1029_v59, %v1029_v59  ;;  %v900_v58 = vmul.f32 0.1, %v884_v45  ;;  %v1028_v54 = vsel %vm1012_vm0, %v1004_v44, %v1020_v61  ;;  %v582_v12 = vsel %vm4720_vm3, 0, %v581_v23  ;;  %v1616_v36 = vld [vmem:[#allocation2 + $0x120] sm:$0xf] }
  0x9a   : > { %v704_v18 = vsel %vm4736_vm5, 0, %v703_v35  ;;  %2346 = vrot.lane.b32.xlu1 %v2311_v32, %s4620_s12  ;;  %2440 = vrot.lane.b32.xlu0 %v5163_v24, %s4621_s24  ;;  %v1813_v13 = vor.u32 %v1812_v4, %v1808_v56  ;;  %v4276_v28 = vpack.c.bf16 %v1028_v54, %v1028_v54  ;;  %583 = vst [vmem:[#allocation2 + $0x128] sm:$0x1] %v582_v12  ;;  %v1619_v7 = vld [vmem:[#allocation2 + $0x124] sm:$0x1]  ;;  %vm1014_vm6 = vcmp.ge.f32.partialorder %v1006_v19, 0.0 }
  0x9b   : > { %v1546_v14 = vshrl.u32 %v4277_v60, 16  ;;  %v1549_v33 = vshll.u32 %v4277_v60, 16  ;;  %705 = vst [vmem:[#allocation2 + $0x12c] sm:$0x1] %v704_v18  ;;  %v4493_v15 = vld [vmem:[#allocation2 + $0xd0] sm:$0x1f]   ;;  %v908_v17 = vsel %vm892_vm1, %v884_v45, %v900_v58  ;;  %v878_v5 = vmul.f32 %v5096_v41, %v4326_v49 }
  0x9c   : > { %v877_v24 = vmul.f32 %v5096_v41, %v4323_v50  ;;  %v1538_v26 = vshrl.u32 %v4276_v28, 16  ;;  %v1541_v29 = vshll.u32 %v4276_v28, 16  ;;  %v4260_v16 = vpack.c.bf16 %v908_v17, %v908_v17  ;;  %v1610_v57 = vld [vmem:[#allocation2 + $0x118] sm:$0xf]  ;;  %v1613_v34 = vld [vmem:[#allocation2 + $0x11c] sm:$0x1] }
  0x9d   : > { %v1548_v27 = vrot.slane %v1546_v14, 7  ;;  %v1815_v31 = vshrl.u32 %v4493_v15, 16  ;;  %v1817_v32 = vshll.u32 %v4493_v15, 16  ;;  %v522_v9 = vsel %vm4720_vm3, 0, %v521_v40  ;;  %v643_v39 = vld [vmem:[#allocation2 + $0x8c] sm:$0x1] }
  0x9e   : > { %2438 = vrot.lane.b32.xlu1 %v5161_v37, %s4621_s24  ;;  %v1540_v50 = vrot.slane %v1538_v26, 7  ;;  %v1240_v6 = vshrl.u32 %v4260_v16, 16  ;;  %523 = vst [vmem:[#allocation2 + $0x88] sm:$0x1] %v522_v9  ;;  %v1243_v45 = vshll.u32 %v4260_v16, 16  ;;  %v886_v23 = vadd.f32 %v5108_v46, %v878_v5 }
  0x9f   : > { %v1551_v2 = vor.u32 %v1549_v33, %v1548_v27  ;;  %v1552_v49 = vrot.slane %v1548_v27, 4  ;;  %v1819_v42 = vrot.slane %v1817_v32, 1  ;;  %v4495_v44 = vld [vmem:[#allocation2 + $0xd8] sm:$0x1f]   ;;  %v518_v35 = vld [vmem:[#allocation2 + $0x80] sm:$0x1]  ;;  %v885_v47 = vadd.f32 %v5108_v46, %v877_v24 }
  0xa0   : > { %v1543_v37 = vor.u32 %v1541_v29, %v1540_v50  ;;  %v1544_v56 = vrot.slane %v1540_v50, 4  ;;  %v640_v30 = vld [vmem:[#allocation2 + $0x84] sm:$0x1]  ;;  %v1822_v10 = vshrl.u32 %v4495_v44, 16  ;;  %v1824_v59 = vshll.u32 %v4495_v44, 16 }
  0xa1   : > { %v1617_v38 = vsel %vm4850_vm11, %v1551_v2, %v1616_v36  ;;  %v1620_v55 = vsel %vm4720_vm3, %v1552_v49, %v1619_v7  ;;  %v1820_v21 = vor.u32 %v1819_v42, %v1815_v31  ;;  %v1242_v61 = vrot.slane %v1240_v6, 7  ;;  %v1312_v63 = vld [vmem:[#allocation2 + $0x78] sm:$0xf]  ;;  %v485_v4 = vld [vmem:[#allocation2 + $0x28] sm:$0x1] }
  0xa2   : > { %1618 = vst [vmem:[#allocation2 + $0x120] sm:$0xf] %v1617_v38  ;;  %1621 = vst [vmem:[#allocation2 + $0x124] sm:$0x1] %v1620_v55  ;;  %1838 = vrot.lane.b32.xlu1 %v1813_v13, %s4614_s14  ;;  %v1611_v60 = vsel %vm4850_vm11, %v1543_v37, %v1610_v57  ;;  %v1614_v58 = vsel %vm4720_vm3, %v1544_v56, %v1613_v34  ;;  %v1315_v54 = vld [vmem:[#allocation2 + $0x7c] sm:$0x1]  ;;  %v4327_v37 = vunpack.c.h.bf16 %v5209_v51 }
  0xa3   : > { %v1022_v12 = vmul.f32 0.1, %v1006_v19  ;;  %v644_v18 = vsel %vm4736_vm5, 0, %v643_v39  ;;  %v607_v11 = vld [vmem:[#allocation2 + $0x2c] sm:$0x1]  ;;  %1840 = vrot.lane.b32.xlu0 %v1820_v21, %s4614_s14  ;;  %v1826_v14 = vrot.slane %v1824_v59, 1  ;;  %v1245_v33 = vor.u32 %v1243_v45, %v1242_v61 }
  0xa4   : > { %1612 = vst [vmem:[#allocation2 + $0x118] sm:$0xf] %v1611_v60  ;;  %1615 = vst [vmem:[#allocation2 + $0x11c] sm:$0x1] %v1614_v58  ;;  %v1246_v28 = vrot.slane %v1242_v61, 4  ;;  %vm894_vm7 = vcmp.ge.f32.partialorder %v886_v23, 0.0 }
  0xa5   : > { %645 = vst [vmem:[#allocation2 + $0x8c] sm:$0x1] %v644_v18  ;;  %v5290_v13 = vld [vmem:[%s4876_s18 + $0x10] sm:$0xff]   ;;  %v1030_v40 = vsel %vm1014_vm6, %v1006_v19, %v1022_v12  ;;  %v902_v15 = vmul.f32 0.1, %v886_v23  ;;  %v519_v36 = vsel %vm4720_vm3, 0, %v518_v35  ;;  %v1827_v24 = vor.u32 %v1826_v14, %v1822_v10 }
  0xa6   : > { %v641_v17 = vsel %vm4736_vm5, 0, %v640_v30  ;;  %v524_v5 = vld [vmem:[#allocation2 + $0x90] sm:$0x1]  ;;  %v1313_v27 = vsel %vm4850_vm11, %v1245_v33, %v1312_v63  ;;  %v1316_v7 = vsel %vm4720_vm3, %v1246_v28, %v1315_v54  ;;  %v4278_v26 = vpack.c.bf16 %v1030_v40, %v1030_v40  ;;  %520 = vst [vmem:[#allocation2 + $0x80] sm:$0x1] %v519_v36  ;;  %2442 = vrot.lane.b32.xlu1 %v5223_v53, %s4621_s24  ;;  %v5324_v56 = vld [vmem:[%s4876_s18 + $0x18] sm:$0xff]  }
  0xa7   : > { %642 = vst [vmem:[#allocation2 + $0x84] sm:$0x1] %v641_v17  ;;  %v646_v29 = vld [vmem:[#allocation2 + $0x94] sm:$0x1]  ;;  %1314 = vst [vmem:[#allocation2 + $0x78] sm:$0xf] %v1313_v27  ;;  %v910_v19 = vsel %vm894_vm7, %v886_v23, %v902_v15  ;;  %1948 = vrot.lane.b32.xlu0 %v5228_v8, %s4615_s20  ;;  %v4306_v49 = vunpack.c.l.bf16 %v5290_v13  ;;  %v4310_v17 = vunpack.c.l.bf16 %v5324_v56 }
  0xa8   : > { %1317 = vst [vmem:[#allocation2 + $0x7c] sm:$0x1] %v1316_v7  ;;  %vm893_vm8 = vcmp.ge.f32.partialorder %v885_v47, 0.0  ;;  %v901_v16 = vmul.f32 0.1, %v885_v47  ;;  %v486_v31 = vsel %vm4720_vm3, 0, %v485_v4  ;;  %v4262_v34 = vpack.c.bf16 %v910_v19, %v910_v19 }
  0xa9   : > { %v1554_v32 = vshrl.u32 %v4278_v26, 16  ;;  %v1557_v57 = vshll.u32 %v4278_v26, 16  ;;  %487 = vst [vmem:[#allocation2 + $0x28] sm:$0x1] %v486_v31  ;;  %v608_v9 = vsel %vm4736_vm5, 0, %v607_v11  ;;  %v525_v50 = vsel %vm4720_vm3, 0, %v524_v5 }
  0xaa   : > { %v5310_v53 = vld [vmem:[#allocation2 + $0x120] sm:$0xf]  ;;  %v1666_v39 = vld [vmem:[#allocation2 + $0x124] sm:$0x1]  ;;  %v909_v2 = vsel %vm893_vm8, %v885_v47, %v901_v16  ;;  %609 = vst [vmem:[#allocation2 + $0x2c] sm:$0x1] %v608_v9  ;;  %1842 = vrot.lane.b32.xlu1 %v1827_v24, %s4614_s14  ;;  %v809_v55 = vmul.f32 %v5096_v41, %v4306_v49 }
  0xab   : > { %v647_v8 = vsel %vm4736_vm5, 0, %v646_v29  ;;  %v4081_v6 = vcombine.low %v5310_v53, %v1666_v39  ;;  %v1556_v42 = vrot.slane %v1554_v32, 7  ;;  %v1622_v44 = vld [vmem:[#allocation2 + $0x128] sm:$0xf]  ;;  %v1256_v45 = vshrl.u32 %v4262_v34, 16 }
  0xac   : > { %526 = vst [vmem:[#allocation2 + $0x90] sm:$0x1] %v525_v50  ;;  %648 = vst [vmem:[#allocation2 + $0x94] sm:$0x1] %v647_v8  ;;  %v5319_v23 = vld [vmem:[#allocation2 + $0x118] sm:$0xf]  ;;  %v4261_v38 = vpack.c.bf16 %v909_v2, %v909_v2 }
  0xad   : > { %v1665_v35 = vld [vmem:[#allocation2 + $0x11c] sm:$0x1]  ;;  %v1259_v47 = vshll.u32 %v4262_v34, 16  ;;  %v1927_v30 = vshrl.u32 %v4081_v6, 16  ;;  %v1929_v21 = vshll.u32 %v4081_v6, 16  ;;  %v1559_v59 = vor.u32 %v1557_v57, %v1556_v42 }
  0xae   : > { %v4080_v10 = vcombine.low %v5319_v23, %v1665_v35  ;;  %v1625_v61 = vld [vmem:[#allocation2 + $0x12c] sm:$0x1]  ;;  %v1324_v63 = vld [vmem:[#allocation2 + $0x88] sm:$0xf]  ;;  %v1560_v4 = vrot.slane %v1556_v42, 4  ;;  %v1258_v60 = vrot.slane %v1256_v45, 7  ;;  %v824_v57 = vadd.f32 %v5108_v46, %v809_v55 }
  0xaf   : > { %v1327_v58 = vld [vmem:[#allocation2 + $0x8c] sm:$0x1]  ;;  %v1248_v54 = vshrl.u32 %v4261_v38, 16  ;;  %v1251_v12 = vshll.u32 %v4261_v38, 16  ;;  %v1931_v18 = vrot.slane %v1929_v21, 1  ;;  %v1623_v51 = vsel %vm4850_vm11, %v1559_v59, %v1622_v44 }
  0xb0   : > { %v1920_v11 = vshrl.u32 %v4080_v10, 16  ;;  %v1922_v14 = vshll.u32 %v4080_v10, 16  ;;  %v5327_v33 = vld [vmem:[#allocation2 + $0x78] sm:$0xf]  ;;  %1624 = vst [vmem:[#allocation2 + $0x128] sm:$0xf] %v1623_v51  ;;  %v1626_v28 = vsel %vm4720_vm3, %v1560_v4, %v1625_v61  ;;  %v1261_v40 = vor.u32 %v1259_v47, %v1258_v60 }
  0xb1   : > { %v1262_v15 = vrot.slane %v1258_v60, 4  ;;  %v491_v36 = vld [vmem:[#allocation2 + $0x38] sm:$0x1]  ;;  %v1932_v5 = vor.u32 %v1931_v18, %v1927_v30  ;;  %v4087_v27 = vcombine.low %v5327_v33, %v5327_v33  ;;  %1627 = vst [vmem:[#allocation2 + $0x12c] sm:$0x1] %v1626_v28  ;;  %v1250_v7 = vrot.slane %v1248_v54, 7 }
  0xb2   : > { %v1924_v24 = vrot.slane %v1922_v14, 1  ;;  %v613_v26 = vld [vmem:[#allocation2 + $0x3c] sm:$0x1]  ;;  %v488_v29 = vld [vmem:[#allocation2 + $0x30] sm:$0x1]  ;;  %v1325_v19 = vsel %vm4850_vm11, %v1261_v40, %v1324_v63  ;;  %v879_v34 = vmul.f32 %v5096_v41, %v4327_v37  ;;  %v492_v50 = vsel %vm4720_vm3, 0, %v491_v36  ;;  %v5376_v40 = vpop.permute.xlu0 %1828 }
  0xb3   : > { %v1328_v16 = vsel %vm4720_vm3, %v1262_v15, %v1327_v58  ;;  %v1318_v31 = vld [vmem:[#allocation2 + $0x80] sm:$0xf]  ;;  %v1321_v32 = vld [vmem:[#allocation2 + $0x84] sm:$0x1]  ;;  %v610_v9 = vld [vmem:[#allocation2 + $0x34] sm:$0x1]  ;;  %1952 = vrot.lane.b32.xlu0 %v1932_v5, %s4615_s20  ;;  %v1253_v2 = vor.u32 %v1251_v12, %v1250_v7  ;;  %v811_v47 = vmul.f32 %v5096_v41, %v4310_v17  ;;  %v4307_v61 = vunpack.c.h.bf16 %v5290_v13 }
  0xb4   : > { %v1925_v39 = vor.u32 %v1924_v24, %v1920_v11  ;;  %1326 = vst [vmem:[#allocation2 + $0x88] sm:$0xf] %v1325_v19  ;;  %1329 = vst [vmem:[#allocation2 + $0x8c] sm:$0x1] %v1328_v16  ;;  %v1254_v49 = vrot.slane %v1250_v7, 4  ;;  %vm832_vm9 = vcmp.ge.f32.partialorder %v824_v57, 0.0  ;;  %v887_v42 = vadd.f32 %v5108_v46, %v879_v34 }
  0xb5   : > { %v494_v8 = vld [vmem:[#allocation2 + $0x40] sm:$0x1]  ;;  %v840_v6 = vmul.f32 0.1, %v824_v57  ;;  %493 = vst [vmem:[#allocation2 + $0x38] sm:$0x1] %v492_v50  ;;  %v1319_v45 = vsel %vm4850_vm11, %v1253_v2, %v1318_v31  ;;  %v826_v60 = vadd.f32 %v5108_v46, %v811_v47  ;;  %v810_v13 = vmul.f32 %v5096_v41, %v4307_v61 }
  0xb6   : > { %v614_v44 = vsel %vm4736_vm5, 0, %v613_v26  ;;  %1950 = vrot.lane.b32.xlu1 %v1925_v39, %s4615_s20  ;;  %v1322_v35 = vsel %vm4720_vm3, %v1254_v49, %v1321_v32  ;;  %v489_v38 = vsel %vm4720_vm3, 0, %v488_v29  ;;  %v616_v55 = vld [vmem:[#allocation2 + $0x44] sm:$0x1]  ;;  %1320 = vst [vmem:[#allocation2 + $0x80] sm:$0xf] %v1319_v45  ;;  %v4311_v28 = vunpack.c.h.bf16 %v5324_v56 }
  0xb7   : > { %615 = vst [vmem:[#allocation2 + $0x3c] sm:$0x1] %v614_v44  ;;  %1323 = vst [vmem:[#allocation2 + $0x84] sm:$0x1] %v1322_v35  ;;  %v5356_v37 = vsel %vm832_vm9, %v824_v57, %v840_v6  ;;  %vm895_vm10 = vcmp.ge.f32.partialorder %v887_v42, 0.0  ;;  %v611_v21 = vsel %vm4736_vm5, 0, %v610_v9  ;;  %1988 = vrot.lane.b32.xlu0 %v4087_v27, %s4616_s21  ;;  %v825_v16 = vadd.f32 %v5108_v46, %v810_v13  ;;  %v5393_v6 = vpop.permute.xlu0 %1940 }
  0xb8   : > { %v903_v30 = vmul.f32 0.1, %v887_v42  ;;  %490 = vst [vmem:[#allocation2 + $0x30] sm:$0x1] %v489_v38  ;;  %v5361_v10 = vld [vmem:[#allocation2 + $0x128] sm:$0xf]  ;;  %v4252_v59 = vpack.c.bf16 %v5356_v37, %v5356_v37  ;;  %v812_v56 = vmul.f32 %v5096_v41, %v4311_v28 }
  0xb9   : > { %612 = vst [vmem:[#allocation2 + $0x34] sm:$0x1] %v611_v21  ;;  %v1667_v63 = vld [vmem:[#allocation2 + $0x12c] sm:$0x1]  ;;  %v495_v58 = vsel %vm4720_vm3, 0, %v494_v8  ;;  %v617_v54 = vsel %vm4736_vm5, 0, %v616_v55 }
  0xba   : > { %v911_v4 = vsel %vm895_vm10, %v887_v42, %v903_v30  ;;  %v4082_v12 = vcombine.low %v5361_v10, %v1667_v63  ;;  %v1089_v18 = vshrl.u32 %v4252_v59, 16  ;;  %496 = vst [vmem:[#allocation2 + $0x40] sm:$0x1] %v495_v58  ;;  %618 = vst [vmem:[#allocation2 + $0x44] sm:$0x1] %v617_v54  ;;  %v1092_v51 = vshll.u32 %v4252_v59, 16 }
  0xbb   : > { %v4263_v11 = vpack.c.bf16 %v911_v4, %v911_v4  ;;  %v5372_v14 = vld [vmem:[#allocation2 + $0x88] sm:$0xf]  ;;  %vm834_vm12 = vcmp.ge.f32.partialorder %v826_v60, 0.0  ;;  %v842_v27 = vmul.f32 0.1, %v826_v60  ;;  %vm833_vm13 = vcmp.ge.f32.partialorder %v825_v16, 0.0  ;;  %v5416_v28 = vpop.permute.xlu0 %1980 }
  0xbc   : > { %v1934_v15 = vshrl.u32 %v4082_v12, 16  ;;  %v1936_v36 = vshll.u32 %v4082_v12, 16  ;;  %v4089_v17 = vcombine.low %v5372_v14, %v5372_v14  ;;  %v1091_v5 = vrot.slane %v1089_v18, 7  ;;  %v1163_v26 = vld [vmem:[#allocation2 + $0x28] sm:$0xf] }
  0xbd   : > { %v1264_v24 = vshrl.u32 %v4263_v11, 16  ;;  %v1166_v29 = vld [vmem:[#allocation2 + $0x2c] sm:$0x1]  ;;  %v1267_v19 = vshll.u32 %v4263_v11, 16  ;;  %v5383_v31 = vld [vmem:[#allocation2 + $0x80] sm:$0xf]  ;;  %v5385_v39 = vsel %vm834_vm12, %v826_v60, %v842_v27 }
  0xbe   : > { %v1938_v7 = vrot.slane %v1936_v36, 1  ;;  %1992 = vrot.lane.b32.xlu0 %v4089_v17, %s4616_s21  ;;  %v1094_v32 = vor.u32 %v1092_v51, %v1091_v5  ;;  %v1095_v57 = vrot.slane %v1091_v5, 4  ;;  %v1330_v50 = vld [vmem:[#allocation2 + $0x90] sm:$0xf]  ;;  %v1333_v8 = vld [vmem:[#allocation2 + $0x94] sm:$0x1]  ;;  %v4254_v41 = vpack.c.bf16 %v5385_v39, %v5385_v39 }
  0xbf   : > { %v1266_v9 = vrot.slane %v1264_v24, 7  ;;  %v841_v46 = vmul.f32 0.1, %v825_v16  ;;  %v4088_v42 = vcombine.low %v5383_v31, %v5383_v31  ;;  %v5401_v35 = vld [vmem:[%s6102_s5] ss:$0 sm:$0xff]  ;;  %vm2452_vm6 = vcmask 31744  }
  0xc0   : > { %v1939_v34 = vor.u32 %v1938_v7, %v1934_v15  ;;  %v1164_v2 = vsel %vm4850_vm11, %v1094_v32, %v1163_v26  ;;  %v1167_v49 = vsel %vm4720_vm3, %v1095_v57, %v1166_v29  ;;  %v827_v47 = vadd.f32 %v5401_v35, %v812_v56  ;;  %v1175_v60 = vld [vmem:[#allocation2 + $0x38] sm:$0xf]  ;;  %v1178_v58 = vld [vmem:[#allocation2 + $0x3c] sm:$0x1]  ;;  %v1169_v36 = vld [vmem:[#allocation2 + $0x30] sm:$0xf] }
  0xc1   : > { %1165 = vst [vmem:[#allocation2 + $0x28] sm:$0xf] %v1164_v2  ;;  %1168 = vst [vmem:[#allocation2 + $0x2c] sm:$0x1] %v1167_v49  ;;  %v1269_v44 = vor.u32 %v1267_v19, %v1266_v9  ;;  %v1270_v45 = vrot.slane %v1266_v9, 4  ;;  %v1105_v38 = vshrl.u32 %v4254_v41, 16  ;;  %v5405_v30 = vsel %vm833_vm13, %v825_v16, %v841_v46 }
  0xc2   : > { %1954 = vrot.lane.b32.xlu1 %v1939_v34, %s4615_s20  ;;  %v1108_v55 = vshll.u32 %v4254_v41, 16  ;;  %v4253_v61 = vpack.c.bf16 %v5405_v30, %v5405_v30  ;;  %vm835_vm14 = vcmp.ge.f32.partialorder %v827_v47, 0.0  ;;  %v843_v4 = vmul.f32 0.1, %v827_v47  ;;  %v1696_v18 = vld [vmem:[#allocation2 + $0x7c] sm:$0x1]  ;;  %v5424_v34 = vpop.permute.xlu1 %1982 }
  0xc3   : > { %v1331_v21 = vsel %vm4850_vm11, %v1269_v44, %v1330_v50  ;;  %v1334_v59 = vsel %vm4720_vm3, %v1270_v45, %v1333_v8  ;;  %v1107_v63 = vrot.slane %v1105_v38, 7  ;;  %v1172_v17 = vld [vmem:[#allocation2 + $0x34] sm:$0x1]  ;;  %v584_v57 = vld [vmem:[#allocation2 + $0x130] sm:$0x1]  ;;  %v4103_v9 = vcombine.low %v5327_v33, %v1696_v18 }
  0xc4   : > { %1332 = vst [vmem:[#allocation2 + $0x90] sm:$0xf] %v1331_v21  ;;  %1335 = vst [vmem:[#allocation2 + $0x94] sm:$0x1] %v1334_v59  ;;  %v1097_v54 = vshrl.u32 %v4253_v61, 16  ;;  %v1100_v12 = vshll.u32 %v4253_v61, 16  ;;  %v5414_v13 = vsel %vm835_vm14, %v827_v47, %v843_v4  ;;  %v5431_v47 = vpop.permute.xlu0 %1984 }
  0xc5   : > { %v1110_v11 = vor.u32 %v1108_v55, %v1107_v63  ;;  %v1111_v51 = vrot.slane %v1107_v63, 4  ;;  %v4255_v5 = vpack.c.bf16 %v5414_v13, %v5414_v13  ;;  %v1698_v2 = vld [vmem:[#allocation2 + $0x8c] sm:$0x1]  ;;  %v1181_v44 = vld [vmem:[#allocation2 + $0x40] sm:$0xf]  ;;  %v2163_v63 = vshll.u32 %v4103_v9, 16 }
  0xc6   : > { %1990 = vrot.lane.b32.xlu1 %v4088_v42, %s4616_s21  ;;  %v1099_v15 = vrot.slane %v1097_v54, 7  ;;  %v1184_v45 = vld [vmem:[#allocation2 + $0x44] sm:$0x1]  ;;  %v4105_v33 = vcombine.low %v5372_v14, %v1698_v2  ;;  %v706_v59 = vld [vmem:[#allocation2 + $0x134] sm:$0x1]  ;;  %v4359_v14 = vunpack.c.h.bf16 %v5206_v48  ;;  %v5444_v18 = vpop.permute.xlu1 %1986  ;;  %vm2477_vm7 = vcmask 64512  }
  0xc7   : > { %v1176_v27 = vsel %vm4850_vm11, %v1110_v11, %v1175_v60  ;;  %v1179_v7 = vsel %vm4720_vm3, %v1111_v51, %v1178_v58  ;;  %v1113_v19 = vshrl.u32 %v4255_v5, 16  ;;  %v1116_v16 = vshll.u32 %v4255_v5, 16  ;;  %v1697_v61 = vld [vmem:[#allocation2 + $0x84] sm:$0x1]  ;;  %v4598_v5 = vld [vmem:[%s6101_s4] ss:$0 sm:$0xff] }
  0xc8   : > { %v4505_v24 = vld [vmem:[#allocation2 + $0x28] sm:$0x1f]   ;;  %1177 = vst [vmem:[#allocation2 + $0x38] sm:$0xf] %v1176_v27  ;;  %1180 = vst [vmem:[#allocation2 + $0x3c] sm:$0x1] %v1179_v7  ;;  %v1102_v26 = vor.u32 %v1100_v12, %v1099_v15  ;;  %v4343_v12 = vunpack.c.h.bf16 %v5155_v22  ;;  %v5451_v27 = vpop.permute.xlu0 %2228  ;;  %v4104_v48 = vcombine.low %v5383_v31, %v1697_v61 }
  0xc9   : > { %v1103_v29 = vrot.slane %v1099_v15, 4  ;;  %v2065_v56 = vshrl.u32 %v4505_v24, 16  ;;  %v2067_v32 = vshll.u32 %v4505_v24, 16  ;;  %v1115_v41 = vrot.slane %v1113_v19, 7  ;;  %v676_v61 = vld [vmem:[#allocation2 + $0xe4] sm:$0x1] }
  0xca   : > { %v1170_v50 = vsel %vm4850_vm11, %v1102_v26, %v1169_v36  ;;  %v585_v58 = vsel %vm4720_vm3, 0, %v584_v57  ;;  %v2161_v11 = vshrl.u32 %v4103_v9, 16  ;;  %v707_v51 = vsel %vm4736_vm5, 0, %v706_v59 }
  0xcb   : > { %v1675_v49 = vld [vmem:[#allocation2 + $0x90] sm:$0xf]  ;;  %v1173_v8 = vsel %vm4720_vm3, %v1103_v29, %v1172_v17  ;;  %v2069_v46 = vrot.slane %v2067_v32, 1  ;;  %1171 = vst [vmem:[#allocation2 + $0x30] sm:$0xf] %v1170_v50  ;;  %v1118_v38 = vor.u32 %v1116_v16, %v1115_v41  ;;  %v1119_v55 = vrot.slane %v1115_v41, 4 }
  0xcc   : > { %v4090_v42 = vcombine.low %v1675_v49, %v1675_v49  ;;  %1174 = vst [vmem:[#allocation2 + $0x34] sm:$0x1] %v1173_v8  ;;  %586 = vst [vmem:[#allocation2 + $0x130] sm:$0x1] %v585_v58  ;;  %v2177_v17 = vshll.u32 %v4105_v33, 16  ;;  %v999_v24 = vmul.f32 %v4598_v5, %v4359_v14  ;;  %v2165_v26 = vrot.slane %v2163_v63, 1  ;;  %v5455_v8 = vpop.permute.xlu1 %2230 }
  0xcd   : > { %v2070_v21 = vor.u32 %v2069_v46, %v2065_v56  ;;  %v1182_v4 = vsel %vm4850_vm11, %v1118_v38, %v1181_v44  ;;  %v1185_v60 = vsel %vm4720_vm3, %v1119_v55, %v1184_v45  ;;  %708 = vst [vmem:[#allocation2 + $0x134] sm:$0x1] %v707_v51  ;;  %v939_v19 = vmul.f32 %v4598_v5, %v4343_v12  ;;  %v1699_v16 = vld [vmem:[#allocation2 + $0x94] sm:$0x1]  ;;  %v554_v38 = vld [vmem:[#allocation2 + $0xe0] sm:$0x1] }
  0xce   : > { %1994 = vrot.lane.b32.xlu1 %v4090_v42, %s4616_s21  ;;  %1183 = vst [vmem:[#allocation2 + $0x40] sm:$0xf] %v1182_v4  ;;  %1186 = vst [vmem:[#allocation2 + $0x44] sm:$0x1] %v1185_v60  ;;  %v1007_v29 = vadd.f32 %v5401_v35, %v999_v24  ;;  %v2175_v57 = vshrl.u32 %v4105_v33, 16  ;;  %v2179_v2 = vrot.slane %v2177_v17, 1  ;;  %v5457_v42 = vcombine.low %v1675_v49, %v1699_v16 }
  0xcf   : > { %2100 = vrot.lane.b32.xlu0 %v2070_v21, %s4618_s23  ;;  %v4508_v54 = vld [vmem:[#allocation2 + $0x38] sm:$0x1f]   ;;  %v2170_v46 = vshll.u32 %v4104_v48, 16  ;;  %v2166_v31 = vor.u32 %v2165_v26, %v2161_v11  ;;  %v947_v55 = vadd.f32 %v5401_v35, %v939_v19  ;;  %v2168_v58 = vshrl.u32 %v4104_v48, 16 }
  0xd0   : > { %v2079_v15 = vshrl.u32 %v4508_v54, 16  ;;  %v2081_v36 = vshll.u32 %v4508_v54, 16  ;;  %vm1015_vm15 = vcmp.ge.f32.partialorder %v1007_v29, 0.0  ;;  %v1023_v50 = vmul.f32 0.1, %v1007_v29  ;;  %v5472_v17 = vpop.permute.xlu1 %1832 }
  0xd1   : > { %v2180_v60 = vor.u32 %v2179_v2, %v2175_v57  ;;  %v5463_v54 = vld [vmem:[#allocation2 + $0xc8] sm:$0x1f]   ;;  %v2172_v49 = vrot.slane %v2170_v46, 1  ;;  %v1704_v14 = vld [vmem:[#allocation2 + $0x118] sm:$0xf]  ;;  %v555_v35 = vsel %vm4720_vm3, 0, %v554_v38 }
  0xd2   : > { %v2083_v7 = vrot.slane %v2081_v36, 1  ;;  %v1031_v45 = vsel %vm1015_vm15, %v1007_v29, %v1023_v50  ;;  %556 = vst [vmem:[#allocation2 + $0xe0] sm:$0x1] %v555_v35  ;;  %v677_v36 = vsel %vm4736_vm5, 0, %v676_v61  ;;  %vm955_vm0 = vcmp.ge.f32.partialorder %v947_v55, 0.0 }
  0xd3   : > { %v4509_v22 = vld [vmem:[#allocation2 + $0x30] sm:$0x1f]   ;;  %v4279_v59 = vpack.c.bf16 %v1031_v45, %v1031_v45  ;;  %678 = vst [vmem:[#allocation2 + $0xe4] sm:$0x1] %v677_v36  ;;  %v963_v24 = vmul.f32 0.1, %v947_v55  ;;  %v2173_v3 = vor.u32 %v2172_v49, %v2168_v58 }
  0xd4   : > { %v2072_v56 = vshrl.u32 %v4509_v22, 16  ;;  %v2074_v32 = vshll.u32 %v4509_v22, 16  ;;  %v2084_v9 = vor.u32 %v2083_v7, %v2079_v15  ;;  %v2184_v15 = vshll.u32 %v5457_v42, 16  ;;  %v1628_v7 = vld [vmem:[#allocation2 + $0x130] sm:$0xf] }
  0xd5   : > { %v4510_v44 = vld [vmem:[#allocation2 + $0x40] sm:$0x1f]   ;;  %v5461_v21 = vpop.permute.xlu0 %1830  ;;  %v1562_v12 = vshrl.u32 %v4279_v59, 16  ;;  %v1565_v11 = vshll.u32 %v4279_v59, 16  ;;  %v4111_v22 = vcombine.low %v1704_v14, %v1704_v14  ;;  %v1631_v26 = vld [vmem:[#allocation2 + $0x134] sm:$0x1]  ;;  %v971_v57 = vsel %vm955_vm0, %v947_v55, %v963_v24 }
  0xd6   : > { %v2076_v41 = vrot.slane %v2074_v32, 1  ;;  %2104 = vrot.lane.b32.xlu0 %v2084_v9, %s4618_s23  ;;  %v2086_v63 = vshrl.u32 %v4510_v44, 16  ;;  %v2088_v4 = vshll.u32 %v4510_v44, 16  ;;  %v2315_v19 = vshll.u32 %v5463_v54, 16  ;;  %v4520_v32 = vld [vmem:[#allocation2 + $0xd8] sm:$0x1f]  }
  0xd7   : > { %v1564_v5 = vrot.slane %v1562_v12, 7  ;;  %v2182_v9 = vshrl.u32 %v5457_v42, 16  ;;  %v2186_v2 = vrot.slane %v2184_v15, 1  ;;  %v4271_v50 = vpack.c.bf16 %v971_v57, %v971_v57  ;;  %v1706_v46 = vld [vmem:[#allocation2 + $0x128] sm:$0xf] }
  0xd8   : > { %v2077_v33 = vor.u32 %v2076_v41, %v2072_v56  ;;  %v2090_v51 = vrot.slane %v2088_v4, 1  ;;  %v1728_v41 = vld [vmem:[#allocation2 + $0x11c] sm:$0x1]  ;;  %v4523_v42 = vld [vmem:[%s6103_s6 + $0x10] ss:$0 sps:$4 sm:$0x33]   ;;  %v4113_v58 = vcombine.low %v1706_v46, %v1706_v46 }
  0xd9   : > { %v5474_v29 = vpop.permute.xlu0 %1944  ;;  %v1567_v16 = vor.u32 %v1565_v11, %v1564_v5  ;;  %v1568_v56 = vrot.slane %v1564_v5, 4  ;;  %v1413_v45 = vshrl.u32 %v4271_v50, 16  ;;  %v1416_v38 = vshll.u32 %v4271_v50, 16  ;;  %v1705_v49 = vld [vmem:[#allocation2 + $0x120] sm:$0xf] }
  0xda   : > { %2102 = vrot.lane.b32.xlu1 %v2077_v33, %s4618_s23  ;;  %2196 = vrot.lane.b32.xlu0 %v2166_v31, %s4619_s30  ;;  %v2091_v48 = vor.u32 %v2090_v51, %v2086_v63  ;;  %v5484_v55 = vpop.permute.xlu1 %1834  ;;  %v1730_v33 = vld [vmem:[#allocation2 + $0x12c] sm:$0x1]  ;;  %v2313_v59 = vshrl.u32 %v5463_v54, 16  ;;  %v2317_v61 = vrot.slane %v2315_v19, 1  ;;  %v2329_v63 = vshll.u32 %v4520_v32, 16 }
  0xdb   : > { %v1629_v31 = vsel %vm4850_vm11, %v1567_v16, %v1628_v7  ;;  %v1632_v44 = vsel %vm4720_vm3, %v1568_v56, %v1631_v26  ;;  %v4127_v4 = vcombine.low %v1704_v14, %v1728_v41  ;;  %v4521_v12 = vld [vmem:[#allocation2 + $0xd0] sm:$0x1f]   ;;  %v1415_v11 = vrot.slane %v1413_v45, 7  ;;  %v1479_v51 = vld [vmem:[#allocation2 + $0xe0] sm:$0xf]  ;;  %v4524_v54 = vld [vmem:[%s6103_s6 + $0x8] sm:$0xff]  }
  0xdc   : > { %1630 = vst [vmem:[#allocation2 + $0x130] sm:$0xf] %v1629_v31  ;;  %1633 = vst [vmem:[#allocation2 + $0x134] sm:$0x1] %v1632_v44  ;;  %v1482_v15 = vld [vmem:[#allocation2 + $0xe4] sm:$0x1]  ;;  %v4129_v36 = vcombine.low %v1706_v46, %v1730_v33 }
  0xdd   : > { %v5492_v35 = vpop.permute.xlu0 %2092  ;;  %vm2649_vm5 = vcmask 1041408   ;;  %v1418_v5 = vor.u32 %v1416_v38, %v1415_v11  ;;  %v1419_v24 = vrot.slane %v1415_v11, 4  ;;  %v2327_v7 = vshrl.u32 %v4520_v32, 16  ;;  %v1729_v19 = vld [vmem:[#allocation2 + $0x124] sm:$0x1] }
  0xde   : > { %2106 = vrot.lane.b32.xlu1 %v2091_v48, %s4618_s23  ;;  %2200 = vrot.lane.b32.xlu0 %v2180_v60, %s4619_s30  ;;  %v2187_v60 = vor.u32 %v2186_v2, %v2182_v9  ;;  %v2651_v14 = vsel %vm2649_vm5, %v4523_v42, 0  ;;  %v4112_v48 = vcombine.low %v1705_v49, %v1705_v49  ;;  %v2331_v26 = vrot.slane %v2329_v63, 1  ;;  %v5505_v9 = vpop.permute.xlu1 %1942  ;;  %v4525_v32 = vld [vmem:[%s6103_s6] sm:$0xff]  }
  0xdf   : > { %4435 = vmatprep.subr.msk.bf16.mxu0 %vm2649_vm5, %v4523_v42  ;;  %v2322_v16 = vshll.u32 %v4521_v12, 16  ;;  %v2411_v56 = vshll.u32 %v4127_v4, 16  ;;  %v1480_v57 = vsel %vm4850_vm11, %v1418_v5, %v1479_v51  ;;  %v4128_v41 = vcombine.low %v1705_v49, %v1729_v19 }
  0xe0   : > { %4394 = vmatpush3.bf16.msra.mxu0 %v2651_v14  ;;  %1481 = vst [vmem:[#allocation2 + $0xe0] sm:$0xf] %v1480_v57  ;;  %v2332_v46 = vor.u32 %v2331_v26, %v2327_v7  ;;  %v2320_v31 = vshrl.u32 %v4521_v12, 16  ;;  %v2425_v43 = vshll.u32 %v4129_v36, 16  ;;  %v2409_v45 = vshrl.u32 %v4127_v4, 16 }
  0xe1   : > { %4395 = vmatprep.subr.bf16.mxu0 %v4524_v54  ;;  %v2324_v44 = vrot.slane %v2322_v16, 1  ;;  %v2413_v38 = vrot.slane %v2411_v56, 1  ;;  %vm714_vm11 = vcmask 57344   ;;  %v730_v7 = vld [vmem:[#allocation3 + $0x18] sm:$0x1]  ;;  %vm2494_vm8 = vcmask 97280  }
  0xe2   : > { %2198 = vrot.lane.b32.xlu1 %v2173_v3, %s4619_s30  ;;  %2236 = vrot.lane.b32.xlu0 %v4111_v22, %s4617_s22  ;;  %v2318_v22 = vor.u32 %v2317_v61, %v2313_v59  ;;  %v1483_v3 = vsel %vm4720_vm3, %v1419_v24, %v1482_v15  ;;  %v2423_v61 = vshrl.u32 %v4129_v36, 16  ;;  %v2427_v63 = vrot.slane %v2425_v43, 1  ;;  %v761_v26 = vld [vmem:[#allocation3 + $0x1c] sm:$0x1]  ;;  %vm5525_vm1 = vmand %vm714_vm11, %vm468_vm2  ;;  %715 = vst.msk [vmem:[#allocation3 + $0x4] sm:$0x1] %vm714_vm11, %v4613_v0 }
  0xe3   : > { %v1707_v2 = vld [vmem:[#allocation2 + $0x130] sm:$0xf]  ;;  %1484 = vst [vmem:[#allocation2 + $0xe4] sm:$0x1] %v1483_v3  ;;  %v1731_v42 = vld [vmem:[#allocation2 + $0x134] sm:$0x1]  ;;  %v2325_v49 = vor.u32 %v2324_v44, %v2320_v31  ;;  %v2414_v12 = vor.u32 %v2413_v38, %v2409_v45  ;;  %vm5540_vm2 = vmand %vm714_vm11, %vm590_vm4 }
  0xe4   : > { %4396 = vmatpush3.bf16.msra.mxu0 %v4524_v54  ;;  %v4114_v1 = vcombine.low %v1707_v2, %v1707_v2  ;;  %v2416_v15 = vshrl.u32 %v4128_v41, 16  ;;  %v2428_v36 = vor.u32 %v2427_v63, %v2423_v61  ;;  %vm712_vm3 = vcmask 60416   ;;  %718 = vst.msk [vmem:[#allocation3 + $0x4c] sm:$0x1] %vm714_vm11, %v4613_v0  ;;  %v4599_v44 = vld [vmem:[#allocation2 + $0xf0] sm:$0xf] }
  0xe5   : > { %4397 = vmatprep.subr.bf16.mxu0 %v4525_v32  ;;  %713 = vst.msk [vmem:[#allocation3] sm:$0xf] %vm712_vm3, %v4613_v0  ;;  %717 = vst.msk [vmem:[#allocation3 + $0x48] sm:$0xf] %vm712_vm3, %v4613_v0  ;;  %v731_v3 = vsel %vm5525_vm1, 0, %v730_v7  ;;  %v2455_v45 = vsel %vm2452_vm6, %v4599_v44, %v5376_v40  ;;  %vm2511_vm9 = vcmask 130048  }
  0xe6   : > { %2202 = vrot.lane.b32.xlu1 %v2187_v60, %s4619_s30  ;;  %2240 = vrot.lane.b32.xlu0 %v4113_v58, %s4617_s22  ;;  %v2418_v60 = vshll.u32 %v4128_v41, 16  ;;  %v4130_v58 = vcombine.low %v1707_v2, %v1731_v42  ;;  %732 = vst [vmem:[#allocation3 + $0x18] sm:$0x1] %v731_v3  ;;  %v4600_v38 = vld [vmem:[#allocation2 + $0xf8] sm:$0xf]  ;;  %vm2528_vm10 = vcmask 162816  }
  0xe7   : > { %v5514_v33 = vpop.permute.xlu1 %1946  ;;  %v2458_v42 = vsel %vm2452_vm6, %v4600_v38, %v5461_v21  ;;  %vm2545_vm12 = vcmask 195584   ;;  %vm2562_vm13 = vcmask 228352   ;;  %vm2579_vm14 = vcmask 261120   ;;  %s4623_s30 = smov 56  }
  0xe8   : > { %v5510_v50 = vpop.permute.xlu0 %2096  ;;  %4398 = vmatpush3.bf16.msra.mxu0 %v4525_v32  ;;  %v2420_v5 = vrot.slane %v2418_v60, 1  ;;  %v2432_v24 = vshll.u32 %v4130_v58, 16  ;;  %v2430_v56 = vshrl.u32 %v4130_v58, 16  ;;  %v762_v32 = vsel %vm5540_vm2, 0, %v761_v26 }
  0xe9   : > { %763 = vst [vmem:[#allocation3 + $0x1c] sm:$0x1] %v762_v32  ;;  %v2479_v60 = vsel %vm2477_vm7, %v2455_v45, %v5393_v6  ;;  %v2481_v58 = vsel %vm2477_vm7, %v2458_v42, %v5505_v9  ;;  %vm2636_vm15 = vcmask 293888  }
  0xea   : > { %2238 = vrot.lane.b32.xlu1 %v4112_v48, %s4617_s22  ;;  %2348 = vrot.lane.b32.xlu0 %v2318_v22, %s4620_s12  ;;  %v4522_v11 = vld [vmem:[#allocation2 + $0xe0] sm:$0x1f]   ;;  %v2421_v16 = vor.u32 %v2420_v5, %v2416_v15  ;;  %v2434_v57 = vrot.slane %v2432_v24, 1  ;;  %v2496_v40 = vsel %vm2494_vm8, %v2479_v60, %v5416_v28 }
  0xeb   : > { %v2334_v4 = vshrl.u32 %v4522_v11, 16  ;;  %v2336_v51 = vshll.u32 %v4522_v11, 16  ;;  %v2513_v21 = vsel %vm2511_vm9, %v2496_v40, %v5492_v35  ;;  %v4601_v15 = vld [vmem:[#allocation2 + $0x100] sm:$0xf] }
  0xec   : > { %v5516_v59 = vpop.permute.xlu0 %2188  ;;  %v2461_v28 = vsel %vm2452_vm6, %v4601_v15, %v5472_v17 }
  0xed   : > { %v2338_v54 = vrot.slane %v2336_v51, 1  ;;  %v2095_v14 = vpop.permute.xlu1 %2094  ;;  %v2530_v6 = vsel %vm2528_vm10, %v2513_v21, %v5516_v59 }
  0xee   : > { %2242 = vrot.lane.b32.xlu1 %v4114_v1, %s4617_s22  ;;  %2352 = vrot.lane.b32.xlu0 %v2332_v46, %s4620_s12  ;;  %v2435_v46 = vor.u32 %v2434_v57, %v2430_v56 }
  0xef   : > { %v2339_v22 = vor.u32 %v2338_v54, %v2334_v4  ;;  %v4602_v54 = vld [vmem:[#allocation2 + $0x108] sm:$0xf] }
  0xf0   : > { %v5522_v48 = vpop.permute.xlu0 %2192  ;;  %v2464_v59 = vsel %vm2452_vm6, %v4602_v54, %v5484_v55 }
  0xf1   : > { %v2485_v17 = vsel %vm2477_vm7, %v2464_v59, %v5514_v33  ;;  %v4603_v59 = vld [vmem:[#allocation2 + $0x110] sm:$0xf] }
  0xf2   : > { %2350 = vrot.lane.b32.xlu1 %v2325_v49, %s4620_s12  ;;  %2444 = vrot.lane.b32.xlu0 %v2414_v12, %s4621_s24  ;;  %v2498_v12 = vsel %vm2494_vm8, %v2481_v58, %v5424_v34  ;;  %v2547_v34 = vsel %vm2545_vm12, %v2530_v6, %v5451_v27 }
  0xf3   : > { %v2515_v4 = vsel %vm2511_vm9, %v2498_v12, %v2095_v14 }
  0xf4   : > { %v2233_v41 = vpop.permute.xlu0 %2232 }
  0xf6   : > { %2354 = vrot.lane.b32.xlu1 %v2339_v22, %s4620_s12  ;;  %2448 = vrot.lane.b32.xlu0 %v2428_v36, %s4621_s24  ;;  %v2483_v36 = vsel %vm2477_vm7, %v2461_v28, %v5474_v29  ;;  %v2502_v29 = vsel %vm2494_vm8, %v2485_v17, %v5444_v18 }
  0xf7   : > { %v2500_v55 = vsel %vm2494_vm8, %v2483_v36, %v5431_v47 }
  0xf8   : > { %v2099_v0 = vpop.permute.xlu1 %2098  ;;  %v2341_v43 = vpop.permute.xlu0 %2340 }
  0xf9   : > { %v2564_v5 = vsel %vm2562_vm13, %v2547_v34, %v2341_v43  ;;  %v2519_v33 = vsel %vm2511_vm9, %v2502_v29, %v2099_v0 }
  0xfa   : > { %2446 = vrot.lane.b32.xlu1 %v2421_v16, %s4621_s24  ;;  %v2517_v16 = vsel %vm2511_vm9, %v2500_v55, %v5510_v50 }
  0xfb   : > { %v2534_v56 = vsel %vm2528_vm10, %v2517_v16, %v5522_v48 }
  0xfc   : > { %v2191_v31 = vpop.permute.xlu1 %2190  ;;  %v2345_v63 = vpop.permute.xlu0 %2344  ;;  %v2551_v32 = vsel %vm2545_vm12, %v2534_v56, %v2233_v41 }
  0xfd   : > { %v2532_v9 = vsel %vm2528_vm10, %v2515_v4, %v2191_v31  ;;  %v2568_v18 = vsel %vm2562_vm13, %v2551_v32, %v2345_v63 }
  0xfe   : > { %2450 = vrot.lane.b32.xlu1 %v2435_v46, %s4621_s24  ;;  %v2549_v35 = vsel %vm2545_vm12, %v2532_v9, %v5455_v8 }
 0x100   : > { %v2195_v1 = vpop.permute.xlu1 %2194  ;;  %v2437_v11 = vpop.permute.xlu0 %2436 }
 0x101   : > { %v2581_v27 = vsel %vm2579_vm14, %v2564_v5, %v2437_v11  ;;  %v2536_v57 = vsel %vm2528_vm10, %v2519_v33, %v2195_v1 }
 0x104   : > { %v2235_v61 = vpop.permute.xlu1 %2234 }
 0x105   : > { %v2553_v47 = vsel %vm2545_vm12, %v2536_v57, %v2235_v61 }
 0x108   : > { %v2343_v49 = vpop.permute.xlu1 %2342  ;;  %v1837_v14 = vpop.permute.xlu0 %1836 }
 0x109   : > { %v2566_v24 = vsel %vm2562_vm13, %v2549_v35, %v2343_v49  ;;  %v2467_v36 = vsel %vm2452_vm6, %v4603_v59, %v1837_v14  ;;  %v779_v59 = vld [vmem:[#allocation3 + $0x4c] sm:$0x1] }
 0x10c   : > { %v2347_v51 = vpop.permute.xlu1 %2346  ;;  %v2441_v3 = vpop.permute.xlu0 %2440 }
 0x10d   : > { %v2570_v46 = vsel %vm2562_vm13, %v2553_v47, %v2347_v51  ;;  %v2585_v43 = vsel %vm2579_vm14, %v2568_v18, %v2441_v3 }
 0x110   : > { %v2439_v22 = vpop.permute.xlu1 %2438 }
 0x111   : > { %v2583_v8 = vsel %vm2579_vm14, %v2566_v24, %v2439_v22 }
 0x112   : > { %v4131_v7 = vcombine.low %v2581_v27, %v2583_v8 }
 0x114   : > { %v1839_v26 = vpop.permute.xlu1 %1838  ;;  %4399 = vmatprep.mubr.msk.bf16.mxu0 %vm2636_vm15, %v4131_v7 }
 0x115   : > { %v1841_v48 = vpop.permute.xlu0 %1840  ;;  %v2470_v5 = vsel %vm2452_vm6, %v5319_v23, %v1839_v26 }
 0x116   : > { %v2473_v24 = vsel %vm2452_vm6, %v5310_v53, %v1841_v48  ;;  %v724_v48 = vld [vmem:[#allocation3 + $0x8] sm:$0x1] }
 0x118   : > { %v2443_v31 = vpop.permute.xlu1 %2442 }
 0x119   : > { %v2587_v50 = vsel %vm2579_vm14, %v2570_v46, %v2443_v31  ;;  %v1949_v44 = vpop.permute.xlu0 %1948 }
 0x11a   : > { %v4132_v0 = vcombine.low %v2585_v43, %v2587_v50  ;;  %v2487_v22 = vsel %vm2477_vm7, %v2467_v36, %v1949_v44  ;;  %v755_v44 = vld [vmem:[#allocation3 + $0xc] sm:$0x1]  ;;  %v721_v36 = vld [vmem:[#allocation3] sm:$0x1] }
 0x11c   : > { %4400 = vmatmul.mubr.msk.bf16.vlgmr.msra.gmra.mxu0 %vm2636_vm15, %v4132_v0  ;;  %v1843_v1 = vpop.permute.xlu1 %1842 }
 0x11d   : > { %v2476_v23 = vsel %vm2452_vm6, %v5361_v10, %v1843_v1 }
 0x125   : > { %v1953_v45 = vpop.permute.xlu0 %1952 }
 0x126   : > { %v2491_v26 = vsel %vm2477_vm7, %v2473_v24, %v1953_v45  ;;  %v722_v24 = vsel %vm5525_vm1, 0, %v721_v36 }
 0x127   : > { %723 = vst [vmem:[#allocation3] sm:$0x1] %v722_v24 }
 0x128   : > { %v1951_v38 = vpop.permute.xlu1 %1950 }
 0x129   : > { %v1989_v41 = vpop.permute.xlu0 %1988  ;;  %v2489_v17 = vsel %vm2477_vm7, %v2470_v5, %v1951_v38  ;;  %v780_v5 = vsel %vm5540_vm2, 0, %v779_v59 }
 0x12a   : > { %v2504_v27 = vsel %vm2494_vm8, %v2487_v22, %v1989_v41  ;;  %v725_v41 = vsel %vm5525_vm1, 0, %v724_v48  ;;  %781 = vst [vmem:[#allocation3 + $0x4c] sm:$0x1] %v780_v5  ;;  %v752_v22 = vld [vmem:[#allocation3 + $0x4] sm:$0x1] }
 0x12b   : > { %726 = vst [vmem:[#allocation3 + $0x8] sm:$0x1] %v725_v41  ;;  %v767_v48 = vld [vmem:[#allocation3 + $0x2c] sm:$0x1] }
 0x130   : > { %v1993_v61 = vpop.permute.xlu0 %1992 }
 0x131   : > { %v2508_v56 = vsel %vm2494_vm8, %v2491_v26, %v1993_v61 }
 0x134   : > { %v1955_v42 = vpop.permute.xlu1 %1954 }
 0x135   : > { %v2493_v33 = vsel %vm2477_vm7, %v2476_v23, %v1955_v42  ;;  %v756_v42 = vsel %vm5540_vm2, 0, %v755_v44 }
 0x136   : > { %757 = vst [vmem:[#allocation3 + $0xc] sm:$0x1] %v756_v42 }
 0x138   : > { %v1991_v60 = vpop.permute.xlu1 %1990 }
 0x139   : > { %v2506_v8 = vsel %vm2494_vm8, %v2489_v17, %v1991_v60  ;;  %v753_v17 = vsel %vm5540_vm2, 0, %v752_v22 }
 0x13a   : > { %754 = vst [vmem:[#allocation3 + $0x4] sm:$0x1] %v753_v17 }
 0x140   : > { %v1995_v58 = vpop.permute.xlu1 %1994 }
 0x141   : > { %v2101_v63 = vpop.permute.xlu0 %2100  ;;  %v2510_v32 = vsel %vm2494_vm8, %v2493_v33, %v1995_v58  ;;  %v764_v58 = vld [vmem:[#allocation3 + $0x24] sm:$0x1]  ;;  %vm5700_vm8 = vmand %vm712_vm3, %vm590_vm4 }
 0x142   : > { %v2521_v29 = vsel %vm2511_vm9, %v2504_v27, %v2101_v63  ;;  %v733_v63 = vld [vmem:[#allocation3 + $0x20] sm:$0x1] }
 0x148   : > { %v2105_v49 = vpop.permute.xlu0 %2104 }
 0x149   : > { %v2525_v47 = vsel %vm2511_vm9, %v2508_v56, %v2105_v49 }
 0x14c   : > { %v2103_v40 = vpop.permute.xlu1 %2102  ;;  %v2197_v12 = vpop.permute.xlu0 %2196 }
 0x14d   : > { %v2523_v14 = vsel %vm2511_vm9, %v2506_v8, %v2103_v40  ;;  %v2538_v53 = vsel %vm2528_vm10, %v2521_v29, %v2197_v12  ;;  %v2991_v8 = vld [vmem:[#allocation3 + $0x4c] sm:$0x1] }
 0x150   : > { %v2107_v11 = vpop.permute.xlu1 %2106  ;;  %v2201_v21 = vpop.permute.xlu0 %2200 }
 0x151   : > { %v2527_v31 = vsel %vm2511_vm9, %v2510_v32, %v2107_v11  ;;  %v2542_v43 = vsel %vm2528_vm10, %v2525_v47, %v2201_v21  ;;  %v734_v11 = vsel %vm5525_vm1, 0, %v733_v63  ;;  %v765_v21 = vsel %vm5540_vm2, 0, %v764_v58 }
 0x152   : > { %735 = vst [vmem:[#allocation3 + $0x20] sm:$0x1] %v734_v11  ;;  %766 = vst [vmem:[#allocation3 + $0x24] sm:$0x1] %v765_v21 }
 0x154   : > { %v2199_v4 = vpop.permute.xlu1 %2198  ;;  %v2237_v6 = vpop.permute.xlu0 %2236 }
 0x155   : > { %v2540_v16 = vsel %vm2528_vm10, %v2523_v14, %v2199_v4  ;;  %v2555_v57 = vsel %vm2545_vm12, %v2538_v53, %v2237_v6  ;;  %v2935_v14 = vld [vmem:[#allocation3 + $0x4] sm:$0x1] }
 0x158   : > { %v2203_v9 = vpop.permute.xlu1 %2202  ;;  %v2241_v51 = vpop.permute.xlu0 %2240 }
 0x159   : > { %v2544_v1 = vsel %vm2528_vm10, %v2527_v31, %v2203_v9  ;;  %v2559_v61 = vsel %vm2545_vm12, %v2542_v43, %v2241_v51  ;;  %v727_v51 = vld [vmem:[#allocation3 + $0x10] sm:$0x1]  ;;  %v773_v31 = vld [vmem:[#allocation3 + $0x3c] sm:$0x1] }
 0x15c   : > { %v2239_v15 = vpop.permute.xlu1 %2238  ;;  %v2349_v28 = vpop.permute.xlu0 %2348 }
 0x15d   : > { %v2557_v3 = vsel %vm2545_vm12, %v2540_v16, %v2239_v15  ;;  %v2572_v10 = vsel %vm2562_vm13, %v2555_v57, %v2349_v28  ;;  %v758_v15 = vld [vmem:[#allocation3 + $0x14] sm:$0x1]  ;;  %v728_v28 = vsel %vm5525_vm1, 0, %v727_v51  ;;  %v2943_v16 = vld [vmem:[#allocation3] sm:$0xe] }
 0x15e   : > { %729 = vst [vmem:[#allocation3 + $0x10] sm:$0x1] %v728_v28  ;;  %v4160_v47 = vcombine.low %v2943_v16, %v2935_v14  ;;  %v2894_v16 = vld [vmem:[#allocation3 + $0x1c] sm:$0x1] }
 0x160   : > { %v2243_v34 = vpop.permute.xlu1 %2242  ;;  %v2353_v35 = vpop.permute.xlu0 %2352 }
 0x161   : > { %v2561_v60 = vsel %vm2545_vm12, %v2544_v1, %v2243_v34  ;;  %v2576_v49 = vsel %vm2562_vm13, %v2559_v61, %v2353_v35  ;;  %v759_v34 = vsel %vm5540_vm2, 0, %v758_v15  ;;  %v748_v35 = vld [vmem:[#allocation3 + $0x48] sm:$0x1]  ;;  %v768_v1 = vsel %vm5540_vm2, 0, %v767_v48  ;;  %v739_v61 = vld [vmem:[#allocation3 + $0x30] sm:$0x1] }
 0x162   : > { %760 = vst [vmem:[#allocation3 + $0x14] sm:$0x1] %v759_v34  ;;  %769 = vst [vmem:[#allocation3 + $0x2c] sm:$0x1] %v768_v1  ;;  %v740_v63 = vsel %vm5525_vm1, 0, %v739_v61 }
 0x163   : > { %741 = vst [vmem:[#allocation3 + $0x30] sm:$0x1] %v740_v63 }
 0x164   : > { %v2351_v54 = vpop.permute.xlu1 %2350  ;;  %v2445_v7 = vpop.permute.xlu0 %2444 }
 0x165   : > { %v2574_v18 = vsel %vm2562_vm13, %v2557_v3, %v2351_v54  ;;  %v2589_v50 = vsel %vm2579_vm14, %v2572_v10, %v2445_v7  ;;  %v749_v54 = vsel %vm5525_vm1, 0, %v748_v35 }
 0x166   : > { %750 = vst [vmem:[#allocation3 + $0x48] sm:$0x1] %v749_v54 }
 0x168   : > { %v2355_v55 = vpop.permute.xlu1 %2354  ;;  %v2449_v45 = vpop.permute.xlu0 %2448 }
 0x169   : > { %v2578_v40 = vsel %vm2562_vm13, %v2561_v60, %v2355_v55  ;;  %v2593_v4 = vsel %vm2579_vm14, %v2576_v49, %v2449_v45  ;;  %v5657_v55 = vld [vmem:[#allocation3] sm:$0xf]  ;;  %v770_v60 = vld [vmem:[#allocation3 + $0x34] sm:$0x1] }
 0x16a   : > { %v4152_v23 = vcombine.low %v5657_v55, %v2935_v14  ;;  %v745_v45 = vld [vmem:[#allocation3 + $0x40] sm:$0x1]  ;;  %v771_v58 = vsel %vm5540_vm2, 0, %v770_v60  ;;  %v2891_v14 = vld [vmem:[#allocation3 + $0x18] sm:$0xf] }
 0x16b   : > { %v746_v41 = vsel %vm5525_vm1, 0, %v745_v45  ;;  %772 = vst [vmem:[#allocation3 + $0x34] sm:$0x1] %v771_v58  ;;  %v5683_v49 = vld [vmem:[%s6104_s7] ss:$0 sm:$0xff] }
 0x16c   : > { %v2447_v46 = vpop.permute.xlu1 %2446  ;;  %v3041_v33 = vshrl.u32 %v4152_v23, 16  ;;  %v3043_v56 = vshll.u32 %v4152_v23, 16  ;;  %747 = vst [vmem:[#allocation3 + $0x40] sm:$0x1] %v746_v41  ;;  %v2897_v41 = vld [vmem:[#allocation3 + $0x20] sm:$0xf] }
 0x16d   : > { %v2591_v0 = vsel %vm2579_vm14, %v2574_v18, %v2447_v46  ;;  %v2983_v27 = vld [vmem:[#allocation3 + $0x48] sm:$0xf]  ;;  %v3136_v18 = vrot.slane %v4160_v47, 1  ;;  %v742_v46 = vld [vmem:[#allocation3 + $0x38] sm:$0x1] }
 0x16e   : > { %v4133_v38 = vcombine.low %v2589_v50, %v2591_v0  ;;  %v4199_v7 = vcombine.low %v2983_v27, %v2983_v27  ;;  %v4207_v29 = vcombine.low %v2983_v27, %v2991_v8  ;;  %v3045_v3 = vrot.slane %v3043_v56, 1  ;;  %v736_v0 = vld [vmem:[#allocation3 + $0x28] sm:$0x1] }
 0x16f   : > { %v743_v43 = vsel %vm5525_vm1, 0, %v742_v46  ;;  %v774_v50 = vsel %vm5540_vm2, 0, %v773_v31  ;;  %v737_v44 = vsel %vm5525_vm1, 0, %v736_v0 }
 0x170   : > { %v2451_v12 = vpop.permute.xlu1 %2450  ;;  %4403 = vmatprep.mubr.msk.bf16.mxu0 %vm2636_vm15, %v4133_v38  ;;  %3382 = vrot.lane.b32.xlu1 %v4199_v7, %s4622_s28  ;;  %v3458_v26 = vshrl.u32 %v4207_v29, 16  ;;  %v3460_v53 = vshll.u32 %v4207_v29, 16  ;;  %v3046_v10 = vor.u32 %v3045_v3, %v3041_v33  ;;  %744 = vst [vmem:[#allocation3 + $0x38] sm:$0x1] %v743_v43  ;;  %775 = vst [vmem:[#allocation3 + $0x3c] sm:$0x1] %v774_v50 }
 0x171   : > { %v2595_v6 = vsel %vm2579_vm14, %v2578_v40, %v2451_v12  ;;  %738 = vst [vmem:[#allocation3 + $0x28] sm:$0x1] %v737_v44  ;;  %v776_v38 = vld [vmem:[#allocation3 + $0x44] sm:$0x1]  ;;  %v5688_v12 = vld [vmem:[%s6105_s8] ss:$0 sm:$0xff] }
 0x172   : > { %v4134_v9 = vcombine.low %v2593_v4, %v2595_v6  ;;  %v3462_v57 = vrot.slane %v3460_v53, 1  ;;  %3096 = vrot.lane.b32.xlu0 %v3046_v10, %s4615_s20  ;;  %v777_v42 = vsel %vm5540_vm2, 0, %v776_v38  ;;  %v2879_v10 = vld [vmem:[#allocation3 + $0x8] sm:$0xf] }
 0x173   : > { %778 = vst [vmem:[#allocation3 + $0x44] sm:$0x1] %v777_v42  ;;  %v2900_v42 = vld [vmem:[#allocation3 + $0x24] sm:$0x1] }
 0x174   : > { %4404 = vmatmul.mubr.msk.bf16.gmra.mxu0 %vm2636_vm15, %v4134_v9  ;;  %v3463_v32 = vor.u32 %v3462_v57, %v3458_v26 }
 0x176   : > { %3478 = vrot.lane.b32.xlu1 %v3463_v32, %s4623_s30  ;;  %3144 = vrot.lane.b32.xlu0 %v3136_v18, %s4618_s23  ;;  %v2882_v18 = vld [vmem:[#allocation3 + $0xc] sm:$0x1] }
 0x1dc   : > { %v4401_v40 = vpop.f32.mrf.mxu0 }
 0x1dd   : > { %v2727_v11 = vmul.f32 %v4401_v40, %v5683_v49 }
 0x1de   : > { %v2687_v21 = vpop.f32.mrf.mxu0 }
 0x1df   : > { %v2742_v4 = vadd.f32 %v5688_v12, %v2727_v11  ;;  %v2725_v2 = vmul.f32 %v5683_v49, %v2687_v21 }
 0x1e0   : > { %v4402_v6 = vpop.f32.mrf.mxu0 }
 0x1e1   : > { %vm2750_vm0 = vcmp.ge.f32.partialorder %v2742_v4, 0.0  ;;  %v2758_v9 = vmul.f32 0.1, %v2742_v4  ;;  %v2740_v51 = vadd.f32 %v5688_v12, %v2725_v2  ;;  %v2728_v15 = vmul.f32 %v4402_v6, %v5683_v49  ;;  %v2888_v2 = vld [vmem:[#allocation3 + $0x14] sm:$0x1] }
 0x1e2   : > { %v2690_v28 = vpop.f32.mrf.mxu0 }
 0x1e3   : > { %v2766_v34 = vsel %vm2750_vm0, %v2742_v4, %v2758_v9  ;;  %vm2748_vm11 = vcmp.ge.f32.partialorder %v2740_v51, 0.0  ;;  %v2756_v35 = vmul.f32 0.1, %v2740_v51  ;;  %v2743_v54 = vadd.f32 %v5688_v12, %v2728_v15  ;;  %v2885_v4 = vld [vmem:[#allocation3 + $0x10] sm:$0xf] }
 0x1e4   : > { %v4282_v59 = vpack.c.bf16 %v2766_v34, %v2766_v34  ;;  %v2726_v36 = vmul.f32 %v5683_v49, %v2690_v28 }
 0x1e5   : > { %v2764_v5 = vsel %vm2748_vm11, %v2740_v51, %v2756_v35  ;;  %vm2751_vm2 = vcmp.ge.f32.partialorder %v2743_v54, 0.0  ;;  %v2759_v24 = vmul.f32 0.1, %v2743_v54  ;;  %vm3634_vm11 = vcmask 457728  }
 0x1e6   : > { %v2813_v22 = vshrl.u32 %v4282_v59, 16  ;;  %v4280_v17 = vpack.c.bf16 %v2764_v5, %v2764_v5  ;;  %v2741_v27 = vadd.f32 %v5688_v12, %v2726_v36  ;;  %v2816_v29 = vshll.u32 %v4282_v59, 16 }
 0x1e7   : > { %v2767_v8 = vsel %vm2751_vm2, %v2743_v54, %v2759_v24  ;;  %vm3651_vm2 = vcmask 523264  }
 0x1e8   : > { %v2815_v7 = vrot.slane %v2813_v22, 7  ;;  %v2797_v23 = vshrl.u32 %v4280_v17, 16  ;;  %v4283_v26 = vpack.c.bf16 %v2767_v8, %v2767_v8  ;;  %v2800_v33 = vshll.u32 %v4280_v17, 16 }
 0x1e9   : > { %vm2749_vm10 = vcmp.ge.f32.partialorder %v2741_v27, 0.0  ;;  %v2757_v56 = vmul.f32 0.1, %v2741_v27 }
 0x1ea   : > { %v2818_v57 = vor.u32 %v2816_v29, %v2815_v7  ;;  %v2819_v3 = vrot.slane %v2815_v7, 4  ;;  %v2799_v32 = vrot.slane %v2797_v23, 7  ;;  %v2821_v47 = vshrl.u32 %v4283_v26, 16 }
 0x1eb   : > { %v2765_v46 = vsel %vm2749_vm10, %v2741_v27, %v2757_v56  ;;  %v2824_v44 = vshll.u32 %v4283_v26, 16 }
 0x1ec   : > { %v2892_v31 = vsel %vm5700_vm8, %v2818_v57, %v2891_v14  ;;  %v2895_v43 = vsel %vm5525_vm1, %v2819_v3, %v2894_v16  ;;  %v2802_v50 = vor.u32 %v2800_v33, %v2799_v32  ;;  %v2803_v0 = vrot.slane %v2799_v32, 4 }
 0x1ed   : > { %2893 = vst [vmem:[#allocation3 + $0x18] sm:$0xf] %v2892_v31  ;;  %2896 = vst [vmem:[#allocation3 + $0x1c] sm:$0x1] %v2895_v43  ;;  %v2823_v48 = vrot.slane %v2821_v47, 7  ;;  %v4281_v1 = vpack.c.bf16 %v2765_v46, %v2765_v46 }
 0x1ee   : > { %v2880_v45 = vsel %vm5700_vm8, %v2802_v50, %v2879_v10  ;;  %v2883_v38 = vsel %vm5525_vm1, %v2803_v0, %v2882_v18 }
 0x1ef   : > { %2881 = vst [vmem:[#allocation3 + $0x8] sm:$0xf] %v2880_v45  ;;  %2884 = vst [vmem:[#allocation3 + $0xc] sm:$0x1] %v2883_v38  ;;  %v2826_v61 = vor.u32 %v2824_v44, %v2823_v48  ;;  %v2827_v60 = vrot.slane %v2823_v48, 4  ;;  %v2805_v63 = vshrl.u32 %v4281_v1, 16 }
 0x1f0   : > { %v2808_v21 = vshll.u32 %v4281_v1, 16 }
 0x1f1   : > { %v2898_v58 = vsel %vm5700_vm8, %v2826_v61, %v2897_v41  ;;  %v2901_v40 = vsel %vm5525_vm1, %v2827_v60, %v2900_v42  ;;  %v2807_v11 = vrot.slane %v2805_v63, 7 }
 0x1f2   : > { %2899 = vst [vmem:[#allocation3 + $0x20] sm:$0xf] %v2898_v58  ;;  %2902 = vst [vmem:[#allocation3 + $0x24] sm:$0x1] %v2901_v40 }
 0x1f3   : > { %v2810_v6 = vor.u32 %v2808_v21, %v2807_v11  ;;  %v2811_v9 = vrot.slane %v2807_v11, 4 }
 0x1f4   : > { %v2977_v51 = vld [vmem:[#allocation3 + $0x18] sm:$0xf]  ;;  %v2938_v28 = vld [vmem:[#allocation3 + $0x1c] sm:$0x1] }
 0x1f5   : > { %v2953_v15 = vld [vmem:[#allocation3 + $0x18] sm:$0xf]  ;;  %v2886_v34 = vsel %vm5700_vm8, %v2810_v6, %v2885_v4  ;;  %v2889_v35 = vsel %vm5525_vm1, %v2811_v9, %v2888_v2  ;;  %v4193_v54 = vcombine.low %v2977_v51, %v2977_v51  ;;  %v2985_v5 = vld [vmem:[#allocation3 + $0x1c] sm:$0x1] }
 0x1f6   : > { %v4170_v59 = vcombine.low %v2953_v15, %v2953_v15  ;;  %v2946_v36 = vld [vmem:[#allocation3 + $0x18] sm:$0xe]  ;;  %2887 = vst [vmem:[#allocation3 + $0x10] sm:$0xf] %v2886_v34  ;;  %2890 = vst [vmem:[#allocation3 + $0x14] sm:$0x1] %v2889_v35  ;;  %v4201_v40 = vcombine.low %v2977_v51, %v2985_v5 }
 0x1f7   : > { %v4163_v24 = vcombine.low %v2946_v36, %v2938_v28  ;;  %v5720_v22 = vld [vmem:[#allocation3 + $0x8] sm:$0xf]  ;;  %v2993_v17 = vld [vmem:[#allocation3 + $0x18] sm:$0xe]  ;;  %v2961_v27 = vld [vmem:[#allocation3 + $0x1c] sm:$0x1]  ;;  %3370 = vrot.lane.b32.xlu1 %v4193_v54, %s4622_s28 }
 0x1f8   : > { %3188 = vrot.lane.b32.xlu0 %v4170_v59, %s4617_s22  ;;  %v2969_v8 = vld [vmem:[#allocation3 + $0x18] sm:$0xe]  ;;  %v4168_v14 = vcombine.low %v5720_v22, %v5720_v22  ;;  %v4209_v23 = vcombine.low %v2993_v17, %v2985_v5  ;;  %v2959_v16 = vld [vmem:[#allocation3 + $0xc] sm:$0x1]  ;;  %v2967_v33 = vld [vmem:[#allocation3 + $0x8] sm:$0xe]  ;;  %v4178_v32 = vcombine.low %v2953_v15, %v2961_v27 }
 0x1f9   : > { %v3139_v7 = vrot.slane %v4163_v24, 1  ;;  %v5724_v29 = vld [vmem:[#allocation3 + $0x18] sm:$0xf]  ;;  %v4186_v26 = vcombine.low %v2969_v8, %v2961_v27  ;;  %v2936_v56 = vld [vmem:[#allocation3 + $0xc] sm:$0x1]  ;;  %v4184_v18 = vcombine.low %v2967_v33, %v2959_v16  ;;  %v3418_v35 = vshll.u32 %v4201_v40, 16 }
 0x1fa   : > { %v2944_v57 = vld [vmem:[#allocation3 + $0x8] sm:$0xe]  ;;  %v4155_v3 = vcombine.low %v5724_v29, %v2938_v28  ;;  %v3505_v47 = vrot.slane %v4209_v23, 1  ;;  %v5733_v50 = vld [vmem:[#allocation3 + $0x20] sm:$0xf]  ;;  %v3241_v0 = vshll.u32 %v4178_v32, 16  ;;  %v4176_v17 = vcombine.low %v5720_v22, %v2959_v16 }
 0x1fb   : > { %3150 = vrot.lane.b32.xlu1 %v3139_v7, %s4618_s23  ;;  %v3322_v10 = vrot.slane %v4186_v26, 1  ;;  %v4161_v46 = vcombine.low %v2944_v57, %v2936_v56  ;;  %v3320_v31 = vrot.slane %v4184_v18, 1  ;;  %v5735_v44 = vld [vmem:[#allocation3 + $0x20] sm:$0xf]  ;;  %v4194_v38 = vcombine.low %v5733_v50, %v5733_v50  ;;  %v5750_v11 = vld [vmem:[#allocation3 + $0x8] sm:$0xf] }
 0x1fc   : > { %3184 = vrot.lane.b32.xlu0 %v4168_v14, %s4617_s22  ;;  %v3064_v48 = vshll.u32 %v4155_v3, 16  ;;  %v4171_v41 = vcombine.low %v5735_v44, %v5735_v44  ;;  %v3243_v42 = vrot.slane %v3241_v0, 1  ;;  %v3239_v63 = vshrl.u32 %v4178_v32, 16  ;;  %v5752_v2 = vld [vmem:[#allocation3 + $0x24] sm:$0x1] }
 0x1fd   : > { %v3137_v43 = vrot.slane %v4161_v46, 1  ;;  %v2976_v1 = vld [vmem:[#allocation3 + $0x10] sm:$0xf]  ;;  %v5737_v45 = vld [vmem:[#allocation3 + $0x14] sm:$0x1]  ;;  %v3062_v58 = vshrl.u32 %v4155_v3, 16  ;;  %v4153_v34 = vcombine.low %v5750_v11, %v2936_v56 }
 0x1fe   : > { %v3066_v61 = vrot.slane %v3064_v48, 1  ;;  %v5746_v60 = vcombine.low %v2976_v1, %v5737_v45  ;;  %v3244_v21 = vor.u32 %v3243_v42, %v3239_v63  ;;  %v2994_v6 = vld [vmem:[#allocation3 + $0x20] sm:$0xe]  ;;  %v5754_v9 = vld [vmem:[#allocation3 + $0x10] sm:$0xf]  ;;  %v4192_v51 = vcombine.low %v2976_v1, %v2976_v1 }
 0x1ff   : > { %3514 = vrot.lane.b32.xlu1 %v3505_v47, %s4624_s15  ;;  %v5756_v15 = vld [vmem:[#allocation3 + $0x24] sm:$0x1]  ;;  %v2970_v28 = vld [vmem:[#allocation3 + $0x20] sm:$0xe]  ;;  %v4169_v54 = vcombine.low %v5754_v9, %v5754_v9  ;;  %v4210_v59 = vcombine.low %v2994_v6, %v5752_v2  ;;  %v3420_v27 = vrot.slane %v3418_v35, 1  ;;  %v3050_v23 = vshll.u32 %v4153_v34, 16 }
 0x200   : > { %3332 = vrot.lane.b32.xlu0 %v3322_v10, %s4625_s16  ;;  %v3067_v4 = vor.u32 %v3066_v61, %v3062_v58  ;;  %v4187_v36 = vcombine.low %v2970_v28, %v5756_v15  ;;  %v5765_v5 = vld [vmem:[#allocation3 + $0x24] sm:$0x1]  ;;  %v2947_v24 = vld [vmem:[#allocation3 + $0x20] sm:$0xe]  ;;  %v3416_v26 = vshrl.u32 %v4201_v40, 16  ;;  %v3227_v22 = vshll.u32 %v4176_v17, 16 }
 0x201   : > { %v3506_v8 = vrot.slane %v4210_v59, 1  ;;  %v4164_v14 = vcombine.low %v2947_v24, %v5765_v5  ;;  %v5771_v33 = vld [vmem:[#allocation3 + $0x14] sm:$0x1]  ;;  %v2945_v56 = vld [vmem:[#allocation3 + $0x10] sm:$0xe]  ;;  %v3052_v32 = vrot.slane %v3050_v23, 1 }
 0x202   : > { %v3323_v7 = vrot.slane %v4187_v36, 1  ;;  %v3421_v57 = vor.u32 %v3420_v27, %v3416_v26  ;;  %v4162_v47 = vcombine.low %v2945_v56, %v5771_v33  ;;  %v5776_v16 = vld [vmem:[#allocation3 + $0x14] sm:$0x1]  ;;  %v2968_v10 = vld [vmem:[#allocation3 + $0x10] sm:$0xe]  ;;  %v3048_v18 = vshrl.u32 %v4153_v34, 16 }
 0x203   : > { %3146 = vrot.lane.b32.xlu1 %v3137_v43, %s4618_s23  ;;  %v3140_v3 = vrot.slane %v4164_v14, 1  ;;  %v4185_v43 = vcombine.low %v2968_v10, %v5776_v16  ;;  %v3229_v0 = vrot.slane %v3227_v22, 1  ;;  %v2992_v48 = vld [vmem:[#allocation3 + $0x10] sm:$0xe]  ;;  %v3225_v1 = vshrl.u32 %v4176_v17, 16 }
 0x204   : > { %3328 = vrot.lane.b32.xlu0 %v3320_v31, %s4625_s16  ;;  %v3053_v46 = vor.u32 %v3052_v32, %v3048_v18  ;;  %v3138_v31 = vrot.slane %v4162_v47, 1  ;;  %v4208_v42 = vcombine.low %v2992_v48, %v5737_v45  ;;  %v2918_v47 = vld [vmem:[#allocation3 + $0x3c] sm:$0x1]  ;;  %v2906_v48 = vld [vmem:[#allocation3 + $0x2c] sm:$0x1]  ;;  %v4177_v19 = vcombine.low %v5754_v9, %v5776_v16 }
 0x206   : > { %v3504_v61 = vrot.slane %v4208_v42, 1 }
 0x207   : > { %3190 = vrot.lane.b32.xlu1 %v4171_v41, %s4617_s22  ;;  %v3230_v41 = vor.u32 %v3229_v0, %v3225_v1  ;;  %v2903_v0 = vld [vmem:[#allocation3 + $0x28] sm:$0xf] }
 0x208   : > { %3372 = vrot.lane.b32.xlu0 %v4194_v38, %s4622_s28  ;;  %v3321_v38 = vrot.slane %v4185_v43, 1  ;;  %v4179_v43 = vcombine.low %v5735_v44, %v5756_v15  ;;  %v4202_v44 = vcombine.low %v5733_v50, %v5752_v2 }
 0x20a   : > { %v3423_v53 = vshrl.u32 %v4202_v44, 16 }
 0x20b   : > { %3102 = vrot.lane.b32.xlu1 %v3067_v4, %s4615_s20 }
 0x20c   : > { %3284 = vrot.lane.b32.xlu0 %v3244_v21, %s4621_s24 }
 0x20f   : > { %3186 = vrot.lane.b32.xlu1 %v4169_v54, %s4617_s22 }
 0x210   : > { %3368 = vrot.lane.b32.xlu0 %v4192_v51, %s4622_s28 }
 0x213   : > { %3334 = vrot.lane.b32.xlu1 %v3323_v7, %s4625_s16 }
 0x214   : > { %3516 = vrot.lane.b32.xlu0 %v3506_v8, %s4624_s15 }
 0x217   : > { %3466 = vrot.lane.b32.xlu1 %v3421_v57, %s4623_s30  ;;  %v2915_v57 = vld [vmem:[#allocation3 + $0x38] sm:$0xf] }
 0x218   : > { %3152 = vrot.lane.b32.xlu0 %v3140_v3, %s4618_s23 }
 0x21b   : > { %3098 = vrot.lane.b32.xlu1 %v3053_v46, %s4615_s20 }
 0x21c   : > { %3148 = vrot.lane.b32.xlu0 %v3138_v31, %s4618_s23 }
 0x21f   : > { %3330 = vrot.lane.b32.xlu1 %v3321_v38, %s4625_s16 }
 0x220   : > { %3280 = vrot.lane.b32.xlu0 %v3230_v41, %s4621_s24 }
 0x224   : > { %3512 = vrot.lane.b32.xlu0 %v3504_v61, %s4624_s15  ;;  %v5801_v61 = vld [vmem:[#allocation3 + $0x20] sm:$0xf] }
 0x234   : > { %v4405_v63 = vpop.f32.mrf.mxu0 }
 0x235   : > { %v2731_v58 = vmul.f32 %v4405_v63, %v5683_v49 }
 0x236   : > { %v2703_v40 = vpop.f32.mrf.mxu0 }
 0x237   : > { %v2746_v21 = vadd.f32 %v5688_v12, %v2731_v58  ;;  %v2729_v4 = vmul.f32 %v5683_v49, %v2703_v40 }
 0x238   : > { %v4406_v6 = vpop.f32.mrf.mxu0 }
 0x239   : > { %vm2754_vm4 = vcmp.ge.f32.partialorder %v2746_v21, 0.0  ;;  %v2762_v28 = vmul.f32 0.1, %v2746_v21  ;;  %v2744_v45 = vadd.f32 %v5688_v12, %v2729_v4  ;;  %v2732_v34 = vmul.f32 %v4406_v6, %v5683_v49  ;;  %v2921_v4 = vld [vmem:[#allocation3 + $0x40] sm:$0xf] }
 0x23a   : > { %v2706_v35 = vpop.f32.mrf.mxu0  ;;  %v2924_v6 = vld [vmem:[#allocation3 + $0x44] sm:$0x1] }
 0x23b   : > { %v2770_v51 = vsel %vm2754_vm4, %v2746_v21, %v2762_v28  ;;  %vm2752_vm13 = vcmp.ge.f32.partialorder %v2744_v45, 0.0  ;;  %v2760_v54 = vmul.f32 0.1, %v2744_v45  ;;  %v2747_v59 = vadd.f32 %v5688_v12, %v2732_v34 }
 0x23c   : > { %v4286_v36 = vpack.c.bf16 %v2770_v51, %v2770_v51  ;;  %v2730_v24 = vmul.f32 %v5683_v49, %v2706_v35  ;;  %v4156_v35 = vcombine.low %v5801_v61, %v5765_v5  ;;  %v3248_v51 = vshll.u32 %v4179_v43, 16 }
 0x23d   : > { %v2768_v17 = vsel %vm2752_vm13, %v2744_v45, %v2760_v54  ;;  %vm2755_vm15 = vcmp.ge.f32.partialorder %v2747_v59, 0.0  ;;  %v2763_v27 = vmul.f32 0.1, %v2747_v59 }
 0x23e   : > { %v2845_v8 = vshrl.u32 %v4286_v36, 16  ;;  %v4284_v7 = vpack.c.bf16 %v2768_v17, %v2768_v17  ;;  %v2745_v14 = vadd.f32 %v5688_v12, %v2730_v24  ;;  %v2848_v56 = vshll.u32 %v4286_v36, 16  ;;  %v2909_v36 = vld [vmem:[#allocation3 + $0x30] sm:$0xf]  ;;  %v2912_v24 = vld [vmem:[#allocation3 + $0x34] sm:$0x1] }
 0x23f   : > { %v2771_v23 = vsel %vm2755_vm15, %v2747_v59, %v2763_v27  ;;  %v3425_v17 = vshll.u32 %v4202_v44, 16  ;;  %v3250_v5 = vrot.slane %v3248_v51, 1  ;;  %v5857_v51 = vpop.permute.xlu1 %3382 }
 0x240   : > { %v2847_v26 = vrot.slane %v2845_v8, 7  ;;  %v2829_v3 = vshrl.u32 %v4284_v7, 16  ;;  %v4287_v32 = vpack.c.bf16 %v2771_v23, %v2771_v23  ;;  %v2832_v22 = vshll.u32 %v4284_v7, 16 }
 0x241   : > { %vm2753_vm0 = vcmp.ge.f32.partialorder %v2745_v14, 0.0  ;;  %v2761_v10 = vmul.f32 0.1, %v2745_v14 }
 0x242   : > { %v2850_v18 = vor.u32 %v2848_v56, %v2847_v26  ;;  %v2851_v46 = vrot.slane %v2847_v26, 4  ;;  %v2831_v49 = vrot.slane %v2829_v3, 7  ;;  %v2853_v31 = vshrl.u32 %v4287_v32, 16 }
 0x243   : > { %v2769_v12 = vsel %vm2753_vm0, %v2745_v14, %v2761_v10  ;;  %v2856_v58 = vshll.u32 %v4287_v32, 16  ;;  %v3427_v32 = vrot.slane %v3425_v17, 1 }
 0x244   : > { %v2916_v1 = vsel %vm5700_vm8, %v2850_v18, %v2915_v57  ;;  %v2919_v38 = vsel %vm5525_vm1, %v2851_v46, %v2918_v47  ;;  %v2834_v41 = vor.u32 %v2832_v22, %v2831_v49  ;;  %v2835_v42 = vrot.slane %v2831_v49, 4  ;;  %v5829_v22 = vld [vmem:[#allocation3 + $0x10] sm:$0xf] }
 0x245   : > { %2917 = vst [vmem:[#allocation3 + $0x38] sm:$0xf] %v2916_v1  ;;  %2920 = vst [vmem:[#allocation3 + $0x3c] sm:$0x1] %v2919_v38  ;;  %v2855_v63 = vrot.slane %v2853_v31, 7  ;;  %v4285_v40 = vpack.c.bf16 %v2769_v12, %v2769_v12  ;;  %v3071_v57 = vshll.u32 %v4156_v35, 16  ;;  %v3428_v46 = vor.u32 %v3427_v32, %v3423_v53  ;;  %v5873_v32 = vpop.permute.xlu1 %3478 }
 0x246   : > { %v2904_v15 = vsel %vm5700_vm8, %v2834_v41, %v2903_v0  ;;  %v2907_v21 = vsel %vm5525_vm1, %v2835_v42, %v2906_v48  ;;  %v3246_v47 = vshrl.u32 %v4179_v43, 16  ;;  %v3069_v43 = vshrl.u32 %v4156_v35, 16 }
 0x247   : > { %2905 = vst [vmem:[#allocation3 + $0x28] sm:$0xf] %v2904_v15  ;;  %2908 = vst [vmem:[#allocation3 + $0x2c] sm:$0x1] %v2907_v21  ;;  %v2858_v28 = vor.u32 %v2856_v58, %v2855_v63  ;;  %v2859_v45 = vrot.slane %v2855_v63, 4  ;;  %v2837_v34 = vshrl.u32 %v4285_v40, 16  ;;  %v4154_v48 = vcombine.low %v5829_v22, %v5771_v33 }
 0x248   : > { %v2840_v59 = vshll.u32 %v4285_v40, 16  ;;  %v3251_v10 = vor.u32 %v3250_v5, %v3246_v47  ;;  %v3073_v18 = vrot.slane %v3071_v57, 1  ;;  %v3234_v12 = vshll.u32 %v4177_v19, 16 }
 0x249   : > { %v2922_v50 = vsel %vm5700_vm8, %v2858_v28, %v2921_v4  ;;  %v2925_v2 = vsel %vm5525_vm1, %v2859_v45, %v2924_v6  ;;  %v2839_v54 = vrot.slane %v2837_v34, 7  ;;  %v3057_v63 = vshll.u32 %v4154_v48, 16  ;;  %v3677_v6 = vld [vmem:[%s6107_s10] sm:$0x3] }
 0x24a   : > { %2923 = vst [vmem:[#allocation3 + $0x40] sm:$0xf] %v2922_v50  ;;  %2926 = vst [vmem:[#allocation3 + $0x44] sm:$0x1] %v2925_v2  ;;  %v3074_v16 = vor.u32 %v3073_v18, %v3069_v43  ;;  %v3236_v58 = vrot.slane %v3234_v12, 1  ;;  %v3232_v4 = vshrl.u32 %v4177_v19, 16  ;;  %v3097_v50 = vpop.permute.xlu0 %3096  ;;  %4436 = vmatprep.subr.msk.bf16.mxu1 %vm2649_vm5, %v3677_v6  ;;  %v853_v53 = vpack.c.bf16 %v5070_v20, %v5023_v62 }
 0x24b   : > { %v2842_v27 = vor.u32 %v2840_v59, %v2839_v54  ;;  %v2843_v8 = vrot.slane %v2839_v54, 4  ;;  %v3059_v28 = vrot.slane %v3057_v63, 1  ;;  %v3411_v2 = vshll.u32 %v5746_v60, 16  ;;  %v4590_v19 = vld [vmem:[%s6106_s9 + $0x20] ss:$0 sps:$4 sm:$0xff]  }
 0x24c   : > { %v5815_v7 = vld [vmem:[#allocation3 + $0x38] sm:$0xf]  ;;  %v2942_v31 = vld [vmem:[#allocation3 + $0x3c] sm:$0x1]  ;;  %v3237_v34 = vor.u32 %v3236_v58, %v3232_v4  ;;  %v3691_v5 = vsel %vm2649_vm5, %v3677_v6, 0  ;;  %vm3818_vm5 = vcmask 1043456   ;;  %v855_v12 = vpack.c.bf16 %v5414_v13, %v5385_v39 }
 0x24d   : > { %v5817_v14 = vld [vmem:[#allocation3 + $0x38] sm:$0xf]  ;;  %v2910_v23 = vsel %vm5700_vm8, %v2842_v27, %v2909_v36  ;;  %v2913_v26 = vsel %vm5525_vm1, %v2843_v8, %v2912_v24  ;;  %v4197_v56 = vcombine.low %v5815_v7, %v5815_v7  ;;  %v2965_v38 = vld [vmem:[#allocation3 + $0x3c] sm:$0x1]  ;;  %v3055_v24 = vshrl.u32 %v4154_v48, 16  ;;  %4408 = vmatpush3.bf16.msra.mxu1 %v3691_v5 }
 0x24e   : > { %2911 = vst [vmem:[#allocation3 + $0x30] sm:$0xf] %v2910_v23  ;;  %2914 = vst [vmem:[#allocation3 + $0x34] sm:$0x1] %v2913_v26  ;;  %v4174_v3 = vcombine.low %v5817_v14, %v5817_v14  ;;  %v5833_v49 = vld [vmem:[#allocation3 + $0x28] sm:$0xf]  ;;  %v3145_v47 = vpop.permute.xlu0 %3144  ;;  %v4182_v62 = vcombine.low %v5817_v14, %v2965_v38  ;;  %4437 = vmatprep.subr.msk.bf16.mxu1 %vm3818_vm5, %v4590_v19 }
 0x24f   : > { %3378 = vrot.lane.b32.xlu1 %v4197_v56, %s4622_s28  ;;  %v2950_v0 = vld [vmem:[#allocation3 + $0x38] sm:$0xe]  ;;  %v4195_v1 = vcombine.low %v5833_v49, %v5833_v49  ;;  %v5842_v41 = vld [vmem:[#allocation3 + $0x28] sm:$0xf]  ;;  %v5845_v44 = vld [vmem:[#allocation3 + $0x2c] sm:$0x1]  ;;  %v3060_v26 = vor.u32 %v3059_v28, %v3055_v24  ;;  %v852_v56 = vpack.c.bf16 %v5033_v25, %v4989_v52  ;;  %v854_v52 = vpack.c.bf16 %v5405_v30, %v5356_v37 }
 0x250   : > { %3196 = vrot.lane.b32.xlu0 %v4174_v3, %s4617_s22  ;;  %v4167_v9 = vcombine.low %v2950_v0, %v2942_v31  ;;  %v2973_v42 = vld [vmem:[#allocation3 + $0x38] sm:$0xe]  ;;  %v4172_v33 = vcombine.low %v5842_v41, %v5842_v41  ;;  %v2995_v21 = vld [vmem:[#allocation3 + $0x28] sm:$0xe]  ;;  %v5861_v59 = vld [vmem:[#allocation3 + $0x2c] sm:$0x1]  ;;  %v3530_v30 = vsel %vm2477_vm7, %v5657_v55, %v3097_v50  ;;  %v4203_v50 = vcombine.low %v5833_v49, %v5845_v44 }
 0x251   : > { %v4190_v15 = vcombine.low %v2973_v42, %v2965_v38  ;;  %v5854_v45 = vld [vmem:[#allocation3 + $0x38] sm:$0xf]  ;;  %v4211_v35 = vcombine.low %v2995_v21, %v5845_v44  ;;  %v2948_v36 = vld [vmem:[#allocation3 + $0x28] sm:$0xe]  ;;  %v3413_v23 = vrot.slane %v3411_v2, 1  ;;  %4409 = vmatprep.mubr.msk.bf16.mxu1 %vm2452_vm6, %v852_v56  ;;  %v4592_v55 = vld [vmem:[%s6106_s9 + $0x10] sm:$0xff]   ;;  %v3553_v63 = vsel %vm2511_vm9, %v3530_v30, %v3145_v47 }
 0x252   : > { %v3143_v40 = vrot.slane %v4167_v9, 1  ;;  %v4159_v17 = vcombine.low %v5854_v45, %v2942_v31  ;;  %v4165_v8 = vcombine.low %v2948_v36, %v5861_v59  ;;  %v5871_v57 = vld [vmem:[#allocation3 + $0x2c] sm:$0x1]  ;;  %v2971_v3 = vld [vmem:[#allocation3 + $0x28] sm:$0xe]  ;;  %4410 = vmatmul.mubr.msk.bf16.vlgmr.msra.gmra.mxu1 %vm2452_vm6, %v853_v53  ;;  %v4591_v37 = vld [vmem:[%s6106_s9 + $0x18] sm:$0xff]  }
 0x253   : > { %3286 = vrot.lane.b32.xlu1 %v3251_v10, %s4621_s24  ;;  %v3326_v54 = vrot.slane %v4190_v15, 1  ;;  %v3507_v27 = vrot.slane %v4211_v35, 1  ;;  %v3409_v10 = vshrl.u32 %v5746_v60, 16  ;;  %v5888_v31 = vld [vmem:[#allocation3 + $0x40] sm:$0xf]  ;;  %4413 = vmatprep.mubr.msk.bf16.mxu1 %vm2452_vm6, %v854_v52  ;;  %v3820_v60 = vsel %vm3818_vm5, %v4590_v19, 0 }
 0x254   : > { %3468 = vrot.lane.b32.xlu0 %v3428_v46, %s4623_s30  ;;  %v3092_v25 = vshll.u32 %v4159_v17, 16  ;;  %v3141_v18 = vrot.slane %v4165_v8, 1  ;;  %v4188_v46 = vcombine.low %v2971_v3, %v5871_v57  ;;  %4418 = vmatpush3.bf16.msra.mxu1 %v3820_v60  ;;  %v4175_v0 = vcombine.low %v5888_v31, %v5888_v31  ;;  %v2982_v42 = vld [vmem:[#allocation3 + $0x40] sm:$0xf]  ;;  %v2966_v4 = vld [vmem:[#allocation3 + $0x44] sm:$0x1] }
 0x255   : > { %v3414_v20 = vor.u32 %v3413_v23, %v3409_v10  ;;  %4419 = vmatprep.subr.bf16.mxu1 %v4591_v37  ;;  %v3269_v9 = vshll.u32 %v4182_v62, 16  ;;  %v3090_v38 = vshrl.u32 %v4159_v17, 16  ;;  %v5916_v58 = vld [vmem:[#allocation3 + $0x30] sm:$0xf]  ;;  %v4198_v21 = vcombine.low %v2982_v42, %v2982_v42  ;;  %v2974_v6 = vld [vmem:[#allocation3 + $0x40] sm:$0xe] }
 0x256   : > { %v3094_v14 = vrot.slane %v3092_v25, 1  ;;  %v4173_v2 = vcombine.low %v5916_v58, %v5916_v58  ;;  %v5935_v24 = vld [vmem:[#allocation3 + $0x28] sm:$0xf]  ;;  %v4180_v17 = vcombine.low %v5842_v41, %v5871_v57  ;;  %v2980_v8 = vld [vmem:[#allocation3 + $0x30] sm:$0xf]  ;;  %v4594_v49 = vld [vmem:[%s6106_s9] sm:$0xff]  }
 0x257   : > { %3374 = vrot.lane.b32.xlu1 %v4195_v1, %s4622_s28  ;;  %v5906_v1 = vld [vmem:[#allocation3 + $0x3c] sm:$0x1]  ;;  %v3271_v15 = vrot.slane %v3269_v9, 1  ;;  %v2941_v5 = vld [vmem:[#allocation3 + $0x34] sm:$0x1]  ;;  %v4157_v56 = vcombine.low %v5935_v24, %v5861_v59  ;;  %v4196_v57 = vcombine.low %v2980_v8, %v2980_v8  ;;  %vm3600_vm1 = vcmask 326656  }
 0x258   : > { %3104 = vrot.lane.b32.xlu0 %v3074_v16, %s4615_s20  ;;  %v3324_v16 = vrot.slane %v4188_v46, 1  ;;  %4420 = vmatpush3.bf16.msra.mxu1 %v4591_v37  ;;  %v4205_v39 = vcombine.low %v5815_v7, %v5906_v1  ;;  %v3095_v13 = vor.u32 %v3094_v14, %v3090_v38  ;;  %v3267_v7 = vshrl.u32 %v4182_v62, 16  ;;  %v2949_v23 = vld [vmem:[#allocation3 + $0x30] sm:$0xe]  ;;  %v5948_v10 = vld [vmem:[#allocation3 + $0x44] sm:$0x1] }
 0x259   : > { %4421 = vmatprep.subr.bf16.mxu1 %v4592_v55  ;;  %v4166_v47 = vcombine.low %v2949_v23, %v2941_v5  ;;  %v3255_v53 = vshll.u32 %v4180_v17, 16  ;;  %v4206_v59 = vcombine.low %v2982_v42, %v5948_v10  ;;  %v5953_v46 = vld [vmem:[#allocation3 + $0x30] sm:$0xf]  ;;  %v3430_v37 = vshrl.u32 %v4203_v50, 16  ;;  %v2988_v30 = vld [vmem:[#allocation3 + $0x34] sm:$0x1] }
 0x25a   : > { %4414 = vmatmul.mubr.msk.bf16.gmra.mxu1 %vm2452_vm6, %v855_v12  ;;  %v3446_v35 = vshll.u32 %v4205_v39, 16  ;;  %v3444_v19 = vshrl.u32 %v4205_v39, 16  ;;  %v2996_v14 = vld [vmem:[#allocation3 + $0x30] sm:$0xe]  ;;  %v4183_v12 = vcombine.low %v5888_v31, %v2966_v4  ;;  %v4158_v9 = vcombine.low %v5953_v46, %v2941_v5  ;;  %v2964_v39 = vld [vmem:[#allocation3 + $0x34] sm:$0x1] }
 0x25b   : > { %3158 = vrot.lane.b32.xlu1 %v3143_v40, %s4618_s23  ;;  %v3257_v60 = vrot.slane %v3255_v53, 1  ;;  %v2997_v53 = vld [vmem:[#allocation3 + $0x38] sm:$0xe]  ;;  %vm3617_vm6 = vcmask 392192   ;;  %vm3805_vm8 = vcmask 588800  }
 0x25c   : > { %3192 = vrot.lane.b32.xlu0 %v4172_v33, %s4617_s22  ;;  %4422 = vmatpush3.bf16.msra.mxu1 %v4592_v55  ;;  %v3448_v44 = vrot.slane %v3446_v35, 1  ;;  %v3276_v35 = vshll.u32 %v4183_v12, 16 }
 0x25e   : > { %v3449_v25 = vor.u32 %v3448_v44, %v3444_v19 }
 0x25f   : > { %3282 = vrot.lane.b32.xlu1 %v3237_v34, %s4621_s24  ;;  %v4593_v34 = vld [vmem:[%s6106_s9 + $0x8] sm:$0xff]  }
 0x260   : > { %3340 = vrot.lane.b32.xlu0 %v3326_v54, %s4625_s16  ;;  %4423 = vmatprep.subr.bf16.mxu1 %v4593_v34  ;;  %v4191_v54 = vcombine.low %v2974_v6, %v2966_v4 }
 0x261   : > { %4424 = vmatpush3.bf16.msra.mxu1 %v4593_v34  ;;  %v4181_v34 = vcombine.low %v5916_v58, %v2964_v39  ;;  %v3274_v58 = vshrl.u32 %v4183_v12, 16 }
 0x262   : > { %v3327_v3 = vrot.slane %v4191_v54, 1  ;;  %4425 = vmatprep.subr.bf16.mxu1 %v4594_v49 }
 0x263   : > { %3518 = vrot.lane.b32.xlu1 %v3507_v27, %s4624_s15  ;;  %v3272_v27 = vor.u32 %v3271_v15, %v3267_v7  ;;  %v3262_v5 = vshll.u32 %v4181_v34, 16  ;;  %v3260_v19 = vshrl.u32 %v4181_v34, 16 }
 0x264   : > { %3100 = vrot.lane.b32.xlu0 %v3060_v26, %s4615_s20  ;;  %v3432_v26 = vshll.u32 %v4203_v50, 16  ;;  %v4204_v50 = vcombine.low %v2980_v8, %v2988_v30  ;;  %v3083_v8 = vshrl.u32 %v4158_v9, 16 }
 0x265   : > { %4426 = vmatpush3.bf16.msra.mxu1 %v4594_v49 }
 0x266   : > { %v3434_v52 = vrot.slane %v3432_v26, 1  ;;  %v3439_v44 = vshll.u32 %v4204_v50, 16 }
 0x267   : > { %3154 = vrot.lane.b32.xlu1 %v3141_v18, %s4618_s23  ;;  %v3078_v18 = vshll.u32 %v4157_v56, 16 }
 0x268   : > { %3464 = vrot.lane.b32.xlu0 %v3414_v20, %s4623_s30  ;;  %v3142_v20 = vrot.slane %v4166_v47, 1  ;;  %v3441_v47 = vrot.slane %v3439_v44, 1 }
 0x269   : > { %v5900_v43 = vpop.permute.xlu1 %3370  ;;  %v3080_v55 = vrot.slane %v3078_v18, 1  ;;  %v2999_v18 = vld [vmem:[#allocation3 + $0x48] sm:$0xe] }
 0x26a   : > { %v5902_v48 = vpop.permute.xlu0 %3188 }
 0x26b   : > { %3198 = vrot.lane.b32.xlu1 %v4175_v0, %s4617_s22  ;;  %v3253_v0 = vshrl.u32 %v4180_v17, 16  ;;  %v3451_v17 = vshrl.u32 %v4206_v59, 16 }
 0x26c   : > { %3336 = vrot.lane.b32.xlu0 %v3324_v16, %s4625_s16  ;;  %v3435_v16 = vor.u32 %v3434_v52, %v3430_v37  ;;  %v2998_v52 = vld [vmem:[#allocation3 + $0x40] sm:$0xe] }
 0x26d   : > { %v5918_v40 = vpop.permute.xlu1 %3150  ;;  %v3258_v42 = vor.u32 %v3257_v60, %v3253_v0  ;;  %v4214_v37 = vcombine.low %v2998_v52, %v5948_v10 }
 0x26e   : > { %v3185_v33 = vpop.permute.xlu0 %3184 }
 0x26f   : > { %v5922_v28 = vsel %vm2545_vm12, %v3553_v63, %v3185_v33  ;;  %3110 = vrot.lane.b32.xlu1 %v3095_v13, %s4615_s20  ;;  %v4212_v63 = vcombine.low %v2996_v14, %v2988_v30  ;;  %v2972_v13 = vld [vmem:[#allocation3 + $0x30] sm:$0xe]  ;;  %v3453_v33 = vshll.u32 %v4206_v59, 16  ;;  %v4213_v59 = vcombine.low %v2997_v53, %v5906_v1  ;;  %v4604_v30 = vld [vmem:[#allocation3 + $0x4c] sm:$0x1] }
 0x270   : > { %3380 = vrot.lane.b32.xlu0 %v4198_v21, %s4622_s28  ;;  %v3076_v21 = vshrl.u32 %v4157_v56, 16  ;;  %v4189_v7 = vcombine.low %v2972_v13, %v2964_v39  ;;  %v4215_v14 = vcombine.low %v2999_v18, %v4604_v30  ;;  %v3510_v12 = vrot.slane %v4214_v37, 1 }
 0x271   : > { %v5933_v36 = vpop.permute.xlu1 %3514  ;;  %v3455_v54 = vrot.slane %v3453_v33, 1  ;;  %v3509_v0 = vrot.slane %v4213_v59, 1 }
 0x272   : > { %v3081_v4 = vor.u32 %v3080_v55, %v3076_v21  ;;  %v5973_v26 = vpop.permute.xlu0 %3332 }
 0x273   : > { %3194 = vrot.lane.b32.xlu1 %v4173_v2, %s4617_s22  ;;  %v3508_v2 = vrot.slane %v4212_v63, 1  ;;  %v3456_v23 = vor.u32 %v3455_v54, %v3451_v17 }
 0x274   : > { %3292 = vrot.lane.b32.xlu0 %v3272_v27, %s4621_s24  ;;  %v3278_v27 = vrot.slane %v3276_v35, 1 }
 0x275   : > { %v5946_v41 = vpop.permute.xlu1 %3146 }
 0x276   : > { %v3279_v56 = vor.u32 %v3278_v27, %v3274_v58  ;;  %v3329_v60 = vpop.permute.xlu0 %3328 }
 0x277   : > { %3342 = vrot.lane.b32.xlu1 %v3327_v3, %s4625_s16  ;;  %v3264_v3 = vrot.slane %v3262_v5, 1 }
 0x278   : > { %3376 = vrot.lane.b32.xlu0 %v4196_v57, %s4622_s28 }
 0x279   : > { %v3191_v62 = vpop.permute.xlu1 %3190 }
 0x27b   : > { %3474 = vrot.lane.b32.xlu1 %v3449_v25, %s4623_s30  ;;  %v3437_v25 = vshrl.u32 %v4204_v50, 16 }
 0x27c   : > { %3156 = vrot.lane.b32.xlu0 %v3142_v20, %s4618_s23  ;;  %s446_s23 = scalar_lea.vmem %s6108_s11, %s4748_s19 }
 0x27d   : > { %v3103_v38 = vpop.permute.xlu1 %3102  ;;  %v3442_v20 = vor.u32 %v3441_v47, %v3437_v25 }
 0x27e   : > { %v3539_v15 = vsel %vm2477_vm7, %v5724_v29, %v3103_v38  ;;  %v3085_v29 = vshll.u32 %v4158_v9, 16  ;;  %v3511_v9 = vrot.slane %v4215_v14, 1 }
 0x27f   : > { %3470 = vrot.lane.b32.xlu1 %v3435_v16, %s4623_s30  ;;  %v3559_v6 = vsel %vm2511_vm9, %v3539_v15, %v5918_v40  ;;  %v3325_v40 = vrot.slane %v4189_v7, 1  ;;  %v5983_v16 = vpop.permute.xlu0 %3372 }
 0x280   : > { %3288 = vrot.lane.b32.xlu0 %v3258_v42, %s4621_s24  ;;  %v5966_v31 = vsel %vm2545_vm12, %v3559_v6, %v3191_v62  ;;  %v3087_v49 = vrot.slane %v3085_v29, 1  ;;  %v3265_v62 = vor.u32 %v3264_v3, %v3260_v19 }
 0x281   : > { %v3187_v10 = vpop.permute.xlu1 %3186 }
 0x282   : > { %v3088_v57 = vor.u32 %v3087_v49, %v3083_v8 }
 0x283   : > { %3106 = vrot.lane.b32.xlu1 %v3081_v4, %s4615_s20  ;;  %v3285_v1 = vpop.permute.xlu0 %3284 }
 0x284   : > { %3520 = vrot.lane.b32.xlu0 %v3508_v2, %s4624_s15 }
 0x285   : > { %v3335_v42 = vpop.permute.xlu1 %3334 }
 0x287   : > { %3338 = vrot.lane.b32.xlu1 %v3325_v40, %s4625_s16  ;;  %v3369_v55 = vpop.permute.xlu0 %3368 }
 0x288   : > { %3476 = vrot.lane.b32.xlu0 %v3456_v23, %s4623_s30 }
 0x289   : > { %v3467_v39 = vpop.permute.xlu1 %3466 }
 0x28b   : > { %3294 = vrot.lane.b32.xlu1 %v3279_v56, %s4621_s24  ;;  %v5986_v38 = vpop.permute.xlu0 %3516 }
 0x28c   : > { %3108 = vrot.lane.b32.xlu0 %v3088_v57, %s4615_s20 }
 0x28d   : > { %v3099_v33 = vpop.permute.xlu1 %3098 }
 0x28e   : > { %v3533_v54 = vsel %vm2477_vm7, %v5750_v11, %v3099_v33 }
 0x28f   : > { %3290 = vrot.lane.b32.xlu1 %v3265_v62, %s4621_s24  ;;  %v5988_v63 = vpop.permute.xlu0 %3152  ;;  %v3555_v17 = vsel %vm2511_vm9, %v3533_v54, %v5946_v41 }
 0x290   : > { %3472 = vrot.lane.b32.xlu0 %v3442_v20, %s4623_s30  ;;  %v3571_v27 = vsel %vm2545_vm12, %v3555_v17, %v3187_v10 }
 0x291   : > { %v3331_v21 = vpop.permute.xlu1 %3330 }
 0x293   : > { %3522 = vrot.lane.b32.xlu1 %v3509_v0, %s4624_s15  ;;  %v3149_v13 = vpop.permute.xlu0 %3148 }
 0x294   : > { %3524 = vrot.lane.b32.xlu0 %v3510_v12, %s4624_s15 }
 0x297   : > { %3526 = vrot.lane.b32.xlu1 %v3511_v9, %s4624_s15  ;;  %v3281_v15 = vpop.permute.xlu0 %3280 }
 0x298   : > { %v3585_v58 = vsel %vm2579_vm14, %v5922_v28, %v3281_v15 }
 0x299   : > { %v3602_v56 = vsel %vm3600_vm1, %v3585_v58, %v3329_v60 }
 0x29a   : > { %v3619_v47 = vsel %vm3617_vm6, %v3602_v56, %v3369_v55 }
 0x29b   : > { %v3513_v6 = vpop.permute.xlu0 %3512 }
 0x2c1   : > { %v5990_v4 = vpop.permute.xlu1 %3378 }
 0x2c2   : > { %v5992_v34 = vpop.permute.xlu0 %3196 }
 0x2c5   : > { %v3287_v7 = vpop.permute.xlu1 %3286 }
 0x2c6   : > { %v3469_v35 = vpop.permute.xlu0 %3468 }
 0x2c9   : > { %v3375_v50 = vpop.permute.xlu1 %3374 }
 0x2ca   : > { %v3105_v2 = vpop.permute.xlu0 %3104 }
 0x2cd   : > { %v5996_v29 = vpop.permute.xlu1 %3158 }
 0x2ce   : > { %v3193_v40 = vpop.permute.xlu0 %3192 }
 0x2d1   : > { %v3283_v5 = vpop.permute.xlu1 %3282 }
 0x2d2   : > { %v3587_v23 = vsel %vm2579_vm14, %v3571_v27, %v3283_v5  ;;  %v6002_v49 = vpop.permute.xlu0 %3340 }
 0x2d3   : > { %v3604_v44 = vsel %vm3600_vm1, %v3587_v23, %v3331_v21 }
 0x2d4   : > { %v3621_v8 = vsel %vm3617_vm6, %v3604_v44, %v5900_v43 }
 0x2d5   : > { %v3519_v11 = vpop.permute.xlu1 %3518  ;;  %v3638_v57 = vsel %vm3634_vm11, %v3621_v8, %v3467_v39 }
 0x2d6   : > { %v3101_v41 = vpop.permute.xlu0 %3100  ;;  %v3655_v28 = vsel %vm3651_vm2, %v3638_v57, %v5933_v36 }
 0x2d7   : > { %v3536_v18 = vsel %vm2477_vm7, %v5829_v22, %v3101_v41  ;;  %v3591_v22 = vsel %vm2579_vm14, %v5966_v31, %v3287_v7 }
 0x2d8   : > { %v3557_v59 = vsel %vm2511_vm9, %v3536_v18, %v3149_v13  ;;  %v3608_v13 = vsel %vm3600_vm1, %v3591_v22, %v3335_v42 }
 0x2d9   : > { %v3155_v3 = vpop.permute.xlu1 %3154  ;;  %v3573_v37 = vsel %vm2545_vm12, %v3557_v59, %v5902_v48  ;;  %v3625_v33 = vsel %vm3617_vm6, %v3608_v13, %v3375_v50 }
 0x2da   : > { %v3465_v53 = vpop.permute.xlu0 %3464  ;;  %v3589_v14 = vsel %vm2579_vm14, %v3573_v37, %v3285_v1 }
 0x2db   : > { %v3636_v19 = vsel %vm3634_vm11, %v3619_v47, %v3465_v53  ;;  %v3606_v12 = vsel %vm3600_vm1, %v3589_v14, %v5973_v26 }
 0x2dc   : > { %v3653_v52 = vsel %vm3651_vm2, %v3636_v19, %v3513_v6  ;;  %v3623_v10 = vsel %vm3617_vm6, %v3606_v12, %v5983_v16  ;;  %v3542_v16 = vsel %vm2477_vm7, %v5801_v61, %v3105_v2 }
 0x2dd   : > { %v4220_v43 = vcombine.low %v3653_v52, %v3655_v28  ;;  %v3199_v25 = vpop.permute.xlu1 %3198  ;;  %v3640_v48 = vsel %vm3634_vm11, %v3623_v10, %v3469_v35  ;;  %v3561_v50 = vsel %vm2511_vm9, %v3542_v16, %v5988_v63 }
 0x2de   : > { %v3337_v62 = vpop.permute.xlu0 %3336  ;;  %v3657_v26 = vsel %vm3651_vm2, %v3640_v48, %v5986_v38  ;;  %v3577_v38 = vsel %vm2545_vm12, %v3561_v50, %v3193_v40 }
 0x2df   : > { %4427 = vmatprep.mubr.msk.bf16.mxu1 %vm3805_vm8, %v4220_v43 }
 0x2e1   : > { %v3111_v20 = vpop.permute.xlu1 %3110 }
 0x2e2   : > { %v3381_v60 = vpop.permute.xlu0 %3380  ;;  %v3551_v42 = vsel %vm2477_vm7, %v5854_v45, %v3111_v20 }
 0x2e3   : > { %v3567_v5 = vsel %vm2511_vm9, %v3551_v42, %v5996_v29 }
 0x2e4   : > { %v3583_v58 = vsel %vm2545_vm12, %v3567_v5, %v3199_v25 }
 0x2e5   : > { %v3195_v30 = vpop.permute.xlu1 %3194 }
 0x2e6   : > { %v3293_v36 = vpop.permute.xlu0 %3292 }
 0x2e9   : > { %v3343_v0 = vpop.permute.xlu1 %3342 }
 0x2ea   : > { %v3377_v9 = vpop.permute.xlu0 %3376 }
 0x2ed   : > { %v3475_v55 = vpop.permute.xlu1 %3474 }
 0x2ee   : > { %v3157_v39 = vpop.permute.xlu0 %3156 }
 0x2f1   : > { %v3471_v1 = vpop.permute.xlu1 %3470 }
 0x2f2   : > { %v3642_v15 = vsel %vm3634_vm11, %v3625_v33, %v3471_v1  ;;  %v3289_v21 = vpop.permute.xlu0 %3288 }
 0x2f3   : > { %v3659_v31 = vsel %vm3651_vm2, %v3642_v15, %v3519_v11  ;;  %v3593_v23 = vsel %vm2579_vm14, %v3577_v38, %v3289_v21 }
 0x2f4   : > { %v4221_v6 = vcombine.low %v3657_v26, %v3659_v31  ;;  %v3610_v45 = vsel %vm3600_vm1, %v3593_v23, %v3337_v62 }
 0x2f5   : > { %v3107_v7 = vpop.permute.xlu1 %3106 }
 0x2f6   : > { %v3521_v54 = vpop.permute.xlu0 %3520  ;;  %4428 = vmatmul.mubr.msk.bf16.vlgmr.msra.gmra.mxu1 %vm3805_vm8, %v4221_v6  ;;  %v3545_v27 = vsel %vm2477_vm7, %v5935_v24, %v3107_v7 }
 0x2f7   : > { %v3563_v61 = vsel %vm2511_vm9, %v3545_v27, %v3155_v3  ;;  %v3627_v3 = vsel %vm3617_vm6, %v3610_v45, %v3377_v9 }
 0x2f8   : > { %v3579_v11 = vsel %vm2545_vm12, %v3563_v61, %v3195_v30 }
 0x2f9   : > { %v3339_v35 = vpop.permute.xlu1 %3338 }
 0x2fa   : > { %v3477_v17 = vpop.permute.xlu0 %3476 }
 0x2fd   : > { %v3295_v44 = vpop.permute.xlu1 %3294 }
 0x2fe   : > { %v3109_v2 = vpop.permute.xlu0 %3108  ;;  %v3599_v40 = vsel %vm2579_vm14, %v3583_v58, %v3295_v44 }
 0x2ff   : > { %v3548_v63 = vsel %vm2477_vm7, %v5953_v46, %v3109_v2  ;;  %v3616_v47 = vsel %vm3600_vm1, %v3599_v40, %v3343_v0 }
 0x300   : > { %v3565_v24 = vsel %vm2511_vm9, %v3548_v63, %v3157_v39  ;;  %v3633_v62 = vsel %vm3617_vm6, %v3616_v47, %v5857_v51 }
 0x301   : > { %v3581_v29 = vsel %vm2545_vm12, %v3565_v24, %v5992_v34  ;;  %v3291_v8 = vpop.permute.xlu1 %3290 }
 0x302   : > { %v3597_v41 = vsel %vm2579_vm14, %v3581_v29, %v3293_v36  ;;  %v3595_v56 = vsel %vm2579_vm14, %v3579_v11, %v3291_v8  ;;  %v3473_v57 = vpop.permute.xlu0 %3472 }
 0x303   : > { %v3612_v46 = vsel %vm3600_vm1, %v3595_v56, %v3339_v35  ;;  %v3644_v53 = vsel %vm3634_vm11, %v3627_v3, %v3473_v57  ;;  %v3614_v19 = vsel %vm3600_vm1, %v3597_v41, %v6002_v49  ;;  %v3650_v49 = vsel %vm3634_vm11, %v3633_v62, %v5873_v32 }
 0x304   : > { %v3629_v34 = vsel %vm3617_vm6, %v3612_v46, %v5990_v4  ;;  %v3631_v28 = vsel %vm3617_vm6, %v3614_v19, %v3381_v60  ;;  %v3661_v25 = vsel %vm3651_vm2, %v3644_v53, %v3521_v54 }
 0x305   : > { %v3646_v52 = vsel %vm3634_vm11, %v3629_v34, %v3475_v55  ;;  %v3523_v43 = vpop.permute.xlu1 %3522  ;;  %v3648_v20 = vsel %vm3634_vm11, %v3631_v28, %v3477_v17 }
 0x306   : > { %v3663_v18 = vsel %vm3651_vm2, %v3646_v52, %v3523_v43  ;;  %v3525_v37 = vpop.permute.xlu0 %3524 }
 0x307   : > { %v4222_v59 = vcombine.low %v3661_v25, %v3663_v18  ;;  %v3665_v60 = vsel %vm3651_vm2, %v3648_v20, %v3525_v37 }
 0x309   : > { %v3527_v4 = vpop.permute.xlu1 %3526  ;;  %4431 = vmatprep.mubr.msk.bf16.mxu1 %vm3805_vm8, %v4222_v59 }
 0x30a   : > { %v3667_v30 = vsel %vm3651_vm2, %v3650_v49, %v3527_v4 }
 0x30b   : > { %v4223_v36 = vcombine.low %v3665_v60, %v3667_v30 }
 0x30d   : > { %4432 = vmatmul.mubr.msk.bf16.gmra.mxu1 %vm3805_vm8, %v4223_v36 }
 0x312   : > { %v4411_v14 = vpop.f32.mrf.mxu1 }
 0x314   : > { %v3727_v51 = vpop.f32.mrf.mxu1 }
 0x316   : > { %v4412_v0 = vpop.f32.mrf.mxu1 }
 0x318   : > { %v3730_v12 = vpop.f32.mrf.mxu1 }
 0x31a   : > { %v4415_v9 = vpop.f32.mrf.mxu1 }
 0x31c   : > { %v3743_v22 = vpop.f32.mrf.mxu1 }
 0x31e   : > { %v4416_v55 = vpop.f32.mrf.mxu1 }
 0x320   : > { %v3746_v10 = vpop.f32.mrf.mxu1 }
 0x3b6   : > { %v4429_v32 = vpop.f32.mrf.mxu1 }
 0x3b7   : > { %v3865_v39 = vadd.f32 %v4429_v32, %v4411_v14 }
 0x3b8   : > { %v3856_v13 = vpop.f32.mrf.mxu1 }
 0x3b9   : > { %v4290_v48 = vpack.c.bf16 %v3865_v39, %v3865_v39  ;;  %v3857_v33 = vadd.f32 %v3856_v13, %v3727_v51 }
 0x3ba   : > { %v4430_v1 = vpop.f32.mrf.mxu1 }
 0x3bb   : > { %3921 = vst.msk [vmem:[%s446_s23 + $0x8] sm:$0xf] %vm712_vm3, %v4290_v48  ;;  %v4288_v15 = vpack.c.bf16 %v3857_v33, %v3857_v33  ;;  %v3868_v21 = vadd.f32 %v4430_v1, %v4412_v0 }
 0x3bc   : > { %v3859_v26 = vpop.f32.mrf.mxu1 }
 0x3bd   : > { %3919 = vst.msk [vmem:[%s446_s23] sm:$0xf] %vm712_vm3, %v4288_v15  ;;  %v4291_v31 = vpack.c.bf16 %v3868_v21, %v3868_v21  ;;  %v3860_v6 = vadd.f32 %v3859_v26, %v3730_v12 }
 0x3bf   : > { %3922 = vst.msk [vmem:[%s446_s23 + $0xc] sm:$0xf] %vm712_vm3, %v4291_v31  ;;  %v4289_v7 = vpack.c.bf16 %v3860_v6, %v3860_v6 }
 0x3c1   : > { %3920 = vst.msk [vmem:[%s446_s23 + $0x4] sm:$0xf] %vm712_vm3, %v4289_v7 }
 0x3cd   : > { %v4433_v54 = vpop.f32.mrf.mxu1 }
 0x3ce   : > { %v3881_v16 = vadd.f32 %v4433_v54, %v4415_v9 }
 0x3cf   : > { %v3872_v42 = vpop.f32.mrf.mxu1 }
 0x3d0   : > { %v4294_v35 = vpack.c.bf16 %v3881_v16, %v3881_v16  ;;  %v3873_v50 = vadd.f32 %v3872_v42, %v3743_v22 }
 0x3d1   : > { %v4434_v17 = vpop.f32.mrf.mxu1 }
 0x3d2   : > { %3925 = vst.msk [vmem:[%s446_s23 + $0x18] sm:$0xf] %vm712_vm3, %v4294_v35  ;;  %v4292_v38 = vpack.c.bf16 %v3873_v50, %v3873_v50  ;;  %v3884_v27 = vadd.f32 %v4434_v17, %v4416_v55 }
 0x3d3   : > { %v3875_v5 = vpop.f32.mrf.mxu1 }
 0x3d4   : > { %3923 = vst.msk [vmem:[%s446_s23 + $0x10] sm:$0xf] %vm712_vm3, %v4292_v38  ;;  %v4295_v23 = vpack.c.bf16 %v3884_v27, %v3884_v27  ;;  %v3876_v44 = vadd.f32 %v3875_v5, %v3746_v10 }
 0x3d6   : > { %3926 = vst.msk [vmem:[%s446_s23 + $0x1c] sm:$0xf] %vm712_vm3, %v4295_v23  ;;  %v4293_v61 = vpack.c.bf16 %v3876_v44, %v3876_v44 }
 0x3d8   : > { %3924 = vst.msk [vmem:[%s446_s23 + $0x14] sm:$0xf] %vm712_vm3, %v4293_v61 }
 0x3d9 PF: > { %s21_s17 = sadd.s32 1, %s4611_s17  }
 0x3da   : > { %p18_p4 = scmp.ge.s32.totalorder %s21_s17, 4  }
 0x3dc   :  { %20 = sbr.rel (!%p18_p4) target bundleno = 1 (0x1), region = 113 }

</bundles_post_ra>
